<compile_context>
chip_gen: v5e
topology: v5e:2x2
jax: 0.10.0
libtpu: 0.0.40
codegen_flags: <defaults>
</compile_context>

<pallas_src>
import math

import jax
import jax.numpy as jnp
from jax.experimental import pallas as pl
from jax.experimental.pallas import tpu as pltpu

_HIGHEST = jax.lax.Precision.HIGHEST


def _softmax_last(x):
    """Numerically-stable softmax over the last axis (exact divide)."""
    m = jnp.max(x, axis=-1, keepdims=True)
    e = jnp.exp(x - m)
    s = jnp.sum(e, axis=-1, keepdims=True)
    return e / s


def boundary_kernel(f_b_ref, f_w_ref, f_s_ref, f_m_ref,
                    qmask_ref, lmask_row_ref, lmask_col_ref,
                    wq_ref, bq_ref, wk_ref, bk_ref,
                    out_ref, a_ref):
    """One (batch-block, j-chunk) grid step."""
    j = pl.program_id(1)

    bt, lb, d = f_b_ref.shape
    lw = f_w_ref.shape[1]
    tj = f_m_ref.shape[2]
    nj = a_ref.shape[0]
    inv_sqrt_d = 1.0 / math.sqrt(d)

    f_s = f_s_ref[...]                        # (BT, 1, D) f32 (used in both phases)

    # ---------------- attention phase: only at the first j chunk ----------------
    @pl.when(j == 0)
    def _attention_phase():
        f_b = f_b_ref[...]                    # (BT, Lb, D)
        f_w = f_w_ref[...]                    # (BT, Lw, D)
        qmask = qmask_ref[...]                # (BT, 1, Lw)
        lmask_row = lmask_row_ref[...]        # (BT, 1, Lb)
        f_b_mask = lmask_col_ref[...]         # (BT, Lb, 1)

        # Attention(f_b, f_w, f_w, query_mask).  Fold the batch block into M so
        # the projections are a single bigger MXU matmul instead of BT tiny ones.
        q = jnp.dot(f_b.reshape(bt * lb, d), wq_ref[...],
                    preferred_element_type=jnp.float32,
                    precision=_HIGHEST) + bq_ref[...]
        k = jnp.dot(f_w.reshape(bt * lw, d), wk_ref[...],
                    preferred_element_type=jnp.float32,
                    precision=_HIGHEST) + bk_ref[...]
        q = q.reshape(bt, lb, d)
        k = k.reshape(bt, lw, d)

        attn = jnp.einsum('bld,bmd->blm', q, k,
                          preferred_element_type=jnp.float32,
                          precision=_HIGHEST) * inv_sqrt_d
        # (attn * mask) before the fill is redundant for a 0/1 mask -> dropped.
        attn = jnp.where(qmask == 0.0, -1e9, attn)
        attn = _softmax_last(attn)
        f_baq = jnp.einsum('blm,bmd->bld', attn, f_w,
                           preferred_element_type=jnp.float32,
                           precision=_HIGHEST)

        # Boundary self-attention.
        f_baq = f_baq * f_b_mask
        f_bq = f_b * (f_baq + f_s)
        a = jnp.einsum('bid,bjd->bij', f_bq, f_bq,
                       preferred_element_type=jnp.float32,
                       precision=_HIGHEST) * inv_sqrt_d
        a = jnp.where(lmask_row == 0.0, -1e9, a)
        a = _softmax_last(a)
        a = a * f_b_mask                       # zero rows of padded boundaries

        # Stash A for the streamed gated-memory reduction, pre-sliced per chunk
        # so each j step only does a cheap leading-axis index a_ref[j].
        for jj in range(nj):                   # static unroll
            a_ref[jj] = a[:, :, jj * tj:(jj + 1) * tj]

        f_bb = jnp.einsum('bij,bjd->bid', a, f_b,
                          preferred_element_type=jnp.float32,
                          precision=_HIGHEST) * f_b_mask

        # Initialize the resident output accumulator.
        out_ref[...] = f_bb + f_b

    # ------------- gated memory aggregation: streamed over j chunks -------------
    # f_m arrives in its storage dtype (bf16 recommended); up-cast the current
    # chunk to f32 and accumulate in f32 (v5e-safe, matches f32 reference).
    f_m_c = f_m_ref[...].astype(jnp.float32)           # (BT, Lb, TJ, D)
    g_m = jax.nn.sigmoid(f_m_c * f_s[:, :, None, :])   # sigmoid -> EUP slot
    a_c = a_ref[j]                                      # (BT, Lb, TJ)
    out_ref[...] += jnp.sum(a_c[..., None] * (g_m * f_m_c), axis=2)


def _pick_tj(lb, d, bt, fm_dtype, budget_bytes):
    """Largest TJ dividing Lb (respecting the dtype sublane tiling) whose
    (BT, Lb, TJ, D) f_m chunk fits the byte budget (keeps the double-buffered
    f_m window well inside v7x's 64 MiB VMEM)."""
    itemsize = jnp.dtype(fm_dtype).itemsize
    sub = 16 if itemsize == 2 else 8
    tj = lb
    while (bt * lb * tj * d * itemsize > budget_bytes
           and tj % 2 == 0
           and (tj // 2) % sub == 0
           and lb % (tj // 2) == 0):
        tj //= 2
    return tj


def boundary_unit(f_b, f_w, f_s, f_m, query_mask, length_mask,
                  wq_t, bq, wk_t, bk, *, bt=None, tj=None,
                  fm_block_budget_bytes=4 * 1024 * 1024):
    B, Lb, D = f_b.shape
    Lw = f_w.shape[1]
    f32 = jnp.float32

    if bt is None:
        bt = 1
        while B % (bt * 2) == 0 and (bt * 2) * Lb <= 512:
            bt *= 2
    assert B % bt == 0, "batch block must divide B"

    # f_m is streamed in its storage dtype (pass bf16 to halve HBM traffic);
    # it is up-cast to f32 chunk-by-chunk inside the kernel.
    if tj is None:
        tj = _pick_tj(Lb, D, bt, f_m.dtype, fm_block_budget_bytes)
    assert Lb % tj == 0, "TJ must divide Lb"
    nj = Lb // tj

    f_s_r = f_s.reshape(B, 1, D).astype(f32)
    qmask_r = query_mask.astype(f32).reshape(B, 1, Lw)
    lmask_row = length_mask.astype(f32).reshape(B, 1, Lb)
    # Column-layout copy of the length mask is shipped as a (tiny) extra input
    # rather than transposed in-kernel: it is DMA'd once per batch block only.
    lmask_col = length_mask.astype(f32).reshape(B, Lb, 1)
    bq_r = bq.reshape(1, D).astype(f32)
    bk_r = bk.reshape(1, D).astype(f32)

    grid = (B // bt, nj)

    return pl.pallas_call(
        boundary_kernel,
        out_shape=jax.ShapeDtypeStruct((B, Lb, D), f32),
        grid_spec=pltpu.PrefetchScalarGridSpec(
            num_scalar_prefetch=0,
            grid=grid,
            in_specs=[
                pl.BlockSpec((bt, Lb, D), lambda b, j: (b, 0, 0)),          # f_b
                pl.BlockSpec((bt, Lw, D), lambda b, j: (b, 0, 0)),          # f_w
                pl.BlockSpec((bt, 1, D), lambda b, j: (b, 0, 0)),           # f_s
                pl.BlockSpec((bt, Lb, tj, D), lambda b, j: (b, 0, j, 0)),   # f_m (j-chunked)
                pl.BlockSpec((bt, 1, Lw), lambda b, j: (b, 0, 0)),          # query_mask (row)
                pl.BlockSpec((bt, 1, Lb), lambda b, j: (b, 0, 0)),          # length_mask (row)
                pl.BlockSpec((bt, Lb, 1), lambda b, j: (b, 0, 0)),          # length_mask (col)
                pl.BlockSpec((D, D), lambda b, j: (0, 0)),                  # W_q^T
                pl.BlockSpec((1, D), lambda b, j: (0, 0)),                  # b_q
                pl.BlockSpec((D, D), lambda b, j: (0, 0)),                  # W_k^T
                pl.BlockSpec((1, D), lambda b, j: (0, 0)),                  # b_k
            ],
            out_specs=pl.BlockSpec((bt, Lb, D), lambda b, j: (b, 0, 0)),
            scratch_shapes=[pltpu.VMEM((nj, bt, Lb, tj), jnp.float32)],     # A chunks
        ),
        compiler_params=pltpu.CompilerParams(
            dimension_semantics=("parallel", "arbitrary"),
            vmem_limit_bytes=32 * 1024 * 1024,
        ),
    )(f_b.astype(f32), f_w.astype(f32), f_s_r, f_m,
      qmask_r, lmask_row, lmask_col,
      wq_t.astype(f32), bq_r, wk_t.astype(f32), bk_r)


def boundary_unit_reference(f_b, f_w, f_s, f_m, query_mask, length_mask,
                            wq_t, bq, wk_t, bk):
    """Pure-JAX reference mirroring the PyTorch forward exactly (f32 math)."""
    B, Lb, D = f_b.shape
    inv_sqrt_d = 1.0 / math.sqrt(D)
    f32 = jnp.float32
    f_b = f_b.astype(f32)
    f_w = f_w.astype(f32)
    f_s = f_s.astype(f32)
    f_m = f_m.astype(f32)

    q = jnp.einsum('bld,de->ble', f_b, wq_t.astype(f32),
                   precision=_HIGHEST) + bq.astype(f32)
    k = jnp.einsum('bld,de->ble', f_w, wk_t.astype(f32),
                   precision=_HIGHEST) + bk.astype(f32)
    attn = jnp.einsum('bld,bmd->blm', q, k, precision=_HIGHEST) * inv_sqrt_d
    qm = query_mask.astype(f32)[:, None, :]
    attn = attn * qm
    attn = jnp.where(qm == 0.0, -1e9, attn)
    attn = jax.nn.softmax(attn, axis=-1)
    f_baq = jnp.einsum('blm,bmd->bld', attn, f_w, precision=_HIGHEST)

    f_b_mask = length_mask.astype(f32)[:, :, None]
    f_baq = f_baq * f_b_mask
    f_bq = f_b * (f_baq + f_s[:, None, :])
    A = jnp.einsum('bid,bjd->bij', f_bq, f_bq, precision=_HIGHEST) * inv_sqrt_d
    lm = length_mask.astype(f32)[:, None, :]
    A = A * lm
    A = jnp.where(lm == 0.0, -1e9, A)
    A = jax.nn.softmax(A, axis=-1)
    A = A * f_b_mask
    f_bb = jnp.einsum('bij,bjd->bid', A, f_b, precision=_HIGHEST) * f_b_mask

    g_m = jax.nn.sigmoid(f_m * f_s[:, None, None, :])
    f_bm = jnp.sum(A[..., None] * (g_m * f_m), axis=2)
    return f_bb + f_b + f_bm


if __name__ == "__main__":
    # Small shapes, but big enough to exercise batch-blocking (BT=2 -> 2 batch
    # steps) and f_m j-chunking (TJ=16 -> 2 chunks per batch block).
    B, Lb, Lw, D = 4, 32, 8, 32

    key = jax.random.PRNGKey(0)
    k1, k2, k3, k4, k5, k6, k7, k8 = jax.random.split(key, 8)

    f_b = jax.random.normal(k1, (B, Lb, D), dtype=jnp.float32)
    f_w = jax.random.normal(k2, (B, Lw, D), dtype=jnp.float32)
    f_s = jax.random.normal(k3, (B, D), dtype=jnp.float32)
    # f_m is the dominant (B, Lb, Lb, D) tensor: store it in bf16 so the kernel
    # streams half the HBM bytes; it is up-cast per chunk inside the kernel.
    # The reference uses the SAME bf16-stored values, so this costs no accuracy
    # in the comparison.
    f_m = jax.random.normal(k4, (B, Lb, Lb, D), dtype=jnp.float32).astype(jnp.bfloat16)

    # Deterministic 0/1 masks with some padding positions.
    lengths_w = jnp.array([Lw, 5, Lw, 3], dtype=jnp.int32)
    lengths_b = jnp.array([Lb, 21, 7, Lb], dtype=jnp.int32)
    query_mask = (jnp.arange(Lw)[None, :] < lengths_w[:, None]).astype(jnp.float32)
    length_mask = (jnp.arange(Lb)[None, :] < lengths_b[:, None]).astype(jnp.float32)

    # Linear(D, D) parameters (stored transposed: y = x @ W^T + b).
    wq_t = 0.1 * jax.random.normal(k5, (D, D), dtype=jnp.float32)
    bq = 0.1 * jax.random.normal(k6, (D,), dtype=jnp.float32)
    wk_t = 0.1 * jax.random.normal(k7, (D, D), dtype=jnp.float32)
    bk = 0.1 * jax.random.normal(k8, (D,), dtype=jnp.float32)

    out = boundary_unit(f_b, f_w, f_s, f_m, query_mask, length_mask,
                        wq_t, bq, wk_t, bk, bt=2, tj=16)
    out = jax.block_until_ready(out)

    ref = boundary_unit_reference(f_b, f_w, f_s, f_m, query_mask, length_mask,
                                  wq_t, bq, wk_t, bk)
    ref = jax.block_until_ready(ref)

    assert out.shape == (B, Lb, D)
    assert jnp.allclose(out, ref, atol=2e-3, rtol=2e-3), (
        "mismatch vs reference, max abs diff = "
        f"{float(jnp.max(jnp.abs(out - ref)))}")

    print("KERNEL_OK")
</pallas_src>

<mosaic_0001>
module attributes {stable_mosaic.version = 11 : i64} {
  func.func @boundary_kernel(%arg0: i32, %arg1: i32, %arg2: memref<2x32x32xf32, #tpu.memory_space<vmem>>, %arg3: memref<2x8x32xf32, #tpu.memory_space<vmem>>, %arg4: memref<2x1x32xf32, #tpu.memory_space<vmem>>, %arg5: memref<2x32x16x32xbf16, #tpu.memory_space<vmem>>, %arg6: memref<2x1x8xf32, #tpu.memory_space<vmem>>, %arg7: memref<2x1x32xf32, #tpu.memory_space<vmem>>, %arg8: memref<2x32x1xf32, #tpu.memory_space<vmem>>, %arg9: memref<32x32xf32, #tpu.memory_space<vmem>>, %arg10: memref<1x32xf32, #tpu.memory_space<vmem>>, %arg11: memref<32x32xf32, #tpu.memory_space<vmem>>, %arg12: memref<1x32xf32, #tpu.memory_space<vmem>>, %arg13: memref<2x32x32xf32, #tpu.memory_space<vmem>>, %arg14: memref<2x2x32x16xf32, #tpu.memory_space<vmem>>) attributes {dimension_semantics = [#tpu.dimension_semantics<parallel>, #tpu.dimension_semantics<arbitrary>], iteration_bounds = array<i64: 2, 2>, scalar_prefetch = 0 : i64, scratch_operands = 1 : i64, tpu.core_type = #tpu.core_type<tc>, window_params = [{transform_indices = @transform_0, window_bounds = array<i64: 2, 32, 32>}, {transform_indices = @transform_1, window_bounds = array<i64: 2, 8, 32>}, {transform_indices = @transform_2, window_bounds = array<i64: 2, 1, 32>}, {transform_indices = @transform_3, window_bounds = array<i64: 2, 32, 16, 32>}, {transform_indices = @transform_4, window_bounds = array<i64: 2, 1, 8>}, {transform_indices = @transform_5, window_bounds = array<i64: 2, 1, 32>}, {transform_indices = @transform_6, window_bounds = array<i64: 2, 32, 1>}, {pipeline_mode = #tpu.pipeline_mode<synchronous>, transform_indices = @transform_7, window_bounds = array<i64: 32, 32>}, {pipeline_mode = #tpu.pipeline_mode<synchronous>, transform_indices = @transform_8, window_bounds = array<i64: 1, 32>}, {pipeline_mode = #tpu.pipeline_mode<synchronous>, transform_indices = @transform_9, window_bounds = array<i64: 32, 32>}, {pipeline_mode = #tpu.pipeline_mode<synchronous>, transform_indices = @transform_10, window_bounds = array<i64: 1, 32>}, {transform_indices = @transform_11, window_bounds = array<i64: 2, 32, 32>}]} {
    %c0 = arith.constant 0 : index
    %c0_0 = arith.constant 0 : index
    %c0_1 = arith.constant 0 : index
    %0 = vector.load %arg4[%c0, %c0_0, %c0_1] : memref<2x1x32xf32, #tpu.memory_space<vmem>>, vector<2x1x32xf32>
    %c0_i32 = arith.constant 0 : i32
    %1 = arith.cmpi eq, %arg1, %c0_i32 : i32
    %2 = arith.extui %1 : i1 to i32
    %c0_i32_2 = arith.constant 0 : i32
    %3 = arith.cmpi ne, %2, %c0_i32_2 : i32
    scf.if %3 {
      %c0_17 = arith.constant 0 : index
      %c0_18 = arith.constant 0 : index
      %c0_19 = arith.constant 0 : index
      %25 = vector.load %arg2[%c0_17, %c0_18, %c0_19] : memref<2x32x32xf32, #tpu.memory_space<vmem>>, vector<2x32x32xf32>
      %c0_20 = arith.constant 0 : index
      %c0_21 = arith.constant 0 : index
      %c0_22 = arith.constant 0 : index
      %26 = vector.load %arg3[%c0_20, %c0_21, %c0_22] : memref<2x8x32xf32, #tpu.memory_space<vmem>>, vector<2x8x32xf32>
      %c0_23 = arith.constant 0 : index
      %c0_24 = arith.constant 0 : index
      %c0_25 = arith.constant 0 : index
      %27 = vector.load %arg6[%c0_23, %c0_24, %c0_25] : memref<2x1x8xf32, #tpu.memory_space<vmem>>, vector<2x1x8xf32>
      %c0_26 = arith.constant 0 : index
      %c0_27 = arith.constant 0 : index
      %c0_28 = arith.constant 0 : index
      %28 = vector.load %arg7[%c0_26, %c0_27, %c0_28] : memref<2x1x32xf32, #tpu.memory_space<vmem>>, vector<2x1x32xf32>
      %c0_29 = arith.constant 0 : index
      %c0_30 = arith.constant 0 : index
      %c0_31 = arith.constant 0 : index
      %29 = vector.load %arg8[%c0_29, %c0_30, %c0_31] : memref<2x32x1xf32, #tpu.memory_space<vmem>>, vector<2x32x1xf32>
      %30 = vector.shape_cast %25 : vector<2x32x32xf32> to vector<64x32xf32>
      %c0_32 = arith.constant 0 : index
      %c0_33 = arith.constant 0 : index
      %31 = vector.load %arg9[%c0_32, %c0_33] : memref<32x32xf32, #tpu.memory_space<vmem>>, vector<32x32xf32>
      %cst_34 = arith.constant dense<0.000000e+00> : vector<64x32xf32>
      %32 = tpu.matmul %30, %31, %cst_34 {dimension_numbers = #tpu.dot_dimension_numbers<[1], [0], [0], [1], [0, 0, 1, 1], [], []>, precision = #tpu.contract_precision<fp32>} : vector<64x32xf32>, vector<32x32xf32>, vector<64x32xf32> -> vector<64x32xf32>
      %c0_35 = arith.constant 0 : index
      %c0_36 = arith.constant 0 : index
      %33 = vector.load %arg10[%c0_35, %c0_36] : memref<1x32xf32, #tpu.memory_space<vmem>>, vector<1x32xf32>
      %34 = vector.broadcast %33 : vector<1x32xf32> to vector<64x32xf32>
      %35 = arith.addf %32, %34 : vector<64x32xf32>
      %36 = vector.shape_cast %26 : vector<2x8x32xf32> to vector<16x32xf32>
      %c0_37 = arith.constant 0 : index
      %c0_38 = arith.constant 0 : index
      %37 = vector.load %arg11[%c0_37, %c0_38] : memref<32x32xf32, #tpu.memory_space<vmem>>, vector<32x32xf32>
      %cst_39 = arith.constant dense<0.000000e+00> : vector<16x32xf32>
      %38 = tpu.matmul %36, %37, %cst_39 {dimension_numbers = #tpu.dot_dimension_numbers<[1], [0], [0], [1], [0, 0, 1, 1], [], []>, precision = #tpu.contract_precision<fp32>} : vector<16x32xf32>, vector<32x32xf32>, vector<16x32xf32> -> vector<16x32xf32>
      %c0_40 = arith.constant 0 : index
      %c0_41 = arith.constant 0 : index
      %39 = vector.load %arg12[%c0_40, %c0_41] : memref<1x32xf32, #tpu.memory_space<vmem>>, vector<1x32xf32>
      %40 = vector.broadcast %39 : vector<1x32xf32> to vector<16x32xf32>
      %41 = arith.addf %38, %40 : vector<16x32xf32>
      %42 = vector.shape_cast %35 : vector<64x32xf32> to vector<2x32x32xf32>
      %43 = vector.shape_cast %41 : vector<16x32xf32> to vector<2x8x32xf32>
      "tpu.trace_start"() <{level = 10 : i32, message = "bld,bmd->blm"}> : () -> ()
      %cst_42 = arith.constant dense<0.000000e+00> : vector<2x32x8xf32>
      %44 = tpu.matmul %42, %43, %cst_42 {dimension_numbers = #tpu.dot_dimension_numbers<[2], [2], [1], [1], [0, 0, 0, 1, 1, 1], [0], [0]>, precision = #tpu.contract_precision<fp32>} : vector<2x32x32xf32>, vector<2x8x32xf32>, vector<2x32x8xf32> -> vector<2x32x8xf32>
      "tpu.trace_stop"() : () -> ()
      %cst_43 = arith.constant 0.176776692 : f32
      %45 = vector.broadcast %cst_43 : f32 to vector<2x32x8xf32>
      %46 = arith.mulf %44, %45 : vector<2x32x8xf32>
      %cst_44 = arith.constant 0.000000e+00 : f32
      %47 = vector.broadcast %cst_44 : f32 to vector<2x1x8xf32>
      %48 = arith.cmpf oeq, %27, %47 : vector<2x1x8xf32>
      %cst_45 = arith.constant -1.000000e+09 : f32
      %49 = vector.shape_cast %48 : vector<2x1x8xi1> to vector<2x1x8xi1>
      %50 = vector.broadcast %49 : vector<2x1x8xi1> to vector<2x32x8xi1>
      %51 = vector.broadcast %cst_45 : f32 to vector<2x32x8xf32>
      %52 = arith.select %50, %51, %46 : vector<2x32x8xi1>, vector<2x32x8xf32>
      %cst_46 = arith.constant dense<0xFF800000> : vector<2x32xf32>
      %53 = vector.multi_reduction <maximumf>, %52, %cst_46 [2] : vector<2x32x8xf32> to vector<2x32xf32>
      %54 = vector.shape_cast %53 : vector<2x32xf32> to vector<2x32x1xf32>
      %55 = vector.broadcast %54 : vector<2x32x1xf32> to vector<2x32x8xf32>
      %56 = arith.subf %52, %55 : vector<2x32x8xf32>
      %57 = math.exp %56 : vector<2x32x8xf32>
      %cst_47 = arith.constant dense<0.000000e+00> : vector<2x32xf32>
      %58 = vector.multi_reduction <add>, %57, %cst_47 [2] : vector<2x32x8xf32> to vector<2x32xf32>
      %59 = vector.shape_cast %58 : vector<2x32xf32> to vector<2x32x1xf32>
      %60 = vector.broadcast %59 : vector<2x32x1xf32> to vector<2x32x8xf32>
      %61 = arith.divf %57, %60 : vector<2x32x8xf32>
      "tpu.trace_start"() <{level = 10 : i32, message = "blm,bmd->bld"}> : () -> ()
      %cst_48 = arith.constant dense<0.000000e+00> : vector<2x32x32xf32>
      %62 = tpu.matmul %61, %26, %cst_48 {dimension_numbers = #tpu.dot_dimension_numbers<[2], [1], [1], [2], [0, 0, 0, 1, 1, 2], [0], [0]>, precision = #tpu.contract_precision<fp32>} : vector<2x32x8xf32>, vector<2x8x32xf32>, vector<2x32x32xf32> -> vector<2x32x32xf32>
      "tpu.trace_stop"() : () -> ()
      %63 = vector.broadcast %29 : vector<2x32x1xf32> to vector<2x32x32xf32>
      %64 = arith.mulf %62, %63 : vector<2x32x32xf32>
      %65 = vector.broadcast %0 : vector<2x1x32xf32> to vector<2x32x32xf32>
      %66 = arith.addf %64, %65 : vector<2x32x32xf32>
      %67 = arith.mulf %25, %66 : vector<2x32x32xf32>
      "tpu.trace_start"() <{level = 10 : i32, message = "bid,bjd->bij"}> : () -> ()
      %cst_49 = arith.constant dense<0.000000e+00> : vector<2x32x32xf32>
      %68 = tpu.matmul %67, %67, %cst_49 {dimension_numbers = #tpu.dot_dimension_numbers<[2], [2], [1], [1], [0, 0, 0, 1, 1, 1], [0], [0]>, precision = #tpu.contract_precision<fp32>} : vector<2x32x32xf32>, vector<2x32x32xf32>, vector<2x32x32xf32> -> vector<2x32x32xf32>
      "tpu.trace_stop"() : () -> ()
      %cst_50 = arith.constant 0.176776692 : f32
      %69 = vector.broadcast %cst_50 : f32 to vector<2x32x32xf32>
      %70 = arith.mulf %68, %69 : vector<2x32x32xf32>
      %cst_51 = arith.constant 0.000000e+00 : f32
      %71 = vector.broadcast %cst_51 : f32 to vector<2x1x32xf32>
      %72 = arith.cmpf oeq, %28, %71 : vector<2x1x32xf32>
      %cst_52 = arith.constant -1.000000e+09 : f32
      %73 = vector.shape_cast %72 : vector<2x1x32xi1> to vector<2x1x32xi1>
      %74 = vector.broadcast %73 : vector<2x1x32xi1> to vector<2x32x32xi1>
      %75 = vector.broadcast %cst_52 : f32 to vector<2x32x32xf32>
      %76 = arith.select %74, %75, %70 : vector<2x32x32xi1>, vector<2x32x32xf32>
      %cst_53 = arith.constant dense<0xFF800000> : vector<2x32xf32>
      %77 = vector.multi_reduction <maximumf>, %76, %cst_53 [2] : vector<2x32x32xf32> to vector<2x32xf32>
      %78 = vector.shape_cast %77 : vector<2x32xf32> to vector<2x32x1xf32>
      %79 = vector.broadcast %78 : vector<2x32x1xf32> to vector<2x32x32xf32>
      %80 = arith.subf %76, %79 : vector<2x32x32xf32>
      %81 = math.exp %80 : vector<2x32x32xf32>
      %cst_54 = arith.constant dense<0.000000e+00> : vector<2x32xf32>
      %82 = vector.multi_reduction <add>, %81, %cst_54 [2] : vector<2x32x32xf32> to vector<2x32xf32>
      %83 = vector.shape_cast %82 : vector<2x32xf32> to vector<2x32x1xf32>
      %84 = vector.broadcast %83 : vector<2x32x1xf32> to vector<2x32x32xf32>
      %85 = arith.divf %81, %84 : vector<2x32x32xf32>
      %86 = vector.broadcast %29 : vector<2x32x1xf32> to vector<2x32x32xf32>
      %87 = arith.mulf %85, %86 : vector<2x32x32xf32>
      %88 = vector.extract_strided_slice %87 {offsets = [0, 0, 0], sizes = [2, 32, 16], strides = [1, 1, 1]} : vector<2x32x32xf32> to vector<2x32x16xf32>
      %c0_55 = arith.constant 0 : index
      %c0_56 = arith.constant 0 : index
      %c0_57 = arith.constant 0 : index
      %c0_58 = arith.constant 0 : index
      %89 = vector.load %arg14[%c0_55, %c0_56, %c0_57, %c0_58] : memref<2x2x32x16xf32, #tpu.memory_space<vmem>>, vector<1x2x32x16xf32>
      %90 = vector.shape_cast %89 : vector<1x2x32x16xf32> to vector<2x32x16xf32>
      %91 = vector.shape_cast %88 : vector<2x32x16xf32> to vector<1x2x32x16xf32>
      tpu.vector_store %arg14[%c0_55, %c0_56, %c0_57, %c0_58], %91 {strides = array<i32>} : memref<2x2x32x16xf32, #tpu.memory_space<vmem>>, vector<1x2x32x16xf32>,
      %92 = vector.extract_strided_slice %87 {offsets = [0, 0, 16], sizes = [2, 32, 16], strides = [1, 1, 1]} : vector<2x32x32xf32> to vector<2x32x16xf32>
      %c1 = arith.constant 1 : index
      %c0_59 = arith.constant 0 : index
      %c0_60 = arith.constant 0 : index
      %c0_61 = arith.constant 0 : index
      %93 = vector.load %arg14[%c1, %c0_59, %c0_60, %c0_61] : memref<2x2x32x16xf32, #tpu.memory_space<vmem>>, vector<1x2x32x16xf32>
      %94 = vector.shape_cast %93 : vector<1x2x32x16xf32> to vector<2x32x16xf32>
      %95 = vector.shape_cast %92 : vector<2x32x16xf32> to vector<1x2x32x16xf32>
      tpu.vector_store %arg14[%c1, %c0_59, %c0_60, %c0_61], %95 {strides = array<i32>} : memref<2x2x32x16xf32, #tpu.memory_space<vmem>>, vector<1x2x32x16xf32>,
      "tpu.trace_start"() <{level = 10 : i32, message = "bij,bjd->bid"}> : () -> ()
      %cst_62 = arith.constant dense<0.000000e+00> : vector<2x32x32xf32>
      %96 = tpu.matmul %87, %25, %cst_62 {dimension_numbers = #tpu.dot_dimension_numbers<[2], [1], [1], [2], [0, 0, 0, 1, 1, 2], [0], [0]>, precision = #tpu.contract_precision<fp32>} : vector<2x32x32xf32>, vector<2x32x32xf32>, vector<2x32x32xf32> -> vector<2x32x32xf32>
      "tpu.trace_stop"() : () -> ()
      %97 = vector.broadcast %29 : vector<2x32x1xf32> to vector<2x32x32xf32>
      %98 = arith.mulf %96, %97 : vector<2x32x32xf32>
      %99 = arith.addf %98, %25 : vector<2x32x32xf32>
      %c0_63 = arith.constant 0 : index
      %c0_64 = arith.constant 0 : index
      %c0_65 = arith.constant 0 : index
      %100 = vector.load %arg13[%c0_63, %c0_64, %c0_65] : memref<2x32x32xf32, #tpu.memory_space<vmem>>, vector<2x32x32xf32>
      tpu.vector_store %arg13[%c0_63, %c0_64, %c0_65], %99 {strides = array<i32>} : memref<2x32x32xf32, #tpu.memory_space<vmem>>, vector<2x32x32xf32>,
    } else {
    }
    %c0_3 = arith.constant 0 : index
    %c0_4 = arith.constant 0 : index
    %c0_5 = arith.constant 0 : index
    %c0_6 = arith.constant 0 : index
    %4 = vector.load %arg5[%c0_3, %c0_4, %c0_5, %c0_6] : memref<2x32x16x32xbf16, #tpu.memory_space<vmem>>, vector<2x32x16x32xbf16>
    %5 = arith.extf %4 : vector<2x32x16x32xbf16> to vector<2x32x16x32xf32>
    %6 = vector.shape_cast %0 : vector<2x1x32xf32> to vector<2x1x1x32xf32>
    %7 = vector.broadcast %6 : vector<2x1x1x32xf32> to vector<2x32x16x32xf32>
    %8 = arith.mulf %5, %7 : vector<2x32x16x32xf32>
    %9 = arith.negf %8 : vector<2x32x16x32xf32>
    %10 = math.exp %9 : vector<2x32x16x32xf32>
    %cst = arith.constant 1.000000e+00 : f32
    %11 = vector.broadcast %cst : f32 to vector<2x32x16x32xf32>
    %12 = arith.addf %11, %10 : vector<2x32x16x32xf32>
    %13 = arith.divf %11, %12 : vector<2x32x16x32xf32>
    %14 = arith.index_cast %arg1 : i32 to index
    %c0_7 = arith.constant 0 : index
    %c0_8 = arith.constant 0 : index
    %c0_9 = arith.constant 0 : index
    %15 = vector.load %arg14[%14, %c0_7, %c0_8, %c0_9] : memref<2x2x32x16xf32, #tpu.memory_space<vmem>>, vector<1x2x32x16xf32>
    %16 = vector.shape_cast %15 : vector<1x2x32x16xf32> to vector<2x32x16xf32>
    %c0_10 = arith.constant 0 : index
    %c0_11 = arith.constant 0 : index
    %c0_12 = arith.constant 0 : index
    %17 = vector.load %arg13[%c0_10, %c0_11, %c0_12] : memref<2x32x32xf32, #tpu.memory_space<vmem>>, vector<2x32x32xf32>
    %18 = vector.shape_cast %16 : vector<2x32x16xf32> to vector<2x32x16x1xf32>
    %19 = arith.mulf %13, %5 : vector<2x32x16x32xf32>
    %20 = vector.broadcast %18 : vector<2x32x16x1xf32> to vector<2x32x16x32xf32>
    %21 = arith.mulf %20, %19 : vector<2x32x16x32xf32>
    %cst_13 = arith.constant dense<0.000000e+00> : vector<2x32x32xf32>
    %22 = vector.multi_reduction <add>, %21, %cst_13 [2] : vector<2x32x16x32xf32> to vector<2x32x32xf32>
    %23 = arith.addf %17, %22 : vector<2x32x32xf32>
    %c0_14 = arith.constant 0 : index
    %c0_15 = arith.constant 0 : index
    %c0_16 = arith.constant 0 : index
    %24 = vector.load %arg13[%c0_14, %c0_15, %c0_16] : memref<2x32x32xf32, #tpu.memory_space<vmem>>, vector<2x32x32xf32>
    tpu.vector_store %arg13[%c0_14, %c0_15, %c0_16], %23 {strides = array<i32>} : memref<2x32x32xf32, #tpu.memory_space<vmem>>, vector<2x32x32xf32>,
    return
  }
  func.func @transform_0(%arg0: i32, %arg1: i32) -> (i32, i32, i32) {
    %c0_i32 = arith.constant 0 : i32
    %c0_i32_0 = arith.constant 0 : i32
    %c0_i32_1 = arith.constant 0 : i32
    return %arg0, %c0_i32, %c0_i32_0 : i32, i32, i32
  }
  func.func @transform_1(%arg0: i32, %arg1: i32) -> (i32, i32, i32) {
    %c0_i32 = arith.constant 0 : i32
    %c0_i32_0 = arith.constant 0 : i32
    %c0_i32_1 = arith.constant 0 : i32
    return %arg0, %c0_i32, %c0_i32_0 : i32, i32, i32
  }
  func.func @transform_2(%arg0: i32, %arg1: i32) -> (i32, i32, i32) {
    %c0_i32 = arith.constant 0 : i32
    %c0_i32_0 = arith.constant 0 : i32
    %c0_i32_1 = arith.constant 0 : i32
    return %arg0, %c0_i32, %c0_i32_0 : i32, i32, i32
  }
  func.func @transform_3(%arg0: i32, %arg1: i32) -> (i32, i32, i32, i32) {
    %c0_i32 = arith.constant 0 : i32
    %c0_i32_0 = arith.constant 0 : i32
    %c0_i32_1 = arith.constant 0 : i32
    return %arg0, %c0_i32, %arg1, %c0_i32_0 : i32, i32, i32, i32
  }
  func.func @transform_4(%arg0: i32, %arg1: i32) -> (i32, i32, i32) {
    %c0_i32 = arith.constant 0 : i32
    %c0_i32_0 = arith.constant 0 : i32
    %c0_i32_1 = arith.constant 0 : i32
    return %arg0, %c0_i32, %c0_i32_0 : i32, i32, i32
  }
  func.func @transform_5(%arg0: i32, %arg1: i32) -> (i32, i32, i32) {
    %c0_i32 = arith.constant 0 : i32
    %c0_i32_0 = arith.constant 0 : i32
    %c0_i32_1 = arith.constant 0 : i32
    return %arg0, %c0_i32, %c0_i32_0 : i32, i32, i32
  }
  func.func @transform_6(%arg0: i32, %arg1: i32) -> (i32, i32, i32) {
    %c0_i32 = arith.constant 0 : i32
    %c0_i32_0 = arith.constant 0 : i32
    %c0_i32_1 = arith.constant 0 : i32
    return %arg0, %c0_i32, %c0_i32_0 : i32, i32, i32
  }
  func.func @transform_7(%arg0: i32, %arg1: i32) -> (i32, i32) {
    %c0_i32 = arith.constant 0 : i32
    %c0_i32_0 = arith.constant 0 : i32
    %c0_i32_1 = arith.constant 0 : i32
    return %c0_i32, %c0_i32_0 : i32, i32
  }
  func.func @transform_8(%arg0: i32, %arg1: i32) -> (i32, i32) {
    %c0_i32 = arith.constant 0 : i32
    %c0_i32_0 = arith.constant 0 : i32
    %c0_i32_1 = arith.constant 0 : i32
    return %c0_i32, %c0_i32_0 : i32, i32
  }
  func.func @transform_9(%arg0: i32, %arg1: i32) -> (i32, i32) {
    %c0_i32 = arith.constant 0 : i32
    %c0_i32_0 = arith.constant 0 : i32
    %c0_i32_1 = arith.constant 0 : i32
    return %c0_i32, %c0_i32_0 : i32, i32
  }
  func.func @transform_10(%arg0: i32, %arg1: i32) -> (i32, i32) {
    %c0_i32 = arith.constant 0 : i32
    %c0_i32_0 = arith.constant 0 : i32
    %c0_i32_1 = arith.constant 0 : i32
    return %c0_i32, %c0_i32_0 : i32, i32
  }
  func.func @transform_11(%arg0: i32, %arg1: i32) -> (i32, i32, i32) {
    %c0_i32 = arith.constant 0 : i32
    %c0_i32_0 = arith.constant 0 : i32
    %c0_i32_1 = arith.constant 0 : i32
    return %arg0, %c0_i32, %c0_i32_0 : i32, i32, i32
  }
}

</mosaic_0001>

<bundles_post_ra>
// kernel: tpu_custom_call.1
= control target key start
LH: loop header
LB: loop body
LE: loop exit
PB: predicated region body
PF: predicated region fallthrough
CT: control target
= control target key end

     0   :  { %s16932_s0 = inlined_call_operand.vmem [shape: f32[4,32,32], index: 0, kind: input, shape index: {}]   ;;  %s16933_s1 = inlined_call_operand.hbm [shape: f32[4,8,32], index: 1, kind: input, shape index: {}]   ;;  %s16934_s2 = inlined_call_operand.vmem [shape: f32[4,1,32], index: 2, kind: input, shape index: {}]   ;;  %s16935_s3 = inlined_call_operand.hbm [shape: bf16[4,32,32,32], index: 3, kind: input, shape index: {}]   ;;  %s16936_s4 = inlined_call_operand.hbm [shape: f32[4,1,8], index: 4, kind: input, shape index: {}]   ;;  %s16937_s5 = inlined_call_operand.hbm [shape: f32[4,1,32], index: 5, kind: input, shape index: {}]   ;;  %s16938_s6 = inlined_call_operand.vmem [shape: f32[4,32,1], index: 6, kind: input, shape index: {}]   ;;  %s16939_s7 = inlined_call_operand.hbm [shape: f32[32,32], index: 7, kind: input, shape index: {}]   ;;  %s16940_s8 = inlined_call_operand.vmem [shape: f32[1,32], index: 8, kind: input, shape index: {}]   ;;  %s16941_s9 = inlined_call_operand.hbm [shape: f32[32,32], index: 9, kind: input, shape index: {}]   ;;  %s16942_s10 = inlined_call_operand.vmem [shape: f32[1,32], index: 10, kind: input, shape index: {}]   ;;  %s16943_s11 = inlined_call_operand.hbm [shape: f32[4,32,32], index: 11, kind: output, shape index: {}]  }
   0x1   :  { %17025 = sst [smem:[#allocation44_spill]] %s16932_s0 }
   0x2   :  { %17026 = sst [smem:[#allocation45_spill]] %s16933_s1 }
   0x3   :  { %17027 = sst [smem:[#allocation46_spill]] %s16934_s2 }
   0x4   :  { %17028 = sst [smem:[#allocation47_spill]] %s16935_s3 }
   0x5   :  { %17029 = sst [smem:[#allocation48_spill]] %s16938_s6 }
   0x6   :  { %17030 = sst [smem:[#allocation49_spill]] %s16939_s7 }
   0x7   :  { %17031 = sst [smem:[#allocation50_spill]] %s16940_s8 }
   0x8   :  { %17032 = sst [smem:[#allocation51_spill]] %s16941_s9 }
   0x9   :  { %17033 = sst [smem:[#allocation52_spill]] %s16942_s10 }
   0xa   :  { %17034 = sst [smem:[#allocation53_spill]] %s16943_s11 }
   0xb   :  { %16 = vsyncpa [#allocation4], 0 }
   0xc   :  { %18 = vsyncpa [#allocation4 + $0x1], 0 }
   0xd   :  { %19 = vsyncpa [#allocation7], 0 }
   0xe   :  { %21 = vsyncpa [#allocation7 + $0x1], 0 }
   0xf   :  { %22 = vsyncpa [#allocation10], 0 }
  0x10   :  { %24 = vsyncpa [#allocation10 + $0x1], 0 }
  0x11   :  { %25 = vsyncpa [#allocation13], 0 }
  0x12   :  { %26 = vsyncpa [#allocation5], 0 }
  0x13   :  { %28 = vsyncpa [#allocation5 + $0x1], 0  ;;  %s10687_s17 = smov 0   ;;  %s10689_s18 = smov 0  }
  0x14   :  { %s10691_s19 = smov 0   ;;  %s10693_s20 = smov 0  }
  0x15   :  { %s10695_s21 = smov 0   ;;  %s10697_s22 = smov 0  }
  0x16   :  { %s10699_s23 = smov 0   ;;  %s10701_s24 = smov 0  }
  0x17   :  { %s10703_s25 = smov 0   ;;  %s10705_s26 = smov 0  }
  0x18   :  { %s10707_s27 = smov 0  }
  0x19 LB: > { %17035 = sst [smem:[#allocation25_spill]] %s10579_s20  ;;  %s10743_s28 = sadd.s32 4294967295, %s10607_s27   ;;  %s10607_s27 = sphi %s10707_s27, %s34_s27   ;;  %s10603_s26 = sphi %s10705_s26, %s17670_s26   ;;  %s10599_s25 = sphi %s10703_s25, %s17669_s25   ;;  %s10595_s24 = sphi %s10701_s24, %s17668_s24   ;;  %s10591_s23 = sphi %s10699_s23, %s17667_s23   ;;  %s10587_s22 = sphi %s10697_s22, %s17659_s22   ;;  %s10583_s21 = sphi %s10695_s21, %s17666_s21   ;;  %s10579_s20 = sphi %s10693_s20, %s17665_s20   ;;  %s10575_s19 = sphi %s10691_s19, %s17664_s19   ;;  %s10571_s18 = sphi %s10689_s18, %s17663_s18   ;;  %s10567_s17 = sphi %s10687_s17, %s17662_s17  }
  0x1a   : > { %17036 = sst [smem:[#allocation26_spill]] %s10587_s22  ;;  %s8999_s29 = sadd.s32 4294967294, %s10607_s27  }
  0x1b   : > { %17037 = sst [smem:[#allocation27_spill]] %s10591_s23  ;;  %s43_s30 = sadd.s32 1, %s10599_s25 }
  0x1c   : > { %s46_s12 = sadd.s32 1, %s10603_s26  ;;  %p44_p0 = scmp.ge.s32.totalorder %s43_s30, 2 }
  0x1d   : > { %s79_s13 = sadd.s32 1, %s10587_s22  ;;  %p86_p1 = scmp.ne.s32.totalorder %s10587_s22, %s10583_s21 }
  0x1e   : > { %p87_p2 = scmp.eq.s32.totalorder %s10607_s27, 0  ;;  %s17672_s30 = smov (%p44_p0, %s43_s30), 0 }
  0x1f   : > { %17038 = sst [smem:[#allocation28_spill]] %s17672_s30  ;;  %s17674_s12 = smov (!%p44_p0, %s46_s12), %s10603_s26 }
  0x20   : > { %p10760_p3 = por %p87_p2, %p86_p1  ;;  %p16946_p4 = scmp.ne.s32.totalorder %s10583_s21, %s10579_s20 }
  0x21   : > { %p48_p5 = scmp.ge.s32.totalorder %s17674_s12, 2  ;;  %p93_p6 = scmp.eq.s32.totalorder %s10743_s28, 0 }
  0x22   : > { %s129_s15 = ssub.s32 %s10599_s25, %s17672_s30  ;;  %s133_s16 = sadd.s32 1, %s10575_s19 }
  0x23   : > { %s17676_s12 = smov (%p48_p5, %s17674_s12), 0  ;;  %p10777_p7 = por %p93_p6, %p16946_p4 }
  0x24   : > { %17040 = sst [smem:[#allocation29_spill]] %s17676_s12  ;;  %p140_p8 = scmp.ne.s32.totalorder %s10575_s19, %s10571_s18 }
  0x25   : > { %s17041_s11 = scalar_select %p10777_p7, 1, 0 }
  0x26   : > { %s76_s10 = ssub.s32 %s10603_s26, %s17676_s12  ;;  %p146_p9 = scmp.ne.s32.totalorder %s10571_s18, %s10567_s17 }
  0x27   : > { %p77_p10 = scmp.eq.s32.totalorder %s76_s10, 0  ;;  %s130_s30 = sor.u32 %s129_s15, %s76_s10 }
  0x28   : > { %p131_p11 = scmp.eq.s32.totalorder %s130_s30, 0  ;;  %p10789_p12 = por %p140_p8, %p87_p2 }
  0x29   : > { %s10794_s23 = scalar_select %p77_p10, %s10587_s22, %s79_s13  }
  0x2a   : > { %s10797_s6 = scalar_select %p131_p11, %s10575_s19, %s133_s16  }
  0x2b   : > { %17043 = sst [smem:[#allocation30_spill]] %s10794_s23  ;;  %p10801_p13 = por %p146_p9, %p93_p6 }
  0x2c   : > { %17044 = sst [smem:[#allocation31_spill]] %s10797_s6  ;;  %p332_p0 = scmp.eq.s32.totalorder %s10743_s28, 3 }
  0x2d   : > { %p338_p5 = scmp.eq.s32.totalorder %s8999_s29, 3  ;;  %p9000_p4 = scmp.ge.s32.totalorder %s10607_s27, 1 }
  0x2e   : > { %p10810_p7 = por %p332_p0, %p86_p1  ;;  %p345_p2 = scmp.lt.s32.totalorder %s10607_s27, 5 }
  0x2f   : > { %p17048_p8 = scmp.ne.s32.totalorder %s10583_s21, %s10579_s20  ;;  %s17052_s7 = sld [smem:[#allocation49_spill]] }
  0x30   : > { %s17046_s10 = scalar_select %p10810_p7, 1, 0 }
  0x31   : > { %p10818_p10 = por %p338_p5, %p17048_p8  ;;  %p10822_p11 = pnand %p9000_p4, %p345_p2 }
  0x32   : > { %17047 = sst [smem:[#allocation32_spill]] %s17046_s10  ;;  %s10609_s16 = smov [#allocation11]  }
  0x33   : > { %s17049_s17 = scalar_select %p10818_p10, 1, 0 }
  0x34   : > { %p9527_p1 = pneg %p10822_p11  ;;  %s358_s12 = sshll.u32 %s10609_s16, 4  ;;  %s359_s12 = int_to_ptr.vmem [resolvable:$true] %s358_s12 }
  0x35   : > { %17050 = sst [smem:[#allocation33_spill]] %s17049_s17  ;;  %s356_s29 = sshll.u32 %s17052_s7, 4  ;;  %s357_s29 = int_to_ptr.hbm [resolvable:$true] %s356_s29 }
  0x36   : > { %p9528_p9 = pnand %p9527_p1, %p93_p6  ;;  %s17053_s9 = sld [smem:[#allocation51_spill]] }
  0x37   : > { %s10610_s20 = smov 128   ;;  %s10611_s10 = smov 8  }
  0x38   : > { %9530 = dma.hbm_to_vmem [thread:$0]  (!%p9528_p9), %s357_s29, 512, %s359_s12, [#allocation10], %s10610_s20, %s10610_s20, %s10611_s10  }
  0x39   : > { %s10612_s2 = smov [#allocation12]   ;;  %p9003_p4 = scmp.ge.s32.totalorder %s10607_s27, 4 }
  0x3a   : > { %s375_s13 = sshll.u32 %s10612_s2, 4  ;;  %s10838_s15 = sand.u32 (!%p9003_p4), 1, %s10587_s22   ;;  %s376_s13 = int_to_ptr.vmem [resolvable:$true] %s375_s13 }
  0x3b   : > { %388 = sbr.rel (%p9003_p4) target bundleno = 97 (0x61), region = 32  ;;  %s9169_s6 = sshll.u32 (!%p9003_p4), %s10603_s26, 4 }
  0x3c   : > { %s373_s17 = sshll.u32 %s17053_s9, 4  ;;  %s9004_s23 = sshll.u32 (!%p9003_p4), %s10838_s15, 4  ;;  %s374_s17 = int_to_ptr.hbm [resolvable:$true] %s373_s17 }
  0x3d   : > { %9533 = dma.hbm_to_vmem [thread:$0]  (!%p9528_p9), %s374_s17, 512, %s376_s13, [#allocation13], %s10610_s20, %s10610_s20, %s10611_s10  }
  0x3e   : > { %s17054_s1 = sld [smem:[#allocation45_spill]] (!%p9003_p4)  ;;  %s406_s2 = scalar_lea.vmem (!%p9003_p4), [#allocation3], %s9004_s23 }
  0x3f   : > { %s414_s9 = sshll.u32 (!%p9003_p4), %s406_s2, 4  ;;  %s403_s20 = scalar_lea.sflag (!%p9003_p4), [#allocation4], %s10838_s15  ;;  %s415_s9 = int_to_ptr.vmem [resolvable:$true] %s414_s9 }
  0x40   : > { %s10613_s10 = smov 128   ;;  %s10614_s17 = smov 8  }
  0x44   : > { %s411_s12 = scalar_lea.hbm %s17054_s1, %s9169_s6 }
  0x45   : > { %s412_s29 = sshll.u32 %s411_s12, 4  ;;  %s413_s29 = int_to_ptr.hbm [resolvable:$true] %s412_s29 }
  0x46   : > { %9506 = dma.hbm_to_vmem [thread:$0]  (%p10760_p3), %s413_s29, 256, %s415_s9, %s403_s20, %s10613_s10, %s10613_s10, %s10614_s17  }
  0x47   : > { %s16954_s13 = sand.u32 1, %s10607_s27   ;;  %s434_s22 = sand.u32 1, %s10575_s19  }
  0x48   : > { %s9007_s7 = sshll.u32 %s434_s22, 9  ;;  %s9009_s6 = sshll.u32 %s10599_s25, 1 }
  0x49   : > { %s9170_s23 = sshll.u32 %s10603_s26, 8  ;;  %s436_s12 = scalar_lea.vmem [#allocation6], %s9007_s7 }
  0x4a   : > { %s442_s16 = sadd.s32 %s9170_s23, %s9009_s6  ;;  %s459_s2 = sshll.u32 %s436_s12, 4  ;;  %s460_s2 = int_to_ptr.vmem [resolvable:$true] %s459_s2 }
  0x4b   : > { %s9011_s1 = sshll.u32 %s442_s16, 2  ;;  %s17055_s3 = sld [smem:[#allocation47_spill]] }
  0x4c   : > { %s10615_s10 = smov 256   ;;  %s10616_s23 = smov 128  }
  0x4d   : > { %9508 = sst [smem:[#allocation16]] (%p10789_p12), %s10615_s10  ;;  %s10617_s7 = smov 2  }
  0x4e   : > { %s9507_s17 = scalar_select %p10789_p12, [#allocation0], [#allocation17] }
  0x4f   : > { %9509 = sst [smem:[#allocation16 + $0x1]] (%p10789_p12), %s10616_s23  ;;  %s10618_s16 = smov 64  }
  0x50   : > { %s449_s22 = sld [smem:[%s9507_s17]]   ;;  %s433_s29 = scalar_lea.sflag [#allocation7], %s16954_s13 }
  0x51   : > { %s444_s20 = scalar_lea.hbm %s17055_s3, %s9011_s1  ;;  %9510 = sst [smem:[#allocation16 + $0x2]] (%p10789_p12), %s10617_s7 }
  0x52   : > { %s457_s6 = sshll.u32 %s444_s20, 4  ;;  %9511 = sst [smem:[#allocation16 + $0x3]] (%p10789_p12), %s10618_s16  ;;  %s458_s6 = int_to_ptr.hbm [resolvable:$true] %s457_s6 }
  0x53   : > { %9512 = sst [smem:[#allocation16 + $0x4]] (%p10789_p12), %s10618_s16  ;;  %s10619_s1 = smov 4  }
  0x54   : > { %9513 = sst [smem:[#allocation16 + $0x5]] (%p10789_p12), %s10619_s1  ;;  %s10620_s20 = smov [#allocation15]  }
  0x55   : > { %s9014_s10 = sshll.u32 %s10838_s15, 1  ;;  %s9015_s17 = sshll.u32 %s10603_s26, 1 }
  0x56   : > { %s9012_s12 = sshll.u32 %s449_s22, 26  ;;  %s490_s16 = scalar_lea.hbm %s16936_s4, %s9015_s17 }
  0x57   : > { %s9013_s9 = sadd.s32 134217728, %s9012_s12  ;;  %s491_s3 = sshll.u32 %s490_s16, 4  ;;  %s492_s3 = int_to_ptr.hbm [resolvable:$true] %s491_s3 }
  0x58   : > { %9514 = dma.general (%p10789_p12), %s458_s6, 8192, %s460_s2, %s433_s29, %s10620_s20, [#allocation16], %s9013_s9, 0  }
  0x59   : > { %s486_s1 = scalar_lea.vmem [#allocation8], %s9014_s10  ;;  %s10621_s12 = smov 16  }
  0x5a   : > { %s493_s22 = sshll.u32 %s486_s1, 4  ;;  %s10622_s13 = smov 1   ;;  %s494_s22 = int_to_ptr.vmem [resolvable:$true] %s493_s22 }
  0x5b   : > { %9515 = dma.hbm_to_vmem [thread:$0]  (%p10760_p3), %s492_s3, 32, %s494_s22, %s433_s29, %s10621_s12, %s10621_s12, %s10622_s13  }
  0x5c   : > { %s511_s15 = scalar_lea.hbm %s16937_s5, %s9015_s17  ;;  %s507_s9 = scalar_lea.vmem [#allocation9], %s9014_s10 }
  0x5d   : > { %s512_s6 = sshll.u32 %s511_s15, 4  ;;  %s514_s20 = sshll.u32 %s507_s9, 4  ;;  %s513_s6 = int_to_ptr.hbm [resolvable:$true] %s512_s6  ;;  %s515_s20 = int_to_ptr.vmem [resolvable:$true] %s514_s20 }
  0x5e   : > { %s17056_s23 = sand.u32 1, %s10607_s27  }
  0x5f   : > { %s504_s7 = scalar_lea.sflag [#allocation10], %s17056_s23 }
  0x60   : > { %9516 = dma.hbm_to_vmem [thread:$0]  (%p10760_p3), %s513_s6, 32, %s515_s20, %s504_s7, %s10621_s12, %s10621_s12, %s10622_s13  }
  0x61 PF: > { %536 = sbr.rel (%p10822_p11) target bundleno = 2786 (0xae2), region = 64 }
  0x66   : > { %s10890_s3 = sand.u32 1, %s10583_s21   ;;  %p17057_p12 = scmp.ne.s32.totalorder %s17041_s11, 0 }
  0x67   : > { %s9019_s29 = sshll.u32 %s10890_s3, 4  ;;  %s539_s17 = scalar_lea.sflag [#allocation4], %s10890_s3 }
  0x68   : > { %s10894_s16 = scalar_lea.vmem [#allocation3], %s9019_s29 }
  0x69   : > { %10538 = dma.done.wait (%p17057_p12), %s539_s17, 256  }
  0x6a   : > { %10540 = vsyncadd (%p17057_p12), %s539_s17, 4294967040  ;;  %s548_s14 = sand.u32 1, %s10743_s28   ;;  %s550_s30 = sand.u32 1, %s10571_s18  }
  0x6b   : > { %s9020_s13 = sshll.u32 %s550_s30, 9  ;;  %s549_s10 = scalar_lea.sflag [#allocation7], %s548_s14 }
  0x6c   : > { %s10902_s1 = scalar_lea.vmem [#allocation6], %s9020_s13 }
  0x6d   : > { %10542 = dma.done.wait (%p10801_p13), %s549_s10, 8192  }
  0x6e   : > { %10544 = vsyncadd (%p10801_p13), %s549_s10, 4294959104  ;;  %s9021_s22 = sshll.u32 %s10890_s3, 1 }
  0x6f   : > { %s10909_s12 = scalar_lea.vmem [#allocation8], %s9021_s22 }
  0x70   : > { %10546 = dma.done.wait (%p17057_p12), %s549_s10, 32  }
  0x71   : > { %10548 = vsyncadd (%p17057_p12), %s549_s10, 4294967264  ;;  %s569_s8 = scalar_lea.sflag [#allocation10], %s548_s14  ;;  %s10915_s2 = scalar_lea.vmem [#allocation9], %s9021_s22 }
  0x72   : > { %10550 = dma.done.wait (%p17057_p12), %s569_s8, 32  }
  0x73   : > { %10552 = vsyncadd (%p17057_p12), %s569_s8, 4294967264 }
  0x74   : > { %10554 = dma.done.wait (%p93_p6), [#allocation10], 512  }
  0x75   : > { %10556 = vsyncadd (%p93_p6), [#allocation10], 4294966784 }
  0x76   : > { %10558 = dma.done.wait (%p93_p6), [#allocation13], 512  }
  0x77   : > { %10560 = vsyncadd (%p93_p6), [#allocation13], 4294966784  ;;  %s9026_s0 = sshll.u32 %s10595_s24, 1  ;;  %s9025_s15 = sshll.u32 %s10890_s3, 6 }
  0x78   : > { %p654_p3 = scmp.lt.s32.totalorder %s9026_s0, 3  ;;  %s17058_s20 = sld [smem:[#allocation46_spill]] }
  0x79   : > { %s17059_s17 = sld [smem:[#allocation44_spill]]  ;;  %s10948_s22 = scalar_lea.vmem [#allocation14], %s9025_s15 }
  0x7a   : > { %s17678_s0 = smov (!%p654_p3, %s9026_s0), 3  ;;  %s17060_s28 = sld [smem:[#allocation48_spill]] }
  0x7b   : > { %s9171_s11 = sshll.u32 %s17678_s0, 5  ;;  %s17061_s8 = sld [smem:[#allocation27_spill]] }
  0x7e   : > { %s664_s23 = scalar_lea.vmem %s17058_s20, %s17678_s0 }
  0x7f   : > { %s10937_s14 = scalar_lea.vmem %s17059_s17, %s9171_s11  ;;  %v10944_v0 = vld [vmem:[%s664_s23] sm:$0x1]  ;;  %v10946_v1 = vld [vmem:[%s664_s23 + $0x1] sm:$0x1] }
  0x80   : > { %s10942_s10 = scalar_lea.vmem %s17060_s28, %s9171_s11 }
  0x81   : > { %p9033_p6 = scmp.ne.s32.totalorder %s17061_s8, 0 }
  0x82   : > { %s17062_s11 = sld [smem:[#allocation50_spill]] (!%p9033_p6) }
  0x83   : > { %683 = sbr.rel (%p9033_p6) target bundleno = 1838 (0x72e), region = 92  ;;  %s17063_s20 = sld [smem:[#allocation52_spill]] (!%p9033_p6) }
  0x88   : > { %v709_v2 = vld [vmem:[#allocation11 + $0x18] sm:$0xff]  ;;  %v708_v3 = vld [vmem:[#allocation11 + $0x10] sm:$0xff]  ;;  %v707_v4 = vld [vmem:[#allocation11 + $0x8] sm:$0xff]  ;;  %vm714_vm0 = vcmask 261120   ;;  %vm1903_vm3 = vcmask 64512  }
  0x89   : > { %v10951_v5 = vand.u32 4294901760, %v709_v2  ;;  %v10953_v6 = vand.u32 4294901760, %v708_v3  ;;  %v10955_v7 = vand.u32 4294901760, %v707_v4  ;;  %v706_v8 = vld [vmem:[#allocation11] sm:$0xff]  ;;  %v684_v9 = vld [vmem:[%s10937_s14] sm:$0xff]  ;;  %v691_v10 = vld [vmem:[%s10937_s14 + $0x38] sm:$0xff] }
  0x8a   : > { %v10959_v11 = vand.u32 4294901760, %v706_v8  ;;  %v716_v12 = vsel %vm714_vm0, %v684_v9, 0  ;;  %v737_v13 = vsel %vm714_vm0, %v691_v10, 0  ;;  %v685_v14 = vld [vmem:[%s10937_s14 + $0x8] sm:$0xff]  ;;  %v686_v19 = vld [vmem:[%s10937_s14 + $0x10] sm:$0xff]  ;;  %v687_v46 = vld [vmem:[%s10937_s14 + $0x18] sm:$0xff] }
  0x8b   : > { %752 = vmatpush.msra.mxu0 %v10951_v5  ;;  %9494 = vmatpush.msra.mxu2 %v10951_v5  ;;  %v837_v15 = vsub.f32 %v709_v2, %v10951_v5  ;;  %v10967_v16 = vand.u32 4294901760, %v716_v12  ;;  %v10969_v17 = vand.u32 4294901760, %v737_v13  ;;  %v843_v18 = vsub.f32 %v708_v3, %v10953_v6  ;;  %v1144_v50 = vld [vmem:[#allocation12 + $0x18] sm:$0xff]  ;;  %v689_v9 = vld [vmem:[%s10937_s14 + $0x28] sm:$0xff]  ;;  %v1143_v10 = vld [vmem:[#allocation12 + $0x10] sm:$0xff] }
  0x8c   : > { %v849_v20 = vsub.f32 %v707_v4, %v10955_v7  ;;  %v855_v21 = vsub.f32 %v706_v8, %v10959_v11  ;;  %v719_v22 = vsel %vm714_vm0, %v685_v14, 0  ;;  %v722_v30 = vsel %vm714_vm0, %v686_v19, 0  ;;  %v688_v59 = vld [vmem:[%s10937_s14 + $0x20] sm:$0xff]  ;;  %v690_v19 = vld [vmem:[%s10937_s14 + $0x30] sm:$0xff] }
  0x8d   : > { %754 = vmatpush.msra.mxu0 %v10953_v6  ;;  %9495 = vmatpush.msra.mxu2 %v10953_v6  ;;  %v838_v23 = vand.u32 4294901760, %v837_v15  ;;  %v10979_v24 = vsub.f32 %v716_v12, %v10967_v16  ;;  %v10982_v25 = vsub.f32 %v737_v13, %v10969_v17  ;;  %v844_v26 = vand.u32 4294901760, %v843_v18 }
  0x8e   : > { %v850_v27 = vand.u32 4294901760, %v849_v20  ;;  %v856_v28 = vand.u32 4294901760, %v855_v21  ;;  %v10984_v29 = vand.u32 4294901760, %v719_v22  ;;  %v11002_v40 = vand.u32 4294901760, %v722_v30 }
  0x8f   : > { %756 = vmatpush.msra.mxu0 %v10955_v7  ;;  %9496 = vmatpush.msra.mxu2 %v10955_v7  ;;  %v839_v31 = vsub.f32 %v837_v15, %v838_v23  ;;  %v761_v32 = vand.u32 4294901760, %v10979_v24  ;;  %v817_v33 = vand.u32 4294901760, %v10982_v25  ;;  %v845_v34 = vsub.f32 %v843_v18, %v844_v26 }
  0x90   : > { %v851_v35 = vsub.f32 %v849_v20, %v850_v27  ;;  %v10992_v36 = vsub.f32 %v719_v22, %v10984_v29  ;;  %v857_v42 = vsub.f32 %v855_v21, %v856_v28  ;;  %v11010_v49 = vsub.f32 %v722_v30, %v11002_v40 }
  0x91   : > { %758 = vmatpush.msra.mxu0 %v10959_v11  ;;  %9497 = vmatpush.msra.mxu2 %v10959_v11  ;;  %v840_v37 = vand.u32 4294901760, %v839_v31  ;;  %v762_v38 = vsub.f32 %v10979_v24, %v761_v32  ;;  %v818_v39 = vsub.f32 %v10982_v25, %v817_v33  ;;  %v846_v41 = vand.u32 4294901760, %v845_v34 }
  0x92   : > { %v769_v43 = vand.u32 4294901760, %v10992_v36  ;;  %v852_v47 = vand.u32 4294901760, %v851_v35  ;;  %v858_v51 = vand.u32 4294901760, %v857_v42  ;;  %v725_v52 = vsel %vm714_vm0, %v687_v46, 0  ;;  %v1141_v35 = vld [vmem:[#allocation12] sm:$0xff] }
  0x93   : > { %907 = vmatpush.msrb.mxu2 %v837_v15  ;;  %1042 = vmatpush.msrb.mxu0 %v838_v23  ;;  %v763_v44 = vand.u32 4294901760, %v762_v38  ;;  %v819_v45 = vand.u32 4294901760, %v818_v39  ;;  %v11013_v53 = vand.u32 4294901760, %v1144_v50  ;;  %v777_v56 = vand.u32 4294901760, %v11010_v49 }
  0x94   : > { %841 = vmatpush.msra.mxu1 %v840_v37  ;;  %9498 = vmatpush.msra.mxu3 %v840_v37  ;;  %v770_v48 = vsub.f32 %v10992_v36, %v769_v43  ;;  %v11019_v57 = vand.u32 4294901760, %v725_v52  ;;  %v728_v63 = vsel %vm714_vm0, %v688_v59, 0  ;;  %v731_v12 = vsel %vm714_vm0, %v689_v9, 0 }
  0x95   : > { %910 = vmatpush.msrb.mxu2 %v843_v18  ;;  %1046 = vmatpush.msrb.mxu0 %v844_v26  ;;  %v11016_v54 = vsub.f32 %v1144_v50, %v11013_v53  ;;  %v778_v61 = vsub.f32 %v11010_v49, %v777_v56  ;;  %v11038_v8 = vand.u32 4294901760, %v728_v63  ;;  %v734_v23 = vsel %vm714_vm0, %v690_v19, 0  ;;  %v11086_v50 = vld [vmem:[%s10894_s16] sm:$0xff] }
  0x96   : > { %764 = vmatmul.f32.vlgmr.msra.gmra.mxu0 %v763_v44  ;;  %820 = vmatmul.f32.vlgmr.msra.gmra.mxu2 %v819_v45  ;;  %v771_v55 = vand.u32 4294901760, %v770_v48  ;;  %v784_v62 = vsub.f32 %v725_v52, %v11019_v57  ;;  %v11077_v37 = vand.u32 4294901760, %v1141_v35 }
  0x97   : > { %847 = vmatpush.msra.mxu1 %v846_v41  ;;  %9499 = vmatpush.msra.mxu3 %v846_v41  ;;  %v1206_v58 = vand.u32 4294901760, %v11016_v54  ;;  %v779_v3 = vand.u32 4294901760, %v778_v61 }
  0x98   : > { %913 = vmatpush.msrb.mxu2 %v849_v20  ;;  %1050 = vmatpush.msrb.mxu0 %v850_v27  ;;  %v785_v4 = vand.u32 4294901760, %v784_v62  ;;  %v1223_v42 = vsub.f32 %v1141_v35, %v11077_v37 }
  0x99   : > { %853 = vmatpush.msra.mxu1 %v852_v47  ;;  %9500 = vmatpush.msra.mxu3 %v852_v47  ;;  %v1207_v60 = vsub.f32 %v11016_v54, %v1206_v58 }
  0x9a   : > { %916 = vmatpush.msrb.mxu2 %v855_v21  ;;  %1054 = vmatpush.msrb.mxu0 %v856_v28  ;;  %v11069_v28 = vand.u32 4294901760, %v734_v23  ;;  %v1224_v44 = vand.u32 4294901760, %v1223_v42 }
  0x9b   : > { %859 = vmatpush.msra.mxu1 %v858_v51  ;;  %9501 = vmatpush.msra.mxu3 %v858_v51  ;;  %v1208_v2 = vand.u32 4294901760, %v1207_v60  ;;  %v1150_v51 = vsel %vm714_vm0, %v11086_v50, 0 }
  0x9c   : > { %861 = vmatmul.f32.vlgmr.msra.gmra.mxu1 %v10967_v16  ;;  %889 = vmatmul.f32.vlgmr.msra.gmra.mxu3 %v10969_v17  ;;  %v808_v31 = vsub.f32 %v734_v23, %v11069_v28  ;;  %v1225_v47 = vsub.f32 %v1223_v42, %v1224_v44  ;;  %v1175_v52 = vand.u32 4294901760, %v1150_v51 }
  0x9d   : > { %971 = vmatpush.msrb.mxu3 %v10951_v5  ;;  %1168 = vmatpush.msra.mxu2 %v11013_v53 }
  0x9e   : > { %772 = vmatmul.f32.gmra.mxu0 %v771_v55  ;;  %919 = vmatmul.f32.vlgmr.msrb.gmra.mxu2 %v10979_v24  ;;  %v809_v39 = vand.u32 4294901760, %v808_v31  ;;  %v1226_v48 = vand.u32 4294901760, %v1225_v47  ;;  %v693_v55 = vld [vmem:[%s10894_s16 + $0x8] sm:$0xff] }
  0x9f   : > { %973 = vmatpush.msrb.mxu3 %v10953_v6  ;;  %1101 = vmatpush.msrb.mxu1 %v10951_v5  ;;  %v786_v5 = vsub.f32 %v784_v62, %v785_v4  ;;  %v1153_v59 = vsel %vm714_vm0, %v693_v55, 0 }
  0xa0   : > { %v810_v45 = vsub.f32 %v808_v31, %v809_v39  ;;  %v1183_v61 = vand.u32 4294901760, %v1153_v59 }
  0xa1   : > { %975 = vmatpush.msrb.mxu3 %v10955_v7  ;;  %1103 = vmatpush.msrb.mxu1 %v10953_v6  ;;  %v792_v6 = vsub.f32 %v728_v63, %v11038_v8  ;;  %v787_v14 = vand.u32 4294901760, %v786_v5 }
  0xa2   : > { %v1184_v63 = vsub.f32 %v1153_v59, %v1183_v61 }
  0xa3   : > { %977 = vmatpush.msrb.mxu3 %v10959_v11  ;;  %1105 = vmatpush.msrb.mxu1 %v10955_v7  ;;  %v11050_v7 = vand.u32 4294901760, %v1143_v10  ;;  %v793_v15 = vand.u32 4294901760, %v792_v6 }
  0xa4   : > { %865 = vmatmul.f32.gmra.mxu1 %v10984_v29  ;;  %981 = vmatmul.f32.vlgmr.msrb.gmra.mxu3 %v761_v32  ;;  %v1142_v32 = vld [vmem:[#allocation12 + $0x8] sm:$0xff] }
  0xa5   : > { %1209 = vmatpush.msra.mxu3 %v1208_v2  ;;  %1107 = vmatpush.msrb.mxu1 %v10959_v11  ;;  %v11054_v13 = vsub.f32 %v1143_v10, %v11050_v7  ;;  %v11056_v11 = vand.u32 4294901760, %v731_v12  ;;  %v794_v21 = vsub.f32 %v792_v6, %v793_v15  ;;  %v11073_v34 = vand.u32 4294901760, %v1142_v32 }
  0xa6   : > { %780 = vmatmul.f32.gmra.mxu0 %v779_v3  ;;  %924 = vmatmul.f32.gmra.mxu2 %v10992_v36  ;;  %v1185_v3 = vand.u32 4294901760, %v1184_v63 }
  0xa7   : > { %1170 = vmatpush.msra.mxu2 %v11050_v7  ;;  %v1212_v18 = vand.u32 4294901760, %v11054_v13  ;;  %v800_v22 = vsub.f32 %v731_v12, %v11056_v11  ;;  %v795_v26 = vand.u32 4294901760, %v794_v21  ;;  %v1217_v36 = vsub.f32 %v1142_v32, %v11073_v34 }
  0xa9   : > { %v1213_v20 = vsub.f32 %v11054_v13, %v1212_v18  ;;  %v801_v27 = vand.u32 4294901760, %v800_v22  ;;  %1172 = vmatpush.msra.mxu2 %v11073_v34  ;;  %v1218_v41 = vand.u32 4294901760, %v1217_v36 }
  0xab   : > { %v1214_v24 = vand.u32 4294901760, %v1213_v20  ;;  %v802_v30 = vsub.f32 %v800_v22, %v801_v27  ;;  %1174 = vmatpush.msra.mxu2 %v11077_v37 }
  0xac   : > { %869 = vmatmul.f32.gmra.mxu1 %v11002_v40  ;;  %987 = vmatmul.f32.gmra.mxu3 %v769_v43  ;;  %v1219_v43 = vsub.f32 %v1217_v36, %v1218_v41 }
  0xad   : > { %1215 = vmatpush.msra.mxu3 %v1214_v24  ;;  %v803_v38 = vand.u32 4294901760, %v802_v30  ;;  %1251 = vmatpush.msrb.mxu2 %v11016_v54 }
  0xae   : > { %788 = vmatmul.f32.gmra.mxu0 %v787_v14  ;;  %929 = vmatmul.f32.gmra.mxu2 %v11010_v49  ;;  %v1220_v46 = vand.u32 4294901760, %v1219_v43  ;;  %v811_v49 = vand.u32 4294901760, %v810_v45 }
  0xaf   : > { %1254 = vmatpush.msrb.mxu2 %v11054_v13 }
  0xb0   : > { %1221 = vmatpush.msra.mxu3 %v1220_v46 }
  0xb1   : > { %1257 = vmatpush.msrb.mxu2 %v1217_v36 }
  0xb2   : > { %1227 = vmatpush.msra.mxu3 %v1226_v48 }
  0xb3   : > { %1260 = vmatpush.msrb.mxu2 %v1223_v42 }
  0xb4   : > { %873 = vmatmul.f32.gmra.mxu1 %v11019_v57  ;;  %993 = vmatmul.f32.gmra.mxu3 %v777_v56  ;;  %v1176_v56 = vsub.f32 %v1150_v51, %v1175_v52 }
  0xb5   : > { %1285 = vmatpush.msrb.mxu3 %v11013_v53 }
  0xb6   : > { %796 = vmatmul.f32.gmra.mxu0 %v795_v26  ;;  %934 = vmatmul.f32.gmra.mxu2 %v784_v62  ;;  %v1177_v60 = vand.u32 4294901760, %v1176_v56 }
  0xb7   : > { %1287 = vmatpush.msrb.mxu3 %v11050_v7 }
  0xb8   : > { %v1178_v62 = vsub.f32 %v1176_v56, %v1177_v60 }
  0xb9   : > { %1289 = vmatpush.msrb.mxu3 %v11073_v34 }
  0xba   : > { %v1179_v2 = vand.u32 4294901760, %v1178_v62 }
  0xbb   : > { %1291 = vmatpush.msrb.mxu3 %v11077_v37 }
  0xbc   : > { %877 = vmatmul.f32.gmra.mxu1 %v11038_v8  ;;  %999 = vmatmul.f32.gmra.mxu3 %v785_v4  ;;  %v1186_v4 = vsub.f32 %v1184_v63, %v1185_v3 }
  0xbe   : > { %804 = vmatmul.f32.gmra.mxu0 %v803_v38  ;;  %939 = vmatmul.f32.gmra.mxu2 %v792_v6 }
  0xc4   : > { %881 = vmatmul.f32.gmra.mxu1 %v11056_v11  ;;  %1005 = vmatmul.f32.gmra.mxu3 %v793_v15 }
  0xc6   : > { %812 = vmatmul.f32.gmra.mxu0 %v811_v49  ;;  %944 = vmatmul.f32.gmra.mxu2 %v800_v22 }
  0xcc   : > { %885 = vmatmul.f32.gmra.mxu1 %v11069_v28  ;;  %1011 = vmatmul.f32.gmra.mxu3 %v801_v27 }
  0xce   : > { %949 = vmatmul.f32.gmra.mxu2 %v808_v31  ;;  %1056 = vmatmul.f32.vlgmr.msrb.gmra.mxu0 %v10967_v16 }
  0xd4   : > { %1017 = vmatmul.f32.gmra.mxu3 %v809_v39  ;;  %1109 = vmatmul.f32.vlgmr.msrb.gmra.mxu1 %v10967_v16  ;;  %v1187_v16 = vand.u32 4294901760, %v1186_v4 }
  0xd6   : > { %954 = vmatmul.f32.gmra.mxu2 %v10982_v25  ;;  %1060 = vmatmul.f32.gmra.mxu0 %v10984_v29 }
  0xdc   : > { %1023 = vmatmul.f32.gmra.mxu3 %v817_v33  ;;  %1113 = vmatmul.f32.gmra.mxu1 %v10984_v29 }
  0xde   : > { %1064 = vmatmul.f32.gmra.mxu0 %v11002_v40  ;;  %1180 = vmatmul.f32.vlgmr.msra.gmra.mxu2 %v1179_v2 }
  0xdf   : > { %1320 = vmatpush.msra.mxu2 %v1206_v58 }
  0xe1   : > { %1324 = vmatpush.msra.mxu2 %v1212_v18 }
  0xe3   : > { %1328 = vmatpush.msra.mxu2 %v1218_v41 }
  0xe4   : > { %1117 = vmatmul.f32.gmra.mxu1 %v11002_v40  ;;  %1229 = vmatmul.f32.vlgmr.msra.gmra.mxu3 %v1175_v52 }
  0xe5   : > { %1332 = vmatpush.msra.mxu2 %v1224_v44  ;;  %1355 = vmatpush.msra.mxu3 %v11013_v53 }
  0xe6   : > { %1068 = vmatmul.f32.gmra.mxu0 %v11019_v57  ;;  %1188 = vmatmul.f32.gmra.mxu2 %v1187_v16 }
  0xe7   : > { %1357 = vmatpush.msra.mxu3 %v11050_v7 }
  0xe9   : > { %1359 = vmatpush.msra.mxu3 %v11073_v34  ;;  %v11163_v34 = vld [vmem:[%s17062_s11] ss:$0 sm:$0xff] }
  0xeb   : > { %1361 = vmatpush.msra.mxu3 %v11077_v37 }
  0xec   : > { %1121 = vmatmul.f32.gmra.mxu1 %v11019_v57  ;;  %1233 = vmatmul.f32.gmra.mxu3 %v1183_v61 }
  0xee   : > { %1072 = vmatmul.f32.gmra.mxu0 %v11038_v8  ;;  %1263 = vmatmul.f32.vlgmr.msrb.gmra.mxu2 %v1176_v56 }
  0xf4   : > { %1125 = vmatmul.f32.gmra.mxu1 %v11038_v8  ;;  %1295 = vmatmul.f32.vlgmr.msrb.gmra.mxu3 %v1177_v60  ;;  %v9653_v60 = vld [vmem:[%s17063_s20] ss:$0 sm:$0xff] }
  0xf6   : > { %1076 = vmatmul.f32.gmra.mxu0 %v11056_v11  ;;  %1268 = vmatmul.f32.gmra.mxu2 %v1184_v63 }
  0xfc   : > { %1129 = vmatmul.f32.gmra.mxu1 %v11056_v11  ;;  %1301 = vmatmul.f32.gmra.mxu3 %v1185_v3 }
  0xfe   : > { %1080 = vmatmul.f32.gmra.mxu0 %v11069_v28  ;;  %1334 = vmatmul.f32.vlgmr.msra.gmra.mxu2 %v1175_v52 }
 0x104   : > { %1133 = vmatmul.f32.gmra.mxu1 %v11069_v28  ;;  %1363 = vmatmul.f32.vlgmr.msra.gmra.mxu3 %v1175_v52 }
 0x106   : > { %1084 = vmatmul.f32.gmra.mxu0 %v10969_v17  ;;  %1338 = vmatmul.f32.gmra.mxu2 %v1183_v61 }
 0x10c   : > { %1137 = vmatmul.f32.gmra.mxu1 %v10969_v17  ;;  %1367 = vmatmul.f32.gmra.mxu3 %v1183_v61 }
 0x113   : > { %v765_v33 = vpop.f32.mrf.mxu0 }
 0x114   : > { %v766_v35 = vadd.f32 %v11163_v34, %v765_v33 }
 0x119   : > { %v11124_v25 = vpop.f32.mrf.mxu2  ;;  %v862_v53 = vpop.f32.mrf.mxu1 }
 0x11a   : > { %v863_v41 = vadd.f32 %v862_v53, %v766_v35 }
 0x11b   : > { %v773_v58 = vpop.f32.mrf.mxu0 }
 0x11c   : > { %v774_v42 = vadd.f32 %v11163_v34, %v773_v58 }
 0x11f   : > { %v11126_v29 = vpop.f32.mrf.mxu3 }
 0x121   : > { %v920_v40 = vpop.f32.mrf.mxu2  ;;  %v866_v8 = vpop.f32.mrf.mxu1 }
 0x122   : > { %v921_v43 = vadd.f32 %v920_v40, %v863_v41  ;;  %v867_v47 = vadd.f32 %v866_v8, %v774_v42 }
 0x123   : > { %v781_v6 = vpop.f32.mrf.mxu0 }
 0x124   : > { %v782_v52 = vadd.f32 %v11163_v34, %v781_v6 }
 0x127   : > { %v982_v54 = vpop.f32.mrf.mxu3 }
 0x128   : > { %v983_v48 = vadd.f32 %v982_v54, %v921_v43 }
 0x129   : > { %v925_v57 = vpop.f32.mrf.mxu2  ;;  %v870_v10 = vpop.f32.mrf.mxu1 }
 0x12a   : > { %v926_v55 = vadd.f32 %v925_v57, %v867_v47  ;;  %v871_v62 = vadd.f32 %v870_v10, %v782_v52 }
 0x12b   : > { %v789_v17 = vpop.f32.mrf.mxu0 }
 0x12c   : > { %v790_v53 = vadd.f32 %v11163_v34, %v789_v17 }
 0x12f   : > { %v988_v9 = vpop.f32.mrf.mxu3 }
 0x130   : > { %v989_v63 = vadd.f32 %v988_v9, %v926_v55 }
 0x131   : > { %v930_v5 = vpop.f32.mrf.mxu2  ;;  %v874_v14 = vpop.f32.mrf.mxu1 }
 0x132   : > { %v931_v54 = vadd.f32 %v930_v5, %v871_v62  ;;  %v875_v10 = vadd.f32 %v874_v14, %v790_v53 }
 0x133   : > { %v11136_v18 = vpop.f32.mrf.mxu0 }
 0x137   : > { %v994_v12 = vpop.f32.mrf.mxu3 }
 0x138   : > { %v995_v9 = vadd.f32 %v994_v12, %v931_v54  ;;  %v798_v12 = vadd.f32 %v11163_v34, %v11136_v18 }
 0x139   : > { %v11128_v7 = vpop.f32.mrf.mxu2  ;;  %v11140_v20 = vpop.f32.mrf.mxu1 }
 0x13a   : > { %v936_v5 = vadd.f32 %v11128_v7, %v875_v10 }
 0x13b   : > { %v11146_v23 = vpop.f32.mrf.mxu0 }
 0x13f   : > { %v11130_v13 = vpop.f32.mrf.mxu3 }
 0x141   : > { %v11132_v15 = vpop.f32.mrf.mxu2  ;;  %v11148_v24 = vpop.f32.mrf.mxu1 }
 0x143   : > { %v11154_v28 = vpop.f32.mrf.mxu0 }
 0x147   : > { %v11134_v11 = vpop.f32.mrf.mxu3 }
 0x149   : > { %v11138_v19 = vpop.f32.mrf.mxu2  ;;  %v11156_v30 = vpop.f32.mrf.mxu1 }
 0x14b   : > { %v1057_v36 = vpop.f32.mrf.mxu0 }
 0x14c   : > { %v1058_v51 = vadd.f32 %v1057_v36, %v983_v48 }
 0x14f   : > { %v11142_v21 = vpop.f32.mrf.mxu3 }
 0x151   : > { %v11144_v22 = vpop.f32.mrf.mxu2  ;;  %v1110_v38 = vpop.f32.mrf.mxu1 }
 0x152   : > { %v1111_v56 = vadd.f32 %v1110_v38, %v1058_v51 }
 0x153   : > { %v1061_v45 = vpop.f32.mrf.mxu0 }
 0x154   : > { %v1372_v2 = vsel %vm714_vm0, %v1111_v56, 0  ;;  %v1062_v16 = vadd.f32 %v1061_v45, %v989_v63  ;;  %v1001_v56 = vadd.f32 %v11130_v13, %v936_v5  ;;  %v879_v63 = vadd.f32 %v11140_v20, %v798_v12 }
 0x155   : > { %v11172_v40 = vand.u32 4294901760, %v1372_v2  ;;  %v806_v20 = vadd.f32 %v11163_v34, %v11146_v23  ;;  %v814_v5 = vadd.f32 %v11163_v34, %v11154_v28 }
 0x157   : > { %v11150_v26 = vpop.f32.mrf.mxu3  ;;  %v1404_v35 = vsub.f32 %v1372_v2, %v11172_v40 }
 0x159   : > { %v11152_v27 = vpop.f32.mrf.mxu2  ;;  %v1114_v49 = vpop.f32.mrf.mxu1  ;;  %v1405_v45 = vand.u32 4294901760, %v1404_v35 }
 0x15a   : > { %v1115_v57 = vadd.f32 %v1114_v49, %v1062_v16 }
 0x15b   : > { %v1065_v3 = vpop.f32.mrf.mxu0  ;;  %v1406_v55 = vsub.f32 %v1404_v35, %v1405_v45 }
 0x15c   : > { %v1375_v38 = vsel %vm714_vm0, %v1115_v57, 0  ;;  %v1066_v42 = vadd.f32 %v1065_v3, %v995_v9 }
 0x15d   : > { %v11177_v47 = vand.u32 4294901760, %v1375_v38 }
 0x15f   : > { %v11158_v31 = vpop.f32.mrf.mxu3  ;;  %v1412_v14 = vsub.f32 %v1375_v38, %v11177_v47 }
 0x161   : > { %v1181_v32 = vpop.f32.mrf.mxu2  ;;  %v1118_v33 = vpop.f32.mrf.mxu1 }
 0x162   : > { %v1182_v4 = vadd.f32 %v9653_v60, %v1181_v32  ;;  %v1119_v48 = vadd.f32 %v1118_v33, %v1066_v42 }
 0x163   : > { %v1069_v43 = vpop.f32.mrf.mxu0 }
 0x167   : > { %v1230_v37 = vpop.f32.mrf.mxu3 }
 0x168   : > { %v1231_v8 = vadd.f32 %v1230_v37, %v1182_v4  ;;  %v1413_v4 = vand.u32 4294901760, %v1412_v14 }
 0x169   : > { %v1189_v39 = vpop.f32.mrf.mxu2  ;;  %v1122_v37 = vpop.f32.mrf.mxu1 }
 0x16a   : > { %v1190_v41 = vadd.f32 %v9653_v60, %v1189_v39  ;;  %v1414_v10 = vsub.f32 %v1412_v14, %v1413_v4 }
 0x16b   : > { %v1073_v33 = vpop.f32.mrf.mxu0 }
 0x16f   : > { %v1234_v44 = vpop.f32.mrf.mxu3 }
 0x170   : > { %v1235_v51 = vadd.f32 %v1234_v44, %v1190_v41  ;;  %v1070_v44 = vadd.f32 %v1069_v43, %v1001_v56 }
 0x171   : > { %v1264_v46 = vpop.f32.mrf.mxu2  ;;  %v1126_v57 = vpop.f32.mrf.mxu1 }
 0x172   : > { %v1265_v36 = vadd.f32 %v1264_v46, %v1231_v8  ;;  %v1123_v16 = vadd.f32 %v1122_v37, %v1070_v44  ;;  %v941_v8 = vadd.f32 %v11132_v15, %v879_v63  ;;  %v1415_v15 = vand.u32 4294901760, %v1414_v10 }
 0x173   : > { %v822_v63 = vadd.f32 %v11163_v34, %v11124_v25 }
 0x174   : > { %v1381_v9 = vsel %vm714_vm0, %v1123_v16, 0  ;;  %v1007_v23 = vadd.f32 %v11134_v11, %v941_v8 }
 0x175   : > { %v11197_v43 = vand.u32 4294901760, %v1381_v9  ;;  %v891_v16 = vadd.f32 %v11126_v29, %v822_v63 }
 0x177   : > { %v1296_v59 = vpop.f32.mrf.mxu3  ;;  %v1428_v37 = vsub.f32 %v1381_v9, %v11197_v43 }
 0x178   : > { %v1297_v32 = vadd.f32 %v1296_v59, %v1265_v36  ;;  %v1378_v59 = vsel %vm714_vm0, %v1119_v48, 0 }
 0x179   : > { %v1269_v61 = vpop.f32.mrf.mxu2  ;;  %v11187_v18 = vand.u32 4294901760, %v1378_v59  ;;  %v1429_v56 = vand.u32 4294901760, %v1428_v37 }
 0x17a   : > { %v1270_v39 = vadd.f32 %v1269_v61, %v1235_v51  ;;  %v1407_v61 = vand.u32 4294901760, %v1406_v55 }
 0x17f   : > { %v1302_v58 = vpop.f32.mrf.mxu3 }
 0x180   : > { %v1303_v62 = vadd.f32 %v1302_v58, %v1270_v39  ;;  %v887_v39 = vadd.f32 %v11156_v30, %v814_v5 }
 0x181   : > { %v1335_v6 = vpop.f32.mrf.mxu2 }
 0x182   : > { %v1336_v17 = vadd.f32 %v1335_v6, %v1297_v32  ;;  %v1420_v6 = vsub.f32 %v1378_v59, %v11187_v18  ;;  %v883_v32 = vadd.f32 %v11148_v24, %v806_v20  ;;  %v1077_v24 = vpop.f32.mrf.mxu0  ;;  %v11226_v20 = vand.u32 4294901760, %v11086_v50 }
 0x184   : > { %v946_v11 = vadd.f32 %v11138_v19, %v883_v32 }
 0x187   : > { %v1364_v49 = vpop.f32.mrf.mxu3 }
 0x188   : > { %v1365_v52 = vadd.f32 %v1364_v49, %v1336_v17 }
 0x189   : > { %v1339_v7 = vpop.f32.mrf.mxu2 }
 0x18a   : > { %v1384_v46 = vsel %vm714_vm0, %v1365_v52, 0  ;;  %v1340_v3 = vadd.f32 %v1339_v7, %v1303_v62  ;;  %v1130_v52 = vpop.f32.mrf.mxu1  ;;  %v1430_v7 = vsub.f32 %v1428_v37, %v1429_v56  ;;  %v1081_v30 = vpop.f32.mrf.mxu0 }
 0x18b   : > { %v1401_v60 = vand.u32 4294901760, %v1384_v46 }
 0x18d   : > { %v1452_v2 = vsub.f32 %v1384_v46, %v1401_v60  ;;  %1402 = vmatpush.xpose.msrb.mxu2 %v1401_v60  ;;  %1529 = vmatpush.xpose.msra.mxu1 %v1401_v60  ;;  %v1013_v46 = vadd.f32 %v11142_v21, %v946_v11 }
 0x18f   : > { %v1368_v53 = vpop.f32.mrf.mxu3  ;;  %1491 = vmatpush.xpose.msra.mxu0 %v1452_v2  ;;  %v1453_v13 = vand.u32 4294901760, %v1452_v2  ;;  %v1078_v59 = vadd.f32 %v1077_v24, %v1013_v46 }
 0x190   : > { %v1369_v54 = vadd.f32 %v1368_v53, %v1340_v3  ;;  %1408 = vmatmul.f32.vlgmr.msrb.gmra.mxu2 %v1407_v61  ;;  %1533 = vmatmul.f32.vlgmr.msra.gmra.mxu1 %v1405_v45  ;;  %v1421_v45 = vand.u32 4294901760, %v1420_v6  ;;  %v1431_v3 = vand.u32 4294901760, %v1430_v7  ;;  %v956_v53 = vadd.f32 %v11152_v27, %v891_v16 }
 0x191   : > { %1573 = vmatpush.xpose.msra.mxu2 %v1453_v13  ;;  %v1454_v58 = vsub.f32 %v1452_v2, %v1453_v13 }
 0x192   : > { %v1638_v36 = vsel %vm714_vm0, %v1369_v54, 0  ;;  %1494 = vmatmul.f32.vlgmr.msra.gmra.mxu0 %v1404_v35  ;;  %v1074_v35 = vadd.f32 %v1073_v33, %v1007_v23  ;;  %v1422_v51 = vsub.f32 %v1420_v6, %v1421_v45  ;;  %v1134_v62 = vpop.f32.mrf.mxu1  ;;  %v1085_v34 = vpop.f32.mrf.mxu0  ;;  %v1025_v13 = vadd.f32 %v11158_v31, %v956_v53 }
 0x193   : > { %v1655_v38 = vand.u32 4294901760, %v1638_v36  ;;  %v1455_v41 = vand.u32 4294901760, %v1454_v58 }
 0x194   : > { %v1127_v49 = vadd.f32 %v1126_v57, %v1074_v35  ;;  %v1423_v55 = vand.u32 4294901760, %v1422_v51  ;;  %v1086_v58 = vadd.f32 %v1085_v34, %v1025_v13 }
 0x195   : > { %v1706_v42 = vsub.f32 %v1638_v36, %v1655_v38  ;;  %1456 = vmatpush.xpose.msrb.mxu3 %v1455_v41  ;;  %1656 = vmatpush.xpose.msrb.mxu0 %v1655_v38 }
 0x196   : > { %v1626_v28 = vsel %vm714_vm0, %v1127_v49, 0 }
 0x197   : > { %1745 = vmatpush.xpose.msrb.mxu2 %v1706_v42  ;;  %v1707_v17 = vand.u32 4294901760, %v1706_v42  ;;  %v11208_v19 = vand.u32 4294901760, %v1626_v28 }
 0x198   : > { %1416 = vmatmul.f32.gmra.mxu2 %v1415_v15  ;;  %1458 = vmatmul.f32.vlgmr.msrb.gmra.mxu3 %v11172_v40 }
 0x199   : > { %1607 = vmatpush.xpose.msra.mxu3 %v1401_v60  ;;  %1539 = vmatmul.f32.gmra.mxu1 %v1413_v4  ;;  %v1708_v48 = vsub.f32 %v1706_v42, %v1707_v17  ;;  %v1131_v60 = vadd.f32 %v1130_v52, %v1078_v59  ;;  %v11212_v21 = vsub.f32 %v1626_v28, %v11208_v19 }
 0x19a   : > { %1827 = vmatpush.xpose.msra.mxu0 %v1707_v17  ;;  %v1138_v57 = vpop.f32.mrf.mxu1 }
 0x19b   : > { %1499 = vmatmul.f32.gmra.mxu0 %v1412_v14  ;;  %v1709_v12 = vand.u32 4294901760, %v1708_v48  ;;  %v951_v14 = vadd.f32 %v11144_v22, %v887_v39  ;;  %v1629_v2 = vsel %vm714_vm0, %v1131_v60, 0  ;;  %v1659_v22 = vand.u32 4294901760, %v11212_v21 }
 0x19c   : > { %v1665_v4 = vand.u32 4294901760, %v1629_v2  ;;  %v10623_v48 = vmov 0  }
 0x19d   : > { %1783 = vmatpush.xpose.msrb.mxu3 %v1655_v38  ;;  %1710 = vmatpush.xpose.msrb.mxu1 %v1709_v12  ;;  %v1019_v44 = vadd.f32 %v11150_v26, %v951_v14  ;;  %v1660_v26 = vsub.f32 %v11212_v21, %v1659_v22 }
 0x19e   : > { %v1666_v25 = vsub.f32 %v1629_v2, %v1665_v4  ;;  %9651 = vset.pattern.permute.xlu0 %v10623_v48  ;;  %9650 = vset.pattern.permute.xlu2 %v10623_v48 }
 0x19f   : > { %v1082_v61 = vadd.f32 %v1081_v30, %v1019_v44  ;;  %v1661_v27 = vand.u32 4294901760, %v1660_v26  ;;  %9649 = vset.pattern.permute.xlu1 %v10623_v48 }
 0x1a0   : > { %1424 = vmatmul.f32.gmra.mxu2 %v1423_v55  ;;  %1462 = vmatmul.f32.gmra.mxu3 %v11177_v47  ;;  %v1667_v8 = vand.u32 4294901760, %v1666_v25  ;;  %v694_v55 = vld [vmem:[%s10909_s12] sm:$0x1] }
 0x1a1   : > { %1861 = vmatpush.xpose.msra.mxu1 %v1655_v38  ;;  %v1135_v33 = vadd.f32 %v1134_v62, %v1082_v61  ;;  %vm1887_vm1 = vcmp.eq.f32.partialorder %v694_v55, 0.0 }
 0x1a2   : > { %1545 = vmatmul.f32.gmra.mxu1 %v1421_v45  ;;  %v1668_v36 = vsub.f32 %v1666_v25, %v1667_v8  ;;  %v1889_v7 = vsel %vm1887_vm1, 1, %v10623_v48 }
 0x1a3   : > { %1504 = vmatmul.f32.gmra.mxu0 %v1420_v6  ;;  %v1632_v54 = vsel %vm714_vm0, %v1135_v33, 0  ;;  %v1139_v6 = vadd.f32 %v1138_v57, %v1086_v58  ;;  %v1891_v62 = vperm.slane %v1889_v7, 0 }
 0x1a4   : > { %v1673_v29 = vand.u32 4294901760, %v1632_v54  ;;  %v1669_v38 = vand.u32 4294901760, %v1668_v36 }
 0x1a5   : > { %v1635_v10 = vsel %vm714_vm0, %v1139_v6, 0  ;;  %vm11253_vm2 = vcmp.eq.s32.totalorder %v1891_v62, 1 }
 0x1a6   : > { %v1674_v31 = vsub.f32 %v1632_v54, %v1673_v29  ;;  %v1681_v9 = vand.u32 4294901760, %v1635_v10 }
 0x1a8   : > { %1432 = vmatmul.f32.gmra.mxu2 %v1431_v3  ;;  %1466 = vmatmul.f32.gmra.mxu3 %v11187_v18  ;;  %v1675_v41 = vand.u32 4294901760, %v1674_v31  ;;  %v1682_v32 = vsub.f32 %v1635_v10, %v1681_v9 }
 0x1aa   : > { %1551 = vmatmul.f32.gmra.mxu1 %v1429_v56  ;;  %v1676_v42 = vsub.f32 %v1674_v31, %v1675_v41  ;;  %v1683_v15 = vand.u32 4294901760, %v1682_v32 }
 0x1ab   : > { %1509 = vmatmul.f32.gmra.mxu0 %v1428_v37 }
 0x1ac   : > { %v1677_v23 = vand.u32 4294901760, %v1676_v42  ;;  %v1684_v45 = vsub.f32 %v1682_v32, %v1683_v15 }
 0x1b0   : > { %1470 = vmatmul.f32.gmra.mxu3 %v11197_v43  ;;  %1575 = vmatmul.f32.vlgmr.msra.gmra.mxu2 %v11172_v40 }
 0x1b1   : > { %2124 = vmatpush.msra.mxu2 %v11226_v20 }
 0x1b2   : > { %1712 = vmatmul.f32.vlgmr.msrb.gmra.mxu1 %v11208_v19 }
 0x1b3   : > { %2251 = vmatpush.msrb.mxu1 %v11226_v20  ;;  %1662 = vmatmul.f32.vlgmr.msrb.gmra.mxu0 %v1661_v27 }
 0x1b8   : > { %1579 = vmatmul.f32.gmra.mxu2 %v11177_v47  ;;  %1609 = vmatmul.f32.vlgmr.msra.gmra.mxu3 %v11172_v40  ;;  %v1685_v40 = vand.u32 4294901760, %v1684_v45 }
 0x1ba   : > { %1716 = vmatmul.f32.gmra.mxu1 %v1665_v4 }
 0x1bb   : > { %1670 = vmatmul.f32.gmra.mxu0 %v1669_v38 }
 0x1c0   : > { %1583 = vmatmul.f32.gmra.mxu2 %v11187_v18  ;;  %1613 = vmatmul.f32.gmra.mxu3 %v11177_v47 }
 0x1c2   : > { %1720 = vmatmul.f32.gmra.mxu1 %v1673_v29 }
 0x1c3   : > { %1678 = vmatmul.f32.gmra.mxu0 %v1677_v23 }
 0x1c8   : > { %1587 = vmatmul.f32.gmra.mxu2 %v11197_v43  ;;  %1617 = vmatmul.f32.gmra.mxu3 %v11187_v18 }
 0x1ca   : > { %1724 = vmatmul.f32.gmra.mxu1 %v1681_v9 }
 0x1cb   : > { %1686 = vmatmul.f32.gmra.mxu0 %v1685_v40 }
 0x1d0   : > { %1621 = vmatmul.f32.gmra.mxu3 %v11197_v43  ;;  %1748 = vmatmul.f32.vlgmr.msrb.gmra.mxu2 %v11212_v21 }
 0x1d2   : > { %1863 = vmatmul.f32.vlgmr.msra.gmra.mxu1 %v11208_v19 }
 0x1d3   : > { %1829 = vmatmul.f32.vlgmr.msra.gmra.mxu0 %v11208_v19 }
 0x1d8   : > { %1753 = vmatmul.f32.gmra.mxu2 %v1666_v25  ;;  %1787 = vmatmul.f32.vlgmr.msrb.gmra.mxu3 %v1659_v22 }
 0x1da   : > { %1867 = vmatmul.f32.gmra.mxu1 %v1665_v4 }
 0x1db   : > { %1833 = vmatmul.f32.gmra.mxu0 %v1665_v4 }
 0x1e0   : > { %1758 = vmatmul.f32.gmra.mxu2 %v1674_v31  ;;  %1793 = vmatmul.f32.gmra.mxu3 %v1667_v8 }
 0x1e2   : > { %1871 = vmatmul.f32.gmra.mxu1 %v1673_v29 }
 0x1e3   : > { %1837 = vmatmul.f32.gmra.mxu0 %v1673_v29 }
 0x1e8   : > { %1763 = vmatmul.f32.gmra.mxu2 %v1682_v32  ;;  %1799 = vmatmul.f32.gmra.mxu3 %v1675_v41 }
 0x1ea   : > { %1875 = vmatmul.f32.gmra.mxu1 %v1681_v9 }
 0x1eb   : > { %1841 = vmatmul.f32.gmra.mxu0 %v1681_v9 }
 0x1f0   : > { %1805 = vmatmul.f32.gmra.mxu3 %v1683_v15 }
 0x20d   : > { %v1534_v47 = vpop.f32.mrf.mxu1 }
 0x20f   : > { %v1495_v18 = vpop.f32.mrf.mxu0 }
 0x213   : > { %v1409_v43 = vpop.f32.mrf.mxu2 }
 0x216   : > { %v1540_v17 = vpop.f32.mrf.mxu1 }
 0x218   : > { %v1500_v35 = vpop.f32.mrf.mxu0 }
 0x21b   : > { %v1417_v5 = vpop.f32.mrf.mxu2  ;;  %v1459_v24 = vpop.f32.mrf.mxu3 }
 0x21c   : > { %v1460_v28 = vadd.f32 %v1459_v24, %v1409_v43 }
 0x21e   : > { %v1496_v14 = vadd.f32 %v1495_v18, %v1460_v28 }
 0x21f   : > { %v1546_v11 = vpop.f32.mrf.mxu1 }
 0x220   : > { %v1505_v37 = vpop.f32.mrf.mxu0  ;;  %v1535_v21 = vadd.f32 %v1534_v47, %v1496_v14 }
 0x223   : > { %v1425_v49 = vpop.f32.mrf.mxu2  ;;  %v1463_v51 = vpop.f32.mrf.mxu3 }
 0x224   : > { %v1464_v30 = vadd.f32 %v1463_v51, %v1417_v5 }
 0x226   : > { %v1501_v3 = vadd.f32 %v1500_v35, %v1464_v30 }
 0x227   : > { %v1552_v12 = vpop.f32.mrf.mxu1 }
 0x228   : > { %v1510_v52 = vpop.f32.mrf.mxu0  ;;  %v1541_v25 = vadd.f32 %v1540_v17, %v1501_v3 }
 0x22b   : > { %v1433_v39 = vpop.f32.mrf.mxu2  ;;  %v1467_v46 = vpop.f32.mrf.mxu3 }
 0x22c   : > { %v1468_v53 = vadd.f32 %v1467_v46, %v1425_v49 }
 0x22e   : > { %v1506_v58 = vadd.f32 %v1505_v37, %v1468_v53 }
 0x22f   : > { %v11250_v60 = vpop.f32.mrf.mxu1 }
 0x230   : > { %v11248_v56 = vpop.f32.mrf.mxu0  ;;  %v1547_v31 = vadd.f32 %v1546_v11, %v1506_v58 }
 0x233   : > { %v1471_v59 = vpop.f32.mrf.mxu3  ;;  %v1576_v19 = vpop.f32.mrf.mxu2 }
 0x234   : > { %v1577_v63 = vadd.f32 %v1576_v19, %v1535_v21  ;;  %v1472_v6 = vadd.f32 %v1471_v59, %v1433_v39  ;;  %v695_v39 = vld [vmem:[%s10909_s12 + $0x1] sm:$0x1] }
 0x235   : > { %vm1888_vm4 = vcmp.eq.f32.partialorder %v695_v39, 0.0 }
 0x236   : > { %v1511_v42 = vadd.f32 %v1510_v52, %v1472_v6  ;;  %v1890_v14 = vsel %vm1888_vm4, 1, %v10623_v48 }
 0x237   : > { %v1717_v33 = vpop.f32.mrf.mxu1  ;;  %v1892_v62 = vperm.slane %v1890_v14, 0 }
 0x238   : > { %v1671_v22 = vpop.f32.mrf.mxu0  ;;  %v1553_v45 = vadd.f32 %v1552_v12, %v1511_v42 }
 0x239   : > { %v1718_v28 = vadd.f32 %v1717_v33, %v1671_v22  ;;  %vm11283_vm5 = vcmp.eq.s32.totalorder %v1892_v62, 1  ;;  %v1714_v22 = vadd.f32 %v11250_v60, %v11248_v56 }
 0x23b   : > { %v1580_v44 = vpop.f32.mrf.mxu2  ;;  %v1610_v2 = vpop.f32.mrf.mxu3 }
 0x23c   : > { %v1611_v61 = vadd.f32 %v1610_v2, %v1577_v63  ;;  %v1581_v13 = vadd.f32 %v1580_v44, %v1541_v25 }
 0x23e   : > { %v1879_v16 = vmul.f32 0.17677669, %v1611_v61 }
 0x23f   : > { %v1721_v10 = vpop.f32.mrf.mxu1 }
 0x240   : > { %v11259_v34 = vsel %vm11253_vm2, -1e+09, %v1879_v16  ;;  %v1679_v8 = vpop.f32.mrf.mxu0 }
 0x241   : > { %v1904_v26 = vsel %vm1903_vm3, %v11259_v34, -inf }
 0x242   : > { %1905 = vmax.xlane.f32.xlu0 %v1904_v26 }
 0x243   : > { %v1584_v54 = vpop.f32.mrf.mxu2  ;;  %v1614_v57 = vpop.f32.mrf.mxu3 }
 0x244   : > { %v1615_v29 = vadd.f32 %v1614_v57, %v1581_v13  ;;  %v1585_v38 = vadd.f32 %v1584_v54, %v1547_v31  ;;  %v1722_v54 = vadd.f32 %v1721_v10, %v1679_v8 }
 0x246   : > { %v1880_v27 = vmul.f32 0.17677669, %v1615_v29 }
 0x247   : > { %v1725_v17 = vpop.f32.mrf.mxu1 }
 0x248   : > { %v11265_v36 = vsel %vm11253_vm2, -1e+09, %v1880_v27  ;;  %v1687_v47 = vpop.f32.mrf.mxu0 }
 0x249   : > { %v1907_v9 = vsel %vm1903_vm3, %v11265_v36, -inf }
 0x24a   : > { %1908 = vmax.xlane.f32.xlu0 %v1907_v9 }
 0x24b   : > { %v1588_v41 = vpop.f32.mrf.mxu2  ;;  %v1618_v32 = vpop.f32.mrf.mxu3 }
 0x24c   : > { %v1619_v23 = vadd.f32 %v1618_v32, %v1585_v38  ;;  %v1589_v43 = vadd.f32 %v1588_v41, %v1553_v45  ;;  %v1726_v41 = vadd.f32 %v1725_v17, %v1687_v47 }
 0x24e   : > { %v1881_v15 = vmul.f32 0.17677669, %v1619_v23 }
 0x24f   : > { %v1864_v12 = vpop.f32.mrf.mxu1 }
 0x250   : > { %v11271_v40 = vsel %vm11253_vm2, -1e+09, %v1881_v15  ;;  %v1830_v51 = vpop.f32.mrf.mxu0 }
 0x251   : > { %v1910_v18 = vsel %vm1903_vm3, %v11271_v40, -inf }
 0x252   : > { %1911 = vmax.xlane.f32.xlu1 %v1910_v18 }
 0x253   : > { %v1622_v35 = vpop.f32.mrf.mxu3  ;;  %v1749_v24 = vpop.f32.mrf.mxu2 }
 0x254   : > { %v1623_v5 = vadd.f32 %v1622_v35, %v1589_v43  ;;  %v1750_v4 = vadd.f32 %v1749_v24, %v1714_v22 }
 0x256   : > { %v1882_v11 = vmul.f32 0.17677669, %v1623_v5 }
 0x257   : > { %v1868_v21 = vpop.f32.mrf.mxu1 }
 0x258   : > { %v11277_v37 = vsel %vm11253_vm2, -1e+09, %v1882_v11  ;;  %v1834_v7 = vpop.f32.mrf.mxu0 }
 0x259   : > { %v1913_v49 = vsel %vm1903_vm3, %v11277_v37, -inf }
 0x25a   : > { %1914 = vmax.xlane.f32.xlu1 %v1913_v49 }
 0x25b   : > { %v1788_v52 = vpop.f32.mrf.mxu3  ;;  %v1754_v46 = vpop.f32.mrf.mxu2 }
 0x25c   : > { %v1755_v55 = vadd.f32 %v1754_v46, %v1718_v28  ;;  %v1789_v33 = vadd.f32 %v1788_v52, %v1750_v4 }
 0x25e   : > { %v1831_v57 = vadd.f32 %v1830_v51, %v1789_v33 }
 0x25f   : > { %v1872_v10 = vpop.f32.mrf.mxu1 }
 0x260   : > { %v1865_v31 = vadd.f32 %v1864_v12, %v1831_v57  ;;  %v1838_v9 = vpop.f32.mrf.mxu0 }
 0x262   : > { %v1883_v8 = vmul.f32 0.17677669, %v1865_v31 }
 0x263   : > { %v1794_v59 = vpop.f32.mrf.mxu3  ;;  %v1759_v25 = vpop.f32.mrf.mxu2 }
 0x264   : > { %v1795_v19 = vadd.f32 %v1794_v59, %v1755_v55  ;;  %v1760_v58 = vadd.f32 %v1759_v25, %v1722_v54  ;;  %v1899_v18 = vsel %vm11283_vm5, -1e+09, %v1883_v8 }
 0x265   : > { %v1916_v47 = vsel %vm1903_vm3, %v1899_v18, -inf }
 0x266   : > { %v1835_v30 = vadd.f32 %v1834_v7, %v1795_v19 }
 0x267   : > { %v1876_v51 = vpop.f32.mrf.mxu1 }
 0x268   : > { %v1869_v63 = vadd.f32 %v1868_v21, %v1835_v30  ;;  %v1842_v24 = vpop.f32.mrf.mxu0 }
 0x26a   : > { %v1884_v44 = vmul.f32 0.17677669, %v1869_v63 }
 0x26b   : > { %v1800_v13 = vpop.f32.mrf.mxu3  ;;  %v1764_v60 = vpop.f32.mrf.mxu2 }
 0x26c   : > { %v11289_v3 = vsel %vm11283_vm5, -1e+09, %v1884_v44  ;;  %v1801_v27 = vadd.f32 %v1800_v13, %v1760_v58  ;;  %v1765_v23 = vadd.f32 %v1764_v60, %v1726_v41 }
 0x26d   : > { %v1919_v61 = vsel %vm1903_vm3, %v11289_v3, -inf }
 0x26e   : > { %1920 = vmax.xlane.f32.xlu1 %v1919_v61  ;;  %v1839_v32 = vadd.f32 %v1838_v9, %v1801_v27  ;;  %v2174_v61 = vsub.f32 %v11086_v50, %v11226_v20 }
 0x270   : > { %v1873_v43 = vadd.f32 %v1872_v10, %v1839_v32  ;;  %v2175_v22 = vand.u32 4294901760, %v2174_v61  ;;  %2213 = vmatpush.msrb.mxu0 %v2174_v61 }
 0x272   : > { %v1885_v49 = vmul.f32 0.17677669, %v1873_v43  ;;  %v2176_v4 = vsub.f32 %v2174_v61, %v2175_v22  ;;  %2295 = vmatpush.msrb.mxu2 %v2175_v22 }
 0x273   : > { %v1806_v42 = vpop.f32.mrf.mxu3 }
 0x274   : > { %v1807_v45 = vadd.f32 %v1806_v42, %v1765_v23  ;;  %v11312_v12 = vsel %vm11283_vm5, -1e+09, %v1885_v49 }
 0x275   : > { %v1922_v59 = vsel %vm1903_vm3, %v11312_v12, -inf }
 0x276   : > { %v1843_v11 = vadd.f32 %v1842_v24, %v1807_v45 }
 0x278   : > { %v1877_v39 = vadd.f32 %v1876_v51, %v1843_v11 }
 0x27a   : > { %v1886_v19 = vmul.f32 0.17677669, %v1877_v39 }
 0x2b5   : > { %v1906_v16 = vpop.xlane.xlu0 %1905 }
 0x2b6   : > { %v1928_v53 = vsub.f32 %v11259_v34, %v1906_v16  ;;  %v2177_v16 = vand.u32 4294901760, %v2176_v4 }
 0x2b8   : > { %v1936_v26 = vmul.f32 1.442695, %v1928_v53  ;;  %2178 = vmatpush.msra.mxu3 %v2177_v16 }
 0x2ba   : > { %9654 = vpow2.f32 %v1936_v26  ;;  %2329 = vmatpush.msrb.mxu3 %v11226_v20 }
 0x2bd   : > { %v1909_v29 = vpop.xlane.xlu0 %1908 }
 0x2be   : > { %v1929_v6 = vsub.f32 %v11265_v36, %v1909_v29 }
 0x2c0   : > { %v11297_v38 = vpop.eup %9654  ;;  %v1938_v56 = vmul.f32 1.442695, %v1929_v6 }
 0x2c1   : > { %v1952_v34 = vsel %vm1903_vm3, %v11297_v38, 0.0 }
 0x2c2   : > { %9656 = vpow2.f32 %v1938_v56  ;;  %1953 = vadd.xlane.f32.xlu2 %v1952_v34 }
 0x2c5   : > { %v1912_v15 = vpop.xlane.xlu1 %1911 }
 0x2c6   : > { %v1930_v36 = vsub.f32 %v11271_v40, %v1912_v15 }
 0x2c8   : > { %v11304_v35 = vpop.eup %9656  ;;  %v1940_v5 = vmul.f32 1.442695, %v1930_v36 }
 0x2c9   : > { %v1955_v17 = vsel %vm1903_vm3, %v11304_v35, 0.0 }
 0x2ca   : > { %9658 = vpow2.f32 %v1940_v5  ;;  %1917 = vmax.xlane.f32.xlu2 %v1916_v47  ;;  %1956 = vadd.xlane.f32.xlu0 %v1955_v17 }
 0x2cd   : > { %v1915_v40 = vpop.xlane.xlu1 %1914 }
 0x2ce   : > { %v1931_v52 = vsub.f32 %v11277_v37, %v1915_v40  ;;  %v11322_v37 = vsel %vm11283_vm5, -1e+09, %v1886_v19 }
 0x2cf   : > { %v1925_v7 = vsel %vm1903_vm3, %v11322_v37, -inf }
 0x2d0   : > { %v11314_v46 = vpop.eup %9658  ;;  %v1942_v28 = vmul.f32 1.442695, %v1931_v52 }
 0x2d1   : > { %v1958_v55 = vsel %vm1903_vm3, %v11314_v46, 0.0 }
 0x2d2   : > { %9660 = vpow2.f32 %v1942_v28  ;;  %1959 = vadd.xlane.f32.xlu2 %v1958_v55  ;;  %1923 = vmax.xlane.f32.xlu0 %v1922_v59 }
 0x2d8   : > { %v11324_v14 = vpop.eup %9660 }
 0x2d9   : > { %v1961_v30 = vsel %vm1903_vm3, %v11324_v14, 0.0 }
 0x2da   : > { %1926 = vmax.xlane.f32.xlu2 %v1925_v7  ;;  %1962 = vadd.xlane.f32.xlu1 %v1961_v30 }
 0x2e1   : > { %v1921_v21 = vpop.xlane.xlu1 %1920 }
 0x2e2   : > { %v1933_v62 = vsub.f32 %v11289_v3, %v1921_v21 }
 0x2e4   : > { %v1946_v63 = vmul.f32 1.442695, %v1933_v62 }
 0x2e6   : > { %9662 = vpow2.f32 %v1946_v63 }
 0x2ec   : > { %v11331_v44 = vpop.eup %9662 }
 0x2ed   : > { %v1967_v2 = vsel %vm1903_vm3, %v11331_v44, 0.0 }
 0x2ee   : > { %1968 = vadd.xlane.f32.xlu1 %v1967_v2 }
 0x335   : > { %v1954_v3 = vpop.xlane.xlu2 %1953 }
 0x336   : > { %9664 = vrcp.f32 %v1954_v3  ;;  %v1987_v57 = vand.u32 2147483648, %v1954_v3  ;;  %v1985_v29 = vand.u32 2147483647, %v1954_v3  ;;  %vm1981_vm7 = vweird.f32 %v1954_v3 }
 0x338   : > { %v1988_v20 = vor.u32 1.1754944e-38, %v1987_v57  ;;  %vm1986_vm9 = vcmp.eq.f32.partialorder %v1985_v29, 8.507059e+37 }
 0x33c   : > { %v9665_v33 = vpop.eup %9664 }
 0x33d   : > { %v1977_v53 = vmul.f32 %v9665_v33, %v1954_v3  ;;  %v1918_v25 = vpop.xlane.xlu2 %1917  ;;  %v1957_v26 = vpop.xlane.xlu0 %1956  ;;  %vm1982_vm6 = vweird.f32 %v9665_v33 }
 0x33e   : > { %v1932_v13 = vsub.f32 %v1899_v18, %v1918_v25  ;;  %9666 = vrcp.f32 %v1957_v26  ;;  %vm1983_vm8 = vmor %vm1981_vm7, %vm1982_vm6  ;;  %v2000_v42 = vand.u32 2147483647, %v1957_v26  ;;  %v2002_v23 = vand.u32 2147483648, %v1957_v26 }
 0x33f   : > { %v1978_v54 = vsub.f32 1.0, %v1977_v53  ;;  %vm1996_vm11 = vweird.f32 %v1957_v26 }
 0x340   : > { %v1944_v58 = vmul.f32 1.442695, %v1932_v13  ;;  %v2003_v24 = vor.u32 1.1754944e-38, %v2002_v23  ;;  %vm2001_vm13 = vcmp.eq.f32.partialorder %v2000_v42, 8.507059e+37 }
 0x341   : > { %v1979_v50 = vmul.f32 %v9665_v33, %v1978_v54 }
 0x342   : > { %9668 = vpow2.f32 %v1944_v58 }
 0x343   : > { %v1980_v27 = vadd.f32 %v9665_v33, %v1979_v50 }
 0x344   : > { %v9667_v6 = vpop.eup %9666 }
 0x345   : > { %v1984_v31 = vsel %vm1983_vm8, %v9665_v33, %v1980_v27  ;;  %v1992_v9 = vmul.f32 %v9667_v6, %v1957_v26  ;;  %v1960_v56 = vpop.xlane.xlu2 %1959  ;;  %v1924_v60 = vpop.xlane.xlu0 %1923  ;;  %vm1997_vm10 = vweird.f32 %v9667_v6 }
 0x346   : > { %v1989_v34 = vsel %vm1986_vm9, %v1988_v20, %v1984_v31  ;;  %9670 = vrcp.f32 %v1960_v56  ;;  %v1934_v8 = vsub.f32 %v11312_v12, %v1924_v60  ;;  %vm1998_vm12 = vmor %vm1996_vm11, %vm1997_vm10  ;;  %v2017_v28 = vand.u32 2147483648, %v1960_v56 }
 0x347   : > { %v1990_v41 = vmul.f32 %v11297_v38, %v1989_v34  ;;  %v1993_v32 = vsub.f32 1.0, %v1992_v9  ;;  %v2015_v30 = vand.u32 2147483647, %v1960_v56  ;;  %vm2011_vm15 = vweird.f32 %v1960_v56 }
 0x348   : > { %v11340_v10 = vpop.eup %9668  ;;  %v1948_v45 = vmul.f32 1.442695, %v1934_v8  ;;  %v2018_v22 = vor.u32 1.1754944e-38, %v2017_v28 }
 0x349   : > { %v1994_v15 = vmul.f32 %v9667_v6, %v1993_v32  ;;  %v1964_v36 = vsel %vm1903_vm3, %v11340_v10, 0.0  ;;  %v2097_v18 = vsel %vm1903_vm3, %v1990_v41, 0  ;;  %vm2016_vm2 = vcmp.eq.f32.partialorder %v2015_v30, 8.507059e+37 }
 0x34a   : > { %1965 = vadd.xlane.f32.xlu0 %v1964_v36  ;;  %9672 = vpow2.f32 %v1948_v45  ;;  %v11345_v38 = vand.u32 4294901760, %v2097_v18 }
 0x34b   : > { %v1995_v43 = vadd.f32 %v9667_v6, %v1994_v15 }
 0x34c   : > { %v9671_v5 = vpop.eup %9670  ;;  %2180 = vmatmul.f32.vlgmr.msra.gmra.mxu3 %v11345_v38  ;;  %v2126_v51 = vsub.f32 %v2097_v18, %v11345_v38  ;;  %v699_v18 = vld [vmem:[%s10942_s10 + $0x8] sm:$0xff] }
 0x34d   : > { %v1999_v47 = vsel %vm1998_vm12, %v9667_v6, %v1995_v43  ;;  %v2007_v17 = vmul.f32 %v9671_v5, %v1960_v56  ;;  %v1927_v11 = vpop.xlane.xlu2 %1926  ;;  %v1963_v49 = vpop.xlane.xlu1 %1962  ;;  %vm2012_vm14 = vweird.f32 %v9671_v5  ;;  %v700_v43 = vld [vmem:[%s10942_s10 + $0x10] sm:$0xff] }
 0x34e   : > { %v2004_v40 = vsel %vm2001_vm13, %v2003_v24, %v1999_v47  ;;  %v1935_v52 = vsub.f32 %v11322_v37, %v1927_v11  ;;  %9674 = vrcp.f32 %v1963_v49  ;;  %2216 = vmatmul.f32.vlgmr.msrb.gmra.mxu0 %v2126_v51  ;;  %v2127_v39 = vand.u32 4294901760, %v2126_v51  ;;  %vm2013_vm1 = vmor %vm2011_vm15, %vm2012_vm14  ;;  %v698_v24 = vld [vmem:[%s10942_s10] sm:$0xff]  ;;  %v705_v47 = vld [vmem:[%s10942_s10 + $0x38] sm:$0xff] }
 0x34f   : > { %v2008_v12 = vsub.f32 1.0, %v2007_v17  ;;  %v2005_v59 = vmul.f32 %v11304_v35, %v2004_v40  ;;  %v2030_v54 = vand.u32 2147483647, %v1963_v49  ;;  %v2032_v57 = vand.u32 2147483648, %v1963_v49  ;;  %v703_v17 = vld [vmem:[%s10942_s10 + $0x28] sm:$0xff]  ;;  %v704_v11 = vld [vmem:[%s10942_s10 + $0x30] sm:$0xff] }
 0x350   : > { %v1950_v55 = vmul.f32 1.442695, %v1935_v52  ;;  %v11351_v19 = vpop.eup %9672  ;;  %2255 = vmatmul.f32.vlgmr.msrb.gmra.mxu1 %v2127_v39  ;;  %v2128_v21 = vsub.f32 %v2126_v51, %v2127_v39  ;;  %vm2026_vm5 = vweird.f32 %v1963_v49  ;;  %v702_v51 = vld [vmem:[%s10942_s10 + $0x20] sm:$0xff]  ;;  %v9718_v40 = vld [vmem:[%s10894_s16 + $0x8] sm:$0xff]  ;;  %s10624_s16 = smov 112  }
 0x351   : > { %v2009_v7 = vmul.f32 %v9671_v5, %v2008_v12  ;;  %v1970_v62 = vsel %vm1903_vm3, %v11351_v19, 0.0  ;;  %v2100_v37 = vsel %vm1903_vm3, %v2005_v59, 0  ;;  %vm2031_vm7 = vcmp.eq.f32.partialorder %v2030_v54, 8.507059e+37 }
 0x352   : > { %9676 = vpow2.f32 %v1950_v55  ;;  %1971 = vadd.xlane.f32.xlu2 %v1970_v62  ;;  %v2129_v2 = vand.u32 4294901760, %v2128_v21  ;;  %v11356_v61 = vand.u32 4294901760, %v2100_v37 }
 0x353   : > { %v2010_v63 = vadd.f32 %v9671_v5, %v2009_v7 }
 0x354   : > { %v9675_v35 = vpop.eup %9674  ;;  %2130 = vmatmul.f32.vlgmr.msra.gmra.mxu2 %v2129_v2  ;;  %2184 = vmatmul.f32.gmra.mxu3 %v11356_v61  ;;  %v2134_v3 = vsub.f32 %v2100_v37, %v11356_v61 }
 0x355   : > { %v2014_v4 = vsel %vm2013_vm1, %v9671_v5, %v2010_v63  ;;  %v2022_v16 = vmul.f32 %v9675_v35, %v1963_v49  ;;  %vm2027_vm4 = vweird.f32 %v9675_v35  ;;  %v701_v5 = vld [vmem:[%s10942_s10 + $0x18] sm:$0xff] }
 0x356   : > { %v2019_v33 = vsel %vm2016_vm2, %v2018_v22, %v2014_v4  ;;  %2221 = vmatmul.f32.gmra.mxu0 %v2134_v3  ;;  %v2135_v25 = vand.u32 4294901760, %v2134_v3  ;;  %vm2028_vm6 = vmor %vm2026_vm5, %vm2027_vm4  ;;  %2615 = vperm.xlu1 %9649, %v701_v5  }
 0x357   : > { %v2023_v53 = vsub.f32 1.0, %v2022_v16  ;;  %v2020_v26 = vmul.f32 %v11314_v46, %v2019_v33  ;;  %v2033_v46 = vor.u32 1.1754944e-38, %v2032_v57 }
 0x358   : > { %v11361_v13 = vpop.eup %9676  ;;  %2261 = vmatmul.f32.gmra.mxu1 %v2135_v25  ;;  %v2136_v29 = vsub.f32 %v2134_v3, %v2135_v25 }
 0x359   : > { %v2024_v58 = vmul.f32 %v9675_v35, %v2023_v53  ;;  %v1973_v50 = vsel %vm1903_vm3, %v11361_v13, 0.0  ;;  %v2103_v27 = vsel %vm1903_vm3, %v2020_v26, 0 }
 0x35a   : > { %1974 = vadd.xlane.f32.xlu0 %v1973_v50  ;;  %v2141_v6 = vand.u32 4294901760, %v2103_v27  ;;  %v2137_v31 = vand.u32 4294901760, %v2136_v29 }
 0x35b   : > { %v2025_v20 = vadd.f32 %v9675_v35, %v2024_v58 }
 0x35c   : > { %v2142_v9 = vsub.f32 %v2103_v27, %v2141_v6  ;;  %2138 = vmatmul.f32.gmra.mxu2 %v2137_v31  ;;  %2188 = vmatmul.f32.gmra.mxu3 %v2141_v6 }
 0x35d   : > { %v2029_v56 = vsel %vm2028_vm6, %v9675_v35, %v2025_v20 }
 0x35e   : > { %v2034_v60 = vsel %vm2031_vm7, %v2033_v46, %v2029_v56  ;;  %v2143_v34 = vand.u32 4294901760, %v2142_v9  ;;  %2226 = vmatmul.f32.gmra.mxu0 %v2142_v9  ;;  %2635 = vperm.xlu1 %9649, %v705_v47  }
 0x35f   : > { %v2035_v41 = vmul.f32 %v11324_v14, %v2034_v60 }
 0x360   : > { %v2144_v32 = vsub.f32 %v2142_v9, %v2143_v34  ;;  %2267 = vmatmul.f32.gmra.mxu1 %v2143_v34 }
 0x361   : > { %v2106_v8 = vsel %vm1903_vm3, %v2035_v41, 0  ;;  %v1969_v49 = vpop.xlane.xlu1 %1968 }
 0x362   : > { %v2145_v42 = vand.u32 4294901760, %v2144_v32  ;;  %v2149_v23 = vand.u32 4294901760, %v2106_v8  ;;  %9678 = vrcp.f32 %v1969_v49  ;;  %v2062_v37 = vand.u32 2147483648, %v1969_v49 }
 0x363   : > { %vm2056_vm9 = vweird.f32 %v1969_v49  ;;  %v2060_v63 = vand.u32 2147483647, %v1969_v49 }
 0x364   : > { %2146 = vmatmul.f32.gmra.mxu2 %v2145_v42  ;;  %2192 = vmatmul.f32.gmra.mxu3 %v2149_v23  ;;  %v2150_v15 = vsub.f32 %v2106_v8, %v2149_v23  ;;  %v2063_v35 = vor.u32 1.1754944e-38, %v2062_v37 }
 0x365   : > { %vm2061_vm11 = vcmp.eq.f32.partialorder %v2060_v63, 8.507059e+37 }
 0x366   : > { %2231 = vmatmul.f32.gmra.mxu0 %v2150_v15  ;;  %v2151_v45 = vand.u32 4294901760, %v2150_v15  ;;  %2625 = vperm.xlu1 %9649, %v703_v17  }
 0x368   : > { %2273 = vmatmul.f32.gmra.mxu1 %v2151_v45  ;;  %v2152_v36 = vsub.f32 %v2150_v15, %v2151_v45  ;;  %v9679_v39 = vpop.eup %9678 }
 0x369   : > { %v2052_v59 = vmul.f32 %v9679_v39, %v1969_v49  ;;  %vm2057_vm8 = vweird.f32 %v9679_v39 }
 0x36a   : > { %v2153_v14 = vand.u32 4294901760, %v2152_v36  ;;  %2610 = vperm.xlu2 %9650, %v700_v43   ;;  %vm2058_vm10 = vmor %vm2056_vm9, %vm2057_vm8 }
 0x36b   : > { %v2053_v7 = vsub.f32 1.0, %v2052_v59 }
 0x36c   : > { %2154 = vmatmul.f32.gmra.mxu2 %v2153_v14  ;;  %2331 = vmatmul.f32.vlgmr.msrb.gmra.mxu3 %v11345_v38 }
 0x36d   : > { %v2054_v30 = vmul.f32 %v9679_v39, %v2053_v7 }
 0x36e   : > { %2605 = vperm.xlu0 %9651, %v699_v18  }
 0x36f   : > { %v2055_v62 = vadd.f32 %v9679_v39, %v2054_v30 }
 0x372   : > { %2600 = vperm.xlu2 %9650, %v698_v24  }
 0x374   : > { %2297 = vmatmul.f32.vlgmr.msrb.gmra.mxu2 %v11345_v38  ;;  %2335 = vmatmul.f32.gmra.mxu3 %v11356_v61  ;;  %v2374_v38 = vand.u32 4294901760, %v9718_v40 }
 0x376   : > { %2375 = vmatpush.msra.mxu0 %v2374_v38  ;;  %v2425_v52 = vsub.f32 %v9718_v40, %v2374_v38  ;;  %2502 = vmatpush.msra.mxu3 %v2374_v38 }
 0x378   : > { %v2426_v12 = vand.u32 4294901760, %v2425_v52  ;;  %2464 = vmatpush.msra.mxu2 %v2425_v52 }
 0x37a   : > { %2630 = vperm.xlu2 %9650, %v704_v11   ;;  %v2427_v28 = vsub.f32 %v2425_v52, %v2426_v12  ;;  %2546 = vmatpush.msrb.mxu0 %v2426_v12 }
 0x37c   : > { %2301 = vmatmul.f32.gmra.mxu2 %v11356_v61  ;;  %2339 = vmatmul.f32.gmra.mxu3 %v2141_v6  ;;  %v2428_v55 = vand.u32 4294901760, %v2427_v28  ;;  %v2059_v61 = vsel %vm2058_vm10, %v9679_v39, %v2055_v62 }
 0x37d   : > { %v2064_v16 = vsel %vm2061_vm11, %v2063_v35, %v2059_v61 }
 0x37e   : > { %2429 = vmatpush.msra.mxu1 %v2428_v55  ;;  %v2065_v26 = vmul.f32 %v11331_v44, %v2064_v16 }
 0x380   : > { %2580 = vmatpush.msrb.mxu1 %v2374_v38  ;;  %v2351_v20 = vsel %vm1903_vm3, %v2065_v26, 0 }
 0x381   : > { %v11387_v60 = vand.u32 4294901760, %v2351_v20 }
 0x382   : > { %2620 = vperm.xlu2 %9650, %v702_v51  }
 0x383   : > { %v2385_v14 = vsub.f32 %v2351_v20, %v11387_v60 }
 0x384   : > { %2305 = vmatmul.f32.gmra.mxu2 %v2141_v6  ;;  %2343 = vmatmul.f32.gmra.mxu3 %v2149_v23 }
 0x385   : > { %v2386_v38 = vand.u32 4294901760, %v2385_v14 }
 0x38c   : > { %2309 = vmatmul.f32.gmra.mxu2 %v2149_v23 }
 0x3bd   : > { %v1966_v21 = vpop.xlane.xlu0 %1965 }
 0x3be   : > { %9680 = vrcp.f32 %v1966_v21  ;;  %v2047_v33 = vand.u32 2147483648, %v1966_v21  ;;  %v2045_v25 = vand.u32 2147483647, %v1966_v21  ;;  %vm2041_vm13 = vweird.f32 %v1966_v21 }
 0x3c0   : > { %v2048_v57 = vor.u32 1.1754944e-38, %v2047_v33  ;;  %vm2046_vm15 = vcmp.eq.f32.partialorder %v2045_v25, 8.507059e+37 }
 0x3c4   : > { %v9681_v2 = vpop.eup %9680 }
 0x3c5   : > { %v2037_v22 = vmul.f32 %v9681_v2, %v1966_v21  ;;  %v1972_v4 = vpop.xlane.xlu2 %1971  ;;  %vm2042_vm12 = vweird.f32 %v9681_v2 }
 0x3c6   : > { %9682 = vrcp.f32 %v1972_v4  ;;  %vm2043_vm14 = vmor %vm2041_vm13, %vm2042_vm12  ;;  %v2077_v56 = vand.u32 2147483648, %v1972_v4  ;;  %v2075_v41 = vand.u32 2147483647, %v1972_v4  ;;  %vm2071_vm2 = vweird.f32 %v1972_v4 }
 0x3c7   : > { %v2038_v3 = vsub.f32 1.0, %v2037_v22 }
 0x3c8   : > { %v2078_v23 = vor.u32 1.1754944e-38, %v2077_v56  ;;  %vm2076_vm5 = vcmp.eq.f32.partialorder %v2075_v41, 8.507059e+37 }
 0x3c9   : > { %v2039_v53 = vmul.f32 %v9681_v2, %v2038_v3 }
 0x3cb   : > { %v2040_v54 = vadd.f32 %v9681_v2, %v2039_v53  ;;  %v2217_v33 = vpop.f32.mrf.mxu0 }
 0x3cc   : > { %v9683_v58 = vpop.eup %9682 }
 0x3cd   : > { %v2044_v50 = vsel %vm2043_vm14, %v9681_v2, %v2040_v54  ;;  %v1975_v29 = vpop.xlane.xlu0 %1974  ;;  %v2067_v6 = vmul.f32 %v9683_v58, %v1972_v4  ;;  %vm2072_vm1 = vweird.f32 %v9683_v58  ;;  %v2256_v25 = vpop.f32.mrf.mxu1 }
 0x3ce   : > { %v2049_v27 = vsel %vm2046_vm15, %v2048_v57, %v2044_v50  ;;  %9684 = vrcp.f32 %v1975_v29  ;;  %vm2073_vm4 = vmor %vm2071_vm2, %vm2072_vm1  ;;  %v2092_v5 = vand.u32 2147483648, %v1975_v29  ;;  %v2090_v51 = vand.u32 2147483647, %v1975_v29 }
 0x3cf   : > { %v2050_v31 = vmul.f32 %v11340_v10, %v2049_v27  ;;  %v2068_v46 = vsub.f32 1.0, %v2067_v6  ;;  %v11384_v9 = vpop.f32.mrf.mxu3  ;;  %vm2086_vm7 = vweird.f32 %v1975_v29  ;;  %vm3472_vm2 = vcmask 130048  }
 0x3d0   : > { %v2093_v28 = vor.u32 1.1754944e-38, %v2092_v5  ;;  %vm2091_vm9 = vcmp.eq.f32.partialorder %v2090_v51, 8.507059e+37 }
 0x3d1   : > { %v2348_v44 = vsel %vm1903_vm3, %v2050_v31, 0  ;;  %v2069_v34 = vmul.f32 %v9683_v58, %v2068_v46 }
 0x3d2   : > { %v11389_v32 = vand.u32 4294901760, %v2348_v44 }
 0x3d3   : > { %v2070_v42 = vadd.f32 %v9683_v58, %v2069_v34 }
 0x3d4   : > { %v9685_v8 = vpop.eup %9684  ;;  %2431 = vmatmul.f32.vlgmr.msra.gmra.mxu1 %v11389_v32  ;;  %v2377_v10 = vsub.f32 %v2348_v44, %v11389_v32  ;;  %v11411_v44 = vpop.permute.xlu2 %2610 }
 0x3d5   : > { %v2082_v15 = vmul.f32 %v9685_v8, %v1975_v29  ;;  %v2074_v45 = vsel %vm2073_vm4, %v9683_v58, %v2070_v42  ;;  %vm2087_vm6 = vweird.f32 %v9685_v8  ;;  %v2222_v58 = vpop.f32.mrf.mxu0  ;;  %v2262_v29 = vpop.f32.mrf.mxu1 }
 0x3d6   : > { %2467 = vmatmul.f32.vlgmr.msra.gmra.mxu2 %v2377_v10  ;;  %v2378_v36 = vand.u32 4294901760, %v2377_v10  ;;  %v2079_v18 = vsel %vm2076_vm5, %v2078_v23, %v2074_v45  ;;  %vm2088_vm8 = vmor %vm2086_vm7, %vm2087_vm6 }
 0x3d7   : > { %v2083_v43 = vsub.f32 1.0, %v2082_v15  ;;  %v2131_v24 = vpop.f32.mrf.mxu2  ;;  %v2185_v47 = vpop.f32.mrf.mxu3  ;;  %v2080_v11 = vmul.f32 %v11351_v19, %v2079_v18  ;;  %v2387_v19 = vsub.f32 %v2385_v14, %v2386_v38 }
 0x3d8   : > { %2506 = vmatmul.f32.vlgmr.msra.gmra.mxu3 %v2378_v36  ;;  %v2379_v17 = vsub.f32 %v2377_v10, %v2378_v36  ;;  %v2182_v27 = vadd.f32 %v11384_v9, %v2131_v24 }
 0x3d9   : > { %v2084_v49 = vmul.f32 %v9685_v8, %v2083_v43  ;;  %v2354_v52 = vsel %vm1903_vm3, %v2080_v11, 0  ;;  %v2388_v63 = vand.u32 4294901760, %v2387_v19 }
 0x3da   : > { %v2380_v40 = vand.u32 4294901760, %v2379_v17  ;;  %v11396_v39 = vand.u32 4294901760, %v2354_v52  ;;  %v2218_v20 = vadd.f32 %v2217_v33, %v2182_v27 }
 0x3db   : > { %v2085_v12 = vadd.f32 %v9685_v8, %v2084_v49 }
 0x3dc   : > { %2381 = vmatmul.f32.vlgmr.msra.gmra.mxu0 %v2380_v40  ;;  %2435 = vmatmul.f32.gmra.mxu1 %v11387_v60  ;;  %v2393_v7 = vsub.f32 %v2354_v52, %v11396_v39  ;;  %v11415_v43 = vpop.permute.xlu2 %2600 }
 0x3dd   : > { %v2089_v55 = vsel %vm2088_vm8, %v9685_v8, %v2085_v12  ;;  %v2227_v34 = vpop.f32.mrf.mxu0  ;;  %v2257_v8 = vadd.f32 %v2256_v25, %v2218_v20  ;;  %v2268_v23 = vpop.f32.mrf.mxu1  ;;  %v11447_v25 = vld [vmem:[%s10937_s14 + $0x18] sm:$0xff] }
 0x3de   : > { %v2094_v59 = vsel %vm2091_vm9, %v2093_v28, %v2089_v55  ;;  %2472 = vmatmul.f32.gmra.mxu2 %v2385_v14  ;;  %v2394_v2 = vand.u32 4294901760, %v2393_v7 }
 0x3df   : > { %v2095_v30 = vmul.f32 %v11361_v13, %v2094_v59  ;;  %v2139_v21 = vpop.f32.mrf.mxu2  ;;  %v2189_v62 = vpop.f32.mrf.mxu3 }
 0x3e0   : > { %2512 = vmatmul.f32.gmra.mxu3 %v2386_v38  ;;  %v2395_v35 = vsub.f32 %v2393_v7, %v2394_v2  ;;  %v2186_v6 = vadd.f32 %v2185_v47, %v2139_v21  ;;  %v11417_v17 = vpop.permute.xlu0 %2605 }
 0x3e1   : > { %v2357_v37 = vsel %vm1903_vm3, %v2095_v30, 0 }
 0x3e2   : > { %v11402_v61 = vand.u32 4294901760, %v2357_v37  ;;  %v2396_v13 = vand.u32 4294901760, %v2395_v35  ;;  %v2223_v46 = vadd.f32 %v2222_v58, %v2186_v6  ;;  %v11437_v35 = vld [vmem:[%s10937_s14 + $0x8] sm:$0xff] }
 0x3e4   : > { %2389 = vmatmul.f32.gmra.mxu0 %v2388_v63  ;;  %2439 = vmatmul.f32.gmra.mxu1 %v11396_v39  ;;  %v2401_v22 = vsub.f32 %v2357_v37, %v11402_v61  ;;  %v2263_v10 = vadd.f32 %v2262_v29, %v2223_v46  ;;  %v11430_v37 = vld [vmem:[%s10937_s14] sm:$0xff] }
 0x3e5   : > { %v2232_v47 = vpop.f32.mrf.mxu0  ;;  %v2274_v52 = vpop.f32.mrf.mxu1 }
 0x3e6   : > { %2477 = vmatmul.f32.gmra.mxu2 %v2393_v7  ;;  %v2402_v3 = vand.u32 4294901760, %v2401_v22  ;;  %v11426_v7 = vld [vmem:[%s10937_s14 + $0x10] sm:$0xff] }
 0x3e7   : > { %v2147_v4 = vpop.f32.mrf.mxu2  ;;  %v2193_v16 = vpop.f32.mrf.mxu3 }
 0x3e8   : > { %2518 = vmatmul.f32.gmra.mxu3 %v2394_v2  ;;  %v2403_v53 = vsub.f32 %v2401_v22, %v2402_v3  ;;  %v2190_v56 = vadd.f32 %v2189_v62, %v2147_v4  ;;  %v11433_v2 = vpop.permute.xlu1 %2615 }
 0x3ea   : > { %v2404_v54 = vand.u32 4294901760, %v2403_v53  ;;  %v2228_v42 = vadd.f32 %v2227_v34, %v2190_v56 }
 0x3ec   : > { %2397 = vmatmul.f32.gmra.mxu0 %v2396_v13  ;;  %2443 = vmatmul.f32.gmra.mxu1 %v11402_v61  ;;  %v2269_v45 = vadd.f32 %v2268_v23, %v2228_v42 }
 0x3ee   : > { %2482 = vmatmul.f32.gmra.mxu2 %v2401_v22 }
 0x3ef   : > { %v2155_v26 = vpop.f32.mrf.mxu2  ;;  %v2332_v57 = vpop.f32.mrf.mxu3 }
 0x3f0   : > { %2524 = vmatmul.f32.gmra.mxu3 %v2402_v3 }
 0x3f4   : > { %2405 = vmatmul.f32.gmra.mxu0 %v2404_v54  ;;  %2582 = vmatmul.f32.vlgmr.msrb.gmra.mxu1 %v11389_v32 }
 0x3f7   : > { %v2298_v50 = vpop.f32.mrf.mxu2  ;;  %v2336_v31 = vpop.f32.mrf.mxu3 }
 0x3f8   : > { %v2299_v15 = vadd.f32 %v2298_v50, %v2257_v8 }
 0x3fa   : > { %v2333_v36 = vadd.f32 %v2332_v57, %v2299_v15 }
 0x3fc   : > { %2548 = vmatmul.f32.vlgmr.msrb.gmra.mxu0 %v11389_v32  ;;  %2586 = vmatmul.f32.gmra.mxu1 %v11387_v60  ;;  %v2194_v32 = vadd.f32 %v2193_v16, %v2155_v26  ;;  %v2638_v51 = vmul.f32 %v11415_v43, %v2333_v36 }
 0x3fe   : > { %v2233_v11 = vadd.f32 %v2232_v47, %v2194_v32 }
 0x3ff   : > { %v2302_v41 = vpop.f32.mrf.mxu2  ;;  %v2340_v14 = vpop.f32.mrf.mxu3 }
 0x400   : > { %v2303_v9 = vadd.f32 %v2302_v41, %v2263_v10  ;;  %v2275_v28 = vadd.f32 %v2274_v52, %v2233_v11 }
 0x402   : > { %v2337_v5 = vadd.f32 %v2336_v31, %v2303_v9 }
 0x404   : > { %2552 = vmatmul.f32.gmra.mxu0 %v11387_v60  ;;  %2590 = vmatmul.f32.gmra.mxu1 %v11396_v39  ;;  %v2648_v60 = vperm.slane %v10944_v0, 0  ;;  %v2639_v40 = vmul.f32 %v11417_v17, %v2337_v5 }
 0x406   : > { %v2652_v55 = vadd.f32 %v2648_v60, %v2638_v51  ;;  %v2653_v19 = vadd.f32 %v2648_v60, %v2639_v40 }
 0x407   : > { %v2306_v18 = vpop.f32.mrf.mxu2 }
 0x408   : > { %v2307_v24 = vadd.f32 %v2306_v18, %v2269_v45  ;;  %v2660_v63 = vmul.f32 %v11430_v37, %v2652_v55  ;;  %v2661_v22 = vmul.f32 %v11437_v35, %v2653_v19 }
 0x40a   : > { %v2341_v49 = vadd.f32 %v2340_v14, %v2307_v24  ;;  %v2669_v3 = vsel %vm714_vm0, %v2660_v63, 0  ;;  %v2672_v53 = vsel %vm714_vm0, %v2661_v22, 0 }
 0x40b   : > { %v11451_v57 = vand.u32 4294901760, %v2672_v53 }
 0x40c   : > { %2556 = vmatmul.f32.gmra.mxu0 %v11396_v39  ;;  %2594 = vmatmul.f32.gmra.mxu1 %v11402_v61  ;;  %v2640_v38 = vmul.f32 %v11411_v44, %v2341_v49  ;;  %v2344_v39 = vpop.f32.mrf.mxu3 }
 0x40d   : > { %v2709_v20 = vsub.f32 %v2672_v53, %v11451_v57 }
 0x40e   : > { %v2654_v12 = vadd.f32 %v2648_v60, %v2640_v38 }
 0x40f   : > { %v2310_v59 = vpop.f32.mrf.mxu2  ;;  %v2710_v8 = vand.u32 4294901760, %v2709_v20 }
 0x410   : > { %v2662_v30 = vmul.f32 %v11426_v7, %v2654_v12  ;;  %v2311_v21 = vadd.f32 %v2310_v59, %v2275_v28 }
 0x411   : > { %v2711_v23 = vsub.f32 %v2709_v20, %v2710_v8 }
 0x412   : > { %v2345_v62 = vadd.f32 %v2344_v39, %v2311_v21  ;;  %v2675_v4 = vsel %vm714_vm0, %v2662_v30, 0  ;;  %v11476_v39 = vpop.permute.xlu2 %2630 }
 0x413   : > { %v11443_v33 = vand.u32 4294901760, %v2675_v4  ;;  %v2712_v9 = vand.u32 4294901760, %v2711_v23 }
 0x414   : > { %2560 = vmatmul.f32.gmra.mxu0 %v11402_v61  ;;  %v2641_v16 = vmul.f32 %v11433_v2, %v2345_v62  ;;  %v2698_v61 = vand.u32 4294901760, %v2669_v3  ;;  %v11478_v62 = vpop.permute.xlu1 %2635 }
 0x415   : > { %v2717_v50 = vsub.f32 %v2675_v4, %v11443_v33 }
 0x416   : > { %v2655_v13 = vadd.f32 %v2648_v60, %v2641_v16  ;;  %v2701_v27 = vsub.f32 %v2669_v3, %v2698_v61 }
 0x417   : > { %v2718_v31 = vand.u32 4294901760, %v2717_v50 }
 0x418   : > { %v2663_v26 = vmul.f32 %v11447_v25, %v2655_v13  ;;  %v2702_v56 = vand.u32 4294901760, %v2701_v27 }
 0x419   : > { %v2719_v41 = vsub.f32 %v2717_v50, %v2718_v31 }
 0x41a   : > { %v2678_v54 = vsel %vm714_vm0, %v2663_v26, 0  ;;  %v2703_v42 = vsub.f32 %v2701_v27, %v2702_v56 }
 0x41b   : > { %v11453_v58 = vand.u32 4294901760, %v2678_v54  ;;  %v2720_v10 = vand.u32 4294901760, %v2719_v41 }
 0x41c   : > { %v2704_v15 = vand.u32 4294901760, %v2703_v42 }
 0x41d   : > { %2693 = vmatpush.xpose.msrb.mxu2 %v11453_v58  ;;  %2844 = vmatpush.xpose.msra.mxu1 %v11453_v58  ;;  %v2725_v29 = vsub.f32 %v2678_v54, %v11453_v58 }
 0x41f   : > { %2800 = vmatpush.xpose.msra.mxu0 %v2725_v29  ;;  %v2726_v6 = vand.u32 4294901760, %v2725_v29 }
 0x421   : > { %2695 = vmatpush.xpose.msrb.mxu2 %v11443_v33  ;;  %2846 = vmatpush.xpose.msra.mxu1 %v11443_v33  ;;  %v2727_v46 = vsub.f32 %v2725_v29, %v2726_v6 }
 0x423   : > { %2803 = vmatpush.xpose.msra.mxu0 %v2717_v50  ;;  %v2728_v34 = vand.u32 4294901760, %v2727_v46  ;;  %v2649_v46 = vperm.slane %v10946_v1, 0 }
 0x425   : > { %2697 = vmatpush.xpose.msrb.mxu2 %v11451_v57  ;;  %2750 = vmatpush.xpose.msrb.mxu3 %v2728_v34 }
 0x426   : > { %2848 = vmatpush.xpose.msra.mxu1 %v11451_v57 }
 0x427   : > { %2806 = vmatpush.xpose.msra.mxu0 %v2709_v20 }
 0x429   : > { %2699 = vmatpush.xpose.msrb.mxu2 %v2698_v61  ;;  %2756 = vmatpush.xpose.msrb.mxu3 %v2720_v10 }
 0x42a   : > { %2850 = vmatpush.xpose.msra.mxu1 %v2698_v61 }
 0x42b   : > { %2809 = vmatpush.xpose.msra.mxu0 %v2701_v27 }
 0x42c   : > { %2705 = vmatmul.f32.vlgmr.msrb.gmra.mxu2 %v2704_v15 }
 0x42d   : > { %2891 = vmatpush.xpose.msra.mxu2 %v2726_v6  ;;  %2854 = vmatmul.f32.vlgmr.msra.gmra.mxu1 %v2702_v56 }
 0x42e   : > { %2762 = vmatpush.xpose.msrb.mxu3 %v2712_v9  ;;  %2812 = vmatmul.f32.vlgmr.msra.gmra.mxu0 %v2701_v27 }
 0x431   : > { %2895 = vmatpush.xpose.msra.mxu2 %v2718_v31 }
 0x432   : > { %2768 = vmatpush.xpose.msrb.mxu3 %v2704_v15 }
 0x434   : > { %2713 = vmatmul.f32.gmra.mxu2 %v2712_v9  ;;  %v11489_v9 = vld [vmem:[%s10937_s14 + $0x30] sm:$0xff] }
 0x435   : > { %2899 = vmatpush.xpose.msra.mxu2 %v2710_v8  ;;  %2770 = vmatmul.f32.vlgmr.msrb.gmra.mxu3 %v2698_v61 }
 0x436   : > { %2934 = vmatpush.xpose.msra.mxu3 %v11453_v58  ;;  %2860 = vmatmul.f32.gmra.mxu1 %v2710_v8 }
 0x437   : > { %2817 = vmatmul.f32.gmra.mxu0 %v2709_v20  ;;  %v11482_v20 = vpop.permute.xlu1 %2625 }
 0x439   : > { %2903 = vmatpush.xpose.msra.mxu2 %v2702_v56 }
 0x43a   : > { %2936 = vmatpush.xpose.msra.mxu3 %v11443_v33 }
 0x43c   : > { %2721 = vmatmul.f32.gmra.mxu2 %v2720_v10 }
 0x43d   : > { %2774 = vmatmul.f32.gmra.mxu3 %v11451_v57 }
 0x43e   : > { %2938 = vmatpush.xpose.msra.mxu3 %v11451_v57  ;;  %2866 = vmatmul.f32.gmra.mxu1 %v2718_v31 }
 0x43f   : > { %2822 = vmatmul.f32.gmra.mxu0 %v2717_v50 }
 0x442   : > { %2940 = vmatpush.xpose.msra.mxu3 %v2698_v61 }
 0x444   : > { %2729 = vmatmul.f32.gmra.mxu2 %v2728_v34 }
 0x445   : > { %2778 = vmatmul.f32.gmra.mxu3 %v11443_v33 }
 0x446   : > { %2872 = vmatmul.f32.gmra.mxu1 %v2726_v6 }
 0x447   : > { %2827 = vmatmul.f32.gmra.mxu0 %v2725_v29  ;;  %v11480_v29 = vpop.permute.xlu2 %2620 }
 0x44c   : > { %2905 = vmatmul.f32.vlgmr.msra.gmra.mxu2 %v2698_v61 }
 0x44d   : > { %2782 = vmatmul.f32.gmra.mxu3 %v11453_v58 }
 0x451   : > { %v2432_v32 = vpop.f32.mrf.mxu1 }
 0x454   : > { %2909 = vmatmul.f32.gmra.mxu2 %v11451_v57 }
 0x455   : > { %2942 = vmatmul.f32.vlgmr.msra.gmra.mxu3 %v2698_v61 }
 0x459   : > { %v2382_v45 = vpop.f32.mrf.mxu0  ;;  %v2436_v36 = vpop.f32.mrf.mxu1 }
 0x45a   : > { %v2468_v47 = vpop.f32.mrf.mxu2  ;;  %v2433_v38 = vadd.f32 %v2432_v32, %v2382_v45 }
 0x45b   : > { %v2507_v11 = vpop.f32.mrf.mxu3 }
 0x45c   : > { %2913 = vmatmul.f32.gmra.mxu2 %v11443_v33  ;;  %v2469_v28 = vadd.f32 %v2468_v47, %v2433_v38 }
 0x45d   : > { %2946 = vmatmul.f32.gmra.mxu3 %v11451_v57 }
 0x45e   : > { %v2508_v63 = vadd.f32 %v2507_v11, %v2469_v28 }
 0x461   : > { %v2390_v14 = vpop.f32.mrf.mxu0  ;;  %v2440_v18 = vpop.f32.mrf.mxu1 }
 0x462   : > { %v2473_v51 = vpop.f32.mrf.mxu2  ;;  %v2437_v12 = vadd.f32 %v2436_v36, %v2390_v14 }
 0x463   : > { %v2513_v52 = vpop.f32.mrf.mxu3 }
 0x464   : > { %2917 = vmatmul.f32.gmra.mxu2 %v11453_v58  ;;  %v2474_v59 = vadd.f32 %v2473_v51, %v2437_v12 }
 0x465   : > { %2950 = vmatmul.f32.gmra.mxu3 %v11443_v33 }
 0x466   : > { %v2514_v22 = vadd.f32 %v2513_v52, %v2474_v59  ;;  %v11507_v52 = vld [vmem:[%s10937_s14 + $0x38] sm:$0xff] }
 0x469   : > { %v2398_v5 = vpop.f32.mrf.mxu0  ;;  %v2444_v24 = vpop.f32.mrf.mxu1 }
 0x46a   : > { %v2441_v19 = vadd.f32 %v2440_v18, %v2398_v5  ;;  %v2478_v30 = vpop.f32.mrf.mxu2  ;;  %v11493_v18 = vld [vmem:[%s10937_s14 + $0x20] sm:$0xff] }
 0x46b   : > { %v2519_v16 = vpop.f32.mrf.mxu3 }
 0x46c   : > { %v2479_v4 = vadd.f32 %v2478_v30, %v2441_v19 }
 0x46d   : > { %2954 = vmatmul.f32.gmra.mxu3 %v11453_v58 }
 0x46e   : > { %v2520_v33 = vadd.f32 %v2519_v16, %v2479_v4 }
 0x471   : > { %v2406_v49 = vpop.f32.mrf.mxu0  ;;  %v2583_v60 = vpop.f32.mrf.mxu1 }
 0x472   : > { %v2445_v53 = vadd.f32 %v2444_v24, %v2406_v49  ;;  %v2483_v50 = vpop.f32.mrf.mxu2  ;;  %v11497_v24 = vld [vmem:[%s10937_s14 + $0x28] sm:$0xff] }
 0x473   : > { %v2525_v41 = vpop.f32.mrf.mxu3 }
 0x474   : > { %v2484_v27 = vadd.f32 %v2483_v50, %v2445_v53 }
 0x476   : > { %v2526_v8 = vadd.f32 %v2525_v41, %v2484_v27 }
 0x479   : > { %v2549_v40 = vpop.f32.mrf.mxu0  ;;  %v2587_v55 = vpop.f32.mrf.mxu1 }
 0x47a   : > { %v2550_v13 = vadd.f32 %v2549_v40, %v2508_v63 }
 0x47c   : > { %v2584_v26 = vadd.f32 %v2583_v60, %v2550_v13 }
 0x47e   : > { %v2642_v31 = vmul.f32 %v11480_v29, %v2584_v26 }
 0x480   : > { %v2656_v10 = vadd.f32 %v2649_v46, %v2642_v31 }
 0x481   : > { %v2553_v21 = vpop.f32.mrf.mxu0  ;;  %v2591_v61 = vpop.f32.mrf.mxu1 }
 0x482   : > { %v2554_v3 = vadd.f32 %v2553_v21, %v2514_v22  ;;  %v2664_v5 = vmul.f32 %v11493_v18, %v2656_v10 }
 0x484   : > { %v2588_v57 = vadd.f32 %v2587_v55, %v2554_v3  ;;  %v2959_v51 = vsel %vm714_vm0, %v2664_v5, 0 }
 0x485   : > { %v11510_v28 = vand.u32 4294901760, %v2959_v51 }
 0x486   : > { %v2643_v56 = vmul.f32 %v11482_v20, %v2588_v57 }
 0x487   : > { %v2991_v63 = vsub.f32 %v2959_v51, %v11510_v28 }
 0x488   : > { %v2657_v15 = vadd.f32 %v2649_v46, %v2643_v56 }
 0x489   : > { %v2557_v54 = vpop.f32.mrf.mxu0  ;;  %v2595_v36 = vpop.f32.mrf.mxu1  ;;  %v2992_v3 = vand.u32 4294901760, %v2991_v63 }
 0x48a   : > { %v2558_v58 = vadd.f32 %v2557_v54, %v2520_v33  ;;  %v2665_v47 = vmul.f32 %v11497_v24, %v2657_v15  ;;  %v696_v15 = vld [vmem:[%s10915_s2] sm:$0x1] }
 0x48b   : > { %vm3256_vm3 = vcmp.eq.f32.partialorder %v696_v15, 0.0 }
 0x48c   : > { %v2592_v6 = vadd.f32 %v2591_v61, %v2558_v58  ;;  %v2962_v38 = vsel %vm714_vm0, %v2665_v47, 0  ;;  %v2993_v61 = vsub.f32 %v2991_v63, %v2992_v3  ;;  %v11529_v58 = vand.u32 4294901760, %v11447_v25 }
 0x48d   : > { %v11513_v59 = vand.u32 4294901760, %v2962_v38 }
 0x48e   : > { %v2644_v34 = vmul.f32 %v11476_v39, %v2592_v6  ;;  %v2994_v50 = vand.u32 4294901760, %v2993_v61 }
 0x48f   : > { %v2999_v4 = vsub.f32 %v2962_v38, %v11513_v59 }
 0x490   : > { %v2658_v42 = vadd.f32 %v2649_v46, %v2644_v34 }
 0x491   : > { %v2561_v23 = vpop.f32.mrf.mxu0  ;;  %v3000_v26 = vand.u32 4294901760, %v2999_v4 }
 0x492   : > { %v2666_v32 = vmul.f32 %v11489_v9, %v2658_v42  ;;  %v2562_v45 = vadd.f32 %v2561_v23, %v2526_v8 }
 0x493   : > { %v3001_v57 = vsub.f32 %v2999_v4, %v3000_v26 }
 0x494   : > { %v2596_v14 = vadd.f32 %v2595_v36, %v2562_v45  ;;  %v2965_v11 = vsel %vm714_vm0, %v2666_v32, 0 }
 0x495   : > { %v11503_v40 = vand.u32 4294901760, %v2965_v11  ;;  %v3002_v27 = vand.u32 4294901760, %v3001_v57 }
 0x496   : > { %v2645_v49 = vmul.f32 %v11478_v62, %v2596_v14  ;;  %v3258_v14 = vsel %vm3256_vm3, 1, %v10623_v48 }
 0x497   : > { %v3007_v30 = vsub.f32 %v2965_v11, %v11503_v40 }
 0x498   : > { %v2659_v60 = vadd.f32 %v2649_v46, %v2645_v49  ;;  %v3260_v49 = vperm.slane %v3258_v14, 0 }
 0x499   : > { %v3008_v16 = vand.u32 4294901760, %v3007_v30 }
 0x49a   : > { %v2667_v12 = vmul.f32 %v11507_v52, %v2659_v60  ;;  %vm11547_vm10 = vcmp.eq.s32.totalorder %v3260_v49, 1 }
 0x49b   : > { %v3009_v53 = vsub.f32 %v3007_v30, %v3008_v16 }
 0x49c   : > { %v2968_v55 = vsel %vm714_vm0, %v2667_v12, 0 }
 0x49d   : > { %v11515_v19 = vand.u32 4294901760, %v2968_v55  ;;  %v3010_v54 = vand.u32 4294901760, %v3009_v53 }
 0x49f   : > { %2983 = vmatpush.xpose.msrb.mxu0 %v11515_v19  ;;  %3134 = vmatpush.xpose.msrb.mxu3 %v11515_v19  ;;  %v3015_v21 = vsub.f32 %v2968_v55, %v11515_v19 }
 0x4a1   : > { %3090 = vmatpush.xpose.msrb.mxu2 %v3015_v21  ;;  %v3016_v22 = vand.u32 4294901760, %v3015_v21 }
 0x4a3   : > { %2985 = vmatpush.xpose.msrb.mxu0 %v11503_v40  ;;  %3136 = vmatpush.xpose.msrb.mxu3 %v11503_v40  ;;  %v3017_v13 = vsub.f32 %v3015_v21, %v3016_v22 }
 0x4a5   : > { %3093 = vmatpush.xpose.msrb.mxu2 %v3007_v30  ;;  %v3018_v33 = vand.u32 4294901760, %v3017_v13 }
 0x4a7   : > { %2987 = vmatpush.xpose.msrb.mxu0 %v11513_v59  ;;  %3040 = vmatpush.xpose.msrb.mxu1 %v3018_v33 }
 0x4a8   : > { %3138 = vmatpush.xpose.msrb.mxu3 %v11513_v59 }
 0x4a9   : > { %3096 = vmatpush.xpose.msrb.mxu2 %v2999_v4 }
 0x4aa   : > { %v2855_v10 = vpop.f32.mrf.mxu1 }
 0x4ab   : > { %2989 = vmatpush.xpose.msrb.mxu0 %v11510_v28  ;;  %3046 = vmatpush.xpose.msrb.mxu1 %v3010_v54  ;;  %v2813_v42 = vpop.f32.mrf.mxu0 }
 0x4ac   : > { %3140 = vmatpush.xpose.msrb.mxu3 %v11510_v28 }
 0x4ad   : > { %3099 = vmatpush.xpose.msrb.mxu2 %v2991_v63 }
 0x4ae   : > { %2995 = vmatmul.f32.vlgmr.msrb.gmra.mxu0 %v2994_v50 }
 0x4af   : > { %3181 = vmatpush.xpose.msra.mxu0 %v3016_v22  ;;  %3144 = vmatmul.f32.vlgmr.msrb.gmra.mxu3 %v2992_v3  ;;  %v2706_v6 = vpop.f32.mrf.mxu2 }
 0x4b0   : > { %3052 = vmatpush.xpose.msrb.mxu1 %v3002_v27  ;;  %3102 = vmatmul.f32.vlgmr.msrb.gmra.mxu2 %v2991_v63 }
 0x4b1   : > { %3543 = vmatpush.msra.mxu2 %v11529_v58 }
 0x4b3   : > { %3185 = vmatpush.xpose.msra.mxu0 %v3008_v16  ;;  %v2861_v60 = vpop.f32.mrf.mxu1 }
 0x4b4   : > { %3058 = vmatpush.xpose.msrb.mxu1 %v2994_v50  ;;  %v2818_v5 = vpop.f32.mrf.mxu0 }
 0x4b6   : > { %3003 = vmatmul.f32.gmra.mxu0 %v3002_v27 }
 0x4b7   : > { %3189 = vmatpush.xpose.msra.mxu0 %v3000_v26  ;;  %3060 = vmatmul.f32.vlgmr.msrb.gmra.mxu1 %v11510_v28  ;;  %v2714_v31 = vpop.f32.mrf.mxu2 }
 0x4b8   : > { %3224 = vmatpush.xpose.msra.mxu1 %v11515_v19  ;;  %3150 = vmatmul.f32.gmra.mxu3 %v3000_v26  ;;  %v2771_v46 = vpop.f32.mrf.mxu3 }
 0x4b9   : > { %3107 = vmatmul.f32.gmra.mxu2 %v2999_v4  ;;  %v2772_v23 = vadd.f32 %v2771_v46, %v2706_v6 }
 0x4bb   : > { %3193 = vmatpush.xpose.msra.mxu0 %v2992_v3  ;;  %v2814_v36 = vadd.f32 %v2813_v42, %v2772_v23  ;;  %v2867_v61 = vpop.f32.mrf.mxu1 }
 0x4bc   : > { %3226 = vmatpush.xpose.msra.mxu1 %v11503_v40  ;;  %v2823_v13 = vpop.f32.mrf.mxu0 }
 0x4bd   : > { %v2856_v11 = vadd.f32 %v2855_v10, %v2814_v36 }
 0x4be   : > { %3011 = vmatmul.f32.gmra.mxu0 %v3010_v54 }
 0x4bf   : > { %3064 = vmatmul.f32.gmra.mxu1 %v11513_v59  ;;  %v2722_v56 = vpop.f32.mrf.mxu2 }
 0x4c0   : > { %3228 = vmatpush.xpose.msra.mxu1 %v11513_v59  ;;  %3156 = vmatmul.f32.gmra.mxu3 %v3008_v16  ;;  %v2775_v34 = vpop.f32.mrf.mxu3 }
 0x4c1   : > { %3112 = vmatmul.f32.gmra.mxu2 %v3007_v30  ;;  %v2776_v47 = vadd.f32 %v2775_v34, %v2714_v31 }
 0x4c3   : > { %v2819_v55 = vadd.f32 %v2818_v5, %v2776_v47 }
 0x4c4   : > { %3230 = vmatpush.xpose.msra.mxu1 %v11510_v28  ;;  %v2828_v46 = vpop.f32.mrf.mxu0 }
 0x4c5   : > { %v2862_v4 = vadd.f32 %v2861_v60, %v2819_v55 }
 0x4c6   : > { %3019 = vmatmul.f32.gmra.mxu0 %v3018_v33 }
 0x4c7   : > { %3068 = vmatmul.f32.gmra.mxu1 %v11503_v40  ;;  %v2730_v41 = vpop.f32.mrf.mxu2 }
 0x4c8   : > { %3694 = vmatpush.msrb.mxu1 %v11529_v58  ;;  %3162 = vmatmul.f32.gmra.mxu3 %v3016_v22  ;;  %v2779_v8 = vpop.f32.mrf.mxu3 }
 0x4c9   : > { %3117 = vmatmul.f32.gmra.mxu2 %v3015_v21  ;;  %v2780_v22 = vadd.f32 %v2779_v8, %v2722_v56 }
 0x4cb   : > { %v2824_v53 = vadd.f32 %v2823_v13, %v2780_v22  ;;  %v697_v22 = vld [vmem:[%s10915_s2 + $0x1] sm:$0x1] }
 0x4cc   : > { %vm3257_vm11 = vcmp.eq.f32.partialorder %v697_v22, 0.0 }
 0x4cd   : > { %v2868_v27 = vadd.f32 %v2867_v61, %v2824_v53 }
 0x4ce   : > { %3195 = vmatmul.f32.vlgmr.msra.gmra.mxu0 %v11510_v28 }
 0x4cf   : > { %3072 = vmatmul.f32.gmra.mxu1 %v11515_v19  ;;  %v2906_v45 = vpop.f32.mrf.mxu2 }
 0x4d0   : > { %v2783_v32 = vpop.f32.mrf.mxu3  ;;  %v2907_v51 = vadd.f32 %v2906_v45, %v2856_v11 }
 0x4d1   : > { %v2784_v50 = vadd.f32 %v2783_v32, %v2730_v41  ;;  %v2873_v41 = vpop.f32.mrf.mxu1 }
 0x4d3   : > { %v2829_v34 = vadd.f32 %v2828_v46, %v2784_v50 }
 0x4d5   : > { %v2874_v23 = vadd.f32 %v2873_v41, %v2829_v34  ;;  %v3544_v34 = vand.u32 4294901760, %v11426_v7 }
 0x4d6   : > { %3199 = vmatmul.f32.gmra.mxu0 %v11513_v59 }
 0x4d7   : > { %3232 = vmatmul.f32.vlgmr.msra.gmra.mxu1 %v11510_v28  ;;  %v2910_v38 = vpop.f32.mrf.mxu2  ;;  %3545 = vmatpush.msra.mxu2 %v3544_v34 }
 0x4d8   : > { %v2943_v12 = vpop.f32.mrf.mxu3  ;;  %v2911_v3 = vadd.f32 %v2910_v38, %v2862_v4  ;;  %3696 = vmatpush.msrb.mxu1 %v3544_v34 }
 0x4d9   : > { %v2944_v30 = vadd.f32 %v2943_v12, %v2907_v51 }
 0x4db   : > { %v3248_v63 = vmul.f32 0.17677669, %v2944_v30 }
 0x4dd   : > { %v11553_v16 = vsel %vm11547_vm10, -1e+09, %v3248_v63 }
 0x4de   : > { %v3272_v28 = vsel %vm714_vm0, %v11553_v16, -inf  ;;  %3203 = vmatmul.f32.gmra.mxu0 %v11503_v40 }
 0x4df   : > { %3236 = vmatmul.f32.gmra.mxu1 %v11513_v59  ;;  %3273 = vmax.xlane.f32.xlu1 %v3272_v28  ;;  %v2914_v54 = vpop.f32.mrf.mxu2  ;;  %v3259_v28 = vsel %vm3257_vm11, 1, %v10623_v48 }
 0x4e0   : > { %v2947_v33 = vpop.f32.mrf.mxu3  ;;  %v2915_v59 = vadd.f32 %v2914_v54, %v2868_v27 }
 0x4e1   : > { %v2948_v26 = vadd.f32 %v2947_v33, %v2911_v3 }
 0x4e3   : > { %v3249_v57 = vmul.f32 0.17677669, %v2948_v26  ;;  %v3261_v26 = vperm.slane %v3259_v28, 0 }
 0x4e5   : > { %v11561_v6 = vsel %vm11547_vm10, -1e+09, %v3249_v57  ;;  %vm11583_vm12 = vcmp.eq.s32.totalorder %v3261_v26, 1 }
 0x4e6   : > { %v3275_v31 = vsel %vm714_vm0, %v11561_v6, -inf  ;;  %3207 = vmatmul.f32.gmra.mxu0 %v11515_v19 }
 0x4e7   : > { %3240 = vmatmul.f32.gmra.mxu1 %v11503_v40  ;;  %3276 = vmax.xlane.f32.xlu0 %v3275_v31  ;;  %v2918_v10 = vpop.f32.mrf.mxu2 }
 0x4e8   : > { %v2951_v56 = vpop.f32.mrf.mxu3  ;;  %v2919_v40 = vadd.f32 %v2918_v10, %v2874_v23 }
 0x4e9   : > { %v2952_v8 = vadd.f32 %v2951_v56, %v2915_v59 }
 0x4eb   : > { %v3250_v42 = vmul.f32 0.17677669, %v2952_v8 }
 0x4ed   : > { %v11569_v15 = vsel %vm11547_vm10, -1e+09, %v3250_v42 }
 0x4ee   : > { %v3278_v32 = vsel %vm714_vm0, %v11569_v15, -inf }
 0x4ef   : > { %3244 = vmatmul.f32.gmra.mxu1 %v11515_v19  ;;  %3279 = vmax.xlane.f32.xlu2 %v3278_v32 }
 0x4f0   : > { %v2955_v45 = vpop.f32.mrf.mxu3 }
 0x4f1   : > { %v2956_v36 = vadd.f32 %v2955_v45, %v2919_v40 }
 0x4f3   : > { %v3251_v14 = vmul.f32 0.17677669, %v2956_v36 }
 0x4f5   : > { %v11576_v5 = vsel %vm11547_vm10, -1e+09, %v3251_v14 }
 0x4f6   : > { %v3281_v47 = vsel %vm714_vm0, %v11576_v5, -inf }
 0x4f7   : > { %3282 = vmax.xlane.f32.xlu1 %v3281_v47 }
 0x52b   : > { %v2996_v11 = vpop.f32.mrf.mxu0 }
 0x532   : > { %v3145_v30 = vpop.f32.mrf.mxu3 }
 0x533   : > { %v3004_v49 = vpop.f32.mrf.mxu0  ;;  %v3103_v55 = vpop.f32.mrf.mxu2 }
 0x534   : > { %v3061_v60 = vpop.f32.mrf.mxu1 }
 0x535   : > { %v3062_v63 = vadd.f32 %v3061_v60, %v2996_v11 }
 0x537   : > { %v3104_v21 = vadd.f32 %v3103_v55, %v3062_v63 }
 0x539   : > { %v3146_v53 = vadd.f32 %v3145_v30, %v3104_v21 }
 0x53b   : > { %v3012_v51 = vpop.f32.mrf.mxu0  ;;  %v3151_v61 = vpop.f32.mrf.mxu3 }
 0x53c   : > { %v3065_v38 = vpop.f32.mrf.mxu1  ;;  %v3108_v3 = vpop.f32.mrf.mxu2 }
 0x53d   : > { %v3066_v33 = vadd.f32 %v3065_v38, %v3004_v49 }
 0x53f   : > { %v3109_v59 = vadd.f32 %v3108_v3, %v3066_v33 }
 0x541   : > { %v3152_v42 = vadd.f32 %v3151_v61, %v3109_v59 }
 0x543   : > { %v3020_v19 = vpop.f32.mrf.mxu0  ;;  %v3157_v11 = vpop.f32.mrf.mxu3 }
 0x544   : > { %v3069_v12 = vpop.f32.mrf.mxu1  ;;  %v3113_v10 = vpop.f32.mrf.mxu2 }
 0x545   : > { %v3070_v48 = vadd.f32 %v3069_v12, %v3012_v51 }
 0x547   : > { %v3114_v36 = vadd.f32 %v3113_v10, %v3070_v48 }
 0x549   : > { %v3158_v55 = vadd.f32 %v3157_v11, %v3114_v36  ;;  %v3602_v36 = vsub.f32 %v11426_v7, %v3544_v34  ;;  %v11639_v7 = vand.u32 4294901760, %v11507_v52 }
 0x54b   : > { %v3196_v13 = vpop.f32.mrf.mxu0  ;;  %v3163_v26 = vpop.f32.mrf.mxu3 }
 0x54c   : > { %v3073_v4 = vpop.f32.mrf.mxu1  ;;  %v3197_v54 = vadd.f32 %v3196_v13, %v3146_v53  ;;  %v3118_v13 = vpop.f32.mrf.mxu2 }
 0x54d   : > { %v3074_v12 = vadd.f32 %v3073_v4, %v3020_v19 }
 0x54f   : > { %v3119_v3 = vadd.f32 %v3118_v13, %v3074_v12 }
 0x552   : > { %v3274_v57 = vpop.xlane.xlu1 %3273 }
 0x553   : > { %v3296_v50 = vsub.f32 %v11553_v16, %v3274_v57  ;;  %v3200_v27 = vpop.f32.mrf.mxu0 }
 0x554   : > { %v3233_v31 = vpop.f32.mrf.mxu1  ;;  %v3201_v23 = vadd.f32 %v3200_v27, %v3152_v42 }
 0x555   : > { %v3234_v46 = vadd.f32 %v3233_v31, %v3197_v54  ;;  %v3304_v56 = vmul.f32 1.442695, %v3296_v50  ;;  %v3164_v54 = vadd.f32 %v3163_v26, %v3119_v3 }
 0x557   : > { %v3252_v8 = vmul.f32 0.17677669, %v3234_v46  ;;  %9686 = vpow2.f32 %v3304_v56 }
 0x559   : > { %v11589_v41 = vsel %vm11583_vm12, -1e+09, %v3252_v8 }
 0x55a   : > { %v3284_v16 = vsel %vm714_vm0, %v11589_v41, -inf  ;;  %v3277_v32 = vpop.xlane.xlu0 %3276 }
 0x55b   : > { %3285 = vmax.xlane.f32.xlu2 %v3284_v16  ;;  %v3297_v40 = vsub.f32 %v11561_v6, %v3277_v32  ;;  %v3204_v60 = vpop.f32.mrf.mxu0 }
 0x55c   : > { %v3237_v45 = vpop.f32.mrf.mxu1  ;;  %v3205_v63 = vadd.f32 %v3204_v60, %v3158_v55 }
 0x55d   : > { %v3238_v14 = vadd.f32 %v3237_v45, %v3201_v23  ;;  %v11594_v47 = vpop.eup %9686  ;;  %v3306_v49 = vmul.f32 1.442695, %v3297_v40  ;;  %v3596_v40 = vsub.f32 %v11447_v25, %v11529_v58 }
 0x55e   : > { %v3320_v38 = vsel %vm714_vm0, %v11594_v47, 0.0 }
 0x55f   : > { %v3253_v51 = vmul.f32 0.17677669, %v3238_v14  ;;  %3321 = vadd.xlane.f32.xlu1 %v3320_v38  ;;  %9688 = vpow2.f32 %v3306_v49  ;;  %v3597_v45 = vand.u32 4294901760, %v3596_v40  ;;  %3650 = vmatpush.msrb.mxu0 %v3596_v40  ;;  %v3546_v14 = vand.u32 4294901760, %v11437_v35 }
 0x560   : > { %v3603_v49 = vand.u32 4294901760, %v3602_v36 }
 0x561   : > { %v11600_v30 = vsel %vm11583_vm12, -1e+09, %v3253_v51  ;;  %v3598_v11 = vsub.f32 %v3596_v40, %v3597_v45  ;;  %v3608_v60 = vsub.f32 %v11437_v35, %v3546_v14  ;;  %3653 = vmatpush.msrb.mxu0 %v3602_v36  ;;  %v3548_v51 = vand.u32 4294901760, %v11430_v37  ;;  %3698 = vmatpush.msrb.mxu1 %v3546_v14 }
 0x562   : > { %v3287_v6 = vsel %vm714_vm0, %v11600_v30, -inf  ;;  %v3280_v22 = vpop.xlane.xlu2 %3279  ;;  %3547 = vmatpush.msra.mxu2 %v3546_v14  ;;  %v3604_v38 = vsub.f32 %v3602_v36, %v3603_v49 }
 0x563   : > { %3288 = vmax.xlane.f32.xlu0 %v3287_v6  ;;  %v3298_v21 = vsub.f32 %v11569_v15, %v3280_v22  ;;  %v3208_v61 = vpop.f32.mrf.mxu0  ;;  %v3599_v25 = vand.u32 4294901760, %v3598_v11  ;;  %v3609_v12 = vand.u32 4294901760, %v3608_v60  ;;  %v3614_v55 = vsub.f32 %v11430_v37, %v3548_v51  ;;  %3656 = vmatpush.msrb.mxu0 %v3608_v60 }
 0x564   : > { %v3241_v28 = vpop.f32.mrf.mxu1  ;;  %v3209_v27 = vadd.f32 %v3208_v61, %v3164_v54  ;;  %3700 = vmatpush.msrb.mxu1 %v3548_v51  ;;  %3549 = vmatpush.msra.mxu2 %v3548_v51  ;;  %v3605_v6 = vand.u32 4294901760, %v3604_v38 }
 0x565   : > { %v3242_v33 = vadd.f32 %v3241_v28, %v3205_v63  ;;  %v3308_v53 = vmul.f32 1.442695, %v3298_v21  ;;  %v11605_v19 = vpop.eup %9688  ;;  %3600 = vmatpush.msra.mxu3 %v3599_v25  ;;  %v3610_v63 = vsub.f32 %v3608_v60, %v3609_v12  ;;  %v3615_v35 = vand.u32 4294901760, %v3614_v55  ;;  %3659 = vmatpush.msrb.mxu0 %v3614_v55 }
 0x566   : > { %v3323_v50 = vsel %vm714_vm0, %v11605_v19, 0.0  ;;  %3741 = vmatpush.msrb.mxu2 %v3597_v45 }
 0x567   : > { %v3254_v4 = vmul.f32 0.17677669, %v3242_v33  ;;  %9690 = vpow2.f32 %v3308_v53  ;;  %3829 = vmatpush.msra.mxu0 %v11639_v7  ;;  %3606 = vmatpush.msra.mxu3 %v3605_v6  ;;  %v3611_v22 = vand.u32 4294901760, %v3610_v63  ;;  %v3616_v13 = vsub.f32 %v3614_v55, %v3615_v35 }
 0x568   : > { %3745 = vmatpush.msrb.mxu2 %v3603_v49 }
 0x569   : > { %v11609_v57 = vsel %vm11583_vm12, -1e+09, %v3254_v4  ;;  %3612 = vmatpush.msra.mxu3 %v3611_v22  ;;  %v3617_v37 = vand.u32 4294901760, %v3616_v13 }
 0x56a   : > { %v3290_v15 = vsel %vm714_vm0, %v11609_v57, -inf  ;;  %v3283_v31 = vpop.xlane.xlu1 %3282  ;;  %3749 = vmatpush.msrb.mxu2 %v3609_v12 }
 0x56b   : > { %3324 = vadd.xlane.f32.xlu0 %v3323_v50  ;;  %3291 = vmax.xlane.f32.xlu2 %v3290_v15  ;;  %v3299_v59 = vsub.f32 %v11576_v5, %v3283_v31 }
 0x56c   : > { %v3245_v46 = vpop.f32.mrf.mxu1  ;;  %3618 = vmatpush.msra.mxu3 %v3617_v37  ;;  %3753 = vmatpush.msrb.mxu2 %v3615_v35 }
 0x56d   : > { %v3246_v56 = vadd.f32 %v3245_v46, %v3209_v27  ;;  %v3310_v8 = vmul.f32 1.442695, %v3299_v59  ;;  %v11616_v48 = vpop.eup %9690 }
 0x56e   : > { %v3326_v16 = vsel %vm714_vm0, %v11616_v48, 0.0  ;;  %3784 = vmatpush.msrb.mxu3 %v11529_v58 }
 0x56f   : > { %v3255_v42 = vmul.f32 0.17677669, %v3246_v56  ;;  %9692 = vpow2.f32 %v3310_v8 }
 0x570   : > { %3786 = vmatpush.msrb.mxu3 %v3544_v34 }
 0x571   : > { %v11620_v10 = vsel %vm11583_vm12, -1e+09, %v3255_v42 }
 0x572   : > { %v3293_v23 = vsel %vm714_vm0, %v11620_v10, -inf  ;;  %3788 = vmatpush.msrb.mxu3 %v3546_v14 }
 0x573   : > { %3327 = vadd.xlane.f32.xlu2 %v3326_v16  ;;  %3294 = vmax.xlane.f32.xlu1 %v3293_v23 }
 0x574   : > { %3790 = vmatpush.msrb.mxu3 %v3548_v51 }
 0x575   : > { %v11626_v5 = vpop.eup %9692 }
 0x576   : > { %v3329_v32 = vsel %vm714_vm0, %v11626_v5, 0.0 }
 0x577   : > { %3330 = vadd.xlane.f32.xlu0 %v3329_v32 }
 0x5ce   : > { %v3286_v21 = vpop.xlane.xlu2 %3285 }
 0x5cf   : > { %v3300_v28 = vsub.f32 %v11589_v41, %v3286_v21 }
 0x5d1   : > { %v3312_v3 = vmul.f32 1.442695, %v3300_v28 }
 0x5d2   : > { %v3322_v33 = vpop.xlane.xlu1 %3321 }
 0x5d3   : > { %9694 = vpow2.f32 %v3312_v3  ;;  %v3355_v15 = vand.u32 2147483648, %v3322_v33  ;;  %v3353_v46 = vand.u32 2147483647, %v3322_v33  ;;  %vm3349_vm14 = vweird.f32 %v3322_v33 }
 0x5d4   : > { %9696 = vrcp.f32 %v3322_v33 }
 0x5d5   : > { %v3356_v42 = vor.u32 1.1754944e-38, %v3355_v15  ;;  %vm3354_vm1 = vcmp.eq.f32.partialorder %v3353_v46, 8.507059e+37 }
 0x5d6   : > { %v3289_v53 = vpop.xlane.xlu0 %3288 }
 0x5d7   : > { %v3301_v4 = vsub.f32 %v11600_v30, %v3289_v53 }
 0x5d9   : > { %v11645_v26 = vpop.eup %9694  ;;  %v3314_v61 = vmul.f32 1.442695, %v3301_v4 }
 0x5da   : > { %v9697_v54 = vpop.eup %9696  ;;  %v3332_v58 = vsel %vm714_vm0, %v11645_v26, 0.0 }
 0x5db   : > { %v3345_v50 = vmul.f32 %v9697_v54, %v3322_v33  ;;  %9698 = vpow2.f32 %v3314_v61  ;;  %3333 = vadd.xlane.f32.xlu1 %v3332_v58  ;;  %vm3350_vm13 = vweird.f32 %v9697_v54 }
 0x5dc   : > { %vm3351_vm15 = vmor %vm3349_vm14, %vm3350_vm13 }
 0x5dd   : > { %v3346_v41 = vsub.f32 1.0, %v3345_v50 }
 0x5de   : > { %v3325_v27 = vpop.xlane.xlu0 %3324  ;;  %v3292_v31 = vpop.xlane.xlu2 %3291 }
 0x5df   : > { %v3347_v59 = vmul.f32 %v9697_v54, %v3346_v41  ;;  %9700 = vrcp.f32 %v3325_v27  ;;  %v3302_v30 = vsub.f32 %v11609_v57, %v3292_v31  ;;  %v3368_v51 = vand.u32 2147483647, %v3325_v27 }
 0x5e0   : > { %v3370_v25 = vand.u32 2147483648, %v3325_v27  ;;  %vm3364_vm5 = vweird.f32 %v3325_v27 }
 0x5e1   : > { %v11650_v56 = vpop.eup %9698  ;;  %v3348_v8 = vadd.f32 %v9697_v54, %v3347_v59  ;;  %v3316_v16 = vmul.f32 1.442695, %v3302_v30  ;;  %vm3369_vm7 = vcmp.eq.f32.partialorder %v3368_v51, 8.507059e+37 }
 0x5e2   : > { %v3335_v23 = vsel %vm714_vm0, %v11650_v56, 0.0  ;;  %v3371_v13 = vor.u32 1.1754944e-38, %v3370_v25 }
 0x5e3   : > { %v3352_v32 = vsel %vm3351_vm15, %v9697_v54, %v3348_v8  ;;  %3336 = vadd.xlane.f32.xlu2 %v3335_v23  ;;  %9702 = vpow2.f32 %v3316_v16 }
 0x5e4   : > { %v3357_v40 = vsel %vm3354_vm1, %v3356_v42, %v3352_v32 }
 0x5e5   : > { %v9701_v34 = vpop.eup %9700  ;;  %v3358_v45 = vmul.f32 %v11594_v47, %v3357_v40 }
 0x5e6   : > { %v3360_v57 = vmul.f32 %v9701_v34, %v3325_v27  ;;  %v3328_v36 = vpop.xlane.xlu2 %3327  ;;  %v3295_v14 = vpop.xlane.xlu1 %3294  ;;  %vm3365_vm4 = vweird.f32 %v9701_v34 }
 0x5e7   : > { %v11656_v11 = vmul.f32 %v3358_v45, %v11415_v43  ;;  %9704 = vrcp.f32 %v3328_v36  ;;  %v3303_v60 = vsub.f32 %v11620_v10, %v3295_v14  ;;  %vm3366_vm6 = vmor %vm3364_vm5, %vm3365_vm4  ;;  %v3385_v61 = vand.u32 2147483648, %v3328_v36 }
 0x5e8   : > { %v3361_v49 = vsub.f32 1.0, %v3360_v57  ;;  %v3383_v41 = vand.u32 2147483647, %v3328_v36  ;;  %vm3379_vm9 = vweird.f32 %v3328_v36 }
 0x5e9   : > { %3473 = vst.msk [vmem:[#allocation2] sm:$0xff] %vm3472_vm2, %v11656_v11  ;;  %v3522_v38 = vsel %vm714_vm0, %v11656_v11, 0  ;;  %v11663_v47 = vpop.eup %9702  ;;  %v3318_v55 = vmul.f32 1.442695, %v3303_v60  ;;  %v3386_v8 = vor.u32 1.1754944e-38, %v3385_v61  ;;  %v3830_v61 = vand.u32 4294901760, %v11489_v9 }
 0x5ea   : > { %v3362_v12 = vmul.f32 %v9701_v34, %v3361_v49  ;;  %v11665_v6 = vand.u32 4294901760, %v3522_v38  ;;  %v11667_v63 = vpop.xlane.xlu0 %3330  ;;  %v3338_v10 = vsel %vm714_vm0, %v11663_v47, 0.0  ;;  %vm3384_vm10 = vcmp.eq.f32.partialorder %v3383_v41, 8.507059e+37 }
 0x5eb   : > { %9706 = vpow2.f32 %v3318_v55  ;;  %3339 = vadd.xlane.f32.xlu0 %v3338_v10  ;;  %v3400_v40 = vand.u32 2147483648, %v11667_v63  ;;  %vm3394_vm12 = vweird.f32 %v11667_v63  ;;  %v3832_v41 = vand.u32 4294901760, %v11497_v24  ;;  %3831 = vmatpush.msra.mxu0 %v3830_v61 }
 0x5ec   : > { %v3363_v35 = vadd.f32 %v9701_v34, %v3362_v12  ;;  %3620 = vmatmul.f32.vlgmr.msra.gmra.mxu3 %v11665_v6  ;;  %9708 = vrcp.f32 %v11667_v63  ;;  %v3551_v37 = vsub.f32 %v3522_v38, %v11665_v6 }
 0x5ed   : > { %v9705_v22 = vpop.eup %9704  ;;  %3980 = vmatpush.msra.mxu3 %v11639_v7  ;;  %v3401_v51 = vor.u32 1.1754944e-38, %v3400_v40  ;;  %3833 = vmatpush.msra.mxu0 %v3832_v41 }
 0x5ee   : > { %v3367_v21 = vsel %vm3366_vm6, %v9701_v34, %v3363_v35  ;;  %v3375_v28 = vmul.f32 %v9705_v22, %v3328_v36  ;;  %3662 = vmatmul.f32.vlgmr.msrb.gmra.mxu0 %v3551_v37  ;;  %v3552_v33 = vand.u32 4294901760, %v3551_v37  ;;  %vm3380_vm8 = vweird.f32 %v9705_v22 }
 0x5ef   : > { %v3372_v3 = vsel %vm3369_vm7, %v3371_v13, %v3367_v21  ;;  %vm3381_vm3 = vmor %vm3379_vm9, %vm3380_vm8  ;;  %v3398_v36 = vand.u32 2147483647, %v11667_v63  ;;  %3982 = vmatpush.msra.mxu3 %v3830_v61 }
 0x5f0   : > { %v3373_v53 = vmul.f32 %v11605_v19, %v3372_v3  ;;  %v3376_v4 = vsub.f32 1.0, %v3375_v28  ;;  %3704 = vmatmul.f32.vlgmr.msrb.gmra.mxu1 %v3552_v33  ;;  %v3553_v54 = vsub.f32 %v3551_v37, %v3552_v33 }
 0x5f1   : > { %v11676_v58 = vpop.eup %9706  ;;  %vm3399_vm14 = vcmp.eq.f32.partialorder %v3398_v36, 8.507059e+37  ;;  %3984 = vmatpush.msra.mxu3 %v3832_v41 }
 0x5f2   : > { %v3377_v50 = vmul.f32 %v9705_v22, %v3376_v4  ;;  %v3465_v15 = vmul.f32 %v3373_v53, %v11417_v17  ;;  %v9709_v27 = vpop.eup %9708  ;;  %v3554_v31 = vand.u32 4294901760, %v3553_v54  ;;  %v3341_v59 = vsel %vm714_vm0, %v11676_v58, 0.0 }
 0x5f3   : > { %v3390_v19 = vmul.f32 %v9709_v27, %v11667_v63  ;;  %3342 = vadd.xlane.f32.xlu1 %v3341_v59  ;;  %vm3395_vm11 = vweird.f32 %v9709_v27  ;;  %v3882_v4 = vsub.f32 %v11507_v52, %v11639_v7 }
 0x5f4   : > { %v3378_v46 = vadd.f32 %v9705_v22, %v3377_v50  ;;  %3474 = vst.msk [vmem:[#allocation2 + $0x8] sm:$0xff] %vm3472_vm2, %v3465_v15  ;;  %v3524_v30 = vsel %vm714_vm0, %v3465_v15, 0  ;;  %3555 = vmatmul.f32.vlgmr.msra.gmra.mxu2 %v3554_v31  ;;  %vm3396_vm13 = vmor %vm3394_vm12, %vm3395_vm11  ;;  %v3888_v50 = vsub.f32 %v11489_v9, %v3830_v61  ;;  %v3834_v31 = vand.u32 4294901760, %v11493_v18 }
 0x5f5   : > { %v3558_v42 = vand.u32 4294901760, %v3524_v30  ;;  %v3391_v23 = vsub.f32 1.0, %v3390_v19  ;;  %v3883_v54 = vand.u32 4294901760, %v3882_v4  ;;  %3936 = vmatpush.msra.mxu2 %v3882_v4 }
 0x5f6   : > { %v3382_v16 = vsel %vm3381_vm3, %v9705_v22, %v3378_v46  ;;  %v3900_v19 = vsub.f32 %v11493_v18, %v3834_v31  ;;  %3986 = vmatpush.msra.mxu3 %v3834_v31  ;;  %3835 = vmatpush.msra.mxu0 %v3834_v31 }
 0x5f7   : > { %v3387_v32 = vsel %vm3384_vm10, %v3386_v8, %v3382_v16  ;;  %3624 = vmatmul.f32.gmra.mxu3 %v3558_v42  ;;  %v3559_v34 = vsub.f32 %v3524_v30, %v3558_v42  ;;  %v3392_v57 = vmul.f32 %v9709_v27, %v3391_v23  ;;  %3939 = vmatpush.msra.mxu2 %v3888_v50 }
 0x5f8   : > { %v3388_v45 = vmul.f32 %v11616_v48, %v3387_v32  ;;  %v3901_v8 = vand.u32 4294901760, %v3900_v19  ;;  %4027 = vmatpush.msrb.mxu0 %v3883_v54 }
 0x5f9   : > { %3667 = vmatmul.f32.gmra.mxu0 %v3559_v34  ;;  %v3560_v14 = vand.u32 4294901760, %v3559_v34  ;;  %v3393_v49 = vadd.f32 %v9709_v27, %v3392_v57 }
 0x5fa   : > { %v3466_v60 = vmul.f32 %v3388_v45, %v11411_v44 }
 0x5fb   : > { %3489 = vrot.lane.b32.xlu2 %v11656_v11, %s10624_s16  ;;  %3710 = vmatmul.f32.gmra.mxu1 %v3560_v14  ;;  %v3561_v25 = vsub.f32 %v3559_v34, %v3560_v14  ;;  %v3397_v38 = vsel %vm3396_vm13, %v9709_v27, %v3393_v49  ;;  %v3894_v27 = vsub.f32 %v11497_v24, %v3832_v41 }
 0x5fc   : > { %3475 = vst.msk [vmem:[#allocation2 + $0x10] sm:$0xff] %vm3472_vm2, %v3466_v60  ;;  %v3526_v48 = vsel %vm714_vm0, %v3466_v60, 0  ;;  %v3402_v10 = vsel %vm3399_vm14, %v3401_v51, %v3397_v38 }
 0x5fd   : > { %v3562_v12 = vand.u32 4294901760, %v3561_v25  ;;  %v3566_v55 = vand.u32 4294901760, %v3526_v48  ;;  %v3403_v63 = vmul.f32 %v11626_v5, %v3402_v10  ;;  %v3895_v46 = vand.u32 4294901760, %v3894_v27  ;;  %3942 = vmatpush.msra.mxu2 %v3894_v27 }
 0x5ff   : > { %3563 = vmatmul.f32.gmra.mxu2 %v3562_v12  ;;  %3628 = vmatmul.f32.gmra.mxu3 %v3566_v55  ;;  %v3567_v35 = vsub.f32 %v3526_v48, %v3566_v55  ;;  %v3467_v11 = vmul.f32 %v3403_v63, %v11433_v2  ;;  %v3896_v30 = vsub.f32 %v3894_v27, %v3895_v46 }
 0x600   : > { %3491 = vrot.lane.b32.xlu0 %v3465_v15, %s10624_s16  ;;  %v3889_v15 = vand.u32 4294901760, %v3888_v50  ;;  %3945 = vmatpush.msra.mxu2 %v3900_v19 }
 0x601   : > { %3672 = vmatmul.f32.gmra.mxu0 %v3567_v35  ;;  %v3568_v22 = vand.u32 4294901760, %v3567_v35  ;;  %3476 = vst.msk [vmem:[#allocation2 + $0x18] sm:$0xff] %vm3472_vm2, %v3467_v11  ;;  %v3528_v13 = vsel %vm714_vm0, %v3467_v11, 0  ;;  %v3897_v24 = vand.u32 4294901760, %v3896_v30 }
 0x602   : > { %v3574_v21 = vand.u32 4294901760, %v3528_v13  ;;  %v3890_v59 = vsub.f32 %v3888_v50, %v3889_v15  ;;  %4031 = vmatpush.msrb.mxu0 %v3889_v15 }
 0x603   : > { %3716 = vmatmul.f32.gmra.mxu1 %v3568_v22  ;;  %v3569_v37 = vsub.f32 %v3567_v35, %v3568_v22 }
 0x604   : > { %v3575_v3 = vsub.f32 %v3528_v13, %v3574_v21  ;;  %v3891_v9 = vand.u32 4294901760, %v3890_v59  ;;  %4035 = vmatpush.msrb.mxu0 %v3895_v46 }
 0x605   : > { %v3570_v28 = vand.u32 4294901760, %v3569_v37 }
 0x606   : > { %v3576_v5 = vand.u32 4294901760, %v3575_v3  ;;  %4039 = vmatpush.msrb.mxu0 %v3901_v8 }
 0x607   : > { %3571 = vmatmul.f32.gmra.mxu2 %v3570_v28  ;;  %3632 = vmatmul.f32.gmra.mxu3 %v3574_v21 }
 0x608   : > { %3495 = vrot.lane.b32.xlu0 %v3467_v11, %s10624_s16  ;;  %v3577_v33 = vsub.f32 %v3575_v3, %v3576_v5 }
 0x609   : > { %3677 = vmatmul.f32.gmra.mxu0 %v3575_v3 }
 0x60a   : > { %v3578_v53 = vand.u32 4294901760, %v3577_v33 }
 0x60b   : > { %3722 = vmatmul.f32.gmra.mxu1 %v3576_v5 }
 0x60c   : > { %3493 = vrot.lane.b32.xlu1 %v3466_v60, %s10624_s16 }
 0x60f   : > { %3579 = vmatmul.f32.gmra.mxu2 %v3578_v53  ;;  %3792 = vmatmul.f32.vlgmr.msrb.gmra.mxu3 %v11665_v6 }
 0x617   : > { %3755 = vmatmul.f32.vlgmr.msrb.gmra.mxu2 %v11665_v6  ;;  %3796 = vmatmul.f32.gmra.mxu3 %v3558_v42  ;;  %v3884_v6 = vsub.f32 %v3882_v4, %v3883_v54 }
 0x619   : > { %v3885_v52 = vand.u32 4294901760, %v3884_v6 }
 0x61b   : > { %3886 = vmatpush.msra.mxu1 %v3885_v52 }
 0x61d   : > { %3892 = vmatpush.msra.mxu1 %v3891_v9 }
 0x61f   : > { %3759 = vmatmul.f32.gmra.mxu2 %v3558_v42  ;;  %3800 = vmatmul.f32.gmra.mxu3 %v3566_v55  ;;  %v3902_v42 = vsub.f32 %v3900_v19, %v3901_v8 }
 0x620   : > { %3898 = vmatpush.msra.mxu1 %v3897_v24 }
 0x621   : > { %v3903_v16 = vand.u32 4294901760, %v3902_v42 }
 0x623   : > { %3904 = vmatpush.msra.mxu1 %v3903_v16 }
 0x625   : > { %4070 = vmatpush.msrb.mxu1 %v11639_v7 }
 0x627   : > { %3763 = vmatmul.f32.gmra.mxu2 %v3566_v55  ;;  %3804 = vmatmul.f32.gmra.mxu3 %v3574_v21 }
 0x628   : > { %4072 = vmatpush.msrb.mxu1 %v3830_v61 }
 0x62a   : > { %4074 = vmatpush.msrb.mxu1 %v3832_v41 }
 0x62c   : > { %4076 = vmatpush.msrb.mxu1 %v3834_v31 }
 0x62f   : > { %3767 = vmatmul.f32.gmra.mxu2 %v3574_v21 }
 0x64e   : > { %v3334_v18 = vpop.xlane.xlu1 %3333 }
 0x64f   : > { %9710 = vrcp.f32 %v3334_v18  ;;  %v3415_v45 = vand.u32 2147483648, %v3334_v18  ;;  %v3413_v36 = vand.u32 2147483647, %v3334_v18  ;;  %vm3409_vm1 = vweird.f32 %v3334_v18 }
 0x651   : > { %v3416_v7 = vor.u32 1.1754944e-38, %v3415_v45  ;;  %vm3414_vm5 = vcmp.eq.f32.partialorder %v3413_v36, 8.507059e+37 }
 0x655   : > { %v9711_v23 = vpop.eup %9710 }
 0x656   : > { %v3405_v32 = vmul.f32 %v9711_v23, %v3334_v18  ;;  %v3337_v40 = vpop.xlane.xlu2 %3336  ;;  %vm3410_vm15 = vweird.f32 %v9711_v23 }
 0x657   : > { %9712 = vrcp.f32 %v3337_v40  ;;  %vm3411_vm4 = vmor %vm3409_vm1, %vm3410_vm15  ;;  %v3430_v55 = vand.u32 2147483648, %v3337_v40  ;;  %v3428_v35 = vand.u32 2147483647, %v3337_v40  ;;  %vm3424_vm7 = vweird.f32 %v3337_v40 }
 0x658   : > { %v3406_v34 = vsub.f32 1.0, %v3405_v32 }
 0x659   : > { %v3431_v13 = vor.u32 1.1754944e-38, %v3430_v55  ;;  %vm3429_vm9 = vcmp.eq.f32.partialorder %v3428_v35, 8.507059e+37 }
 0x65a   : > { %v3407_v57 = vmul.f32 %v9711_v23, %v3406_v34 }
 0x65c   : > { %v3408_v14 = vadd.f32 %v9711_v23, %v3407_v57 }
 0x65d   : > { %v9713_v49 = vpop.eup %9712 }
 0x65e   : > { %v3420_v60 = vmul.f32 %v9713_v49, %v3337_v40  ;;  %v3490_v51 = vpop.permute.xlu2 %3489  ;;  %v3412_v25 = vsel %vm3411_vm4, %v9711_v23, %v3408_v14  ;;  %v3340_v48 = vpop.xlane.xlu0 %3339  ;;  %vm3425_vm6 = vweird.f32 %v9713_v49 }
 0x65f   : > { %3514 = vst.msk [vmem:[#allocation2 + $0x40] sm:$0xff] %vm3472_vm2, %v3490_v51  ;;  %v3417_v38 = vsel %vm3414_vm5, %v3416_v7, %v3412_v25  ;;  %9714 = vrcp.f32 %v3340_v48  ;;  %vm3426_vm8 = vmor %vm3424_vm7, %vm3425_vm6  ;;  %v3445_v54 = vand.u32 2147483648, %v3340_v48  ;;  %v3443_v6 = vand.u32 2147483647, %v3340_v48 }
 0x660   : > { %v3421_v12 = vsub.f32 1.0, %v3420_v60  ;;  %v3418_v10 = vmul.f32 %v11645_v26, %v3417_v38  ;;  %vm3439_vm10 = vweird.f32 %v3340_v48 }
 0x661   : > { %vm3444_vm12 = vcmp.eq.f32.partialorder %v3443_v6, 8.507059e+37 }
 0x662   : > { %v3422_v63 = vmul.f32 %v9713_v49, %v3421_v12  ;;  %v3468_v11 = vmul.f32 %v3418_v10, %v11480_v29 }
 0x664   : > { %v3423_v22 = vadd.f32 %v9713_v49, %v3422_v63  ;;  %3497 = vrot.lane.b32.xlu2 %v3468_v11, %s10624_s16  ;;  %3477 = vst.msk [vmem:[#allocation2 + $0x20] sm:$0xff] %vm3472_vm2, %v3468_v11  ;;  %v3808_v37 = vsel %vm714_vm0, %v3468_v11, 0 }
 0x665   : > { %v9715_v21 = vpop.eup %9714  ;;  %v11717_v28 = vand.u32 4294901760, %v3808_v37 }
 0x666   : > { %v3427_v26 = vsel %vm3426_vm8, %v9713_v49, %v3423_v22  ;;  %v3435_v3 = vmul.f32 %v9715_v21, %v3340_v48  ;;  %v3343_v5 = vpop.xlane.xlu1 %3342  ;;  %vm3440_vm3 = vweird.f32 %v9715_v21 }
 0x667   : > { %v3432_v33 = vsel %vm3429_vm9, %v3431_v13, %v3427_v26  ;;  %v3837_v53 = vsub.f32 %v3808_v37, %v11717_v28  ;;  %9716 = vrcp.f32 %v3343_v5  ;;  %3906 = vmatmul.f32.vlgmr.msra.gmra.mxu1 %v11717_v28  ;;  %vm3441_vm11 = vmor %vm3439_vm10, %vm3440_vm3  ;;  %v3460_v18 = vand.u32 2147483648, %v3343_v5 }
 0x668   : > { %v3436_v4 = vsub.f32 1.0, %v3435_v3  ;;  %v3433_v61 = vmul.f32 %v11650_v56, %v3432_v33  ;;  %v3446_v56 = vor.u32 1.1754944e-38, %v3445_v54  ;;  %v3458_v45 = vand.u32 2147483647, %v3343_v5 }
 0x669   : > { %3948 = vmatmul.f32.vlgmr.msra.gmra.mxu2 %v3837_v53  ;;  %v3838_v50 = vand.u32 4294901760, %v3837_v53  ;;  %vm3454_vm14 = vweird.f32 %v3343_v5  ;;  %v3461_v49 = vor.u32 1.1754944e-38, %v3460_v18 }
 0x66a   : > { %v3437_v41 = vmul.f32 %v9715_v21, %v3436_v4  ;;  %v3469_v15 = vmul.f32 %v3433_v61, %v11482_v20  ;;  %vm3459_vm1 = vcmp.eq.f32.partialorder %v3458_v45, 8.507059e+37 }
 0x66b   : > { %3990 = vmatmul.f32.vlgmr.msra.gmra.mxu3 %v3838_v50  ;;  %v3839_v27 = vsub.f32 %v3837_v53, %v3838_v50  ;;  %v3663_v54 = vpop.f32.mrf.mxu0 }
 0x66c   : > { %v3438_v31 = vadd.f32 %v9715_v21, %v3437_v41  ;;  %3478 = vst.msk [vmem:[#allocation2 + $0x28] sm:$0xff] %vm3472_vm2, %v3469_v15  ;;  %3499 = vrot.lane.b32.xlu1 %v3469_v15, %s10624_s16  ;;  %v3810_v52 = vsel %vm714_vm0, %v3469_v15, 0 }
 0x66d   : > { %v9717_v59 = vpop.eup %9716  ;;  %v3840_v46 = vand.u32 4294901760, %v3839_v27  ;;  %v11726_v19 = vand.u32 4294901760, %v3810_v52  ;;  %v3705_v6 = vpop.f32.mrf.mxu1 }
 0x66e   : > { %v3450_v9 = vmul.f32 %v9717_v59, %v3343_v5  ;;  %v3442_v30 = vsel %vm3441_vm11, %v9715_v21, %v3438_v31  ;;  %vm3455_vm13 = vweird.f32 %v9717_v59 }
 0x66f   : > { %3841 = vmatmul.f32.vlgmr.msra.gmra.mxu0 %v3840_v46  ;;  %3910 = vmatmul.f32.gmra.mxu1 %v11726_v19  ;;  %v3845_v8 = vsub.f32 %v3810_v52, %v11726_v19  ;;  %v3447_v24 = vsel %vm3444_vm12, %v3446_v56, %v3442_v30  ;;  %v3621_v23 = vpop.f32.mrf.mxu3  ;;  %vm3456_vm15 = vmor %vm3454_vm14, %vm3455_vm13 }
 0x670   : > { %v3451_v42 = vsub.f32 1.0, %v3450_v9  ;;  %v3448_v16 = vmul.f32 %v11663_v47, %v3447_v24 }
 0x671   : > { %3953 = vmatmul.f32.gmra.mxu2 %v3845_v8  ;;  %v3846_v40 = vand.u32 4294901760, %v3845_v8 }
 0x672   : > { %v3492_v32 = vpop.permute.xlu0 %3491  ;;  %v3452_v34 = vmul.f32 %v9717_v59, %v3451_v42  ;;  %v3470_v57 = vmul.f32 %v3448_v16, %v11476_v39  ;;  %v9727_v16 = vld [vmem:[%s10937_s14] sm:$0xff] }
 0x673   : > { %3515 = vst.msk [vmem:[#allocation2 + $0x48] sm:$0xff] %vm3472_vm2, %v3492_v32  ;;  %3996 = vmatmul.f32.gmra.mxu3 %v3846_v40  ;;  %v3847_v36 = vsub.f32 %v3845_v8, %v3846_v40 }
 0x674   : > { %v3453_v14 = vadd.f32 %v9717_v59, %v3452_v34  ;;  %3501 = vrot.lane.b32.xlu0 %v3470_v57, %s10624_s16  ;;  %3479 = vst.msk [vmem:[#allocation2 + $0x30] sm:$0xff] %vm3472_vm2, %v3470_v57  ;;  %v3812_v47 = vsel %vm714_vm0, %v3470_v57, 0 }
 0x675   : > { %v3848_v7 = vand.u32 4294901760, %v3847_v36  ;;  %v3852_v60 = vand.u32 4294901760, %v3812_v47 }
 0x676   : > { %v3457_v51 = vsel %vm3456_vm15, %v9717_v59, %v3453_v14  ;;  %v3668_v31 = vpop.f32.mrf.mxu0  ;;  %v9728_v14 = vld [vmem:[%s10937_s14 + $0x8] sm:$0xff] }
 0x677   : > { %3849 = vmatmul.f32.gmra.mxu0 %v3848_v7  ;;  %3914 = vmatmul.f32.gmra.mxu1 %v3852_v60  ;;  %v3853_v25 = vsub.f32 %v3812_v47, %v3852_v60  ;;  %v3462_v48 = vsel %vm3459_vm1, %v3461_v49, %v3457_v51  ;;  %v3556_v38 = vpop.f32.mrf.mxu2 }
 0x678   : > { %v3463_v12 = vmul.f32 %v11676_v58, %v3462_v48  ;;  %v3622_v50 = vadd.f32 %v3621_v23, %v3556_v38  ;;  %v3711_v9 = vpop.f32.mrf.mxu1 }
 0x679   : > { %3958 = vmatmul.f32.gmra.mxu2 %v3853_v25  ;;  %v3854_v63 = vand.u32 4294901760, %v3853_v25 }
 0x67a   : > { %v3496_v55 = vpop.permute.xlu0 %3495  ;;  %v3625_v10 = vpop.f32.mrf.mxu3  ;;  %v3471_v35 = vmul.f32 %v3463_v12, %v11478_v62  ;;  %v3664_v15 = vadd.f32 %v3663_v54, %v3622_v50 }
 0x67b   : > { %3517 = vst.msk [vmem:[#allocation2 + $0x58] sm:$0xff] %vm3472_vm2, %v3496_v55  ;;  %4002 = vmatmul.f32.gmra.mxu3 %v3854_v63  ;;  %v3855_v11 = vsub.f32 %v3853_v25, %v3854_v63 }
 0x67c   : > { %3503 = vrot.lane.b32.xlu2 %v3471_v35, %s10624_s16  ;;  %3480 = vst.msk [vmem:[#allocation2 + $0x38] sm:$0xff] %vm3472_vm2, %v3471_v35  ;;  %v3814_v22 = vsel %vm714_vm0, %v3471_v35, 0  ;;  %v3706_v59 = vadd.f32 %v3705_v6, %v3664_v15 }
 0x67d   : > { %v3856_v13 = vand.u32 4294901760, %v3855_v11  ;;  %v3860_v37 = vand.u32 4294901760, %v3814_v22 }
 0x67e   : > { %v3494_v21 = vpop.permute.xlu1 %3493 }
 0x67f   : > { %3516 = vst.msk [vmem:[#allocation2 + $0x50] sm:$0xff] %vm3472_vm2, %v3494_v21  ;;  %3857 = vmatmul.f32.gmra.mxu0 %v3856_v13  ;;  %3918 = vmatmul.f32.gmra.mxu1 %v3860_v37  ;;  %v3861_v58 = vsub.f32 %v3814_v22, %v3860_v37  ;;  %v9730_v21 = vld [vmem:[%s10937_s14 + $0x18] sm:$0xff] }
 0x680   : > { %v3717_v57 = vpop.f32.mrf.mxu1 }
 0x681   : > { %3963 = vmatmul.f32.gmra.mxu2 %v3861_v58  ;;  %v3862_v5 = vand.u32 4294901760, %v3861_v58 }
 0x682   : > { %v3564_v26 = vpop.f32.mrf.mxu2  ;;  %v3629_v3 = vpop.f32.mrf.mxu3 }
 0x683   : > { %4008 = vmatmul.f32.gmra.mxu3 %v3862_v5  ;;  %v3863_v33 = vsub.f32 %v3861_v58, %v3862_v5  ;;  %v3626_v52 = vadd.f32 %v3625_v10, %v3564_v26 }
 0x685   : > { %v3864_v53 = vand.u32 4294901760, %v3863_v33  ;;  %v3669_v30 = vadd.f32 %v3668_v31, %v3626_v52 }
 0x687   : > { %3865 = vmatmul.f32.gmra.mxu0 %v3864_v53  ;;  %4078 = vmatmul.f32.vlgmr.msrb.gmra.mxu1 %v11717_v28  ;;  %v3712_v23 = vadd.f32 %v3711_v9, %v3669_v30 }
 0x688   : > { %v3723_v55 = vpop.f32.mrf.mxu1 }
 0x68a   : > { %v3572_v4 = vpop.f32.mrf.mxu2  ;;  %v3633_v61 = vpop.f32.mrf.mxu3 }
 0x68b   : > { %v3630_v42 = vadd.f32 %v3629_v3, %v3572_v4 }
 0x68f   : > { %4041 = vmatmul.f32.vlgmr.msrb.gmra.mxu0 %v11717_v28  ;;  %4082 = vmatmul.f32.gmra.mxu1 %v11726_v19 }
 0x692   : > { %v3580_v41 = vpop.f32.mrf.mxu2  ;;  %v3793_v27 = vpop.f32.mrf.mxu3 }
 0x693   : > { %v3634_v36 = vadd.f32 %v3633_v61, %v3580_v41 }
 0x697   : > { %4045 = vmatmul.f32.gmra.mxu0 %v11726_v19  ;;  %4086 = vmatmul.f32.gmra.mxu1 %v3852_v60  ;;  %v3673_v19 = vpop.f32.mrf.mxu0 }
 0x698   : > { %v3674_v34 = vadd.f32 %v3673_v19, %v3630_v42  ;;  %v9731_v19 = vld [vmem:[%s10937_s14 + $0x20] sm:$0xff] }
 0x69a   : > { %v3756_v56 = vpop.f32.mrf.mxu2  ;;  %v3797_v24 = vpop.f32.mrf.mxu3  ;;  %v3718_v49 = vadd.f32 %v3717_v57, %v3674_v34 }
 0x69b   : > { %v3757_v46 = vadd.f32 %v3756_v56, %v3706_v59 }
 0x69d   : > { %v3794_v28 = vadd.f32 %v3793_v27, %v3757_v46 }
 0x69f   : > { %v4094_v8 = vmul.f32 %v3794_v28, %v11415_v43  ;;  %4049 = vmatmul.f32.gmra.mxu0 %v3852_v60  ;;  %4090 = vmatmul.f32.gmra.mxu1 %v3860_v37  ;;  %v3678_v25 = vpop.f32.mrf.mxu0 }
 0x6a0   : > { %v3679_v48 = vadd.f32 %v3678_v25, %v3634_v36 }
 0x6a1   : > { %v4102_v18 = vadd.f32 %v9727_v16, %v4094_v8 }
 0x6a2   : > { %v3760_v32 = vpop.f32.mrf.mxu2  ;;  %v3801_v7 = vpop.f32.mrf.mxu3  ;;  %v3724_v63 = vadd.f32 %v3723_v55, %v3679_v48 }
 0x6a3   : > { %4110 = vst.msk [vmem:[%s10948_s22] sm:$0xff] %vm714_vm0, %v4102_v18  ;;  %v3761_v40 = vadd.f32 %v3760_v32, %v3712_v23 }
 0x6a5   : > { %v3798_v45 = vadd.f32 %v3797_v24, %v3761_v40 }
 0x6a7   : > { %v4095_v43 = vmul.f32 %v3798_v45, %v11417_v17  ;;  %4053 = vmatmul.f32.gmra.mxu0 %v3860_v37  ;;  %v9729_v17 = vld [vmem:[%s10937_s14 + $0x10] sm:$0xff] }
 0x6a9   : > { %v4103_v47 = vadd.f32 %v9728_v14, %v4095_v43 }
 0x6aa   : > { %v3764_v60 = vpop.f32.mrf.mxu2  ;;  %v3805_v22 = vpop.f32.mrf.mxu3 }
 0x6ab   : > { %4111 = vst.msk [vmem:[%s10948_s22 + $0x8] sm:$0xff] %vm714_vm0, %v4103_v47  ;;  %v3765_v51 = vadd.f32 %v3764_v60, %v3718_v49  ;;  %v9732_v49 = vld [vmem:[%s10937_s14 + $0x28] sm:$0xff] }
 0x6ad   : > { %v3802_v38 = vadd.f32 %v3801_v7, %v3765_v51 }
 0x6af   : > { %v4096_v12 = vmul.f32 %v3802_v38, %v11411_v44 }
 0x6b1   : > { %v4104_v10 = vadd.f32 %v9729_v17, %v4096_v12 }
 0x6b2   : > { %v3768_v35 = vpop.f32.mrf.mxu2 }
 0x6b3   : > { %4112 = vst.msk [vmem:[%s10948_s22 + $0x10] sm:$0xff] %vm714_vm0, %v4104_v10  ;;  %v3769_v11 = vadd.f32 %v3768_v35, %v3724_v63 }
 0x6b5   : > { %v3806_v13 = vadd.f32 %v3805_v22, %v3769_v11 }
 0x6b7   : > { %v4097_v37 = vmul.f32 %v3806_v13, %v11433_v2 }
 0x6b9   : > { %v4105_v58 = vadd.f32 %v9730_v21, %v4097_v37  ;;  %v9734_v21 = vld [vmem:[%s10937_s14 + $0x38] sm:$0xff] }
 0x6bb   : > { %4113 = vst.msk [vmem:[%s10948_s22 + $0x18] sm:$0xff] %vm714_vm0, %v4105_v58 }
 0x6be   : > { %v3498_v26 = vpop.permute.xlu2 %3497 }
 0x6bf   : > { %3518 = vst.msk [vmem:[#allocation2 + $0x60] sm:$0xff] %vm3472_vm2, %v3498_v26 }
 0x6d6   : > { %v3504_v44 = vpop.permute.xlu2 %3503 }
 0x6d7   : > { %3521 = vst.msk [vmem:[#allocation2 + $0x78] sm:$0xff] %vm3472_vm2, %v3504_v44 }
 0x6de   : > { %v3500_v3 = vpop.permute.xlu1 %3499 }
 0x6df   : > { %3519 = vst.msk [vmem:[#allocation2 + $0x68] sm:$0xff] %vm3472_vm2, %v3500_v3 }
 0x6e4   : > { %v3907_v5 = vpop.f32.mrf.mxu1 }
 0x6e6   : > { %v3502_v33 = vpop.permute.xlu0 %3501 }
 0x6e7   : > { %3520 = vst.msk [vmem:[#allocation2 + $0x70] sm:$0xff] %vm3472_vm2, %v3502_v33 }
 0x6ec   : > { %v3842_v53 = vpop.f32.mrf.mxu0  ;;  %v3911_v4 = vpop.f32.mrf.mxu1 }
 0x6ed   : > { %v3949_v41 = vpop.f32.mrf.mxu2  ;;  %v3908_v6 = vadd.f32 %v3907_v5, %v3842_v53 }
 0x6ee   : > { %v3991_v15 = vpop.f32.mrf.mxu3 }
 0x6ef   : > { %v3950_v31 = vadd.f32 %v3949_v41, %v3908_v6 }
 0x6f1   : > { %v3992_v56 = vadd.f32 %v3991_v15, %v3950_v31 }
 0x6f4   : > { %v3850_v2 = vpop.f32.mrf.mxu0  ;;  %v3915_v61 = vpop.f32.mrf.mxu1 }
 0x6f5   : > { %v3954_v59 = vpop.f32.mrf.mxu2  ;;  %v3912_v46 = vadd.f32 %v3911_v4, %v3850_v2 }
 0x6f6   : > { %v3997_v28 = vpop.f32.mrf.mxu3 }
 0x6f7   : > { %v3955_v8 = vadd.f32 %v3954_v59, %v3912_v46 }
 0x6f9   : > { %v3998_v18 = vadd.f32 %v3997_v28, %v3955_v8 }
 0x6fc   : > { %v3858_v54 = vpop.f32.mrf.mxu0  ;;  %v3919_v50 = vpop.f32.mrf.mxu1 }
 0x6fd   : > { %v3916_v23 = vadd.f32 %v3915_v61, %v3858_v54  ;;  %v3959_v40 = vpop.f32.mrf.mxu2 }
 0x6fe   : > { %v4003_v36 = vpop.f32.mrf.mxu3 }
 0x6ff   : > { %v3960_v57 = vadd.f32 %v3959_v40, %v3916_v23 }
 0x701   : > { %v4004_v47 = vadd.f32 %v4003_v36, %v3960_v57 }
 0x704   : > { %v3866_v27 = vpop.f32.mrf.mxu0  ;;  %v4079_v52 = vpop.f32.mrf.mxu1 }
 0x705   : > { %v3964_v48 = vpop.f32.mrf.mxu2 }
 0x706   : > { %v4009_v17 = vpop.f32.mrf.mxu3 }
 0x70c   : > { %v4042_v9 = vpop.f32.mrf.mxu0  ;;  %v4083_v16 = vpop.f32.mrf.mxu1 }
 0x70d   : > { %v4043_v30 = vadd.f32 %v4042_v9, %v3992_v56 }
 0x70f   : > { %v4080_v24 = vadd.f32 %v4079_v52, %v4043_v30 }
 0x711   : > { %v4098_v42 = vmul.f32 %v4080_v24, %v11480_v29  ;;  %v3920_v29 = vadd.f32 %v3919_v50, %v3866_v27 }
 0x713   : > { %v4106_v32 = vadd.f32 %v9731_v19, %v4098_v42  ;;  %v3965_v38 = vadd.f32 %v3964_v48, %v3920_v29 }
 0x714   : > { %v4046_v34 = vpop.f32.mrf.mxu0  ;;  %v4087_v60 = vpop.f32.mrf.mxu1 }
 0x715   : > { %4114 = vst.msk [vmem:[%s10948_s22 + $0x20] sm:$0xff] %vm714_vm0, %v4106_v32  ;;  %v4047_v45 = vadd.f32 %v4046_v34, %v3998_v18  ;;  %v4010_v10 = vadd.f32 %v4009_v17, %v3965_v38 }
 0x717   : > { %v4084_v43 = vadd.f32 %v4083_v16, %v4047_v45 }
 0x719   : > { %v4099_v14 = vmul.f32 %v4084_v43, %v11482_v20  ;;  %v9733_v20 = vld [vmem:[%s10937_s14 + $0x30] sm:$0xff] }
 0x71b   : > { %v4107_v7 = vadd.f32 %v9732_v49, %v4099_v14 }
 0x71c   : > { %v4050_v51 = vpop.f32.mrf.mxu0  ;;  %v4091_v22 = vpop.f32.mrf.mxu1 }
 0x71d   : > { %4115 = vst.msk [vmem:[%s10948_s22 + $0x28] sm:$0xff] %vm714_vm0, %v4107_v7  ;;  %v4051_v25 = vadd.f32 %v4050_v51, %v4004_v47 }
 0x71f   : > { %v4088_v12 = vadd.f32 %v4087_v60, %v4051_v25 }
 0x721   : > { %v4100_v55 = vmul.f32 %v4088_v12, %v11476_v39 }
 0x723   : > { %v4108_v63 = vadd.f32 %v9733_v20, %v4100_v55 }
 0x724   : > { %v4054_v35 = vpop.f32.mrf.mxu0 }
 0x725   : > { %4116 = vst.msk [vmem:[%s10948_s22 + $0x30] sm:$0xff] %vm714_vm0, %v4108_v63  ;;  %v4055_v11 = vadd.f32 %v4054_v35, %v4010_v10 }
 0x727   : > { %v4092_v13 = vadd.f32 %v4091_v22, %v4055_v11 }
 0x729   : > { %v4101_v37 = vmul.f32 %v4092_v13, %v11478_v62 }
 0x72b   : > { %v4109_v58 = vadd.f32 %v9734_v21, %v4101_v37 }
 0x72d   : > { %4117 = vst.msk [vmem:[%s10948_s22 + $0x38] sm:$0xff] %vm714_vm0, %v4109_v58 }
 0x72e PF: > { %v6959_v26 = vlaneseq  ;;  %s17072_s12 = sld [smem:[#allocation27_spill]]  ;;  %v11842_v46 = vld [vmem:[%s10902_s1 + $0x10] sm:$0xff]   ;;  %v11850_v28 = vperm.slane %v10944_v0, 0  ;;  %v11867_v23 = vld [vmem:[%s10902_s1 + $0x8] sm:$0xff]   ;;  %v11886_v7 = vld [vmem:[%s10902_s1 + $0x18] sm:$0xff]   ;;  %vm8046_vm12 = vcmask 261120  }
 0x72f   : > { %v9185_v9 = vunpack.c.l.bf16 %v11842_v46  ;;  %v9186_v30 = vunpack.c.h.bf16 %v11842_v46  ;;  %v9181_v34 = vunpack.c.l.bf16 %v11867_v23  ;;  %v9190_v60 = vunpack.c.h.bf16 %v11886_v7  ;;  %v11914_v63 = vld [vmem:[%s10902_s1] sm:$0xff]   ;;  %s17649_s17 = sld [smem:[#allocation53_spill]]  ;;  %s8775_s10 = scalar_lea.sflag [#allocation5], %s10890_s3 }
 0x730   : > { %v11784_v39 = vshrl.u32 %v6959_v26, 7  ;;  %v9182_v25 = vunpack.c.h.bf16 %v11867_v23  ;;  %v9189_v11 = vunpack.c.l.bf16 %v11886_v7  ;;  %v9177_v37 = vunpack.c.l.bf16 %v11914_v63  ;;  %v12270_v63 = vld [vmem:[%s10902_s1 + $0x38] sm:$0xff]  }
 0x731   : > { %v4384_v42 = vmul.f32 %v9185_v9, %v11850_v28  ;;  %v4385_v16 = vmul.f32 %v9186_v30, %v11850_v28  ;;  %v4382_v45 = vmul.f32 %v9181_v34, %v11850_v28  ;;  %v4387_v38 = vmul.f32 %v9190_v60, %v11850_v28 }
 0x732   : > { %9737 = vset.pattern.permute.xlu2 %v11784_v39  ;;  %9736 = vset.pattern.permute.xlu1 %v11784_v39  ;;  %v11800_v33 = vadd.s32 8, %v11784_v39  ;;  %v4383_v17 = vmul.f32 %v9182_v25, %v11850_v28 }
 0x733   : > { %9735 = vset.pattern.permute.xlu0 %v11784_v39  ;;  %v9038_v0 = vmul.f32 -1.442695, %v4384_v42  ;;  %v9039_v19 = vmul.f32 -1.442695, %v4385_v16  ;;  %v9036_v47 = vmul.f32 -1.442695, %v4382_v45 }
 0x734   : > { %s9162_s2 = sshll.u32 %s17072_s12, 6  ;;  %v9041_v35 = vmul.f32 -1.442695, %v4387_v38  ;;  %v9037_v26 = vmul.f32 -1.442695, %v4383_v17 }
 0x735   : > { %s11789_s23 = scalar_lea.vmem [#allocation2], %s9162_s2  ;;  %9790 = vpow2.f32 %v9038_v0  ;;  %s17650_s14 = smov %s17649_s17 }
 0x736   : > { %v11792_v62 = vld [vmem:[%s11789_s23] sm:$0xff]  ;;  %v11806_v4 = vld [vmem:[%s11789_s23 + $0x8] sm:$0xff]  ;;  %v11817_v50 = vld [vmem:[%s11789_s23 + $0x10] sm:$0xff]  ;;  %9792 = vpow2.f32 %v9039_v19  ;;  %s10485_s6 = scalar_lea.hbm %s17650_s14, 128 }
 0x737   : > { %v6984_v44 = vperm.slane %v11792_v62, 2  ;;  %v6971_v3 = vperm.slane %v11792_v62, 1  ;;  %v6958_v5 = vperm.slane %v11792_v62, 0  ;;  %v7010_v53 = vperm.slane %v11792_v62, 4  ;;  %v11824_v6 = vld [vmem:[%s11789_s23 + $0x18] sm:$0xff]  ;;  %v11838_v59 = vld [vmem:[%s11789_s23 + $0x20] sm:$0xff] }
 0x738   : > { %v7075_v2 = vperm.slane %v11806_v4, 1  ;;  %v6997_v61 = vperm.slane %v11792_v62, 3  ;;  %v7140_v54 = vperm.slane %v11806_v4, 6  ;;  %v16963_v41 = vperm.slane %v11817_v50, 3  ;;  %17073 = vst [vmem:[#allocation34_spill] sm:$0xff] %v11838_v59  ;;  %v11864_v18 = vld [vmem:[%s11789_s23 + $0x28] sm:$0xff] }
 0x739   : > { %v7023_v15 = vperm.slane %v11792_v62, 5  ;;  %v16962_v27 = vperm.slane %v11824_v6, 0  ;;  %v7036_v31 = vperm.slane %v11792_v62, 6  ;;  %v16961_v52 = vperm.slane %v11824_v6, 5  ;;  %17074 = vst [vmem:[#allocation35_spill] sm:$0xff] %v11864_v18  ;;  %v11878_v57 = vld [vmem:[%s11789_s23 + $0x30] sm:$0xff] }
 0x73a   : > { %6989 = vperm.xlu2 %9737, %v6984_v44   ;;  %6976 = vperm.xlu1 %9736, %v6971_v3   ;;  %v16960_v56 = vperm.slane %v11838_v59, 2  ;;  %v7049_v8 = vperm.slane %v11792_v62, 7  ;;  %v16959_v24 = vperm.slane %v11838_v59, 7  ;;  %v7062_v32 = vperm.slane %v11806_v4, 0  ;;  %17075 = vst [vmem:[#allocation36_spill] sm:$0xff] %v11878_v57  ;;  %v11911_v20 = vld [vmem:[%s11789_s23 + $0x38] sm:$0xff] }
 0x73b   : > { %6963 = vperm.xlu0 %9735, %v6958_v5   ;;  %v16958_v40 = vperm.slane %v11864_v18, 4  ;;  %v9791_v43 = vpop.eup %9790  ;;  %v16957_v14 = vperm.slane %v11878_v57, 1  ;;  %9794 = vpow2.f32 %v9036_v47  ;;  %v7088_v51 = vperm.slane %v11806_v4, 2  ;;  %17076 = vst [vmem:[#allocation37_spill] sm:$0xff] %v11911_v20  ;;  %v12683_v18 = vld [vmem:[%s10902_s1 + $0x58] sm:$0xff]  }
 0x73c   : > { %v9793_v36 = vpop.eup %9792  ;;  %v11881_v29 = vadd.f32 1.0, %v9791_v43  ;;  %v16956_v48 = vperm.slane %v11878_v57, 6  ;;  %v7101_v21 = vperm.slane %v11806_v4, 3 }
 0x73d   : > { %v11883_v49 = vadd.f32 1.0, %v9793_v36 }
 0x73e   : > { %9796 = vrcp.f32 %v11881_v29  ;;  %vm5085_vm0 = vweird.f32 %v11881_v29  ;;  %v5091_v47 = vand.u32 2147483648, %v11881_v29 }
 0x73f   : > { %9798 = vrcp.f32 %v11883_v49  ;;  %vm5100_vm4 = vweird.f32 %v11883_v49 }
 0x740   : > { %9800 = vpow2.f32 %v9041_v35 }
 0x741   : > { %v9795_v12 = vpop.eup %9794 }
 0x742   : > { %9740 = vset.pattern.permute.xlu2 %v11800_v33  ;;  %9738 = vset.pattern.permute.xlu1 %v11800_v33  ;;  %v11919_v13 = vadd.f32 1.0, %v9795_v12  ;;  %v5106_v12 = vand.u32 2147483648, %v11883_v49 }
 0x743   : > { %7015 = vperm.xlu0 %9735, %v7010_v53  }
 0x744   : > { %v11900_v55 = vpop.eup %9796  ;;  %9802 = vrcp.f32 %v11919_v13  ;;  %vm5055_vm3 = vweird.f32 %v11919_v13 }
 0x745   : > { %v11906_v10 = vpop.eup %9798  ;;  %v5081_v22 = vmul.f32 %v11900_v55, %v11881_v29  ;;  %9804 = vpow2.f32 %v9037_v26  ;;  %vm5086_vm2 = vweird.f32 %v11900_v55 }
 0x746   : > { %v5096_v58 = vmul.f32 %v11906_v10, %v11883_v49  ;;  %v9801_v19 = vpop.eup %9800  ;;  %vm5101_vm5 = vweird.f32 %v11906_v10  ;;  %vm11958_vm6 = vmor %vm5085_vm0, %vm5086_vm2 }
 0x747   : > { %v11955_v17 = vadd.f32 1.0, %v9801_v19  ;;  %vm11974_vm7 = vmor %vm5100_vm4, %vm5101_vm5 }
 0x749   : > { %vm5130_vm14 = vweird.f32 %v11955_v17 }
 0x74a   : > { %6995 = vperm.xlu2 %9740, %v6984_v44   ;;  %6982 = vperm.xlu1 %9738, %v6971_v3   ;;  %v16955_v44 = vperm.slane %v11911_v20, 3  ;;  %v4386_v3 = vmul.f32 %v9189_v11, %v11850_v28  ;;  %v11945_v43 = vpop.eup %9802 }
 0x74b   : > { %7080 = vperm.xlu0 %9735, %v7075_v2   ;;  %v9805_v36 = vpop.eup %9804  ;;  %vm5056_vm10 = vweird.f32 %v11945_v43 }
 0x74c   : > { %v9040_v42 = vmul.f32 -1.442695, %v4386_v3  ;;  %v5051_v3 = vmul.f32 %v11945_v43, %v11919_v13  ;;  %vm12029_vm11 = vmor %vm5055_vm3, %vm5056_vm10 }
 0x74e   : > { %9806 = vpow2.f32 %v9040_v42 }
 0x752   : > { %7008 = vperm.xlu2 %9740, %v6997_v61   ;;  %9739 = vset.pattern.permute.xlu1 %v11784_v39 }
 0x753   : > { %7145 = vperm.xlu0 %9735, %v7140_v54  }
 0x75a   : > { %9742 = vset.pattern.permute.xlu2 %v11784_v39  ;;  %7002 = vperm.xlu1 %9739, %v6997_v61   ;;  %v4380_v61 = vmul.f32 %v9177_v37, %v11850_v28 }
 0x75b   : > { %7210 = vperm.xlu0 %9735, %v16963_v41  }
 0x75c   : > { %v9034_v0 = vmul.f32 -1.442695, %v4380_v61  ;;  %v11981_v61 = vld [vmem:[%s10902_s1 + $0x28] sm:$0xff]  }
 0x75e   : > { %9808 = vpow2.f32 %v9034_v0  ;;  %v5107_v0 = vor.u32 1.1754944e-38, %v5106_v12 }
 0x75f   : > { %9810 = vrcp.f32 %v11955_v17 }
 0x762   : > { %7028 = vperm.xlu2 %9742, %v7023_v15   ;;  %9741 = vset.pattern.permute.xlu1 %v11800_v33 }
 0x763   : > { %7275 = vperm.xlu0 %9735, %v16962_v27  }
 0x76a   : > { %7041 = vperm.xlu2 %9742, %v7036_v31   ;;  %7021 = vperm.xlu1 %9741, %v7010_v53   ;;  %v5082_v53 = vsub.f32 1.0, %v5081_v22  ;;  %v5104_v22 = vand.u32 2147483647, %v11883_v49  ;;  %v9807_v49 = vpop.eup %9806 }
 0x76b   : > { %7340 = vperm.xlu0 %9735, %v16961_v52   ;;  %v12102_v52 = vld [vmem:[%s10902_s1 + $0x70] sm:$0xff]  }
 0x76c   : > { %v5083_v16 = vmul.f32 %v11900_v55, %v5082_v53  ;;  %v11978_v53 = vadd.f32 1.0, %v9805_v36  ;;  %vm5105_vm9 = vcmp.eq.f32.partialorder %v5104_v22, 8.507059e+37  ;;  %v16969_v36 = vunpack.c.l.bf16 %v11981_v61 }
 0x76e   : > { %v5084_v38 = vadd.f32 %v11900_v55, %v5083_v16  ;;  %v5092_v16 = vor.u32 1.1754944e-38, %v5091_v47  ;;  %9812 = vrcp.f32 %v11978_v53  ;;  %vm5070_vm1 = vweird.f32 %v11978_v53 }
 0x770   : > { %v5088_v42 = vsel %vm11958_vm6, %v11900_v55, %v5084_v38  ;;  %v11993_v55 = vadd.f32 1.0, %v9807_v49 }
 0x772   : > { %9744 = vset.pattern.permute.xlu2 %v11800_v33  ;;  %7034 = vperm.xlu1 %9741, %v7023_v15   ;;  %v5097_v15 = vsub.f32 1.0, %v5096_v58  ;;  %vm5115_vm5 = vweird.f32 %v11993_v55 }
 0x773   : > { %7405 = vperm.xlu0 %9735, %v16960_v56  }
 0x77a   : > { %7060 = vperm.xlu2 %9744, %v7049_v8   ;;  %9743 = vset.pattern.permute.xlu1 %v11784_v39 }
 0x77b   : > { %7470 = vperm.xlu0 %9735, %v16959_v24  }
 0x782   : > { %7073 = vperm.xlu2 %9744, %v7062_v32   ;;  %7054 = vperm.xlu1 %9743, %v7049_v8   ;;  %v11940_v8 = vld [vmem:[%s10902_s1 + $0x20] sm:$0xff]  }
 0x783   : > { %7535 = vperm.xlu0 %9735, %v16958_v40   ;;  %v16970_v45 = vunpack.c.l.bf16 %v11940_v8  ;;  %v16968_v38 = vunpack.c.h.bf16 %v11940_v8  ;;  %v12037_v40 = vld [vmem:[%s10902_s1 + $0x48] sm:$0xff]  }
 0x785   : > { %v4388_v58 = vmul.f32 %v16970_v45, %v11850_v28 }
 0x78a   : > { %9746 = vset.pattern.permute.xlu2 %v11784_v39  ;;  %7067 = vperm.xlu1 %9743, %v7062_v32   ;;  %v5098_v32 = vmul.f32 %v11906_v10, %v5097_v15  ;;  %v7114_v15 = vperm.slane %v11806_v4, 4 }
 0x78b   : > { %7600 = vperm.xlu0 %9735, %v16957_v14  }
 0x792   : > { %7093 = vperm.xlu2 %9746, %v7088_v51   ;;  %9745 = vset.pattern.permute.xlu1 %v11800_v33 }
 0x793   : > { %7665 = vperm.xlu0 %9735, %v16956_v48  }
 0x794   : > { %v6990_v26 = vpop.permute.xlu2 %6989 }
 0x79a   : > { %7106 = vperm.xlu2 %9746, %v7101_v21   ;;  %7086 = vperm.xlu1 %9745, %v7075_v2   ;;  %v5089_v2 = vand.u32 2147483647, %v11881_v29  ;;  %v5099_v29 = vadd.f32 %v11906_v10, %v5098_v32  ;;  %v9042_v32 = vmul.f32 -1.442695, %v4388_v58  ;;  %v5061_v58 = vand.u32 2147483648, %v11919_v13 }
 0x79b   : > { %7730 = vperm.xlu0 %9735, %v16955_v44   ;;  %v5052_v44 = vsub.f32 1.0, %v5051_v3 }
 0x79c   : > { %vm5090_vm8 = vcmp.eq.f32.partialorder %v5089_v2, 8.507059e+37  ;;  %v5103_v19 = vsel %vm11974_vm7, %v11906_v10, %v5099_v29  ;;  %v9809_v2 = vpop.eup %9808  ;;  %9814 = vpow2.f32 %v9042_v32  ;;  %v4390_v10 = vmul.f32 %v16969_v36, %v11850_v28 }
 0x79d   : > { %v5093_v48 = vsel %vm5090_vm8, %v5092_v16, %v5088_v42  ;;  %v5108_v35 = vsel %vm5105_vm9, %v5107_v0, %v5103_v19  ;;  %v11996_v47 = vadd.f32 1.0, %v9809_v2  ;;  %v12002_v12 = vpop.eup %9810  ;;  %v5053_v29 = vmul.f32 %v11945_v43, %v5052_v44 }
 0x79e   : > { %v7794_v22 = vmul.f32 %v9185_v9, %v5093_v48  ;;  %v7795_v3 = vmul.f32 %v9186_v30, %v5108_v35  ;;  %v7127_v16 = vperm.slane %v11806_v4, 5  ;;  %9816 = vrcp.f32 %v11993_v55 }
 0x79f   : > { %9818 = vrcp.f32 %v11996_v47  ;;  %v5126_v46 = vmul.f32 %v12002_v12, %v11955_v17  ;;  %v9044_v9 = vmul.f32 -1.442695, %v4390_v10  ;;  %v4389_v30 = vmul.f32 %v16968_v38, %v11850_v28 }
 0x7a0   : > { %v5054_v48 = vadd.f32 %v11945_v43, %v5053_v29  ;;  %v5059_v44 = vand.u32 2147483647, %v11919_v13  ;;  %v7922_v49 = vmul.f32 %v7794_v22, %v6990_v26  ;;  %v5062_v10 = vor.u32 1.1754944e-38, %v5061_v58 }
 0x7a1   : > { %v5127_v14 = vsub.f32 1.0, %v5126_v46  ;;  %9820 = vpow2.f32 %v9044_v9  ;;  %v9043_v13 = vmul.f32 -1.442695, %v4389_v30  ;;  %v16964_v9 = vunpack.c.l.bf16 %v12037_v40 }
 0x7a2   : > { %9748 = vset.pattern.permute.xlu2 %v11800_v33  ;;  %7099 = vperm.xlu1 %9745, %v7088_v51   ;;  %v12012_v51 = vpop.eup %9812  ;;  %v5058_v26 = vsel %vm12029_vm11, %v11945_v43, %v5054_v48  ;;  %vm5060_vm13 = vcmp.eq.f32.partialorder %v5059_v44, 8.507059e+37  ;;  %v5076_v30 = vand.u32 2147483648, %v11978_v53  ;;  %vm5131_vm15 = vweird.f32 %v12002_v12 }
 0x7a3   : > { %9785 = vset.pattern.permute.xlu0 %v11800_v33  ;;  %v9815_v0 = vpop.eup %9814  ;;  %v5066_v2 = vmul.f32 %v12012_v51, %v11978_v53  ;;  %v5063_v43 = vsel %vm5060_vm13, %v5062_v10, %v5058_v26  ;;  %v5128_v62 = vmul.f32 %v12002_v12, %v5127_v14  ;;  %9822 = vpow2.f32 %v9043_v13  ;;  %vm12086_vm2 = vmor %vm5130_vm14, %vm5131_vm15 }
 0x7a4   : > { %v6996_v42 = vpop.permute.xlu2 %6995  ;;  %v12039_v29 = vpop.eup %9816  ;;  %v12046_v22 = vadd.f32 1.0, %v9815_v0  ;;  %v12068_v14 = vmul.f32 %v9181_v34, %v5063_v43  ;;  %v16965_v10 = vunpack.c.h.bf16 %v11981_v61  ;;  %vm5071_vm0 = vweird.f32 %v12012_v51 }
 0x7a5   : > { %v7923_v32 = vmul.f32 %v7795_v3, %v6996_v42  ;;  %v12048_v58 = vpop.eup %9818  ;;  %v5067_v42 = vsub.f32 1.0, %v5066_v2  ;;  %v5111_v44 = vmul.f32 %v12039_v29, %v11993_v55  ;;  %v4398_v2 = vmul.f32 %v16964_v9, %v11850_v28  ;;  %vm12136_vm9 = vmor %vm5070_vm1, %vm5071_vm0 }
 0x7a6   : > { %v5021_v48 = vmul.f32 %v12048_v58, %v11996_v47  ;;  %9824 = vrcp.f32 %v12046_v22  ;;  %v5129_v13 = vadd.f32 %v12002_v12, %v5128_v62  ;;  %v5134_v34 = vand.u32 2147483647, %v11955_v17 }
 0x7a7   : > { %v8066_v3 = vsel %vm8046_vm12, %v7923_v32, 0.0  ;;  %v9821_v0 = vpop.eup %9820  ;;  %v5136_v32 = vand.u32 2147483648, %v11955_v17  ;;  %v5074_v62 = vand.u32 2147483647, %v11978_v53  ;;  %v16971_v17 = vperm.slane %v11806_v4, 7 }
 0x7a8   : > { %v9052_v56 = vmul.f32 -1.442695, %v4398_v2  ;;  %vm12110_vm4 = vcmp.eq.f32.partialorder %v5134_v34, 8.507059e+37  ;;  %vm5116_vm6 = vweird.f32 %v12039_v29  ;;  %vm5025_vm7 = vweird.f32 %v11996_v47 }
 0x7a9   : > { %v5137_v24 = vor.u32 1.1754944e-38, %v5136_v32  ;;  %vm5026_vm8 = vweird.f32 %v12048_v58  ;;  %vm12154_vm3 = vmor %vm5115_vm5, %vm5116_vm6  ;;  %vm12178_vm11 = vcmp.eq.f32.partialorder %v5074_v62, 8.507059e+37  ;;  %vm5145_vm15 = vweird.f32 %v12046_v22 }
 0x7aa   : > { %7125 = vperm.xlu2 %9748, %v7114_v15   ;;  %9747 = vset.pattern.permute.xlu1 %v11784_v39  ;;  %vm12163_vm10 = vmor %vm5025_vm7, %vm5026_vm8 }
 0x7ab   : > { %6969 = vperm.xlu0 %9785, %v6958_v5   ;;  %v12019_v5 = vld [vmem:[%s10902_s1 + $0x30] sm:$0xff]  }
 0x7ac   : > { %v16966_v35 = vunpack.c.l.bf16 %v12019_v5 }
 0x7ae   : > { %v4392_v46 = vmul.f32 %v16966_v35, %v11850_v28  ;;  %v6977_v35 = vpop.permute.xlu1 %6976 }
 0x7b0   : > { %v9046_v19 = vmul.f32 -1.442695, %v4392_v46  ;;  %v9823_v46 = vpop.eup %9822 }
 0x7b2   : > { %7138 = vperm.xlu2 %9748, %v7127_v16   ;;  %7119 = vperm.xlu1 %9747, %v7114_v15   ;;  %v8065_v15 = vsel %vm8046_vm12, %v7922_v49, 0.0  ;;  %v5068_v49 = vmul.f32 %v12012_v51, %v5067_v42  ;;  %v12090_v42 = vadd.f32 1.0, %v9821_v0  ;;  %9826 = vpow2.f32 %v9046_v19 }
 0x7b3   : > { %7047 = vperm.xlu0 %9785, %v7036_v31   ;;  %v8067_v31 = vadd.f32 %v8066_v3, %v8065_v15  ;;  %v5022_v15 = vsub.f32 1.0, %v5021_v48  ;;  %v5112_v3 = vsub.f32 1.0, %v5111_v44  ;;  %v12096_v48 = vor.u32 1.1754944e-38, %v5076_v30 }
 0x7b4   : > { %v12093_v43 = vadd.f32 %v12012_v51, %v5068_v49  ;;  %v4391_v44 = vmul.f32 %v16965_v10, %v11850_v28  ;;  %v5133_v0 = vsel %vm12086_vm2, %v12002_v12, %v5129_v13  ;;  %v7166_v49 = vperm.slane %v11817_v50, 0 }
 0x7b5   : > { %v8068_v26 = vrot.slane %v8067_v31, 4  ;;  %v5023_v32 = vmul.f32 %v12048_v58, %v5022_v15  ;;  %v5113_v2 = vmul.f32 %v12039_v29, %v5112_v3  ;;  %9828 = vrcp.f32 %v12090_v42 }
 0x7b6   : > { %v16967_v12 = vunpack.c.l.bf16 %v12102_v52  ;;  %v12123_v13 = vadd.f32 1.0, %v9823_v46  ;;  %9830 = vpow2.f32 %v9052_v56  ;;  %v9045_v34 = vmul.f32 -1.442695, %v4391_v44 }
 0x7b7   : > { %v8069_v19 = vadd.f32 %v8068_v26, %v8067_v31  ;;  %v12128_v31 = vld [vmem:[%s10902_s1 + $0x98] sm:$0xff]   ;;  %v5029_v15 = vand.u32 2147483647, %v11996_v47  ;;  %v5031_v3 = vand.u32 2147483648, %v11996_v47  ;;  %v5138_v56 = vsel %vm12110_vm4, %v5137_v24, %v5133_v0 }
 0x7b8   : > { %v5121_v44 = vand.u32 2147483648, %v11993_v55  ;;  %v5024_v41 = vadd.f32 %v12048_v58, %v5023_v32  ;;  %v5114_v53 = vadd.f32 %v12039_v29, %v5113_v2  ;;  %v5119_v24 = vand.u32 2147483647, %v11993_v55 }
 0x7b9   : > { %v8070_v27 = vrot.slane %v8069_v19, 2  ;;  %v4408_v32 = vmul.f32 %v16967_v12, %v11850_v28  ;;  %v9253_v2 = vunpack.c.l.bf16 %v12128_v31  ;;  %9832 = vrcp.f32 %v12123_v13 }
 0x7ba   : > { %9750 = vset.pattern.permute.xlu2 %v11784_v39  ;;  %7132 = vperm.xlu1 %9747, %v7127_v16   ;;  %v5073_v55 = vsel %vm12136_vm9, %v12012_v51, %v12093_v43  ;;  %9834 = vpow2.f32 %v9045_v34  ;;  %vm12184_vm13 = vcmp.eq.f32.partialorder %v5029_v15, 8.507059e+37  ;;  %v5032_v38 = vor.u32 1.1754944e-38, %v5031_v3  ;;  %v6964_v34 = vpop.permute.xlu0 %6963  ;;  %v7009_v15 = vpop.permute.xlu2 %7008 }
 0x7bb   : > { %7112 = vperm.xlu0 %9785, %v7101_v21   ;;  %v12098_v21 = vpop.eup %9824  ;;  %v7797_v36 = vmul.f32 %v9190_v60, %v5138_v56  ;;  %v5122_v45 = vor.u32 1.1754944e-38, %v5121_v44  ;;  %v8071_v46 = vadd.f32 %v8070_v27, %v8069_v19  ;;  %v5028_v51 = vsel %vm12163_vm10, %v12048_v58, %v5024_v41 }
 0x7bc   : > { %v5141_v16 = vmul.f32 %v12098_v21, %v12046_v22  ;;  %v9827_v26 = vpop.eup %9826  ;;  %v5118_v43 = vsel %vm12154_vm3, %v12039_v29, %v5114_v53  ;;  %vm12196_vm14 = vcmp.eq.f32.partialorder %v5119_v24, 8.507059e+37  ;;  %v9062_v60 = vmul.f32 -1.442695, %v4408_v32  ;;  %v6983_v23 = vpop.permute.xlu1 %6982 }
 0x7bd   : > { %v12172_v10 = vpop.eup %9828  ;;  %v4418_v41 = vmul.f32 %v9253_v2, %v11850_v28  ;;  %v5078_v29 = vsel %vm12178_vm11, %v12096_v48, %v5073_v55  ;;  %v5149_v58 = vand.u32 2147483647, %v12046_v22  ;;  %v7920_v19 = vmul.f32 %v12068_v14, %v6977_v35 }
 0x7be   : > { %v5142_v30 = vsub.f32 1.0, %v5141_v16  ;;  %v12182_v16 = vadd.f32 1.0, %v9827_v26  ;;  %v5171_v27 = vmul.f32 %v12172_v10, %v12090_v42  ;;  %vm5146_vm1 = vweird.f32 %v12098_v21 }
 0x7bf   : > { %v5151_v3 = vand.u32 2147483648, %v12046_v22  ;;  %v8072_v44 = vrot.slane %v8071_v46, 1  ;;  %v5033_v53 = vsel %vm12184_vm13, %v5032_v38, %v5028_v51  ;;  %v7925_v24 = vmul.f32 %v7797_v36, %v7009_v15  ;;  %vm12234_vm0 = vmor %vm5145_vm15, %vm5146_vm1  ;;  %v12262_v51 = vld [vmem:[%s10902_s1 + $0xc0] sm:$0xff]  }
 0x7c0   : > { %v5143_v26 = vmul.f32 %v12098_v21, %v5142_v30  ;;  %9836 = vrcp.f32 %v12182_v16  ;;  %v5123_v35 = vsel %vm12196_vm14, %v5122_v45, %v5118_v43  ;;  %v9072_v0 = vmul.f32 -1.442695, %v4418_v41 }
 0x7c1   : > { %9838 = vpow2.f32 %v9062_v60  ;;  %vm12238_vm2 = vcmp.eq.f32.partialorder %v5149_v58, 8.507059e+37  ;;  %v8056_v38 = vsel %vm8046_vm12, %v7920_v19, 0.0  ;;  %v12250_v30 = vadd.f32 %v8072_v44, %v8071_v46 }
 0x7c2   : > { %7158 = vperm.xlu2 %9750, %v16971_v17   ;;  %9749 = vset.pattern.permute.xlu1 %v11800_v33  ;;  %v9831_v17 = vpop.eup %9830  ;;  %v5144_v14 = vadd.f32 %v12098_v21, %v5143_v26  ;;  %v7790_v32 = vmul.f32 %v9177_v37, %v5033_v53  ;;  %v12255_v55 = vsel %vm8046_vm12, %v7925_v24, 0.0  ;;  %v12259_v47 = vmul.f32 %v9189_v11, %v5123_v35  ;;  %v12273_v37 = vld [vmem:[%s10902_s1 + $0x40] sm:$0xff]   ;;  %v7016_v60 = vpop.permute.xlu0 %7015 }
 0x7c3   : > { %7177 = vperm.xlu0 %9785, %v7166_v49   ;;  %v12212_v9 = vpop.eup %9832  ;;  %v12217_v56 = vadd.f32 1.0, %v9831_v17  ;;  %v5172_v17 = vsub.f32 1.0, %v5171_v27  ;;  %v5181_v46 = vand.u32 2147483648, %v12090_v42  ;;  %vm5175_vm4 = vweird.f32 %v12090_v42 }
 0x7c4   : > { %v9835_v48 = vpop.eup %9834  ;;  %v5156_v45 = vmul.f32 %v12212_v9, %v12123_v13  ;;  %v5148_v43 = vsel %vm12234_vm0, %v12098_v21, %v5144_v14  ;;  %v5179_v7 = vand.u32 2147483647, %v12090_v42  ;;  %v17103_v21 = vperm.slane %v11806_v4, 7 }
 0x7c5   : > { %9840 = vrcp.f32 %v12217_v56  ;;  %v12246_v22 = vadd.f32 1.0, %v9835_v48  ;;  %v5173_v62 = vmul.f32 %v12172_v10, %v5172_v17  ;;  %vm5176_vm5 = vweird.f32 %v12172_v10 }
 0x7c6   : > { %v12248_v12 = vpop.eup %9836  ;;  %9842 = vpow2.f32 %v9072_v0  ;;  %v5157_v11 = vsub.f32 1.0, %v5156_v45  ;;  %v16972_v41 = vunpack.c.l.bf16 %v12262_v51  ;;  %v16975_v19 = vunpack.c.h.bf16 %v12270_v63  ;;  %vm12303_vm6 = vmor %vm5175_vm4, %vm5176_vm5 }
 0x7c7   : > { %v9839_v15 = vpop.eup %9838  ;;  %v5201_v27 = vmul.f32 %v12248_v12, %v12182_v16  ;;  %9844 = vrcp.f32 %v12246_v22  ;;  %v5174_v48 = vadd.f32 %v12172_v10, %v5173_v62  ;;  %v5182_v44 = vor.u32 1.1754944e-38, %v5181_v46 }
 0x7c8   : > { %v7179_v53 = vperm.slane %v11817_v50, 1  ;;  %v5211_v24 = vand.u32 2147483648, %v12182_v16  ;;  %vm12307_vm7 = vcmp.eq.f32.partialorder %v5179_v7, 8.507059e+37  ;;  %v5158_v0 = vmul.f32 %v12212_v9, %v5157_v11 }
 0x7c9   : > { %v5202_v45 = vsub.f32 1.0, %v5201_v27  ;;  %vm5205_vm8 = vweird.f32 %v12182_v16  ;;  %v4428_v42 = vmul.f32 %v16972_v41, %v11850_v28  ;;  %vm5160_vm9 = vweird.f32 %v12123_v13 }
 0x7ca   : > { %7171 = vperm.xlu2 %9750, %v7166_v49   ;;  %7151 = vperm.xlu1 %9749, %v7140_v54   ;;  %v7793_v49 = vmul.f32 %v9182_v25, %v5078_v29  ;;  %v5152_v25 = vor.u32 1.1754944e-38, %v5151_v3  ;;  %v12285_v29 = vmul.f32 %v7790_v32, %v6964_v34  ;;  %v16973_v3 = vunpack.c.h.bf16 %v12273_v37 }
 0x7cb   : > { %v12291_v4 = vpop.eup %9840  ;;  %v12297_v34 = vadd.f32 1.0, %v9839_v15  ;;  %v17108_v54 = vunpack.c.l.bf16 %v11940_v8  ;;  %vm5161_vm3 = vweird.f32 %v12212_v9  ;;  %v5178_v62 = vsel %vm12303_vm6, %v12172_v10, %v5174_v48  ;;  %v12336_v15 = vld [vmem:[%s10902_s1 + $0xe8] sm:$0xff]  }
 0x7cc   : > { %v7921_v26 = vmul.f32 %v7793_v49, %v6983_v23  ;;  %v5153_v58 = vsel %vm12238_vm2, %v5152_v25, %v5148_v43  ;;  %v9843_v49 = vpop.eup %9842  ;;  %v5291_v23 = vmul.f32 %v12291_v4, %v12217_v56  ;;  %v5301_v25 = vand.u32 2147483648, %v12217_v56  ;;  %v7003_v10 = vpop.permute.xlu1 %7002  ;;  %vm12348_vm13 = vmor %vm5160_vm9, %vm5161_vm3 }
 0x7cd   : > { %v7798_v36 = vmul.f32 %v17108_v54, %v5153_v58  ;;  %v12323_v32 = vpop.eup %9844  ;;  %vm5206_vm10 = vweird.f32 %v12248_v12  ;;  %v5166_v46 = vand.u32 2147483648, %v12123_v13  ;;  %9846 = vrcp.f32 %v12297_v34  ;;  %v12357_v54 = vpop.permute.xlu0 %7080  ;;  %v12398_v58 = vld [vmem:[%s10902_s1 + $0x110] sm:$0xff]  }
 0x7ce   : > { %v8057_v35 = vsel %vm8046_vm12, %v7921_v26, 0.0  ;;  %v12331_v26 = vadd.f32 1.0, %v9843_v49  ;;  %v5159_v7 = vadd.f32 %v12212_v9, %v5158_v0  ;;  %v5164_v11 = vand.u32 2147483647, %v12123_v13  ;;  %vm12386_vm15 = vmor %vm5205_vm8, %vm5206_vm10 }
 0x7cf   : > { %v8058_v43 = vadd.f32 %v8057_v35, %v8056_v38  ;;  %vm5295_vm11 = vweird.f32 %v12217_v56  ;;  %v5299_v38 = vand.u32 2147483647, %v12217_v56  ;;  %v5203_v27 = vmul.f32 %v12248_v12, %v5202_v45 }
 0x7d0   : > { %v5292_v48 = vsub.f32 1.0, %v5291_v23  ;;  %v12352_v35 = vor.u32 1.1754944e-38, %v5301_v25  ;;  %v5209_v14 = vand.u32 2147483647, %v12182_v16  ;;  %v5186_v0 = vmul.f32 %v12323_v32, %v12246_v22 }
 0x7d1   : > { %v8059_v49 = vrot.slane %v8058_v43, 4  ;;  %v5167_v13 = vor.u32 1.1754944e-38, %v5166_v46  ;;  %v16976_v45 = vunpack.c.l.bf16 %v12336_v15  ;;  %v7924_v41 = vmul.f32 %v12259_v47, %v7003_v10 }
 0x7d2   : > { %9752 = vset.pattern.permute.xlu2 %v11800_v33  ;;  %7164 = vperm.xlu1 %9749, %v17103_v21   ;;  %v7926_v21 = vmul.f32 %v7798_v36, %v7016_v60  ;;  %v9082_v60 = vmul.f32 -1.442695, %v4428_v42  ;;  %v5183_v36 = vsel %vm12307_vm7, %v5182_v44, %v5178_v62  ;;  %9848 = vrcp.f32 %v12331_v26 }
 0x7d3   : > { %v5163_v42 = vsel %vm12348_vm13, %v12212_v9, %v5159_v7  ;;  %vm5165_vm14 = vcmp.eq.f32.partialorder %v5164_v11, 8.507059e+37  ;;  %v5204_v23 = vadd.f32 %v12248_v12, %v5203_v27  ;;  %v7192_v25 = vperm.slane %v11817_v50, 2  ;;  %v12372_v17 = vpop.eup %9846 }
 0x7d4   : > { %9850 = vpow2.f32 %v9082_v60  ;;  %v4395_v44 = vmul.f32 %v16975_v19, %v11850_v28  ;;  %v12375_v47 = vsel %vm8046_vm12, %v7926_v21, 0.0  ;;  %v5293_v62 = vmul.f32 %v12291_v4, %v5292_v48 }
 0x7d5   : > { %v17111_v46 = vunpack.c.l.bf16 %v11981_v61  ;;  %v5187_v11 = vsub.f32 1.0, %v5186_v0  ;;  %vm12390_vm1 = vcmp.eq.f32.partialorder %v5209_v14, 8.507059e+37  ;;  %v5168_v21 = vsel %vm5165_vm14, %v5167_v13, %v5163_v42 }
 0x7d6   : > { %v4438_v27 = vmul.f32 %v16976_v45, %v11850_v28  ;;  %v16974_v60 = vunpack.c.l.bf16 %v12270_v63  ;;  %v8060_v48 = vadd.f32 %v8059_v49, %v8058_v43  ;;  %vm5296_vm0 = vweird.f32 %v12291_v4 }
 0x7d7   : > { %v12380_v9 = vmul.f32 %v17111_v46, %v5183_v36  ;;  %v8074_v36 = vsel %vm8046_vm12, %v7924_v41, 0.0  ;;  %v5212_v14 = vor.u32 1.1754944e-38, %v5211_v24  ;;  %vm12405_vm2 = vcmp.eq.f32.partialorder %v5299_v38, 8.507059e+37  ;;  %vm12435_vm5 = vmor %vm5295_vm11, %vm5296_vm0 }
 0x7d8   : > { %v5441_v13 = vmul.f32 %v12372_v17, %v12297_v34  ;;  %v5208_v42 = vsel %vm12386_vm15, %v12248_v12, %v5204_v23  ;;  %v9049_v43 = vmul.f32 -1.442695, %v4395_v44  ;;  %v4397_v16 = vmul.f32 %v16973_v3, %v11850_v28  ;;  %v12419_v41 = vpop.eup %9848 }
 0x7d9   : > { %v5294_v24 = vadd.f32 %v12291_v4, %v5293_v62  ;;  %v17118_v38 = vunpack.c.h.bf16 %v11940_v8  ;;  %v5188_v46 = vmul.f32 %v12323_v32, %v5187_v11  ;;  %v16980_v12 = vunpack.c.l.bf16 %v12398_v58 }
 0x7da   : > { %7190 = vperm.xlu2 %9752, %v7179_v53   ;;  %9751 = vset.pattern.permute.xlu1 %v11784_v39  ;;  %v9851_v23 = vpop.eup %9850  ;;  %v8076_v7 = vadd.f32 %v12255_v55, %v8074_v36  ;;  %vm5190_vm4 = vweird.f32 %v12246_v22  ;;  %v4394_v44 = vmul.f32 %v16974_v60, %v11850_v28  ;;  %vm5191_vm6 = vweird.f32 %v12323_v32 }
 0x7db   : > { %v7799_v49 = vmul.f32 %v17118_v38, %v5168_v21  ;;  %v5194_v62 = vand.u32 2147483647, %v12246_v22  ;;  %v5196_v55 = vand.u32 2147483648, %v12246_v22  ;;  %v12443_v11 = vperm.slane %v10946_v1, 0  ;;  %v12445_v21 = vpop.permute.xlu0 %7145  ;;  %v12449_v38 = vpop.permute.xlu2 %7028  ;;  %vm12466_vm7 = vmor %vm5190_vm4, %vm5191_vm6 }
 0x7dc   : > { %v5591_v36 = vmul.f32 %v12419_v41, %v12331_v26  ;;  %9852 = vpow2.f32 %v9049_v43  ;;  %v9051_v56 = vmul.f32 -1.442695, %v4397_v16  ;;  %v5213_v3 = vsel %vm12390_vm1, %v5212_v14, %v5208_v42  ;;  %v7022_v60 = vpop.permute.xlu1 %7021 }
 0x7dd   : > { %v12453_v19 = vadd.f32 1.0, %v9851_v23  ;;  %v5189_v45 = vadd.f32 %v12323_v32, %v5188_v46  ;;  %v4448_v1 = vmul.f32 %v16980_v12, %v12443_v11  ;;  %v5298_v43 = vsel %vm12435_vm5, %v12291_v4, %v5294_v24 }
 0x7de   : > { %v9048_v14 = vmul.f32 -1.442695, %v4394_v44  ;;  %v8077_v42 = vrot.slane %v8076_v7, 4  ;;  %vm5445_vm8 = vweird.f32 %v12297_v34  ;;  %vm12471_vm9 = vcmp.eq.f32.partialorder %v5194_v62, 8.507059e+37 }
 0x7df   : > { %v5197_v46 = vor.u32 1.1754944e-38, %v5196_v55  ;;  %v5592_v24 = vsub.f32 1.0, %v5591_v36  ;;  %v7927_v23 = vmul.f32 %v7799_v49, %v7022_v60  ;;  %v5193_v22 = vsel %vm12466_vm7, %v12323_v32, %v5189_v45 }
 0x7e0   : > { %v7231_v44 = vperm.slane %v11817_v50, 5  ;;  %vm5446_vm3 = vweird.f32 %v12372_v17  ;;  %v5449_v62 = vand.u32 2147483647, %v12297_v34  ;;  %v5451_v60 = vand.u32 2147483648, %v12297_v34 }
 0x7e1   : > { %v17125_v55 = vunpack.c.l.bf16 %v12019_v5  ;;  %v7218_v45 = vperm.slane %v11817_v50, 4  ;;  %v8078_v36 = vadd.f32 %v8077_v42, %v8076_v7  ;;  %vm12501_vm10 = vmor %vm5445_vm8, %vm5446_vm3  ;;  %v8084_v5 = vsel %vm8046_vm12, %v7927_v23, 0.0 }
 0x7e2   : > { %7203 = vperm.xlu2 %9752, %v7192_v25   ;;  %7184 = vperm.xlu1 %9751, %v7179_v53   ;;  %v9092_v53 = vmul.f32 -1.442695, %v4438_v27  ;;  %v5442_v27 = vsub.f32 1.0, %v5441_v13  ;;  %v8061_v13 = vrot.slane %v8060_v48, 2  ;;  %v9853_v8 = vpop.eup %9852  ;;  %v16977_v0 = vunpack.c.l.bf16 %v12273_v37 }
 0x7e3   : > { %v7802_v32 = vmul.f32 %v17125_v55, %v5213_v3  ;;  %7242 = vperm.xlu0 %9785, %v7231_v44   ;;  %v12506_v3 = vadd.f32 1.0, %v9853_v8  ;;  %vm12509_vm11 = vcmp.eq.f32.partialorder %v5449_v62, 8.507059e+37  ;;  %v12513_v10 = vpop.permute.xlu0 %7210  ;;  %vm5595_vm13 = vweird.f32 %v12331_v26  ;;  %v7042_v16 = vpop.permute.xlu2 %7041 }
 0x7e4   : > { %9854 = vpow2.f32 %v9092_v53  ;;  %v5443_v4 = vmul.f32 %v12372_v17, %v5442_v27  ;;  %v9102_v53 = vmul.f32 -1.442695, %v4448_v1  ;;  %v12485_v49 = vadd.f32 %v8061_v13, %v8060_v48 }
 0x7e5   : > { %9856 = vpow2.f32 %v9051_v56  ;;  %v5593_v1 = vmul.f32 %v12419_v41, %v5592_v24  ;;  %v5198_v48 = vsel %vm12471_vm9, %v5197_v46, %v5193_v22  ;;  %v5599_v34 = vand.u32 2147483647, %v12331_v26 }
 0x7e6   : > { %9858 = vrcp.f32 %v12453_v19  ;;  %v5444_v56 = vadd.f32 %v12372_v17, %v5443_v4  ;;  %vm5596_vm14 = vweird.f32 %v12419_v41  ;;  %v5601_v42 = vand.u32 2147483648, %v12331_v26 }
 0x7e7   : > { %9860 = vpow2.f32 %v9048_v14  ;;  %v17130_v46 = vunpack.c.h.bf16 %v11981_v61  ;;  %v8079_v22 = vrot.slane %v8078_v36, 2  ;;  %v5594_v8 = vadd.f32 %v12419_v41, %v5593_v1  ;;  %vm12550_vm15 = vmor %vm5595_vm13, %vm5596_vm14 }
 0x7e8   : > { %9862 = vpow2.f32 %v9102_v53  ;;  %v5448_v53 = vsel %vm12501_vm10, %v12372_v17, %v5444_v56  ;;  %v8085_v62 = vadd.f32 %v8084_v5, %v12375_v47  ;;  %v4396_v17 = vmul.f32 %v16977_v0, %v11850_v28 }
 0x7e9   : > { %v7801_v4 = vmul.f32 %v17130_v46, %v5198_v48  ;;  %9864 = vrcp.f32 %v12506_v3  ;;  %v17131_v47 = vunpack.c.l.bf16 %v12037_v40  ;;  %v7928_v1 = vmul.f32 %v12380_v9, %v12449_v38 }
 0x7ea   : > { %9754 = vset.pattern.permute.xlu2 %v11784_v39  ;;  %7197 = vperm.xlu1 %9751, %v7192_v25   ;;  %v5303_v25 = vsel %vm12405_vm2, %v12352_v35, %v5298_v43  ;;  %v9855_v27 = vpop.eup %9854  ;;  %v5452_v43 = vor.u32 1.1754944e-38, %v5451_v60  ;;  %v7035_v60 = vpop.permute.xlu1 %7034  ;;  %v7930_v35 = vmul.f32 %v7802_v32, %v7042_v16  ;;  %vm12554_vm1 = vcmp.eq.f32.partialorder %v5599_v34, 8.507059e+37 }
 0x7eb   : > { %v9857_v7 = vpop.eup %9856  ;;  %v12523_v24 = vadd.f32 1.0, %v9855_v27  ;;  %v8063_v27 = vrot.slane %v12485_v49, 1  ;;  %v7808_v56 = vmul.f32 %v17131_v47, %v5303_v25  ;;  %v7929_v46 = vmul.f32 %v7801_v4, %v7035_v60 }
 0x7ec   : > { %v12517_v14 = vpop.eup %9858  ;;  %v12534_v61 = vadd.f32 1.0, %v9857_v7  ;;  %v12561_v9 = vadd.f32 %v8079_v22, %v8078_v36  ;;  %v5453_v26 = vsel %vm12509_vm11, %v5452_v43, %v5448_v53  ;;  %v5602_v38 = vor.u32 1.1754944e-38, %v5601_v42  ;;  %v12581_v42 = vld [vmem:[%s10902_s1 + $0x50] sm:$0xff]  }
 0x7ed   : > { %v9861_v23 = vpop.eup %9860  ;;  %v5741_v25 = vmul.f32 %v12517_v14, %v12453_v19  ;;  %9866 = vrcp.f32 %v12523_v24  ;;  %v5598_v32 = vsel %vm12550_vm15, %v12419_v41, %v5594_v8  ;;  %v8086_v34 = vrot.slane %v8085_v62, 4 }
 0x7ee   : > { %v12536_v55 = vadd.f32 1.0, %v9861_v23  ;;  %v9863_v5 = vpop.eup %9862  ;;  %v9050_v16 = vmul.f32 -1.442695, %v4396_v17  ;;  %v12572_v4 = vsel %vm8046_vm12, %v12285_v29, 0.0  ;;  %v8092_v36 = vsel %vm8046_vm12, %v7928_v1, 0.0  ;;  %v12597_v1 = vpop.permute.xlu0 %7275 }
 0x7ef   : > { %v12576_v13 = vsel %vm8046_vm12, %v7930_v35, 0.0  ;;  %v12578_v43 = vadd.f32 1.0, %v9863_v5  ;;  %v12583_v23 = vpop.eup %9864  ;;  %v12586_v41 = vadd.f32 %v8063_v27, %v12485_v49  ;;  %v17136_v22 = vunpack.c.l.bf16 %v12102_v52 }
 0x7f0   : > { %9868 = vrcp.f32 %v12536_v55  ;;  %v5742_v29 = vsub.f32 1.0, %v5741_v25  ;;  %v8093_v8 = vsel %vm8046_vm12, %v7929_v46, 0.0  ;;  %v12592_v60 = vmul.f32 %v7808_v56, %v12357_v54  ;;  %v12608_v54 = vld [vmem:[%s10902_s1 + $0x138] sm:$0xff]  }
 0x7f1   : > { %9870 = vrcp.f32 %v12534_v61  ;;  %v7818_v53 = vmul.f32 %v17136_v22, %v5453_v26  ;;  %v5603_v47 = vsel %vm12554_vm1, %v5602_v38, %v5598_v32  ;;  %v5751_v48 = vand.u32 2147483648, %v12453_v19 }
 0x7f2   : > { %7223 = vperm.xlu2 %9754, %v7218_v45   ;;  %9753 = vset.pattern.permute.xlu1 %v11800_v33  ;;  %v17137_v52 = vperm.slane %v11817_v50, 3  ;;  %v8087_v27 = vadd.f32 %v8086_v34, %v8085_v62  ;;  %vm5745_vm0 = vweird.f32 %v12453_v19  ;;  %9872 = vpow2.f32 %v9050_v16 }
 0x7f3   : > { %v12604_v49 = vpop.eup %9866  ;;  %v16978_v56 = vunpack.c.l.bf16 %v12581_v42  ;;  %v5749_v5 = vand.u32 2147483647, %v12453_v19  ;;  %v8094_v7 = vadd.f32 %v8093_v8, %v8092_v36  ;;  %9874 = vrcp.f32 %v12578_v43 }
 0x7f4   : > { %v12620_v62 = vmul.f32 %v7818_v53, %v12445_v21  ;;  %v7828_v46 = vmul.f32 %v9253_v2, %v5603_v47  ;;  %v5743_v26 = vmul.f32 %v12517_v14, %v5742_v29  ;;  %v16979_v38 = vunpack.c.h.bf16 %v12037_v40 }
 0x7f5   : > { %v12626_v32 = vor.u32 1.1754944e-38, %v5751_v48  ;;  %v5891_v34 = vmul.f32 %v12604_v49, %v12523_v24  ;;  %v16984_v36 = vunpack.c.l.bf16 %v12608_v54  ;;  %v8088_v22 = vrot.slane %v8087_v27, 2 }
 0x7f6   : > { %v12611_v35 = vpop.eup %9868  ;;  %vm5746_vm2 = vweird.f32 %v12517_v14  ;;  %vm5250_vm4 = vweird.f32 %v12506_v3  ;;  %v4400_v2 = vmul.f32 %v16978_v56, %v11850_v28  ;;  %v8095_v21 = vrot.slane %v8094_v7, 4  ;;  %v12677_v16 = vpop.permute.xlu0 %7340 }
 0x7f7   : > { %v12617_v25 = vpop.eup %9870  ;;  %v5231_v31 = vmul.f32 %v12611_v35, %v12536_v55  ;;  %v5256_v29 = vand.u32 2147483648, %v12506_v3  ;;  %v12643_v48 = vmul.f32 %v7828_v46, %v12513_v10  ;;  %vm12646_vm5 = vcmp.eq.f32.partialorder %v5749_v5, 8.507059e+37  ;;  %vm12660_vm7 = vmor %vm5745_vm0, %vm5746_vm2 }
 0x7f8   : > { %v5276_v8 = vmul.f32 %v12617_v25, %v12534_v61  ;;  %v9873_v47 = vpop.eup %9872  ;;  %vm5895_vm6 = vweird.f32 %v12523_v24  ;;  %v5892_v5 = vsub.f32 1.0, %v5891_v34  ;;  %v5899_v46 = vand.u32 2147483647, %v12523_v24 }
 0x7f9   : > { %v12654_v56 = vpop.eup %9874  ;;  %v12672_v19 = vadd.f32 %v8088_v22, %v8087_v27  ;;  %vm5251_vm8 = vweird.f32 %v12583_v23  ;;  %v5232_v12 = vsub.f32 1.0, %v5231_v31  ;;  %v9054_v34 = vmul.f32 -1.442695, %v4400_v2  ;;  %v12698_v2 = vld [vmem:[%s11789_s23 + $0x10] sm:$0xff] }
 0x7fa   : > { %7236 = vperm.xlu2 %9754, %v7231_v44   ;;  %7216 = vperm.xlu1 %9753, %v17137_v52   ;;  %v5246_v44 = vmul.f32 %v12583_v23, %v12506_v3  ;;  %v5744_v52 = vadd.f32 %v12517_v14, %v5743_v26  ;;  %v5901_v26 = vand.u32 2147483648, %v12523_v24  ;;  %v12675_v17 = vadd.f32 %v8095_v21, %v8094_v7  ;;  %vm12715_vm14 = vmor %vm5250_vm4, %vm5251_vm8 }
 0x7fb   : > { %v5277_v57 = vsub.f32 1.0, %v5276_v8  ;;  %vm5896_vm9 = vweird.f32 %v12604_v49  ;;  %v5893_v7 = vmul.f32 %v12604_v49, %v5892_v5  ;;  %vm12692_vm3 = vcmp.eq.f32.partialorder %v5899_v46, 8.507059e+37 }
 0x7fc   : > { %v5247_v53 = vsub.f32 1.0, %v5246_v44  ;;  %v4399_v44 = vmul.f32 %v16979_v38, %v11850_v28  ;;  %v4458_v38 = vmul.f32 %v16984_v36, %v12443_v11  ;;  %v12680_v36 = vadd.f32 1.0, %v9873_v47  ;;  %vm12726_vm1 = vmor %vm5895_vm6, %vm5896_vm9 }
 0x7fd   : > { %v5748_v50 = vsel %vm12660_vm7, %v12517_v14, %v5744_v52  ;;  %vm5280_vm10 = vweird.f32 %v12534_v61  ;;  %v7244_v21 = vperm.slane %v12698_v2, 6  ;;  %v5284_v14 = vand.u32 2147483647, %v12534_v61 }
 0x7fe   : > { %v5248_v20 = vmul.f32 %v12583_v23, %v5247_v53  ;;  %v9053_v27 = vmul.f32 -1.442695, %v4399_v44  ;;  %v9112_v31 = vmul.f32 -1.442695, %v4458_v38  ;;  %v5233_v53 = vmul.f32 %v12611_v35, %v5232_v12 }
 0x7ff   : > { %9876 = vpow2.f32 %v9054_v34  ;;  %v16988_v8 = vunpack.c.l.bf16 %v12683_v18  ;;  %v5278_v52 = vmul.f32 %v12617_v25, %v5277_v57  ;;  %v5286_v44 = vand.u32 2147483648, %v12534_v61 }
 0x800   : > { %v5249_v47 = vadd.f32 %v12583_v23, %v5248_v20  ;;  %9878 = vrcp.f32 %v12680_v36  ;;  %vm5235_vm11 = vweird.f32 %v12536_v55  ;;  %vm5236_vm13 = vweird.f32 %v12611_v35 }
 0x801   : > { %9880 = vpow2.f32 %v9053_v27  ;;  %v5894_v10 = vadd.f32 %v12604_v49, %v5893_v7  ;;  %vm5281_vm15 = vweird.f32 %v12617_v25  ;;  %v5241_v57 = vand.u32 2147483648, %v12536_v55  ;;  %vm12749_vm2 = vmor %vm5235_vm11, %vm5236_vm13 }
 0x802   : > { %9756 = vset.pattern.permute.xlu2 %v11800_v33  ;;  %7229 = vperm.xlu1 %9753, %v7218_v45   ;;  %v6041_v45 = vmul.f32 %v12654_v56, %v12578_v43  ;;  %9882 = vpow2.f32 %v9112_v31  ;;  %v17148_v5 = vand.u32 2147483647, %v12506_v3  ;;  %v5234_v34 = vadd.f32 %v12611_v35, %v5233_v53  ;;  %vm12762_vm4 = vmor %vm5280_vm10, %vm5281_vm15 }
 0x803   : > { %v4402_v27 = vmul.f32 %v16988_v8, %v11850_v28  ;;  %v5753_v24 = vsel %vm12646_vm5, %v12626_v32, %v5748_v50  ;;  %v5902_v7 = vor.u32 1.1754944e-38, %v5901_v26  ;;  %v5257_v31 = vor.u32 1.1754944e-38, %v5256_v29  ;;  %v7061_v8 = vpop.permute.xlu2 %7060  ;;  %v12775_v50 = vpop.permute.xlu0 %7405 }
 0x804   : > { %v6042_v38 = vsub.f32 1.0, %v6041_v45  ;;  %vm12732_vm0 = vcmp.eq.f32.partialorder %v17148_v5, 8.507059e+37  ;;  %v5239_v45 = vand.u32 2147483647, %v12536_v55  ;;  %v5279_v3 = vadd.f32 %v12617_v25, %v5278_v52  ;;  %v12819_v55 = vld [vmem:[%s10902_s1 + $0x160] sm:$0xff]  }
 0x805   : > { %v9877_v5 = vpop.eup %9876  ;;  %v8097_v59 = vrot.slane %v12675_v17, 2  ;;  %v5253_v0 = vsel %vm12715_vm14, %v12583_v23, %v5249_v47  ;;  %vm12766_vm5 = vcmp.eq.f32.partialorder %v5284_v14, 8.507059e+37  ;;  %v5898_v23 = vsel %vm12726_vm1, %v12604_v49, %v5894_v10  ;;  %17162 = vst [vmem:[#allocation38_spill] sm:$0xff] %v12819_v55 }
 0x806   : > { %v6043_v32 = vmul.f32 %v12654_v56, %v6042_v38  ;;  %v12770_v26 = vpop.eup %9878  ;;  %vm6045_vm6 = vweird.f32 %v12578_v43  ;;  %v5287_v47 = vor.u32 1.1754944e-38, %v5286_v44  ;;  %v5242_v61 = vor.u32 1.1754944e-38, %v5241_v57 }
 0x807   : > { %v9881_v52 = vpop.eup %9880  ;;  %vm6046_vm7 = vweird.f32 %v12654_v56  ;;  %v5238_v14 = vsel %vm12749_vm2, %v12611_v35, %v5234_v34  ;;  %vm5240_vm8 = vcmp.eq.f32.partialorder %v5239_v45, 8.507059e+37  ;;  %v9056_v38 = vmul.f32 -1.442695, %v4402_v27 }
 0x808   : > { %v9883_v20 = vpop.eup %9882  ;;  %v5258_v12 = vsel %vm12732_vm0, %v5257_v31, %v5253_v0  ;;  %v6051_v49 = vand.u32 2147483648, %v12578_v43  ;;  %v5283_v44 = vsel %vm12762_vm4, %v12617_v25, %v5279_v3  ;;  %v12788_v10 = vadd.f32 1.0, %v9877_v5  ;;  %vm12803_vm9 = vmor %vm6045_vm6, %vm6046_vm7 }
 0x809   : > { %v5903_v57 = vsel %vm12692_vm3, %v5902_v7, %v5898_v23  ;;  %v6044_v53 = vadd.f32 %v12654_v56, %v6043_v32  ;;  %v6049_v35 = vand.u32 2147483647, %v12578_v43  ;;  %v5261_v46 = vmul.f32 %v12770_v26, %v12680_v36 }
 0x80a   : > { %7255 = vperm.xlu2 %9756, %v7244_v21   ;;  %9755 = vset.pattern.permute.xlu1 %v11784_v39  ;;  %v8090_v34 = vrot.slane %v12672_v19, 1  ;;  %v17157_v45 = vunpack.c.l.bf16 %v12262_v51  ;;  %v5243_v22 = vsel %vm5240_vm8, %v5242_v61, %v5238_v14  ;;  %v12807_v7 = vadd.f32 1.0, %v9881_v52  ;;  %v7055_v14 = vpop.permute.xlu1 %7054 }
 0x80b   : > { %v8098_v31 = vadd.f32 %v8097_v59, %v12675_v17  ;;  %v5288_v3 = vsel %vm12766_vm5, %v5287_v47, %v5283_v44  ;;  %v12812_v5 = vadd.f32 1.0, %v9883_v20  ;;  %9884 = vpow2.f32 %v9056_v38 }
 0x80c   : > { %v7838_v27 = vmul.f32 %v17157_v45, %v5753_v24  ;;  %v17160_v51 = vunpack.c.l.bf16 %v12336_v15  ;;  %v17161_v43 = vunpack.c.h.bf16 %v12270_v63  ;;  %v6052_v32 = vor.u32 1.1754944e-38, %v6051_v49 }
 0x80d   : > { %9886 = vrcp.f32 %v12788_v10  ;;  %v6048_v59 = vsel %vm12803_vm9, %v12654_v56, %v6044_v53  ;;  %vm12825_vm3 = vcmp.eq.f32.partialorder %v6049_v35, 8.507059e+37  ;;  %v5262_v29 = vsub.f32 1.0, %v5261_v46 }
 0x80e   : > { %v7848_v24 = vmul.f32 %v17160_v51, %v5903_v57  ;;  %v7805_v0 = vmul.f32 %v17161_v43, %v5258_v12  ;;  %v12833_v23 = vsel %vm8046_vm12, %v12592_v60, 0.0  ;;  %v17166_v47 = vrot.slane %v12561_v9, 1  ;;  %v7074_v60 = vpop.permute.xlu2 %7073  ;;  %v12856_v57 = vpop.permute.xlu0 %7470 }
 0x80f   : > { %v17167_v52 = vunpack.c.h.bf16 %v12273_v37  ;;  %9888 = vrcp.f32 %v12807_v7  ;;  %v12849_v38 = vsel %vm8046_vm12, %v12643_v48, 0.0  ;;  %v7966_v20 = vmul.f32 %v7838_v27, %v12597_v1 }
 0x810   : > { %v12838_v61 = vadd.f32 %v17166_v47, %v12561_v9  ;;  %9890 = vrcp.f32 %v12812_v5  ;;  %v16990_v9 = vunpack.c.l.bf16 %v12819_v55  ;;  %v8099_v12 = vrot.slane %v8098_v31, 1 }
 0x811   : > { %v7807_v56 = vmul.f32 %v17167_v52, %v5288_v3  ;;  %v7933_v49 = vmul.f32 %v7805_v0, %v7061_v8  ;;  %v6053_v44 = vsel %vm12825_vm3, %v6052_v32, %v6048_v59  ;;  %v12859_v53 = vadd.f32 %v8090_v34, %v12672_v19 }
 0x812   : > { %7249 = vperm.xlu1 %9755, %v7244_v21   ;;  %v17165_v21 = vunpack.c.l.bf16 %v12270_v63  ;;  %v12845_v63 = vsel %vm8046_vm12, %v12620_v62, 0.0  ;;  %v9885_v62 = vpop.eup %9884  ;;  %v7976_v48 = vmul.f32 %v7848_v24, %v12677_v16  ;;  %v5263_v46 = vmul.f32 %v12770_v26, %v5262_v29 }
 0x813   : > { %v12863_v45 = vpop.eup %9886  ;;  %v7935_v25 = vmul.f32 %v7807_v56, %v7074_v60  ;;  %v5269_v1 = vand.u32 2147483647, %v12680_v36  ;;  %v5271_v8 = vand.u32 2147483648, %v12680_v36  ;;  %v16995_v27 = vunpack.c.h.bf16 %v12581_v42 }
 0x814   : > { %v7804_v15 = vmul.f32 %v17165_v21, %v5243_v22  ;;  %v17168_v22 = vunpack.c.l.bf16 %v12398_v58  ;;  %vm5265_vm10 = vweird.f32 %v12680_v36  ;;  %vm5266_vm11 = vweird.f32 %v12770_v26  ;;  %v12895_v21 = vld [vmem:[%s10902_s1 + $0x188] sm:$0xff]  }
 0x815   : > { %v4468_v16 = vmul.f32 %v16990_v9, %v12443_v11  ;;  %v12875_v19 = vpop.eup %9888  ;;  %v12878_v34 = vsel %vm8046_vm12, %v7966_v20, 0.0  ;;  %v12880_v51 = vadd.f32 %v8099_v12, %v8098_v31  ;;  %v8111_v24 = vsel %vm8046_vm12, %v7933_v49, 0.0  ;;  %17169 = vst [vmem:[#allocation39_spill] sm:$0xff] %v12895_v21  ;;  %vm12902_vm13 = vmor %vm5265_vm10, %vm5266_vm11 }
 0x816   : > { %v7932_v35 = vmul.f32 %v7804_v15, %v7055_v14  ;;  %v7858_v3 = vmul.f32 %v17168_v22, %v6053_v44  ;;  %v12883_v43 = vadd.f32 1.0, %v9885_v62  ;;  %v12885_v58 = vpop.eup %9890  ;;  %v12888_v0 = vsel %vm8046_vm12, %v7976_v48, 0.0  ;;  %v12925_v44 = vld [vmem:[%s10902_s1 + $0x60] sm:$0xff]  }
 0x817   : > { %v5264_v59 = vadd.f32 %v12770_v26, %v5263_v46  ;;  %v5321_v17 = vmul.f32 %v12863_v45, %v12788_v10  ;;  %v12898_v31 = vsel %vm8046_vm12, %v7935_v25, 0.0  ;;  %vm12906_vm14 = vcmp.eq.f32.partialorder %v5269_v1, 8.507059e+37  ;;  %v12931_v25 = vpop.permute.xlu0 %7535 }
 0x818   : > { %v8110_v32 = vsel %vm8046_vm12, %v7932_v35, 0.0  ;;  %v5272_v47 = vor.u32 1.1754944e-38, %v5271_v8  ;;  %v4401_v52 = vmul.f32 %v16995_v27, %v11850_v28  ;;  %v12914_v56 = vmul.f32 %v7858_v3, %v12775_v50  ;;  %v7068_v50 = vpop.permute.xlu1 %7067  ;;  %17174 = vst [vmem:[#allocation40_spill] sm:$0xff] %v12931_v25 }
 0x819   : > { %v9122_v14 = vmul.f32 -1.442695, %v4468_v16  ;;  %v5329_v60 = vand.u32 2147483647, %v12788_v10  ;;  %v5306_v36 = vmul.f32 %v12875_v19, %v12807_v7  ;;  %v8112_v20 = vadd.f32 %v8111_v24, %v8110_v32 }
 0x81a   : > { %v6191_v12 = vmul.f32 %v12885_v58, %v12812_v5  ;;  %vm5325_vm15 = vweird.f32 %v12788_v10  ;;  %v16989_v49 = vunpack.c.l.bf16 %v12895_v21  ;;  %9892 = vrcp.f32 %v12883_v43 }
 0x81b   : > { %v5268_v62 = vsel %vm12902_vm13, %v12770_v26, %v5264_v59  ;;  %v5322_v48 = vsub.f32 1.0, %v5321_v17  ;;  %v5307_v35 = vsub.f32 1.0, %v5306_v36  ;;  %v5316_v46 = vand.u32 2147483648, %v12807_v7  ;;  %v13052_v36 = vld [vmem:[%s11789_s23 + $0x18] sm:$0xff] }
 0x81c   : > { %vm5310_vm1 = vweird.f32 %v12807_v7  ;;  %vm5311_vm0 = vweird.f32 %v12875_v19  ;;  %v5314_v1 = vand.u32 2147483647, %v12807_v7  ;;  %v7257_v8 = vperm.slane %v12698_v2, 7 }
 0x81d   : > { %v6199_v22 = vand.u32 2147483647, %v12812_v5  ;;  %v5331_v3 = vand.u32 2147483648, %v12788_v10  ;;  %v9055_v16 = vmul.f32 -1.442695, %v4401_v52  ;;  %v16993_v26 = vunpack.c.h.bf16 %v12925_v44  ;;  %vm12952_vm4 = vmor %vm5310_vm1, %vm5311_vm0 }
 0x81e   : > { %v8113_v24 = vrot.slane %v8112_v20, 4  ;;  %vm6195_vm2 = vweird.f32 %v12812_v5  ;;  %v5273_v32 = vsel %vm12906_vm14, %v5272_v47, %v5268_v62  ;;  %9894 = vpow2.f32 %v9122_v14  ;;  %7268 = vperm.xlu2 %9756, %v7257_v8   ;;  %7262 = vperm.xlu1 %9755, %v7257_v8   ;;  %v12970_v8 = vld [vmem:[%s10902_s1 + $0x68] sm:$0xff]  }
 0x81f   : > { %v5308_v59 = vmul.f32 %v12875_v19, %v5307_v35  ;;  %v6192_v2 = vsub.f32 1.0, %v6191_v12  ;;  %v6201_v17 = vand.u32 2147483648, %v12812_v5  ;;  %v4478_v15 = vmul.f32 %v16989_v49, %v12443_v11 }
 0x820   : > { %v5317_v47 = vor.u32 1.1754944e-38, %v5316_v46  ;;  %v12956_v52 = vpop.eup %9892  ;;  %v5323_v14 = vmul.f32 %v12863_v45, %v5322_v48  ;;  %vm12959_vm5 = vcmp.eq.f32.partialorder %v5329_v60, 8.507059e+37  ;;  %vm5315_vm6 = vcmp.eq.f32.partialorder %v5314_v1, 8.507059e+37  ;;  %v12977_v48 = vld [vmem:[%s10902_s1] sm:$0xff]  }
 0x821   : > { %v5309_v12 = vadd.f32 %v12875_v19, %v5308_v59  ;;  %v17179_v62 = vunpack.c.l.bf16 %v12273_v37  ;;  %v5332_v35 = vor.u32 1.1754944e-38, %v5331_v3  ;;  %9896 = vpow2.f32 %v9055_v16  ;;  %v7087_v16 = vpop.permute.xlu1 %7086 }
 0x822   : > { %v4405_v46 = vmul.f32 %v16993_v26, %v11850_v28  ;;  %v8114_v49 = vadd.f32 %v8113_v24, %v8112_v20  ;;  %vm5326_vm7 = vweird.f32 %v12863_v45  ;;  %v16994_v37 = vunpack.c.h.bf16 %v12977_v48 }
 0x823   : > { %v7806_v7 = vmul.f32 %v17179_v62, %v5273_v32  ;;  %v5313_v60 = vsel %vm12952_vm4, %v12875_v19, %v5309_v12  ;;  %v6193_v1 = vmul.f32 %v12885_v58, %v6192_v2  ;;  %v9132_v3 = vmul.f32 -1.442695, %v4478_v15  ;;  %vm12992_vm8 = vmor %vm5325_vm15, %vm5326_vm7 }
 0x824   : > { %v5318_v32 = vsel %vm5315_vm6, %v5317_v47, %v5313_v60  ;;  %v9059_v59 = vmul.f32 -1.442695, %v4405_v46  ;;  %v9895_v62 = vpop.eup %9894  ;;  %v5324_v9 = vadd.f32 %v12863_v45, %v5323_v14  ;;  %v17180_v20 = vunpack.c.h.bf16 %v12037_v40  ;;  %v13000_v47 = vpop.permute.xlu0 %7600 }
 0x825   : > { %v4381_v19 = vmul.f32 %v16994_v37, %v11850_v28  ;;  %v16991_v29 = vunpack.c.h.bf16 %v12970_v8  ;;  %v7934_v12 = vmul.f32 %v7806_v7, %v7068_v50  ;;  %v5351_v15 = vmul.f32 %v12956_v52, %v12883_v43  ;;  %17183 = vst [vmem:[#allocation41_spill] sm:$0xff] %v13000_v47 }
 0x826   : > { %v7809_v24 = vmul.f32 %v17180_v20, %v5318_v32  ;;  %9898 = vpow2.f32 %v9059_v59  ;;  %v16992_v40 = vunpack.c.l.bf16 %v12925_v44  ;;  %vm6196_vm9 = vweird.f32 %v12885_v58  ;;  %9758 = vset.pattern.permute.xlu2 %v11784_v39  ;;  %9757 = vset.pattern.permute.xlu1 %v11800_v33 }
 0x827   : > { %v9035_v50 = vmul.f32 -1.442695, %v4381_v19  ;;  %v4407_v10 = vmul.f32 %v16991_v29, %v11850_v28  ;;  %v9897_v7 = vpop.eup %9896  ;;  %v8115_v46 = vrot.slane %v8114_v49, 2  ;;  %v6194_v60 = vadd.f32 %v12885_v58, %v6193_v1  ;;  %vm13026_vm10 = vmor %vm6195_vm2, %vm6196_vm9 }
 0x828   : > { %v7937_v14 = vmul.f32 %v7809_v24, %v7087_v16  ;;  %vm13008_vm3 = vcmp.eq.f32.partialorder %v6199_v22, 8.507059e+37  ;;  %v13012_v59 = vadd.f32 1.0, %v9895_v62  ;;  %v5328_v16 = vsel %vm12992_vm8, %v12863_v45, %v5324_v9 }
 0x829   : > { %v13017_v20 = vadd.f32 1.0, %v9897_v7  ;;  %9900 = vpow2.f32 %v9035_v50  ;;  %v4404_v24 = vmul.f32 %v16992_v40, %v11850_v28  ;;  %v8119_v1 = vsel %vm8046_vm12, %v7934_v12, 0.0 }
 0x82a   : > { %9902 = vpow2.f32 %v9132_v3  ;;  %v5352_v62 = vsub.f32 1.0, %v5351_v15  ;;  %v5359_v9 = vand.u32 2147483647, %v12883_v43  ;;  %v5361_v45 = vand.u32 2147483648, %v12883_v43 }
 0x82b   : > { %v8129_v19 = vsel %vm8046_vm12, %v7937_v14, 0.0  ;;  %9904 = vrcp.f32 %v13017_v20  ;;  %v9061_v2 = vmul.f32 -1.442695, %v4407_v10  ;;  %v8116_v5 = vadd.f32 %v8115_v46, %v8114_v49 }
 0x82c   : > { %v9899_v50 = vpop.eup %9898  ;;  %v6202_v7 = vor.u32 1.1754944e-38, %v6201_v17  ;;  %9906 = vrcp.f32 %v13012_v59  ;;  %v5333_v12 = vsel %vm12959_vm5, %v5332_v35, %v5328_v16  ;;  %v6198_v3 = vsel %vm13026_vm10, %v12885_v58, %v6194_v60 }
 0x82d   : > { %v8121_v15 = vadd.f32 %v12898_v31, %v8119_v1  ;;  %vm5355_vm11 = vweird.f32 %v12883_v43  ;;  %v9058_v14 = vmul.f32 -1.442695, %v4404_v24  ;;  %v5353_v29 = vmul.f32 %v12956_v52, %v5352_v62 }
 0x82e   : > { %vm13044_vm13 = vcmp.eq.f32.partialorder %v5359_v9, 8.507059e+37  ;;  %v8130_v49 = vadd.f32 %v8129_v19, %v12833_v23  ;;  %v13049_v17 = vadd.f32 1.0, %v9899_v50  ;;  %v7283_v35 = vperm.slane %v13052_v36, 1  ;;  %v13065_v19 = vpop.permute.xlu0 %7665 }
 0x82f   : > { %v9901_v58 = vpop.eup %9900  ;;  %v17190_v31 = vunpack.c.l.bf16 %v12581_v42  ;;  %v5362_v60 = vor.u32 1.1754944e-38, %v5361_v45  ;;  %9908 = vpow2.f32 %v9061_v2  ;;  %v7296_v16 = vperm.slane %v13052_v36, 2  ;;  %17192 = vst [vmem:[#allocation42_spill] sm:$0xff] %v13065_v19 }
 0x830   : > { %v17191_v24 = vperm.slane %v11824_v6, 0  ;;  %v9903_v22 = vpop.eup %9902  ;;  %v8117_v1 = vrot.slane %v8116_v5, 1  ;;  %v6203_v23 = vsel %vm13008_vm3, %v6202_v7, %v6198_v3  ;;  %vm5356_vm14 = vweird.f32 %v12956_v52  ;;  %7288 = vperm.xlu2 %9758, %v7283_v35   ;;  %v7094_v7 = vpop.permute.xlu2 %7093 }
 0x831   : > { %v7810_v46 = vmul.f32 %v17190_v31, %v5333_v12  ;;  %9910 = vrcp.f32 %v13049_v17  ;;  %v9905_v62 = vpop.eup %9904  ;;  %v8122_v9 = vrot.slane %v8121_v15, 4  ;;  %v13067_v2 = vadd.f32 1.0, %v9901_v58  ;;  %7307 = vperm.xlu0 %9785, %v7296_v16   ;;  %vm13082_vm15 = vmor %vm5355_vm11, %vm5356_vm14 }
 0x832   : > { %7281 = vperm.xlu1 %9757, %v17191_v24   ;;  %9912 = vpow2.f32 %v9058_v14  ;;  %v13069_v50 = vpop.eup %9906  ;;  %v6351_v32 = vand.u32 2147483648, %v13012_v59  ;;  %v5354_v12 = vadd.f32 %v12956_v52, %v5353_v29  ;;  %v8131_v3 = vrot.slane %v8130_v49, 4 }
 0x833   : > { %v5336_v31 = vmul.f32 %v9905_v62, %v13017_v20  ;;  %v17193_v24 = vunpack.c.l.bf16 %v12608_v54  ;;  %v7938_v45 = vmul.f32 %v7810_v46, %v7094_v7  ;;  %v13076_v26 = vadd.f32 1.0, %v9903_v22 }
 0x834   : > { %v5346_v58 = vand.u32 2147483648, %v13017_v20  ;;  %vm5340_vm1 = vweird.f32 %v13017_v20  ;;  %vm5341_vm0 = vweird.f32 %v9905_v62  ;;  %v5344_v54 = vand.u32 2147483647, %v13017_v20 }
 0x835   : > { %v7868_v40 = vmul.f32 %v17193_v24, %v6203_v23  ;;  %v5337_v29 = vsub.f32 1.0, %v5336_v31  ;;  %v9909_v23 = vpop.eup %9908  ;;  %v13089_v46 = vadd.f32 %v8117_v1, %v8116_v5  ;;  %v8123_v22 = vadd.f32 %v8122_v9, %v8121_v15  ;;  %vm13108_vm2 = vmor %vm5340_vm1, %vm5341_vm0 }
 0x836   : > { %v6341_v7 = vmul.f32 %v13069_v50, %v13012_v59  ;;  %9914 = vrcp.f32 %v13067_v2  ;;  %v13096_v24 = vor.u32 1.1754944e-38, %v6351_v32  ;;  %v5358_v31 = vsel %vm13082_vm15, %v12956_v52, %v5354_v12 }
 0x837   : > { %v13094_v43 = vpop.eup %9910  ;;  %v8132_v37 = vadd.f32 %v8131_v3, %v8130_v49  ;;  %v5338_v27 = vmul.f32 %v9905_v62, %v5337_v29  ;;  %v13102_v5 = vmul.f32 %v7868_v40, %v12856_v57  ;;  %9916 = vrcp.f32 %v13076_v26  ;;  %v13124_v29 = vpop.permute.xlu0 %7730 }
 0x838   : > { %v9913_v19 = vpop.eup %9912  ;;  %v5347_v1 = vor.u32 1.1754944e-38, %v5346_v58  ;;  %v5396_v9 = vmul.f32 %v13094_v43, %v13049_v17  ;;  %v8137_v52 = vsel %vm8046_vm12, %v7938_v45, 0.0  ;;  %vm5345_vm4 = vcmp.eq.f32.partialorder %v5344_v54, 8.507059e+37  ;;  %7301 = vperm.xlu2 %9758, %v7296_v16   ;;  %17198 = vst [vmem:[#allocation43_spill] sm:$0xff] %v13124_v29 }
 0x839   : > { %v5339_v49 = vadd.f32 %v9905_v62, %v5338_v27  ;;  %v13115_v57 = vadd.f32 1.0, %v9909_v23  ;;  %v8124_v40 = vrot.slane %v8123_v22, 2  ;;  %v6342_v32 = vsub.f32 1.0, %v6341_v7  ;;  %v7100_v27 = vpop.permute.xlu1 %7099 }
 0x83a   : > { %7294 = vperm.xlu1 %9757, %v7283_v35   ;;  %v5363_v20 = vsel %vm13044_vm13, %v5362_v60, %v5358_v31  ;;  %v5397_v12 = vsub.f32 1.0, %v5396_v9  ;;  %v8133_v3 = vrot.slane %v8132_v37, 2  ;;  %v13122_v35 = vadd.f32 1.0, %v9913_v19 }
 0x83b   : > { %v5343_v14 = vsel %vm13108_vm2, %v9905_v62, %v5339_v49  ;;  %9918 = vrcp.f32 %v13115_v57  ;;  %vm5400_vm5 = vweird.f32 %v13049_v17  ;;  %v5404_v10 = vand.u32 2147483647, %v13049_v17 }
 0x83c   : > { %v9915_v45 = vpop.eup %9914  ;;  %v5348_v58 = vsel %vm5345_vm4, %v5347_v1, %v5343_v14  ;;  %v5398_v16 = vmul.f32 %v13094_v43, %v5397_v12  ;;  %v17199_v60 = vunpack.c.h.bf16 %v12581_v42  ;;  %vm5401_vm6 = vweird.f32 %v13094_v43 }
 0x83d   : > { %v5406_v62 = vand.u32 2147483648, %v13049_v17  ;;  %v5036_v19 = vmul.f32 %v9915_v45, %v13067_v2  ;;  %v13134_v23 = vpop.eup %9916  ;;  %vm5040_vm7 = vweird.f32 %v13067_v2  ;;  %vm5041_vm8 = vweird.f32 %v9915_v45  ;;  %vm13148_vm9 = vmor %vm5400_vm5, %vm5401_vm6 }
 0x83e   : > { %v7811_v54 = vmul.f32 %v17199_v60, %v5348_v58  ;;  %v5044_v7 = vand.u32 2147483647, %v13067_v2  ;;  %v5046_v31 = vand.u32 2147483648, %v13067_v2  ;;  %v5399_v42 = vadd.f32 %v13094_v43, %v5398_v16  ;;  %v13153_v58 = vld [vmem:[%s10902_s1 + $0x30] sm:$0xff]   ;;  %v7107_v60 = vpop.permute.xlu2 %7106  ;;  %vm13173_vm10 = vmor %vm5040_vm7, %vm5041_vm8 }
 0x83f   : > { %v5037_v1 = vsub.f32 1.0, %v5036_v19  ;;  %9920 = vrcp.f32 %v13122_v35  ;;  %v13141_v9 = vadd.f32 %v8124_v40, %v8123_v22  ;;  %v8134_v12 = vadd.f32 %v8133_v3, %v8132_v37 }
 0x840   : > { %v7939_v15 = vmul.f32 %v7811_v54, %v7100_v27  ;;  %v16996_v27 = vunpack.c.h.bf16 %v13153_v58  ;;  %v13160_v22 = vmul.f32 %v13069_v50, %v6342_v32  ;;  %v17202_v37 = vunpack.c.l.bf16 %v12683_v18  ;;  %9760 = vset.pattern.permute.xlu2 %v11800_v33 }
 0x841   : > { %v13157_v16 = vpop.eup %9918  ;;  %v5038_v3 = vmul.f32 %v9915_v45, %v5037_v1  ;;  %vm13166_vm3 = vcmp.eq.f32.partialorder %v5404_v10, 8.507059e+37  ;;  %v5407_v49 = vor.u32 1.1754944e-38, %v5406_v62  ;;  %vm5045_vm11 = vcmp.eq.f32.partialorder %v5044_v7, 8.507059e+37 }
 0x842   : > { %9759 = vset.pattern.permute.xlu1 %v11784_v39  ;;  %v7812_v40 = vmul.f32 %v17202_v37, %v5363_v20  ;;  %v8138_v17 = vsel %vm8046_vm12, %v7939_v15, 0.0  ;;  %v5047_v20 = vor.u32 1.1754944e-38, %v5046_v31  ;;  %v5403_v15 = vsel %vm13148_vm9, %v13094_v43, %v5399_v42 }
 0x843   : > { %v8139_v54 = vadd.f32 %v8138_v17, %v8137_v52  ;;  %v5039_v1 = vadd.f32 %v9915_v45, %v5038_v3  ;;  %v5426_v52 = vmul.f32 %v13157_v16, %v13115_v57  ;;  %v8135_v10 = vrot.slane %v8134_v12, 1  ;;  %v6970_v3 = vpop.permute.xlu0 %6969 }
 0x844   : > { %vm5430_vm13 = vweird.f32 %v13115_v57  ;;  %v4393_v2 = vmul.f32 %v16996_v27, %v11850_v28  ;;  %vm17005_vm14 = vcmask 1041409   ;;  %v5434_v43 = vand.u32 2147483647, %v13115_v57 }
 0x845   : > { %v8140_v37 = vrot.slane %v8139_v54, 4  ;;  %v9921_v62 = vpop.eup %9920  ;;  %v5043_v31 = vsel %vm13173_vm10, %v9915_v45, %v5039_v1  ;;  %v5427_v14 = vsub.f32 1.0, %v5426_v52  ;;  %v5436_v7 = vand.u32 2147483648, %v13115_v57 }
 0x846   : > { %v5408_v17 = vsel %vm13166_vm3, %v5407_v49, %v5403_v15  ;;  %v5048_v29 = vsel %vm5045_vm11, %v5047_v20, %v5043_v31  ;;  %v5381_v47 = vmul.f32 %v9921_v62, %v13122_v35  ;;  %v17207_v27 = vunpack.c.h.bf16 %v12977_v48  ;;  %v7126_v48 = vpop.permute.xlu2 %7125 }
 0x847   : > { %v8141_v42 = vadd.f32 %v8140_v37, %v8139_v54  ;;  %vm5431_vm15 = vweird.f32 %v13157_v16  ;;  %vm5385_vm1 = vweird.f32 %v13122_v35  ;;  %v5391_v45 = vand.u32 2147483648, %v13122_v35 }
 0x848   : > { %v7791_v21 = vmul.f32 %v17207_v27, %v5048_v29  ;;  %v5428_v32 = vmul.f32 %v13157_v16, %v5427_v14  ;;  %v5382_v1 = vsub.f32 1.0, %v5381_v47  ;;  %vm5386_vm0 = vweird.f32 %v9921_v62  ;;  %vm13208_vm2 = vmor %vm5430_vm13, %vm5431_vm15 }
 0x849   : > { %v5389_v54 = vand.u32 2147483647, %v13122_v35  ;;  %v8126_v49 = vrot.slane %v13141_v9, 1  ;;  %v8142_v19 = vrot.slane %v8141_v42, 2  ;;  %v9047_v15 = vmul.f32 -1.442695, %v4393_v2  ;;  %vm13220_vm5 = vmor %vm5385_vm1, %vm5386_vm0 }
 0x84a   : > { %v7919_v20 = vmul.f32 %v7791_v21, %v6970_v3  ;;  %v7940_v52 = vmul.f32 %v7812_v40, %v7107_v60  ;;  %v17208_v29 = vunpack.c.h.bf16 %v12925_v44  ;;  %v5429_v37 = vadd.f32 %v13157_v16, %v5428_v32 }
 0x84b   : > { %v5383_v31 = vmul.f32 %v9921_v62, %v5382_v1  ;;  %v8136_v14 = vadd.f32 %v8135_v10, %v8134_v12  ;;  %vm13213_vm4 = vcmp.eq.f32.partialorder %v5434_v43, 8.507059e+37  ;;  %v5392_v57 = vor.u32 1.1754944e-38, %v5391_v45 }
 0x84c   : > { %v7815_v27 = vmul.f32 %v17208_v29, %v5408_v17  ;;  %v8048_v21 = vsel %vm8046_vm12, %v7919_v20, 0.0  ;;  %v5437_v17 = vor.u32 1.1754944e-38, %v5436_v7  ;;  %vm5390_vm6 = vcmp.eq.f32.partialorder %v5389_v54, 8.507059e+37  ;;  %v13237_v54 = vld [vmem:[%s10902_s1 + $0x78] sm:$0xff]   ;;  %v7120_v20 = vpop.permute.xlu1 %7119 }
 0x84d   : > { %v8049_v2 = vadd.f32 %v8048_v21, %v12572_v4  ;;  %v5384_v12 = vadd.f32 %v9921_v62, %v5383_v31  ;;  %v8143_v10 = vadd.f32 %v8142_v19, %v8141_v42  ;;  %v5433_v43 = vsel %vm13208_vm2, %v13157_v16, %v5429_v37  ;;  %v13240_v16 = vld [vmem:[%s10902_s1 + $0x80] sm:$0xff]  }
 0x84e   : > { %9922 = vpow2.f32 %v9047_v15  ;;  %v9229_v35 = vunpack.c.l.bf16 %v12970_v8  ;;  %v8127_v3 = vadd.f32 %v8126_v49, %v13141_v9  ;;  %v7943_v32 = vmul.f32 %v7815_v27, %v7126_v48 }
 0x84f   : > { %v8050_v1 = vrot.slane %v8049_v2, 4  ;;  %v5388_v4 = vsel %vm13220_vm5, %v9921_v62, %v5384_v12  ;;  %vm17002_vm7 = vcmask 1042434   ;;  %v17003_v45 = vunpack.c.h.bf16 %v12683_v18 }
 0x850   : > { %v5393_v7 = vsel %vm5390_vm6, %v5392_v57, %v5388_v4  ;;  %v4406_v42 = vmul.f32 %v9229_v35, %v11850_v28  ;;  %v13243_v19 = vsel %vm8046_vm12, %v7940_v52, 0.0  ;;  %v8701_v9 = vsel %vm17005_vm14, %v8136_v14, %v8127_v3 }
 0x851   : > { %v8051_v49 = vadd.f32 %v8050_v1, %v8049_v2  ;;  %v5438_v62 = vsel %vm13213_vm4, %v5437_v17, %v5433_v43  ;;  %v8144_v15 = vrot.slane %v8143_v10, 1  ;;  %vm17011_vm8 = vcmask 1043459   ;;  %v7139_v17 = vpop.permute.xlu2 %7138 }
 0x852   : > { %v17215_v48 = vunpack.c.l.bf16 %v12925_v44  ;;  %v9060_v27 = vmul.f32 -1.442695, %v4406_v42  ;;  %v4403_v37 = vmul.f32 %v17003_v45, %v11850_v28  ;;  %v8156_v52 = vsel %vm8046_vm12, %v7943_v32, 0.0 }
 0x853   : > { %v8052_v47 = vrot.slane %v8051_v49, 2  ;;  %v17000_v31 = vunpack.c.l.bf16 %v13237_v54  ;;  %v17001_v14 = vunpack.c.l.bf16 %v13240_v16  ;;  %v17216_v40 = vunpack.c.h.bf16 %v12970_v8 }
 0x854   : > { %v7814_v29 = vmul.f32 %v17215_v48, %v5393_v7  ;;  %v9923_v21 = vpop.eup %9922  ;;  %9924 = vpow2.f32 %v9060_v27  ;;  %v9057_v44 = vmul.f32 -1.442695, %v4403_v37  ;;  %v8145_v32 = vadd.f32 %v8144_v15, %v8143_v10  ;;  %v13273_v15 = vld [vmem:[%s10902_s1 + $0x70] sm:$0xff]  }
 0x855   : > { %v7817_v60 = vmul.f32 %v17216_v40, %v5438_v62  ;;  %v8053_v2 = vadd.f32 %v8052_v47, %v8051_v49  ;;  %v13258_v12 = vadd.f32 1.0, %v9923_v21  ;;  %v4410_v43 = vmul.f32 %v17000_v31, %v11850_v28 }
 0x856   : > { %v7942_v57 = vmul.f32 %v7814_v29, %v7120_v20  ;;  %v4412_v3 = vmul.f32 %v17001_v14, %v11850_v28  ;;  %9926 = vpow2.f32 %v9057_v44  ;;  %v16999_v4 = vunpack.c.h.bf16 %v13240_v16 }
 0x857   : > { %v8054_v7 = vrot.slane %v8053_v2, 1  ;;  %vm17010_vm9 = vcmask 1044484   ;;  %9928 = vrcp.f32 %v13258_v12  ;;  %v7945_v49 = vmul.f32 %v7817_v60, %v7139_v17 }
 0x858   : > { %v8155_v1 = vsel %vm8046_vm12, %v7942_v57, 0.0  ;;  %vm17006_vm3 = vcmask 1045509   ;;  %v9064_v62 = vmul.f32 -1.442695, %v4410_v43  ;;  %v4413_v20 = vmul.f32 %v16999_v4, %v11850_v28 }
 0x859   : > { %v8157_v42 = vadd.f32 %v8156_v52, %v8155_v1  ;;  %v8055_v48 = vadd.f32 %v8054_v7, %v8053_v2  ;;  %v9066_v10 = vmul.f32 -1.442695, %v4412_v3  ;;  %v16998_v27 = vunpack.c.h.bf16 %v13273_v15 }
 0x85a   : > { %v9925_v37 = vpop.eup %9924  ;;  %v13277_v52 = vsel %vm17002_vm7, %v8145_v32, %v8701_v9  ;;  %v5224_v47 = vand.u32 2147483647, %v13258_v12  ;;  %9930 = vpow2.f32 %v9064_v62  ;;  %v9067_v21 = vmul.f32 -1.442695, %v4413_v20 }
 0x85b   : > { %v8158_v29 = vrot.slane %v8157_v42, 4  ;;  %v8688_v40 = vsel %vm17005_vm14, %v12586_v41, %v8055_v48  ;;  %v13282_v57 = vadd.f32 1.0, %v9925_v37  ;;  %9932 = vpow2.f32 %v9066_v10 }
 0x85c   : > { %v9927_v44 = vpop.eup %9926  ;;  %v8690_v2 = vsel %vm17002_vm7, %v12250_v30, %v8688_v40  ;;  %v13287_v17 = vsel %vm8046_vm12, %v7945_v49, 0.0  ;;  %9934 = vpow2.f32 %v9067_v21  ;;  %v4409_v9 = vmul.f32 %v16998_v27, %v11850_v28 }
 0x85d   : > { %v8159_v60 = vadd.f32 %v8158_v29, %v8157_v42  ;;  %v9929_v43 = vpop.eup %9928  ;;  %v8692_v41 = vsel %vm17011_vm8, %v12838_v61, %v8690_v2  ;;  %v5226_v32 = vand.u32 2147483648, %v13258_v12  ;;  %9936 = vrcp.f32 %v13282_v57 }
 0x85e   : > { %v5216_v1 = vmul.f32 %v9929_v43, %v13258_v12  ;;  %vm5220_vm10 = vweird.f32 %v13258_v12  ;;  %vm13298_vm11 = vcmp.eq.f32.partialorder %v5224_v47, 8.507059e+37  ;;  %v8694_v7 = vsel %vm17010_vm9, %v12859_v53, %v8692_v41 }
 0x85f   : > { %v8160_v3 = vrot.slane %v8159_v60, 2  ;;  %vm5221_vm13 = vweird.f32 %v9929_v43  ;;  %v5419_v61 = vand.u32 2147483647, %v13282_v57  ;;  %v13307_v49 = vadd.f32 1.0, %v9927_v44 }
 0x860   : > { %v9931_v62 = vpop.eup %9930  ;;  %v5217_v20 = vsub.f32 1.0, %v5216_v1  ;;  %v5421_v48 = vand.u32 2147483648, %v13282_v57  ;;  %v7309_v29 = vperm.slane %v13052_v36, 3  ;;  %v9063_v10 = vmul.f32 -1.442695, %v4409_v9  ;;  %vm13325_vm1 = vmor %vm5220_vm10, %vm5221_vm13 }
 0x861   : > { %v13304_v42 = vadd.f32 %v8160_v3, %v8159_v60  ;;  %v9933_v37 = vpop.eup %9932  ;;  %v5227_v47 = vor.u32 1.1754944e-38, %v5226_v32  ;;  %vm5415_vm15 = vweird.f32 %v13282_v57  ;;  %9938 = vrcp.f32 %v13307_v49 }
 0x862   : > { %v9935_v21 = vpop.eup %9934  ;;  %v5218_v40 = vmul.f32 %v9929_v43, %v5217_v20  ;;  %v13316_v60 = vsel %vm17006_vm3, %v12880_v51, %v8694_v7  ;;  %v5374_v44 = vand.u32 2147483647, %v13307_v49  ;;  %v13319_v2 = vadd.f32 1.0, %v9931_v62  ;;  %7320 = vperm.xlu2 %9760, %v7309_v29   ;;  %7314 = vperm.xlu1 %9759, %v7309_v29  }
 0x863   : > { %v9937_v9 = vpop.eup %9936  ;;  %vm13329_vm0 = vcmp.eq.f32.partialorder %v5419_v61, 8.507059e+37  ;;  %v5376_v51 = vand.u32 2147483648, %v13307_v49  ;;  %v13334_v1 = vadd.f32 1.0, %v9933_v37  ;;  %v5422_v20 = vor.u32 1.1754944e-38, %v5421_v48 }
 0x864   : > { %v5219_v7 = vadd.f32 %v9929_v43, %v5218_v40  ;;  %v5411_v62 = vmul.f32 %v9937_v9, %v13282_v57  ;;  %9940 = vpow2.f32 %v9063_v10  ;;  %vm5416_vm2 = vweird.f32 %v9937_v9  ;;  %v7048_v10 = vpop.permute.xlu0 %7047 }
 0x865   : > { %vm5370_vm4 = vweird.f32 %v13307_v49  ;;  %9942 = vrcp.f32 %v13319_v2  ;;  %v13339_v12 = vadd.f32 1.0, %v9935_v21  ;;  %vm13343_vm5 = vcmp.eq.f32.partialorder %v5374_v44, 8.507059e+37  ;;  %vm13360_vm10 = vmor %vm5415_vm15, %vm5416_vm2 }
 0x866   : > { %v5223_v61 = vsel %vm13325_vm1, %v9929_v43, %v5219_v7  ;;  %v5412_v29 = vsub.f32 1.0, %v5411_v62  ;;  %v5481_v37 = vand.u32 2147483648, %v13319_v2  ;;  %9944 = vrcp.f32 %v13334_v1 }
 0x867   : > { %v9939_v48 = vpop.eup %9938  ;;  %v5228_v40 = vsel %vm13298_vm11, %v5227_v47, %v5223_v61  ;;  %v5377_v53 = vor.u32 1.1754944e-38, %v5376_v51  ;;  %v5479_v21 = vand.u32 2147483647, %v13319_v2  ;;  %v5509_v3 = vand.u32 2147483647, %v13334_v1 }
 0x868   : > { %v17225_v43 = vunpack.c.h.bf16 %v13153_v58  ;;  %v5413_v7 = vmul.f32 %v9937_v9, %v5412_v29  ;;  %v5366_v62 = vmul.f32 %v9939_v48, %v13307_v49  ;;  %vm5475_vm6 = vweird.f32 %v13319_v2 }
 0x869   : > { %vm5371_vm11 = vweird.f32 %v9939_v48  ;;  %vm5505_vm13 = vweird.f32 %v13334_v1  ;;  %v5511_v30 = vand.u32 2147483648, %v13334_v1  ;;  %9946 = vrcp.f32 %v13339_v12 }
 0x86a   : > { %v7803_v44 = vmul.f32 %v17225_v43, %v5228_v40  ;;  %v9941_v58 = vpop.eup %9940  ;;  %v5414_v51 = vadd.f32 %v9937_v9, %v5413_v7  ;;  %v5367_v61 = vsub.f32 1.0, %v5366_v62  ;;  %v5482_v29 = vor.u32 1.1754944e-38, %v5481_v37  ;;  %v7133_v62 = vpop.permute.xlu1 %7132  ;;  %vm13389_vm7 = vmor %vm5370_vm4, %vm5371_vm11 }
 0x86b   : > { %v9943_v40 = vpop.eup %9942  ;;  %vm13367_vm1 = vcmp.eq.f32.partialorder %v5479_v21, 8.507059e+37  ;;  %vm13371_vm15 = vcmp.eq.f32.partialorder %v5509_v3, 8.507059e+37  ;;  %v5512_v31 = vor.u32 1.1754944e-38, %v5511_v30  ;;  %vm5520_vm2 = vweird.f32 %v13339_v12  ;;  %v13380_v21 = vpop.permute.xlu2 %7158 }
 0x86c   : > { %v7931_v47 = vmul.f32 %v7803_v44, %v7048_v10  ;;  %v5524_v41 = vand.u32 2147483647, %v13339_v12  ;;  %v9945_v14 = vpop.eup %9944  ;;  %v5418_v37 = vsel %vm13360_vm10, %v9937_v9, %v5414_v51  ;;  %v5368_v44 = vmul.f32 %v9939_v48, %v5367_v61 }
 0x86d   : > { %v5471_v7 = vmul.f32 %v9943_v40, %v13319_v2  ;;  %v5423_v30 = vsel %vm13329_vm0, %v5422_v20, %v5418_v37  ;;  %v5501_v4 = vmul.f32 %v9945_v14, %v13334_v1  ;;  %v5526_v9 = vand.u32 2147483648, %v13339_v12 }
 0x86e   : > { %v8102_v10 = vsel %vm8046_vm12, %v7931_v47, 0.0  ;;  %v7816_v47 = vmul.f32 %v9229_v35, %v5423_v30  ;;  %v5369_v51 = vadd.f32 %v9939_v48, %v5368_v44  ;;  %vm5476_vm10 = vweird.f32 %v9943_v40  ;;  %v7113_v35 = vpop.permute.xlu0 %7112 }
 0x86f   : > { %v8103_v3 = vadd.f32 %v8102_v10, %v12576_v13  ;;  %v5472_v13 = vsub.f32 1.0, %v5471_v7  ;;  %v9947_v61 = vpop.eup %9946  ;;  %v5502_v20 = vsub.f32 1.0, %v5501_v4  ;;  %vm5506_vm0 = vweird.f32 %v9945_v14  ;;  %vm13407_vm14 = vmor %vm5475_vm6, %vm5476_vm10 }
 0x870   : > { %v13397_v10 = vadd.f32 1.0, %v9941_v58  ;;  %vm8697_vm4 = vcmask 1046534   ;;  %v7944_v49 = vmul.f32 %v7816_v47, %v7133_v62  ;;  %v5373_v37 = vsel %vm13389_vm7, %v9939_v48, %v5369_v51  ;;  %vm13417_vm7 = vmor %vm5505_vm13, %vm5506_vm0 }
 0x871   : > { %v8104_v32 = vrot.slane %v8103_v3, 4  ;;  %v5473_v25 = vmul.f32 %v9943_v40, %v5472_v13  ;;  %v5516_v55 = vmul.f32 %v9947_v61, %v13339_v12  ;;  %vm17023_vm11 = vcmask 1047559  }
 0x872   : > { %v5378_v44 = vsel %vm13343_vm5, %v5377_v53, %v5373_v37  ;;  %v5503_v7 = vmul.f32 %v9945_v14, %v5502_v20  ;;  %vm5521_vm3 = vweird.f32 %v9947_v61  ;;  %v8164_v45 = vsel %vm8046_vm12, %v7944_v49, 0.0 }
 0x873   : > { %v8105_v8 = vadd.f32 %v8104_v32, %v8103_v3  ;;  %v17236_v48 = vunpack.c.h.bf16 %v12683_v18  ;;  %v5474_v30 = vadd.f32 %v9943_v40, %v5473_v25  ;;  %v5517_v53 = vsub.f32 1.0, %v5516_v55  ;;  %vm13434_vm6 = vmor %vm5520_vm2, %vm5521_vm3  ;;  %v7172_v20 = vpop.permute.xlu2 %7171 }
 0x874   : > { %v8166_v3 = vadd.f32 %v13287_v17, %v8164_v45  ;;  %v5504_v4 = vadd.f32 %v9945_v14, %v5503_v7  ;;  %9948 = vrcp.f32 %v13397_v10  ;;  %vm13425_vm5 = vcmp.eq.f32.partialorder %v5524_v41, 8.507059e+37 }
 0x875   : > { %v7813_v62 = vmul.f32 %v17236_v48, %v5378_v44  ;;  %v8106_v2 = vrot.slane %v8105_v8, 2  ;;  %v5478_v18 = vsel %vm13407_vm14, %v9943_v40, %v5474_v30  ;;  %v5518_v51 = vmul.f32 %v9947_v61, %v5517_v53  ;;  %v6950_v48 = vld [vmem:[%s10948_s22] sm:$0xff] }
 0x876   : > { %v8167_v13 = vrot.slane %v8166_v3, 4  ;;  %v5508_v55 = vsel %vm13417_vm7, %v9945_v14, %v5504_v4  ;;  %v5527_v32 = vor.u32 1.1754944e-38, %v5526_v9  ;;  %v5483_v41 = vsel %vm13367_vm1, %v5482_v29, %v5478_v18  ;;  %v7178_v4 = vpop.permute.xlu0 %7177 }
 0x877   : > { %v7941_v47 = vmul.f32 %v7813_v62, %v7113_v35  ;;  %v8107_v1 = vadd.f32 %v8106_v2, %v8105_v8  ;;  %v5513_v49 = vsel %vm13371_vm15, %v5512_v31, %v5508_v55  ;;  %v5519_v37 = vadd.f32 %v9947_v61, %v5518_v51  ;;  %v13475_v55 = vld [vmem:[%s10902_s1 + $0x90] sm:$0xff]  }
 0x878   : > { %v8168_v8 = vadd.f32 %v8167_v13, %v8166_v3  ;;  %v17243_v35 = vunpack.c.l.bf16 %v13240_v16  ;;  %v17244_v9 = vrot.slane %v13304_v42, 1  ;;  %vm5460_vm14 = vweird.f32 %v13397_v10  ;;  %v13472_v13 = vld [vmem:[%s10902_s1 + $0x88] sm:$0xff]  }
 0x879   : > { %v8147_v40 = vsel %vm8046_vm12, %v7941_v47, 0.0  ;;  %v8108_v14 = vrot.slane %v8107_v1, 1  ;;  %v5523_v29 = vsel %vm13434_vm6, %v9947_v61, %v5519_v37  ;;  %v5464_v31 = vand.u32 2147483647, %v13397_v10 }
 0x87a   : > { %v8148_v12 = vadd.f32 %v8147_v40, %v13243_v19  ;;  %v7822_v44 = vmul.f32 %v17243_v35, %v5513_v49  ;;  %v13449_v58 = vadd.f32 %v17244_v9, %v13304_v42  ;;  %v9949_v43 = vpop.eup %9948  ;;  %v8169_v7 = vrot.slane %v8168_v8, 2 }
 0x87b   : > { %v8109_v57 = vadd.f32 %v8108_v14, %v8107_v1  ;;  %v17245_v62 = vunpack.c.l.bf16 %v13237_v54  ;;  %v5528_v42 = vsel %vm13425_vm5, %v5527_v32, %v5523_v29  ;;  %v5456_v61 = vmul.f32 %v9949_v43, %v13397_v10 }
 0x87c   : > { %v8149_v45 = vrot.slane %v8148_v12, 4  ;;  %v7950_v19 = vmul.f32 %v7822_v44, %v7172_v20  ;;  %v5466_v27 = vand.u32 2147483648, %v13397_v10  ;;  %v13464_v2 = vadd.f32 %v8169_v7, %v8168_v8 }
 0x87d   : > { %v7820_v30 = vmul.f32 %v17245_v62, %v5483_v41  ;;  %v8698_v53 = vsel %vm8697_vm4, %v8109_v57, %v13316_v60  ;;  %vm5461_vm3 = vweird.f32 %v9949_v43  ;;  %v17246_v51 = vunpack.c.h.bf16 %v13240_v16 }
 0x87e   : > { %v8150_v3 = vadd.f32 %v8149_v45, %v8148_v12  ;;  %v8700_v47 = vsel %vm17023_vm11, %v13089_v46, %v8698_v53  ;;  %v8191_v18 = vsel %vm8046_vm12, %v7950_v19, 0.0  ;;  %v5457_v1 = vsub.f32 1.0, %v5456_v61  ;;  %vm13491_vm1 = vmor %vm5460_vm14, %vm5461_vm3 }
 0x87f   : > { %v7823_v25 = vmul.f32 %v17246_v51, %v5528_v42  ;;  %v8758_v60 = vadd.f32 %v8700_v47, %v6950_v48  ;;  %v8171_v17 = vrot.slane %v13464_v2, 1  ;;  %vm13478_vm13 = vcmp.eq.f32.partialorder %v5464_v31, 8.507059e+37  ;;  %v13517_v47 = vld [vmem:[%s10902_s1 + $0x1b0] sm:$0xff]  }
 0x880   : > { %v8151_v32 = vrot.slane %v8150_v3, 2  ;;  %v5458_v46 = vmul.f32 %v9949_v43, %v5457_v1  ;;  %v7322_v20 = vperm.slane %v13052_v36, 4  ;;  %v17249_v16 = vunpack.c.h.bf16 %v13237_v54 }
 0x881   : > { %v7951_v41 = vmul.f32 %v7823_v25, %v7178_v4  ;;  %8766 = vst.msk [vmem:[%s10948_s22] sm:$0xff] %vm8046_vm12, %v8758_v60  ;;  %v5467_v8 = vor.u32 1.1754944e-38, %v5466_v27  ;;  %v9246_v12 = vunpack.c.h.bf16 %v13472_v13  ;;  %v9250_v35 = vunpack.c.h.bf16 %v13475_v55  ;;  %v7152_v27 = vpop.permute.xlu1 %7151  ;;  %v13514_v4 = vld [vmem:[%s10902_s1 + $0xa0] sm:$0xff]  }
 0x882   : > { %v4411_v49 = vmul.f32 %v17249_v16, %v11850_v28  ;;  %v8152_v37 = vadd.f32 %v8151_v32, %v8150_v3  ;;  %v5459_v9 = vadd.f32 %v9949_v43, %v5458_v46  ;;  %7333 = vperm.xlu2 %9760, %v7322_v20   ;;  %7327 = vperm.xlu1 %9759, %v7322_v20   ;;  %v17013_v31 = vunpack.c.l.bf16 %v13472_v13 }
 0x883   : > { %v8192_v44 = vsel %vm8046_vm12, %v7951_v41, 0.0  ;;  %v4415_v7 = vmul.f32 %v9246_v12, %v11850_v28  ;;  %v4417_v45 = vmul.f32 %v9250_v35, %v11850_v28  ;;  %v17012_v62 = vunpack.c.l.bf16 %v13475_v55 }
 0x884   : > { %v9065_v29 = vmul.f32 -1.442695, %v4411_v49  ;;  %v8153_v10 = vrot.slane %v8152_v37, 1  ;;  %v8193_v57 = vadd.f32 %v8192_v44, %v8191_v18  ;;  %v5463_v19 = vsel %vm13491_vm1, %v9949_v43, %v5459_v9 }
 0x885   : > { %v4414_v48 = vmul.f32 %v17013_v31, %v11850_v28  ;;  %v5468_v53 = vsel %vm13478_vm13, %v5467_v8, %v5463_v19  ;;  %v9069_v3 = vmul.f32 -1.442695, %v4415_v7  ;;  %v17252_v43 = vunpack.c.h.bf16 %v13273_v15 }
 0x886   : > { %9950 = vpow2.f32 %v9065_v29  ;;  %v8154_v42 = vadd.f32 %v8153_v10, %v8152_v37  ;;  %v8194_v61 = vrot.slane %v8193_v57, 4  ;;  %v9071_v51 = vmul.f32 -1.442695, %v4417_v45  ;;  %v13533_v37 = vld [vmem:[%s10902_s1 + $0xa8] sm:$0xff]  }
 0x887   : > { %v7819_v18 = vmul.f32 %v17252_v43, %v5468_v53  ;;  %v9068_v25 = vmul.f32 -1.442695, %v4414_v48  ;;  %v4416_v1 = vmul.f32 %v17012_v62, %v11850_v28  ;;  %9952 = vpow2.f32 %v9069_v3 }
 0x888   : > { %v8703_v60 = vsel %vm17011_vm8, %v8154_v42, %v13277_v52  ;;  %v8195_v32 = vadd.f32 %v8194_v61, %v8193_v57  ;;  %v17009_v40 = vunpack.c.l.bf16 %v13514_v4  ;;  %v7948_v41 = vmul.f32 %v7820_v30, %v13380_v21 }
 0x889   : > { %v7947_v46 = vmul.f32 %v7819_v18, %v7152_v27  ;;  %9954 = vpow2.f32 %v9071_v51  ;;  %v9070_v15 = vmul.f32 -1.442695, %v4416_v1  ;;  %v13537_v14 = vadd.f32 %v13069_v50, %v13160_v22  ;;  %v13575_v1 = vld [vmem:[%s10902_s1 + $0x98] sm:$0xff]  }
 0x88a   : > { %v8196_v16 = vrot.slane %v8195_v32, 2  ;;  %9956 = vpow2.f32 %v9068_v25  ;;  %v4420_v49 = vmul.f32 %v17009_v40, %v11850_v28  ;;  %v8704_v21 = vsel %vm17010_vm9, %v13449_v58, %v8703_v60  ;;  %9762 = vset.pattern.permute.xlu2 %v11784_v39  ;;  %9761 = vset.pattern.permute.xlu1 %v11800_v33 }
 0x88b   : > { %v8174_v30 = vsel %vm8046_vm12, %v7947_v46, 0.0  ;;  %9958 = vpow2.f32 %v9070_v15  ;;  %v8172_v8 = vadd.f32 %v8171_v17, %v13464_v2  ;;  %v13549_v22 = vsel %vm8046_vm12, %v7948_v41, 0.0 }
 0x88c   : > { %v9951_v52 = vpop.eup %9950  ;;  %v8197_v44 = vadd.f32 %v8196_v16, %v8195_v32  ;;  %v8175_v9 = vadd.f32 %v8174_v30, %v12845_v63  ;;  %v9074_v10 = vmul.f32 -1.442695, %v4420_v49  ;;  %v17008_v58 = vunpack.c.l.bf16 %v13533_v37 }
 0x88d   : > { %v13546_v29 = vadd.f32 1.0, %v9951_v52  ;;  %v17007_v57 = vunpack.c.h.bf16 %v13533_v37  ;;  %v9953_v7 = vpop.eup %9952  ;;  %vm17253_vm15 = vcmask 1045509   ;;  %v7348_v2 = vperm.slane %v13052_v36, 6 }
 0x88e   : > { %v8176_v45 = vrot.slane %v8175_v9, 4  ;;  %v8705_v19 = vsel %vm17253_vm15, %v8172_v8, %v8704_v21  ;;  %v8198_v17 = vrot.slane %v8197_v44, 1  ;;  %v13557_v42 = vadd.f32 1.0, %v9953_v7 }
 0x88f   : > { %9960 = vrcp.f32 %v13546_v29  ;;  %v9955_v63 = vpop.eup %9954  ;;  %v5494_v48 = vand.u32 2147483647, %v13546_v29  ;;  %v7361_v61 = vperm.slane %v13052_v36, 7  ;;  %v5496_v3 = vand.u32 2147483648, %v13546_v29 }
 0x890   : > { %v9957_v27 = vpop.eup %9956  ;;  %v8177_v53 = vadd.f32 %v8176_v45, %v8175_v9  ;;  %v13561_v43 = vadd.f32 1.0, %v9955_v63  ;;  %9962 = vpow2.f32 %v9074_v10  ;;  %v13567_v51 = vmul.f32 %v17008_v58, %v11850_v28  ;;  %v7165_v10 = vpop.permute.xlu1 %7164 }
 0x891   : > { %v9959_v18 = vpop.eup %9958  ;;  %9964 = vrcp.f32 %v13557_v42  ;;  %7372 = vperm.xlu0 %9785, %v7361_v61   ;;  %v13572_v25 = vmul.f32 %v17007_v57, %v11850_v28  ;;  %v5554_v41 = vand.u32 2147483647, %v13557_v42  ;;  %v5556_v46 = vand.u32 2147483648, %v13557_v42 }
 0x892   : > { %v8178_v32 = vrot.slane %v8177_v53, 2  ;;  %9966 = vrcp.f32 %v13561_v43  ;;  %v13581_v15 = vadd.f32 %v8198_v17, %v8197_v44  ;;  %vm5490_vm2 = vweird.f32 %v13546_v29  ;;  %7353 = vperm.xlu2 %9762, %v7348_v2  }
 0x893   : > { %vm13584_vm10 = vcmp.eq.f32.partialorder %v5494_v48, 8.507059e+37  ;;  %v13590_v49 = vadd.f32 1.0, %v9957_v27  ;;  %v17256_v52 = vperm.slane %v11824_v6, 5  ;;  %v5497_v8 = vor.u32 1.1754944e-38, %v5496_v3 }
 0x894   : > { %v8179_v30 = vadd.f32 %v8178_v32, %v8177_v53  ;;  %v5584_v44 = vand.u32 2147483647, %v13561_v43  ;;  %v13595_v9 = vadd.f32 1.0, %v9959_v18  ;;  %vm5550_vm0 = vweird.f32 %v13557_v42 }
 0x895   : > { %7346 = vperm.xlu1 %9761, %v17256_v52   ;;  %v9961_v21 = vpop.eup %9960  ;;  %vm5580_vm7 = vweird.f32 %v13561_v43  ;;  %v5586_v45 = vand.u32 2147483648, %v13561_v43  ;;  %vm13601_vm5 = vcmp.eq.f32.partialorder %v5554_v41, 8.507059e+37  ;;  %v5557_v48 = vor.u32 1.1754944e-38, %v5556_v46 }
 0x896   : > { %v5486_v7 = vmul.f32 %v9961_v21, %v13546_v29  ;;  %v9963_v63 = vpop.eup %9962  ;;  %v8180_v17 = vrot.slane %v8179_v30, 1  ;;  %9968 = vrcp.f32 %v13590_v49  ;;  %vm5491_vm6 = vweird.f32 %v9961_v21 }
 0x897   : > { %v9965_v27 = vpop.eup %9964  ;;  %v5539_v3 = vand.u32 2147483647, %v13590_v49  ;;  %9970 = vrcp.f32 %v13595_v9  ;;  %vm13609_vm14 = vcmp.eq.f32.partialorder %v5584_v44, 8.507059e+37  ;;  %v5541_v41 = vand.u32 2147483648, %v13590_v49  ;;  %vm13621_vm13 = vmor %vm5490_vm2, %vm5491_vm6  ;;  %v7191_v44 = vpop.permute.xlu2 %7190 }
 0x898   : > { %v5487_v53 = vsub.f32 1.0, %v5486_v7  ;;  %v9967_v18 = vpop.eup %9966  ;;  %v8181_v32 = vadd.f32 %v8180_v17, %v8179_v30  ;;  %v5546_v52 = vmul.f32 %v9965_v27, %v13557_v42  ;;  %v5587_v58 = vor.u32 1.1754944e-38, %v5586_v45 }
 0x899   : > { %v5576_v57 = vmul.f32 %v9967_v18, %v13561_v43  ;;  %vm5535_vm3 = vweird.f32 %v13590_v49  ;;  %vm5551_vm1 = vweird.f32 %v9965_v27  ;;  %vm5565_vm15 = vweird.f32 %v13595_v9 }
 0x89a   : > { %v5488_v46 = vmul.f32 %v9961_v21, %v5487_v53  ;;  %v13617_v7 = vsel %vm8697_vm4, %v8181_v32, %v8705_v19  ;;  %v5547_v17 = vsub.f32 1.0, %v5546_v52  ;;  %vm5581_vm9 = vweird.f32 %v9967_v18  ;;  %7366 = vperm.xlu2 %9762, %v7361_v61   ;;  %vm13641_vm2 = vmor %vm5550_vm0, %vm5551_vm1 }
 0x89b   : > { %v5577_v40 = vsub.f32 1.0, %v5576_v57  ;;  %vm13626_vm8 = vcmp.eq.f32.partialorder %v5539_v3, 8.507059e+37  ;;  %v13630_v19 = vadd.f32 1.0, %v9963_v63  ;;  %v5542_v60 = vor.u32 1.1754944e-38, %v5541_v41  ;;  %vm13652_vm6 = vmor %vm5580_vm7, %vm5581_vm9 }
 0x89c   : > { %v5489_v53 = vadd.f32 %v9961_v21, %v5488_v46  ;;  %v9969_v29 = vpop.eup %9968  ;;  %v5548_v32 = vmul.f32 %v9965_v27, %v5547_v17  ;;  %v5569_v52 = vand.u32 2147483647, %v13595_v9  ;;  %v5571_v62 = vand.u32 2147483648, %v13595_v9 }
 0x89d   : > { %7359 = vperm.xlu1 %9761, %v7348_v2   ;;  %v9971_v46 = vpop.eup %9970  ;;  %v5578_v36 = vmul.f32 %v9967_v18, %v5577_v40  ;;  %v7185_v2 = vpop.permute.xlu1 %7184  ;;  %v5531_v63 = vmul.f32 %v9969_v29, %v13590_v49  ;;  %v9076_v3 = vmul.f32 -1.442695, %v13567_v51  ;;  %vm5536_vm0 = vweird.f32 %v9969_v29 }
 0x89e   : > { %v5493_v57 = vsel %vm13621_vm13, %v9961_v21, %v5489_v53  ;;  %v5549_v17 = vadd.f32 %v9965_v27, %v5548_v32  ;;  %v5561_v42 = vmul.f32 %v9971_v46, %v13595_v9  ;;  %v17269_v40 = vunpack.c.h.bf16 %v13237_v54  ;;  %vm13674_vm9 = vmor %vm5535_vm3, %vm5536_vm0 }
 0x89f   : > { %v5498_v41 = vsel %vm13584_vm10, %v5497_v8, %v5493_v57  ;;  %v5579_v53 = vadd.f32 %v9967_v18, %v5578_v36  ;;  %v5532_v31 = vsub.f32 1.0, %v5531_v63  ;;  %9972 = vrcp.f32 %v13630_v19 }
 0x8a0   : > { %v7821_v30 = vmul.f32 %v17269_v40, %v5498_v41  ;;  %v5553_v51 = vsel %vm13641_vm2, %v9965_v27, %v5549_v17  ;;  %v5562_v16 = vsub.f32 1.0, %v5561_v42  ;;  %vm5566_vm10 = vweird.f32 %v9971_v46 }
 0x8a1   : > { %v9077_v43 = vmul.f32 -1.442695, %v13572_v25  ;;  %v5558_v32 = vsel %vm13601_vm5, %v5557_v48, %v5553_v51  ;;  %v5583_v57 = vsel %vm13652_vm6, %v9967_v18, %v5579_v53  ;;  %v5533_v54 = vmul.f32 %v9969_v29, %v5532_v31  ;;  %vm13687_vm5 = vmor %vm5565_vm15, %vm5566_vm10  ;;  %v7204_v48 = vpop.permute.xlu2 %7203 }
 0x8a2   : > { %v7949_v8 = vmul.f32 %v7821_v30, %v7165_v10  ;;  %v7825_v36 = vmul.f32 %v9246_v12, %v5558_v32  ;;  %v5588_v63 = vsel %vm13609_vm14, %v5587_v58, %v5583_v57  ;;  %v5563_v25 = vmul.f32 %v9971_v46, %v5562_v16  ;;  %9764 = vset.pattern.permute.xlu2 %v11800_v33 }
 0x8a3   : > { %vm13678_vm7 = vcmp.eq.f32.partialorder %v5569_v52, 8.507059e+37  ;;  %v7827_v12 = vmul.f32 %v9250_v35, %v5588_v63  ;;  %v5534_v6 = vadd.f32 %v9969_v29, %v5533_v54  ;;  %v5572_v58 = vor.u32 1.1754944e-38, %v5571_v62 }
 0x8a4   : > { %v8183_v31 = vsel %vm8046_vm12, %v7949_v8, 0.0  ;;  %v5564_v18 = vadd.f32 %v9971_v46, %v5563_v25  ;;  %v5629_v52 = vand.u32 2147483647, %v13630_v19  ;;  %9974 = vpow2.f32 %v9076_v3 }
 0x8a5   : > { %9763 = vset.pattern.permute.xlu1 %v11784_v39  ;;  %v8184_v49 = vadd.f32 %v8183_v31, %v13549_v22  ;;  %v9973_v35 = vpop.eup %9972  ;;  %v7953_v61 = vmul.f32 %v7825_v36, %v7191_v44  ;;  %v5538_v9 = vsel %vm13674_vm9, %v9969_v29, %v5534_v6  ;;  %vm5625_vm14 = vweird.f32 %v13630_v19  ;;  %v7198_v42 = vpop.permute.xlu1 %7197 }
 0x8a6   : > { %9976 = vpow2.f32 %v9077_v43  ;;  %v5543_v41 = vsel %vm13626_vm8, %v5542_v60, %v5538_v9  ;;  %v5568_v22 = vsel %vm13687_vm5, %v9971_v46, %v5564_v18  ;;  %v5631_v17 = vand.u32 2147483648, %v13630_v19  ;;  %v13715_v46 = vld [vmem:[%s11789_s23 + $0x20] sm:$0xff] }
 0x8a7   : > { %v8185_v62 = vrot.slane %v8184_v49, 4  ;;  %v7955_v21 = vmul.f32 %v7827_v12, %v7204_v48  ;;  %v17276_v3 = vunpack.c.l.bf16 %v13472_v13  ;;  %v5573_v29 = vsel %vm13678_vm7, %v5572_v58, %v5568_v22 }
 0x8a8   : > { %v5621_v40 = vmul.f32 %v9973_v35, %v13630_v19  ;;  %v17277_v53 = vunpack.c.l.bf16 %v13475_v55  ;;  %vm13710_vm8 = vcmp.eq.f32.partialorder %v5629_v52, 8.507059e+37  ;;  %v7374_v51 = vperm.slane %v13715_v46, 0  ;;  %v13739_v52 = vld [vmem:[%s10902_s1 + $0xb0] sm:$0xff]  }
 0x8a9   : > { %v7824_v44 = vmul.f32 %v17276_v3, %v5543_v41  ;;  %v8186_v30 = vadd.f32 %v8185_v62, %v8184_v49  ;;  %v8201_v13 = vsel %vm8046_vm12, %v7953_v61, 0.0  ;;  %vm5626_vm3 = vweird.f32 %v9973_v35  ;;  %v13742_v61 = vld [vmem:[%s10902_s1 + $0xb8] sm:$0xff]   ;;  %v6951_v3 = vld [vmem:[%s10948_s22 + $0x8] sm:$0xff] }
 0x8aa   : > { %v7826_v45 = vmul.f32 %v17277_v53, %v5573_v29  ;;  %v5622_v43 = vsub.f32 1.0, %v5621_v40  ;;  %v9975_v8 = vpop.eup %9974  ;;  %v5632_v54 = vor.u32 1.1754944e-38, %v5631_v17  ;;  %v17280_v55 = vunpack.c.h.bf16 %v13575_v1  ;;  %7385 = vperm.xlu2 %9764, %v7374_v51   ;;  %vm13730_vm13 = vmor %vm5625_vm14, %vm5626_vm3 }
 0x8ab   : > { %v7952_v16 = vmul.f32 %v7824_v44, %v7185_v2  ;;  %v8187_v32 = vrot.slane %v8186_v30, 2  ;;  %v8210_v27 = vsel %vm8046_vm12, %v7955_v21, 0.0  ;;  %v13724_v31 = vadd.f32 1.0, %v9975_v8  ;;  %v7224_v8 = vpop.permute.xlu2 %7223 }
 0x8ac   : > { %v7954_v57 = vmul.f32 %v7826_v45, %v7198_v42  ;;  %v4419_v36 = vmul.f32 %v17280_v55, %v11850_v28  ;;  %v9977_v63 = vpop.eup %9976  ;;  %v5623_v10 = vmul.f32 %v9973_v35, %v5622_v43  ;;  %v9258_v18 = vunpack.c.h.bf16 %v13514_v4 }
 0x8ad   : > { %v8200_v25 = vsel %vm8046_vm12, %v7952_v16, 0.0  ;;  %7379 = vperm.xlu1 %9763, %v7374_v51   ;;  %v8188_v2 = vadd.f32 %v8187_v32, %v8186_v30  ;;  %v13734_v58 = vadd.f32 1.0, %v9977_v63  ;;  %9978 = vrcp.f32 %v13724_v31  ;;  %v13826_v32 = vld [vmem:[%s10902_s1 + $0xd0] sm:$0xff]  }
 0x8ae   : > { %v8202_v12 = vadd.f32 %v8201_v13, %v8200_v25  ;;  %v8209_v6 = vsel %vm8046_vm12, %v7954_v57, 0.0  ;;  %v5624_v48 = vadd.f32 %v9973_v35, %v5623_v10  ;;  %v5659_v19 = vand.u32 2147483647, %v13724_v31 }
 0x8af   : > { %v8211_v49 = vadd.f32 %v8210_v27, %v8209_v6  ;;  %v8189_v9 = vrot.slane %v8188_v2, 1  ;;  %v9073_v41 = vmul.f32 -1.442695, %v4419_v36  ;;  %v5661_v21 = vand.u32 2147483648, %v13724_v31 }
 0x8b0   : > { %v8203_v62 = vrot.slane %v8202_v12, 4  ;;  %v5628_v17 = vsel %vm13730_vm13, %v9973_v35, %v5624_v48  ;;  %9980 = vrcp.f32 %v13734_v58  ;;  %v9266_v40 = vunpack.c.h.bf16 %v13739_v52 }
 0x8b1   : > { %v8212_v22 = vrot.slane %v8211_v49, 4  ;;  %v8190_v44 = vadd.f32 %v8189_v9, %v8188_v2  ;;  %v5633_v29 = vsel %vm13710_vm8, %v5632_v54, %v5628_v17  ;;  %v17283_v53 = vunpack.c.l.bf16 %v13514_v4 }
 0x8b2   : > { %v8204_v42 = vadd.f32 %v8203_v62, %v8202_v12  ;;  %vm5655_vm1 = vweird.f32 %v13724_v31  ;;  %v9270_v35 = vunpack.c.h.bf16 %v13742_v61  ;;  %vm5670_vm15 = vweird.f32 %v13734_v58 }
 0x8b3   : > { %v8213_v30 = vadd.f32 %v8212_v22, %v8211_v49  ;;  %v7830_v45 = vmul.f32 %v17283_v53, %v5633_v29  ;;  %v8707_v51 = vsel %vm17023_vm11, %v8190_v44, %v13617_v7  ;;  %9982 = vpow2.f32 %v9073_v41  ;;  %v9979_v60 = vpop.eup %9978 }
 0x8b4   : > { %v8205_v13 = vrot.slane %v8204_v42, 2  ;;  %v8759_v16 = vadd.f32 %v8707_v51, %v6951_v3  ;;  %vm13760_vm2 = vcmp.eq.f32.partialorder %v5659_v19, 8.507059e+37  ;;  %v5662_v57 = vor.u32 1.1754944e-38, %v5661_v21 }
 0x8b5   : > { %v8214_v43 = vrot.slane %v8213_v30, 2  ;;  %v5651_v55 = vmul.f32 %v9979_v60, %v13724_v31  ;;  %v5674_v36 = vand.u32 2147483647, %v13734_v58  ;;  %v5676_v7 = vand.u32 2147483648, %v13734_v58 }
 0x8b6   : > { %v8206_v54 = vadd.f32 %v8205_v13, %v8204_v42  ;;  %v9981_v63 = vpop.eup %9980  ;;  %8767 = vst.msk [vmem:[%s10948_s22 + $0x8] sm:$0xff] %vm8046_vm12, %v8759_v16  ;;  %v7958_v25 = vmul.f32 %v7830_v45, %v7224_v8  ;;  %v7387_v10 = vperm.slane %v13715_v46, 1  ;;  %v4421_v2 = vmul.f32 %v9258_v18, %v11850_v28 }
 0x8b7   : > { %v8215_v27 = vadd.f32 %v8214_v43, %v8213_v30  ;;  %v5652_v6 = vsub.f32 1.0, %v5651_v55  ;;  %vm5656_vm6 = vweird.f32 %v9979_v60  ;;  %v5666_v20 = vmul.f32 %v9981_v63, %v13734_v58  ;;  %v7237_v55 = vpop.permute.xlu2 %7236 }
 0x8b8   : > { %v8207_v12 = vrot.slane %v8206_v54, 1  ;;  %7398 = vperm.xlu2 %9764, %v7387_v10   ;;  %v9075_v48 = vmul.f32 -1.442695, %v4421_v2  ;;  %7392 = vperm.xlu1 %9763, %v7387_v10   ;;  %v4425_v9 = vmul.f32 %v9266_v40, %v11850_v28  ;;  %v4427_v62 = vmul.f32 %v9270_v35, %v11850_v28  ;;  %vm13786_vm9 = vmor %vm5655_vm1, %vm5656_vm6 }
 0x8b9   : > { %v8216_v49 = vrot.slane %v8215_v27, 1  ;;  %v9983_v19 = vpop.eup %9982  ;;  %v5653_v41 = vmul.f32 %v9979_v60, %v5652_v6  ;;  %v5667_v22 = vsub.f32 1.0, %v5666_v20  ;;  %vm5671_vm0 = vweird.f32 %v9981_v63  ;;  %v13823_v6 = vld [vmem:[%s10902_s1 + $0xc8] sm:$0xff]  }
 0x8ba   : > { %vm13780_vm10 = vcmp.eq.f32.partialorder %v5674_v36, 8.507059e+37  ;;  %v13790_v3 = vadd.f32 1.0, %v9983_v19  ;;  %9984 = vpow2.f32 %v9075_v48  ;;  %v9079_v44 = vmul.f32 -1.442695, %v4425_v9  ;;  %vm13795_vm7 = vmor %vm5670_vm15, %vm5671_vm0 }
 0x8bb   : > { %v17017_v42 = vunpack.c.l.bf16 %v13739_v52  ;;  %v8208_v29 = vadd.f32 %v8207_v12, %v8206_v54  ;;  %v5654_v30 = vadd.f32 %v9979_v60, %v5653_v41  ;;  %v5668_v53 = vmul.f32 %v9981_v63, %v5667_v22 }
 0x8bc   : > { %v9081_v45 = vmul.f32 -1.442695, %v4427_v62  ;;  %v8217_v51 = vadd.f32 %v8216_v49, %v8215_v27  ;;  %v5677_v31 = vor.u32 1.1754944e-38, %v5676_v7  ;;  %9986 = vrcp.f32 %v13790_v3  ;;  %v7243_v49 = vpop.permute.xlu0 %7242 }
 0x8bd   : > { %v5614_v16 = vand.u32 2147483647, %v13790_v3  ;;  %v5658_v43 = vsel %vm13786_vm9, %v9979_v60, %v5654_v30  ;;  %v5669_v8 = vadd.f32 %v9981_v63, %v5668_v53  ;;  %v5616_v54 = vand.u32 2147483648, %v13790_v3 }
 0x8be   : > { %9988 = vpow2.f32 %v9079_v44  ;;  %v13806_v58 = vmul.f32 %v13134_v23, %v13076_v26  ;;  %v5663_v36 = vsel %vm13760_vm2, %v5662_v57, %v5658_v43  ;;  %v4424_v7 = vmul.f32 %v17017_v42, %v11850_v28 }
 0x8bf   : > { %9990 = vpow2.f32 %v9081_v45  ;;  %vm17292_vm5 = vcmask 1041409   ;;  %v13816_v27 = vsel %vm8046_vm12, %v7958_v25, 0.0  ;;  %v17293_v10 = vunpack.c.l.bf16 %v13533_v37 }
 0x8c0   : > { %v8708_v60 = vsel %vm17292_vm5, %v8208_v29, %v13581_v15  ;;  %v5673_v12 = vsel %vm13795_vm7, %v9981_v63, %v5669_v8  ;;  %v9985_v57 = vpop.eup %9984  ;;  %vm17294_vm14 = vcmask 1042434   ;;  %vm5610_vm8 = vweird.f32 %v13790_v3  ;;  %9766 = vset.pattern.permute.xlu2 %v11784_v39  ;;  %9765 = vset.pattern.permute.xlu1 %v11800_v33 }
 0x8c1   : > { %v7832_v2 = vmul.f32 %v17293_v10, %v5663_v36  ;;  %v13829_v20 = vsel %vm17294_vm14, %v8217_v51, %v8708_v60  ;;  %v5678_v15 = vsel %vm13780_vm10, %v5677_v31, %v5673_v12  ;;  %v9078_v25 = vmul.f32 -1.442695, %v4424_v7 }
 0x8c2   : > { %v17295_v48 = vunpack.c.h.bf16 %v13533_v37  ;;  %vm13838_vm3 = vcmp.eq.f32.partialorder %v5614_v16, 8.507059e+37  ;;  %v5617_v19 = vor.u32 1.1754944e-38, %v5616_v54  ;;  %v13842_v41 = vadd.f32 1.0, %v9985_v57  ;;  %v9987_v22 = vpop.eup %9986 }
 0x8c3   : > { %v7960_v63 = vmul.f32 %v7832_v2, %v7237_v55  ;;  %9992 = vpow2.f32 %v9078_v25  ;;  %v17016_v17 = vunpack.c.l.bf16 %v13742_v61  ;;  %v17015_v21 = vunpack.c.l.bf16 %v13823_v6 }
 0x8c4   : > { %v7833_v9 = vmul.f32 %v17295_v48, %v5678_v15  ;;  %v17014_v44 = vunpack.c.l.bf16 %v13826_v32  ;;  %v9989_v29 = vpop.eup %9988  ;;  %v5606_v53 = vmul.f32 %v9987_v22, %v13790_v3  ;;  %v7413_v45 = vperm.slane %v13715_v46, 3 }
 0x8c5   : > { %v8236_v30 = vsel %vm8046_vm12, %v7960_v63, 0.0  ;;  %v9991_v51 = vpop.eup %9990  ;;  %vm5611_vm13 = vweird.f32 %v9987_v22  ;;  %9994 = vrcp.f32 %v13842_v41  ;;  %v5644_v13 = vand.u32 2147483647, %v13842_v41 }
 0x8c6   : > { %v7961_v37 = vmul.f32 %v7833_v9, %v7243_v49  ;;  %v5646_v31 = vand.u32 2147483648, %v13842_v41  ;;  %v5607_v43 = vsub.f32 1.0, %v5606_v53  ;;  %v13854_v8 = vadd.f32 1.0, %v9989_v29  ;;  %vm13877_vm15 = vmor %vm5610_vm8, %vm5611_vm13  ;;  %v17302_v29 = vld [vmem:[#allocation34_spill] sm:$0xff] }
 0x8c7   : > { %v13856_v54 = vadd.f32 1.0, %v9991_v51  ;;  %v7426_v36 = vperm.slane %v13715_v46, 4  ;;  %v4426_v7 = vmul.f32 %v17016_v17, %v11850_v28  ;;  %v13865_v60 = vmul.f32 %v17015_v21, %v11850_v28  ;;  %v7217_v51 = vpop.permute.xlu1 %7216 }
 0x8c8   : > { %v8237_v16 = vsel %vm8046_vm12, %v7961_v37, 0.0  ;;  %v5608_v10 = vmul.f32 %v9987_v22, %v5607_v43  ;;  %vm5640_vm1 = vweird.f32 %v13842_v41  ;;  %9996 = vrcp.f32 %v13854_v8  ;;  %7418 = vperm.xlu2 %9766, %v7413_v45  }
 0x8c9   : > { %v8238_v55 = vadd.f32 %v8237_v16, %v8236_v30  ;;  %v13872_v2 = vmul.f32 %v17014_v44, %v11850_v28  ;;  %v9993_v12 = vpop.eup %9992  ;;  %v5704_v15 = vand.u32 2147483647, %v13854_v8  ;;  %v5706_v25 = vand.u32 2147483648, %v13854_v8  ;;  %7437 = vperm.xlu0 %9785, %v7426_v36  }
 0x8ca   : > { %9998 = vrcp.f32 %v13856_v54  ;;  %v5609_v63 = vadd.f32 %v9987_v22, %v5608_v10  ;;  %vm13886_vm2 = vcmp.eq.f32.partialorder %v5644_v13, 8.507059e+37  ;;  %v5647_v3 = vor.u32 1.1754944e-38, %v5646_v31 }
 0x8cb   : > { %v8239_v57 = vrot.slane %v8238_v55, 4  ;;  %v5734_v9 = vand.u32 2147483647, %v13856_v54  ;;  %v17303_v30 = vperm.slane %v17302_v29, 2  ;;  %v9995_v37 = vpop.eup %9994  ;;  %vm5700_vm6 = vweird.f32 %v13854_v8 }
 0x8cc   : > { %v5736_v16 = vand.u32 2147483648, %v13856_v54  ;;  %v13895_v43 = vadd.f32 1.0, %v9993_v12  ;;  %v5613_v13 = vsel %vm13877_vm15, %v9987_v22, %v5609_v63  ;;  %v5636_v10 = vmul.f32 %v9995_v37, %v13842_v41 }
 0x8cd   : > { %7411 = vperm.xlu1 %9765, %v17303_v30   ;;  %v8240_v53 = vadd.f32 %v8239_v57, %v8238_v55  ;;  %v5707_v31 = vor.u32 1.1754944e-38, %v5706_v25  ;;  %vm5730_vm0 = vweird.f32 %v13856_v54  ;;  %v5618_v30 = vsel %vm13838_vm3, %v5617_v19, %v5613_v13  ;;  %v13916_v19 = vpop.permute.xlu2 %7255 }
 0x8ce   : > { %vm13903_vm10 = vcmp.eq.f32.partialorder %v5704_v15, 8.507059e+37  ;;  %10000 = vrcp.f32 %v13895_v43  ;;  %v9080_v12 = vmul.f32 -1.442695, %v4426_v7  ;;  %v9997_v57 = vpop.eup %9996  ;;  %v17306_v49 = vunpack.c.h.bf16 %v13575_v1 }
 0x8cf   : > { %v8241_v44 = vrot.slane %v8240_v53, 2  ;;  %v5637_v63 = vsub.f32 1.0, %v5636_v10  ;;  %vm5641_vm9 = vweird.f32 %v9995_v37  ;;  %vm13910_vm7 = vcmp.eq.f32.partialorder %v5734_v9, 8.507059e+37 }
 0x8d0   : > { %v7829_v22 = vmul.f32 %v17306_v49, %v5618_v30  ;;  %v9999_v21 = vpop.eup %9998  ;;  %v5696_v15 = vmul.f32 %v9997_v57, %v13854_v8  ;;  %v5737_v13 = vor.u32 1.1754944e-38, %v5736_v16  ;;  %vm5685_vm5 = vweird.f32 %v13895_v43  ;;  %vm13924_vm14 = vmor %vm5640_vm1, %vm5641_vm9  ;;  %7431 = vperm.xlu2 %9766, %v7426_v36  }
 0x8d1   : > { %v13914_v62 = vadd.f32 %v8241_v44, %v8240_v53  ;;  %v5638_v17 = vmul.f32 %v9995_v37, %v5637_v63  ;;  %v5726_v1 = vmul.f32 %v9999_v21, %v13856_v54  ;;  %v5689_v10 = vand.u32 2147483647, %v13895_v43 }
 0x8d2   : > { %v7957_v7 = vmul.f32 %v7829_v22, %v7217_v51  ;;  %v5697_v44 = vsub.f32 1.0, %v5696_v15  ;;  %vm5701_vm8 = vweird.f32 %v9997_v57  ;;  %vm5731_vm3 = vweird.f32 %v9999_v21 }
 0x8d3   : > { %v5691_v53 = vand.u32 2147483648, %v13895_v43  ;;  %v5639_v51 = vadd.f32 %v9995_v37, %v5638_v17  ;;  %v5727_v30 = vsub.f32 1.0, %v5726_v1  ;;  %10002 = vpow2.f32 %v9080_v12  ;;  %vm13940_vm13 = vmor %vm5700_vm6, %vm5701_vm8 }
 0x8d4   : > { %v8219_v16 = vsel %vm8046_vm12, %v7957_v7, 0.0  ;;  %v10001_v49 = vpop.eup %10000  ;;  %v8243_v41 = vrot.slane %v13914_v62, 1  ;;  %v5698_v63 = vmul.f32 %v9997_v57, %v5697_v44  ;;  %v9084_v15 = vmul.f32 -1.442695, %v13865_v60  ;;  %v7230_v7 = vpop.permute.xlu1 %7229  ;;  %vm13950_vm15 = vmor %vm5730_vm0, %vm5731_vm3 }
 0x8d5   : > { %7424 = vperm.xlu1 %9765, %v7413_v45   ;;  %v8220_v22 = vadd.f32 %v8219_v16, %v12849_v38  ;;  %v5643_v42 = vsel %vm13924_vm14, %v9995_v37, %v5639_v51  ;;  %v5728_v36 = vmul.f32 %v9999_v21, %v5727_v30  ;;  %v5681_v45 = vmul.f32 %v10001_v49, %v13895_v43 }
 0x8d6   : > { %vm5686_vm1 = vweird.f32 %v10001_v49  ;;  %v5648_v38 = vsel %vm13886_vm2, %v5647_v3, %v5643_v42  ;;  %v5699_v60 = vadd.f32 %v9997_v57, %v5698_v63  ;;  %10004 = vpow2.f32 %v9084_v15 }
 0x8d7   : > { %v8221_v12 = vrot.slane %v8220_v22, 4  ;;  %v7831_v8 = vmul.f32 %v9258_v18, %v5648_v38  ;;  %v5729_v1 = vadd.f32 %v9999_v21, %v5728_v36  ;;  %v5682_v9 = vsub.f32 1.0, %v5681_v45  ;;  %vm13974_vm6 = vmor %vm5685_vm5, %vm5686_vm1 }
 0x8d8   : > { %v9086_v44 = vmul.f32 -1.442695, %v13872_v2  ;;  %v5703_v42 = vsel %vm13940_vm13, %v9997_v57, %v5699_v60  ;;  %vm13959_vm2 = vcmp.eq.f32.partialorder %v5689_v10, 8.507059e+37  ;;  %v5692_v54 = vor.u32 1.1754944e-38, %v5691_v53  ;;  %9768 = vset.pattern.permute.xlu2 %v11800_v33  ;;  %v13995_v60 = vld [vmem:[%s10902_s1 + $0xc0] sm:$0xff]  }
 0x8d9   : > { %v8222_v16 = vadd.f32 %v8221_v12, %v8220_v22  ;;  %v10003_v3 = vpop.eup %10002  ;;  %v7959_v51 = vmul.f32 %v7831_v8, %v7230_v7  ;;  %v5708_v30 = vsel %vm13903_vm10, %v5707_v31, %v5703_v42  ;;  %v5733_v4 = vsel %vm13950_vm15, %v9999_v21, %v5729_v1  ;;  %v7269_v22 = vpop.permute.xlu2 %7268 }
 0x8da   : > { %v5683_v18 = vmul.f32 %v10001_v49, %v5682_v9  ;;  %v7835_v2 = vmul.f32 %v9266_v40, %v5708_v30  ;;  %v5738_v57 = vsel %vm13910_vm7, %v5737_v13, %v5733_v4  ;;  %v13978_v31 = vadd.f32 1.0, %v10003_v3 }
 0x8db   : > { %v8223_v63 = vrot.slane %v8222_v16, 2  ;;  %v8228_v21 = vsel %vm8046_vm12, %v7959_v51, 0.0  ;;  %v7837_v40 = vmul.f32 %v9270_v35, %v5738_v57  ;;  %10006 = vpow2.f32 %v9086_v44 }
 0x8dc   : > { %v5684_v55 = vadd.f32 %v10001_v49, %v5683_v18  ;;  %v10005_v25 = vpop.eup %10004  ;;  %v8229_v13 = vadd.f32 %v8228_v21, %v13816_v27  ;;  %v7963_v53 = vmul.f32 %v7835_v2, %v13916_v19  ;;  %10008 = vrcp.f32 %v13978_v31  ;;  %v7250_v7 = vpop.permute.xlu1 %7249 }
 0x8dd   : > { %9767 = vset.pattern.permute.xlu1 %v11784_v39  ;;  %v8224_v43 = vadd.f32 %v8223_v63, %v8222_v16  ;;  %v7965_v15 = vmul.f32 %v7837_v40, %v7269_v22  ;;  %v5719_v36 = vand.u32 2147483647, %v13978_v31  ;;  %v9282_v35 = vunpack.c.h.bf16 %v13826_v32 }
 0x8de   : > { %v5688_v17 = vsel %vm13974_vm6, %v10001_v49, %v5684_v55  ;;  %v8230_v12 = vrot.slane %v8229_v13, 4  ;;  %v9274_v27 = vunpack.c.h.bf16 %v13995_v60  ;;  %v13999_v19 = vadd.f32 %v8243_v41, %v13914_v62 }
 0x8df   : > { %v8225_v45 = vrot.slane %v8224_v43, 1  ;;  %v5693_v38 = vsel %vm13959_vm2, %v5692_v54, %v5688_v17  ;;  %v17319_v37 = vunpack.c.l.bf16 %v13739_v52  ;;  %vm5715_vm0 = vweird.f32 %v13978_v31 }
 0x8e0   : > { %v5721_v8 = vand.u32 2147483648, %v13978_v31  ;;  %v8231_v1 = vadd.f32 %v8230_v12, %v8229_v13  ;;  %v8246_v9 = vsel %vm8046_vm12, %v7963_v53, 0.0  ;;  %v14007_v44 = vsel %vm8046_vm12, %v7965_v15, 0.0 }
 0x8e1   : > { %v7834_v49 = vmul.f32 %v17319_v37, %v5693_v38  ;;  %v14009_v16 = vadd.f32 1.0, %v10005_v25  ;;  %v10007_v42 = vpop.eup %10006  ;;  %v8226_v48 = vadd.f32 %v8225_v45, %v8224_v43  ;;  %vm14011_vm10 = vcmp.eq.f32.partialorder %v5719_v36, 8.507059e+37 }
 0x8e2   : > { %v4433_v52 = vmul.f32 %v9282_v35, %v11850_v28  ;;  %v10009_v41 = vpop.eup %10008  ;;  %v8232_v3 = vrot.slane %v8231_v1, 2  ;;  %v5722_v51 = vor.u32 1.1754944e-38, %v5721_v8  ;;  %v4429_v30 = vmul.f32 %v9274_v27, %v11850_v28 }
 0x8e3   : > { %v7962_v54 = vmul.f32 %v7834_v49, %v7250_v7  ;;  %10010 = vrcp.f32 %v14009_v16  ;;  %v5711_v18 = vmul.f32 %v10009_v41, %v13978_v31  ;;  %v5779_v63 = vand.u32 2147483647, %v14009_v16 }
 0x8e4   : > { %v9278_v2 = vunpack.c.h.bf16 %v13823_v6  ;;  %v8233_v22 = vadd.f32 %v8232_v3, %v8231_v1  ;;  %v5781_v10 = vand.u32 2147483648, %v14009_v16  ;;  %v14027_v21 = vadd.f32 1.0, %v10007_v42  ;;  %v14049_v1 = vld [vmem:[%s10902_s1 + $0xd8] sm:$0xff]  }
 0x8e5   : > { %v8245_v4 = vsel %vm8046_vm12, %v7962_v54, 0.0  ;;  %v5712_v40 = vsub.f32 1.0, %v5711_v18  ;;  %vm5716_vm9 = vweird.f32 %v10009_v41  ;;  %v9087_v55 = vmul.f32 -1.442695, %v4433_v52  ;;  %v7263_v18 = vpop.permute.xlu1 %7262 }
 0x8e6   : > { %v8247_v57 = vadd.f32 %v8246_v9, %v8245_v4  ;;  %v7439_v25 = vperm.slane %v13715_v46, 5  ;;  %vm17322_vm7 = vcmask 1043459   ;;  %v8234_v13 = vrot.slane %v8233_v22, 1  ;;  %vm14041_vm8 = vmor %vm5715_vm0, %vm5716_vm9  ;;  %v14052_v9 = vld [vmem:[%s10902_s1 + $0xe0] sm:$0xff]  }
 0x8e7   : > { %v8710_v43 = vsel %vm17322_vm7, %v8226_v48, %v13829_v20  ;;  %10012 = vrcp.f32 %v14027_v21  ;;  %v5713_v15 = vmul.f32 %v10009_v41, %v5712_v40  ;;  %vm5775_vm5 = vweird.f32 %v14009_v16 }
 0x8e8   : > { %v8248_v53 = vrot.slane %v8247_v57, 4  ;;  %vm14034_vm14 = vcmp.eq.f32.partialorder %v5779_v63, 8.507059e+37  ;;  %v5782_v36 = vor.u32 1.1754944e-38, %v5781_v10  ;;  %7450 = vperm.xlu2 %9768, %v7439_v25   ;;  %7444 = vperm.xlu1 %9767, %v7439_v25   ;;  %v8235_v12 = vadd.f32 %v8234_v13, %v8233_v22  ;;  %v7289_v22 = vpop.permute.xlu2 %7288 }
 0x8e9   : > { %v10011_v45 = vpop.eup %10010  ;;  %10014 = vpow2.f32 %v9087_v55  ;;  %v9083_v38 = vmul.f32 -1.442695, %v4429_v30  ;;  %v5714_v37 = vadd.f32 %v10009_v41, %v5713_v15  ;;  %vm5805_vm3 = vweird.f32 %v14027_v21 }
 0x8ea   : > { %v8249_v7 = vadd.f32 %v8248_v53, %v8247_v57  ;;  %v5771_v49 = vmul.f32 %v10011_v45, %v14009_v16  ;;  %v5809_v8 = vand.u32 2147483647, %v14027_v21  ;;  %vm17327_vm13 = vcmask 1044484  }
 0x8eb   : > { %v8711_v42 = vsel %vm17327_vm13, %v8235_v12, %v8710_v43  ;;  %vm5776_vm1 = vweird.f32 %v10011_v45  ;;  %v5811_v48 = vand.u32 2147483648, %v14027_v21  ;;  %v5718_v54 = vsel %vm14041_vm8, %v10009_v41, %v5714_v37 }
 0x8ec   : > { %v8250_v31 = vrot.slane %v8249_v7, 2  ;;  %v5772_v52 = vsub.f32 1.0, %v5771_v49  ;;  %10016 = vpow2.f32 %v9083_v38  ;;  %v4431_v3 = vmul.f32 %v9278_v2, %v11850_v28  ;;  %vm14071_vm2 = vmor %vm5775_vm5, %vm5776_vm1 }
 0x8ed   : > { %v10013_v30 = vpop.eup %10012  ;;  %v5723_v63 = vsel %vm14011_vm10, %v5722_v51, %v5718_v54  ;;  %v9286_v57 = vunpack.c.h.bf16 %v14049_v1  ;;  %v9290_v10 = vunpack.c.h.bf16 %v14052_v9  ;;  %v17328_v40 = vunpack.c.l.bf16 %v13742_v61 }
 0x8ee   : > { %v8251_v4 = vadd.f32 %v8250_v31, %v8249_v7  ;;  %v5773_v55 = vmul.f32 %v10011_v45, %v5772_v52  ;;  %v5801_v25 = vmul.f32 %v10013_v30, %v14027_v21  ;;  %vm5806_vm15 = vweird.f32 %v10013_v30 }
 0x8ef   : > { %v7836_v41 = vmul.f32 %v17328_v40, %v5723_v63  ;;  %v10015_v43 = vpop.eup %10014  ;;  %v7452_v51 = vperm.slane %v13715_v46, 6  ;;  %v9085_v53 = vmul.f32 -1.442695, %v4431_v3  ;;  %v4435_v61 = vmul.f32 %v9286_v57, %v11850_v28  ;;  %vm14099_vm6 = vmor %vm5805_vm3, %vm5806_vm15 }
 0x8f0   : > { %v8252_v13 = vrot.slane %v8251_v4, 1  ;;  %v5774_v12 = vadd.f32 %v10011_v45, %v5773_v55  ;;  %v5802_v7 = vsub.f32 1.0, %v5801_v25  ;;  %v14079_v20 = vadd.f32 1.0, %v10015_v43  ;;  %v7302_v62 = vpop.permute.xlu2 %7301 }
 0x8f1   : > { %v7964_v15 = vmul.f32 %v7836_v41, %v7263_v18  ;;  %7463 = vperm.xlu2 %9768, %v7452_v51   ;;  %10018 = vpow2.f32 %v9085_v53  ;;  %7457 = vperm.xlu1 %9767, %v7452_v51   ;;  %v9089_v16 = vmul.f32 -1.442695, %v4435_v61  ;;  %v4437_v37 = vmul.f32 %v9290_v10, %v11850_v28 }
 0x8f2   : > { %v8253_v38 = vadd.f32 %v8252_v13, %v8251_v4  ;;  %v10017_v46 = vpop.eup %10016  ;;  %v5778_v31 = vsel %vm14071_vm2, %v10011_v45, %v5774_v12  ;;  %v5803_v54 = vmul.f32 %v10013_v30, %v5802_v7  ;;  %10020 = vrcp.f32 %v14079_v20 }
 0x8f3   : > { %v8254_v49 = vsel %vm8046_vm12, %v7964_v15, 0.0  ;;  %v17331_v52 = vunpack.c.l.bf16 %v13517_v47  ;;  %v5783_v18 = vsel %vm14034_vm14, %v5782_v36, %v5778_v31  ;;  %v5812_v45 = vor.u32 1.1754944e-38, %v5811_v48 }
 0x8f4   : > { %v8256_v4 = vadd.f32 %v14007_v44, %v8254_v49  ;;  %vm17334_vm0 = vcmask 1045509   ;;  %v17335_v41 = vunpack.c.l.bf16 %v13823_v6  ;;  %v5804_v25 = vadd.f32 %v10013_v30, %v5803_v54 }
 0x8f5   : > { %v14091_v3 = vmul.f32 %v17331_v52, %v12443_v11  ;;  %v8712_v40 = vsel %vm17334_vm0, %v13999_v19, %v8711_v42  ;;  %vm5810_vm10 = vcmp.eq.f32.partialorder %v5809_v8, 8.507059e+37  ;;  %v5824_v17 = vand.u32 2147483647, %v14079_v20 }
 0x8f6   : > { %v7840_v55 = vmul.f32 %v17335_v41, %v5783_v18  ;;  %v8257_v44 = vrot.slane %v8256_v4, 4  ;;  %v14108_v36 = vadd.f32 1.0, %v10017_v46  ;;  %10022 = vpow2.f32 %v9089_v16 }
 0x8f7   : > { %v8713_v21 = vsel %vm8697_vm4, %v8253_v38, %v8712_v40  ;;  %v5808_v43 = vsel %vm14099_vm6, %v10013_v30, %v5804_v25  ;;  %v5826_v48 = vand.u32 2147483648, %v14079_v20  ;;  %v9091_v13 = vmul.f32 -1.442695, %v4437_v37  ;;  %v10019_v19 = vpop.eup %10018 }
 0x8f8   : > { %v8258_v42 = vadd.f32 %v8257_v44, %v8256_v4  ;;  %v5813_v51 = vsel %vm5810_vm10, %v5812_v45, %v5808_v43  ;;  %vm5820_vm9 = vweird.f32 %v14079_v20  ;;  %10024 = vrcp.f32 %v14108_v36  ;;  %v10021_v8 = vpop.eup %10020 }
 0x8f9   : > { %v7968_v53 = vmul.f32 %v7840_v55, %v7289_v22  ;;  %v17336_v61 = vunpack.c.l.bf16 %v13826_v32  ;;  %v5764_v12 = vand.u32 2147483647, %v14108_v36  ;;  %v5766_v30 = vand.u32 2147483648, %v14108_v36  ;;  %9770 = vset.pattern.permute.xlu2 %v11784_v39  ;;  %9769 = vset.pattern.permute.xlu1 %v11800_v33 }
 0x8fa   : > { %v8259_v7 = vrot.slane %v8258_v42, 2  ;;  %v5816_v38 = vmul.f32 %v10021_v8, %v14079_v20  ;;  %vm14121_vm7 = vcmp.eq.f32.partialorder %v5824_v17, 8.507059e+37  ;;  %v14125_v37 = vadd.f32 1.0, %v10019_v19 }
 0x8fb   : > { %v7842_v15 = vmul.f32 %v17336_v61, %v5813_v51  ;;  %v5827_v46 = vor.u32 1.1754944e-38, %v5826_v48  ;;  %vm5760_vm5 = vweird.f32 %v14108_v36  ;;  %10026 = vpow2.f32 %v9091_v13  ;;  %v6952_v13 = vld [vmem:[%s10948_s22 + $0x10] sm:$0xff]  ;;  %v14157_v61 = vld [vmem:[%s11789_s23 + $0x28] sm:$0xff] }
 0x8fc   : > { %v10023_v49 = vpop.eup %10022  ;;  %v8260_v31 = vadd.f32 %v8259_v7, %v8258_v42  ;;  %v5817_v54 = vsub.f32 1.0, %v5816_v38  ;;  %vm5821_vm14 = vweird.f32 %v10021_v8  ;;  %10028 = vrcp.f32 %v14125_v37  ;;  %v7282_v38 = vpop.permute.xlu1 %7281 }
 0x8fd   : > { %v7970_v22 = vmul.f32 %v7842_v15, %v7302_v62  ;;  %v14132_v52 = vsel %vm8046_vm12, %v7968_v53, 0.0  ;;  %vm14134_vm8 = vcmp.eq.f32.partialorder %v5764_v12, 8.507059e+37  ;;  %v5767_v18 = vor.u32 1.1754944e-38, %v5766_v30  ;;  %vm14145_vm13 = vmor %vm5820_vm9, %vm5821_vm14 }
 0x8fe   : > { %v14138_v63 = vadd.f32 1.0, %v10023_v49  ;;  %v10025_v45 = vpop.eup %10024  ;;  %v8261_v40 = vrot.slane %v8260_v31, 1  ;;  %v5818_v41 = vmul.f32 %v10021_v8, %v5817_v54  ;;  %vm5790_vm3 = vweird.f32 %v14125_v37 }
 0x8ff   : > { %v9285_v55 = vunpack.c.l.bf16 %v14049_v1  ;;  %v8281_v25 = vsel %vm8046_vm12, %v7970_v22, 0.0  ;;  %v5756_v17 = vmul.f32 %v10025_v45, %v14108_v36  ;;  %v5794_v43 = vand.u32 2147483647, %v14125_v37 }
 0x900   : > { %v5796_v48 = vand.u32 2147483648, %v14125_v37  ;;  %v8262_v19 = vadd.f32 %v8261_v40, %v8260_v31  ;;  %v5819_v42 = vadd.f32 %v10021_v8, %v5818_v41  ;;  %vm5761_vm1 = vweird.f32 %v10025_v45  ;;  %v7308_v40 = vpop.permute.xlu0 %7307 }
 0x901   : > { %10030 = vrcp.f32 %v14138_v63  ;;  %v10027_v62 = vpop.eup %10026  ;;  %v5757_v51 = vsub.f32 1.0, %v5756_v17  ;;  %v5854_v20 = vand.u32 2147483647, %v14138_v63  ;;  %v5856_v53 = vand.u32 2147483648, %v14138_v63  ;;  %vm14178_vm15 = vmor %vm5760_vm5, %vm5761_vm1 }
 0x902   : > { %v7478_v15 = vperm.slane %v14157_v61, 0  ;;  %v10029_v12 = vpop.eup %10028  ;;  %v8714_v30 = vsel %vm17023_vm11, %v8262_v19, %v8713_v21  ;;  %v5823_v7 = vsel %vm14145_vm13, %v10021_v8, %v5819_v42  ;;  %v14163_v22 = vadd.f32 1.0, %v10027_v62 }
 0x903   : > { %v4434_v49 = vmul.f32 %v9285_v55, %v11850_v28  ;;  %v17343_v31 = vperm.slane %v17302_v29, 7  ;;  %v8760_v54 = vadd.f32 %v8714_v30, %v6952_v13  ;;  %v5828_v41 = vsel %vm14121_vm7, %v5827_v46, %v5823_v7  ;;  %v14201_v30 = vld [vmem:[%s10902_s1 + $0xf0] sm:$0xff]  }
 0x904   : > { %v5758_v21 = vmul.f32 %v10025_v45, %v5757_v51  ;;  %v5786_v44 = vmul.f32 %v10029_v12, %v14125_v37  ;;  %7483 = vperm.xlu2 %9770, %v7478_v15   ;;  %v7843_v8 = vmul.f32 %v9282_v35, %v5828_v41  ;;  %vm14182_vm2 = vcmp.eq.f32.partialorder %v5794_v43, 8.507059e+37 }
 0x905   : > { %7476 = vperm.xlu1 %9769, %v17343_v31   ;;  %v5797_v16 = vor.u32 1.1754944e-38, %v5796_v48  ;;  %v9289_v46 = vunpack.c.l.bf16 %v14052_v9  ;;  %vm6345_vm6 = vweird.f32 %v13012_v59  ;;  %vm6346_vm0 = vweird.f32 %v13069_v50  ;;  %8768 = vst.msk [vmem:[%s10948_s22 + $0x10] sm:$0xff] %vm8046_vm12, %v8760_v54  ;;  %v14278_v48 = vld [vmem:[%s10902_s1 + $0xf8] sm:$0xff]  }
 0x906   : > { %v5759_v32 = vadd.f32 %v10025_v45, %v5758_v21  ;;  %v5787_v35 = vsub.f32 1.0, %v5786_v44  ;;  %vm5791_vm10 = vweird.f32 %v10029_v12  ;;  %10032 = vrcp.f32 %v14163_v22 }
 0x907   : > { %v10031_v36 = vpop.eup %10030  ;;  %v7971_v43 = vmul.f32 %v7843_v8, %v7308_v40  ;;  %vm5850_vm9 = vweird.f32 %v14138_v63  ;;  %vm14193_vm7 = vcmp.eq.f32.partialorder %v5854_v20, 8.507059e+37  ;;  %v9088_v13 = vmul.f32 -1.442695, %v4434_v49  ;;  %vm14208_vm5 = vmor %vm5790_vm3, %vm5791_vm10  ;;  %v7295_v8 = vpop.permute.xlu1 %7294 }
 0x908   : > { %v5763_v19 = vsel %vm14178_vm15, %v10025_v45, %v5759_v32  ;;  %v5788_v42 = vmul.f32 %v10029_v12, %v5787_v35  ;;  %v5846_v62 = vmul.f32 %v10031_v36, %v14138_v63  ;;  %v5857_v51 = vor.u32 1.1754944e-38, %v5856_v53  ;;  %vm14257_vm15 = vmor %vm6345_vm6, %vm6346_vm0 }
 0x909   : > { %v8282_v7 = vsel %vm8046_vm12, %v7971_v43, 0.0  ;;  %v5768_v31 = vsel %vm14134_vm8, %v5767_v18, %v5763_v19  ;;  %vm5851_vm14 = vweird.f32 %v10031_v36  ;;  %vm5880_vm13 = vweird.f32 %v14163_v22 }
 0x90a   : > { %v8283_v45 = vadd.f32 %v8282_v7, %v8281_v25  ;;  %v7839_v53 = vmul.f32 %v9274_v27, %v5768_v31  ;;  %v5789_v49 = vadd.f32 %v10029_v12, %v5788_v42  ;;  %v5847_v54 = vsub.f32 1.0, %v5846_v62  ;;  %vm14235_vm3 = vmor %vm5850_vm9, %vm5851_vm14 }
 0x90b   : > { %10034 = vpow2.f32 %v9088_v13  ;;  %v7491_v40 = vperm.slane %v14157_v61, 1  ;;  %v4436_v37 = vmul.f32 %v9289_v46, %v11850_v28  ;;  %v9297_v4 = vunpack.c.l.bf16 %v14201_v30 }
 0x90c   : > { %v14220_v18 = vpop.eup %10032  ;;  %v8284_v41 = vrot.slane %v8283_v45, 4  ;;  %v7967_v21 = vmul.f32 %v7839_v53, %v7282_v38  ;;  %v5793_v60 = vsel %vm14208_vm5, %v10029_v12, %v5789_v49  ;;  %v5848_v27 = vmul.f32 %v10031_v36, %v5847_v54 }
 0x90d   : > { %7489 = vperm.xlu1 %9769, %v7478_v15   ;;  %v17352_v25 = vand.u32 2147483647, %v13012_v59  ;;  %v5798_v17 = vsel %vm14182_vm2, %v5797_v16, %v5793_v60  ;;  %v5876_v12 = vmul.f32 %v14220_v18, %v14163_v22  ;;  %vm5881_vm1 = vweird.f32 %v14220_v18  ;;  %7502 = vperm.xlu0 %9785, %v7491_v40  }
 0x90e   : > { %7496 = vperm.xlu2 %9770, %v7491_v40   ;;  %v9090_v38 = vmul.f32 -1.442695, %v4436_v37  ;;  %v8285_v32 = vadd.f32 %v8284_v41, %v8283_v45  ;;  %v8264_v35 = vsel %vm8046_vm12, %v7967_v21, 0.0  ;;  %v7841_v29 = vmul.f32 %v9278_v2, %v5798_v17  ;;  %vm14271_vm2 = vmor %vm5880_vm13, %vm5881_vm1  ;;  %v7321_v37 = vpop.permute.xlu2 %7320 }
 0x90f   : > { %vm14226_vm8 = vcmp.eq.f32.partialorder %v17352_v25, 8.507059e+37  ;;  %v5849_v16 = vadd.f32 %v10031_v36, %v5848_v27  ;;  %v8265_v63 = vadd.f32 %v8264_v35, %v12878_v34  ;;  %v5877_v43 = vsub.f32 1.0, %v5876_v12 }
 0x910   : > { %10036 = vpow2.f32 %v9090_v38  ;;  %v4440_v13 = vmul.f32 %v9297_v4, %v11850_v28  ;;  %v7969_v19 = vmul.f32 %v7841_v29, %v7295_v8  ;;  %v5884_v62 = vand.u32 2147483647, %v14163_v22 }
 0x911   : > { %v5853_v42 = vsel %vm14235_vm3, %v10031_v36, %v5849_v16  ;;  %v5886_v7 = vand.u32 2147483648, %v14163_v22  ;;  %v10035_v6 = vpop.eup %10034  ;;  %v8266_v2 = vrot.slane %v8265_v63, 4  ;;  %v5878_v20 = vmul.f32 %v14220_v18, %v5877_v43 }
 0x912   : > { %v5858_v31 = vsel %vm14193_vm7, %v5857_v51, %v5853_v42  ;;  %v9094_v36 = vmul.f32 -1.442695, %v4440_v13  ;;  %v8286_v45 = vrot.slane %v8285_v32, 2  ;;  %v8273_v53 = vsel %vm8046_vm12, %v7969_v19, 0.0 }
 0x913   : > { %v7845_v49 = vmul.f32 %v9286_v57, %v5858_v31  ;;  %v14275_v54 = vadd.f32 1.0, %v10035_v6  ;;  %v8267_v51 = vadd.f32 %v8266_v2, %v8265_v63  ;;  %v8274_v40 = vadd.f32 %v8273_v53, %v14132_v52 }
 0x914   : > { %v5879_v41 = vadd.f32 %v14220_v18, %v5878_v20  ;;  %10038 = vpow2.f32 %v9094_v36  ;;  %v6348_v57 = vsel %vm14257_vm15, %v13069_v50, %v13537_v14  ;;  %vm14287_vm6 = vcmp.eq.f32.partialorder %v5884_v62, 8.507059e+37  ;;  %v14343_v36 = vld [vmem:[%s10902_s1 + $0xe8] sm:$0xff]  }
 0x915   : > { %9771 = vset.pattern.permute.xlu1 %v11784_v39  ;;  %v5887_v21 = vor.u32 1.1754944e-38, %v5886_v7  ;;  %10040 = vrcp.f32 %v14275_v54  ;;  %v8268_v52 = vrot.slane %v8267_v51, 2  ;;  %v8275_v27 = vrot.slane %v8274_v40, 4 }
 0x916   : > { %v10037_v60 = vpop.eup %10036  ;;  %v5883_v25 = vsel %vm14271_vm2, %v14220_v18, %v5879_v41  ;;  %9772 = vset.pattern.permute.xlu2 %v11800_v33  ;;  %v9301_v8 = vunpack.c.l.bf16 %v14278_v48  ;;  %v14299_v50 = vsel %vm8046_vm12, %v12914_v56, 0.0  ;;  %v14303_v14 = vsel %vm8046_vm12, %v13102_v5, 0.0  ;;  %v7334_v53 = vpop.permute.xlu2 %7333 }
 0x917   : > { %v6499_v17 = vand.u32 2147483647, %v13076_v26  ;;  %v14306_v15 = vadd.f32 %v8286_v45, %v8285_v32  ;;  %v6492_v12 = vsub.f32 1.0, %v13806_v58  ;;  %v17363_v18 = vand.u32 2147483648, %v13076_v26 }
 0x918   : > { %v8276_v35 = vadd.f32 %v8275_v27, %v8274_v40  ;;  %v7973_v29 = vmul.f32 %v7845_v49, %v7321_v37  ;;  %v14316_v56 = vsel %vm14226_vm8, %v13096_v24, %v6348_v57  ;;  %v8269_v16 = vadd.f32 %v8268_v52, %v8267_v51  ;;  %v7315_v27 = vpop.permute.xlu1 %7314 }
 0x919   : > { %v14311_v38 = vor.u32 1.1754944e-38, %v17363_v18  ;;  %v5888_v5 = vsel %vm14287_vm6, %v5887_v21, %v5883_v25  ;;  %v14320_v63 = vadd.f32 1.0, %v10037_v60  ;;  %v14323_v43 = vmul.f32 -1.442695, %v14091_v3 }
 0x91a   : > { %v10039_v32 = vpop.eup %10038  ;;  %v8277_v13 = vrot.slane %v8276_v35, 2  ;;  %v4442_v19 = vmul.f32 %v9301_v8, %v11850_v28  ;;  %v9302_v44 = vunpack.c.h.bf16 %v14278_v48  ;;  %v8288_v42 = vrot.slane %v14306_v15, 1 }
 0x91b   : > { %v10041_v24 = vpop.eup %10040  ;;  %v5839_v62 = vand.u32 2147483647, %v14275_v54  ;;  %v5841_v7 = vand.u32 2147483648, %v14275_v54  ;;  %10042 = vrcp.f32 %v14320_v63  ;;  %v14334_v3 = vsel %vm8046_vm12, %v7973_v29, 0.0 }
 0x91c   : > { %v7847_v6 = vmul.f32 %v9290_v10, %v5888_v5  ;;  %v5831_v34 = vmul.f32 %v10041_v24, %v14275_v54  ;;  %vm5835_vm0 = vweird.f32 %v14275_v54  ;;  %v8270_v2 = vrot.slane %v8269_v16, 1 }
 0x91d   : > { %v8278_v31 = vadd.f32 %v8277_v13, %v8276_v35  ;;  %v14340_v20 = vadd.f32 1.0, %v10039_v32  ;;  %v9294_v45 = vunpack.c.h.bf16 %v14343_v36  ;;  %vm5836_vm10 = vweird.f32 %v10041_v24 }
 0x91e   : > { %v5832_v49 = vsub.f32 1.0, %v5831_v34  ;;  %v9096_v59 = vmul.f32 -1.442695, %v4442_v19  ;;  %v4443_v10 = vmul.f32 %v9302_v44, %v11850_v28  ;;  %vm14349_vm9 = vcmp.eq.f32.partialorder %v5839_v62, 8.507059e+37  ;;  %vm14359_vm7 = vmor %vm5835_vm0, %vm5836_vm10 }
 0x91f   : > { %v5842_v40 = vor.u32 1.1754944e-38, %v5841_v7  ;;  %v5869_v37 = vand.u32 2147483647, %v14320_v63  ;;  %10044 = vrcp.f32 %v14340_v20  ;;  %v5871_v57 = vand.u32 2147483648, %v14320_v63 }
 0x920   : > { %v5833_v41 = vmul.f32 %v10041_v24, %v5832_v49  ;;  %10046 = vpow2.f32 %v9096_v59  ;;  %v9097_v22 = vmul.f32 -1.442695, %v4443_v10  ;;  %v8279_v60 = vrot.slane %v8278_v31, 1 }
 0x921   : > { %v10043_v21 = vpop.eup %10042  ;;  %v7975_v52 = vmul.f32 %v7847_v6, %v7334_v53  ;;  %v7504_v18 = vperm.slane %v14157_v61, 2  ;;  %v4439_v35 = vmul.f32 %v9294_v45, %v11850_v28  ;;  %v8271_v29 = vadd.f32 %v8270_v2, %v8269_v16 }
 0x922   : > { %v5834_v5 = vadd.f32 %v10041_v24, %v5833_v41  ;;  %v5861_v32 = vmul.f32 %v10043_v21, %v14320_v63  ;;  %vm5865_vm5 = vweird.f32 %v14320_v63  ;;  %vm14369_vm14 = vcmp.eq.f32.partialorder %v5869_v37, 8.507059e+37  ;;  %v14389_v37 = vld [vmem:[%s10902_s1 + $0x100] sm:$0xff]  }
 0x923   : > { %10048 = vpow2.f32 %v9097_v22  ;;  %7515 = vperm.xlu2 %9772, %v7504_v18   ;;  %v9093_v54 = vmul.f32 -1.442695, %v4439_v35  ;;  %7509 = vperm.xlu1 %9771, %v7504_v18   ;;  %v9298_v19 = vunpack.c.h.bf16 %v14201_v30  ;;  %vm5866_vm13 = vweird.f32 %v10043_v21 }
 0x924   : > { %v5838_v62 = vsel %vm14359_vm7, %v10041_v24, %v5834_v5  ;;  %v5862_v16 = vsub.f32 1.0, %v5861_v32  ;;  %v5872_v7 = vor.u32 1.1754944e-38, %v5871_v57  ;;  %v8280_v34 = vadd.f32 %v8279_v60, %v8278_v31  ;;  %vm14393_vm3 = vmor %vm5865_vm5, %vm5866_vm13 }
 0x925   : > { %v14376_v6 = vpop.eup %10044  ;;  %v5843_v2 = vsel %vm14349_vm9, %v5842_v40, %v5838_v62  ;;  %10050 = vpow2.f32 %v9093_v54  ;;  %v4441_v53 = vmul.f32 %v9298_v19, %v11850_v28  ;;  %vm5925_vm8 = vweird.f32 %v14340_v20 }
 0x926   : > { %v10047_v49 = vpop.eup %10046  ;;  %v7844_v59 = vmul.f32 %v9285_v55, %v5843_v2  ;;  %v5863_v10 = vmul.f32 %v10043_v21, %v5862_v16  ;;  %v5921_v24 = vmul.f32 %v14376_v6, %v14340_v20  ;;  %vm5926_vm1 = vweird.f32 %v14376_v6  ;;  %v7328_v16 = vpop.permute.xlu1 %7327 }
 0x927   : > { %v5929_v28 = vand.u32 2147483647, %v14340_v20  ;;  %v5931_v1 = vand.u32 2147483648, %v14340_v20  ;;  %v14400_v55 = vadd.f32 1.0, %v10047_v49  ;;  %v7517_v57 = vperm.slane %v14157_v61, 3  ;;  %vm14423_vm2 = vmor %vm5925_vm8, %vm5926_vm1 }
 0x928   : > { %v7972_v51 = vmul.f32 %v7844_v59, %v7315_v27  ;;  %v5864_v40 = vadd.f32 %v10043_v21, %v5863_v10  ;;  %v5922_v41 = vsub.f32 1.0, %v5921_v24  ;;  %vm17372_vm15 = vcmask 1041409   ;;  %v7354_v59 = vpop.permute.xlu2 %7353 }
 0x929   : > { %v10049_v22 = vpop.eup %10048  ;;  %v8715_v63 = vsel %vm17372_vm15, %v8280_v34, %v8271_v29  ;;  %10052 = vrcp.f32 %v14400_v55  ;;  %v9095_v60 = vmul.f32 -1.442695, %v4441_v53  ;;  %v9306_v25 = vunpack.c.h.bf16 %v14389_v37 }
 0x92a   : > { %v8290_v18 = vsel %vm8046_vm12, %v7972_v51, 0.0  ;;  %v5868_v35 = vsel %vm14393_vm3, %v10043_v21, %v5864_v40  ;;  %v5923_v27 = vmul.f32 %v14376_v6, %v5922_v41  ;;  %v14410_v5 = vadd.f32 1.0, %v10049_v22 }
 0x92b   : > { %v10051_v32 = vpop.eup %10050  ;;  %v8289_v29 = vadd.f32 %v8288_v42, %v14306_v15  ;;  %v8300_v54 = vsel %vm8046_vm12, %v7975_v52, 0.0  ;;  %v8292_v62 = vadd.f32 %v14334_v3, %v8290_v18  ;;  %v5873_v34 = vsel %vm14369_vm14, %v5872_v7, %v5868_v35  ;;  %7528 = vperm.xlu2 %9772, %v7517_v57   ;;  %7522 = vperm.xlu1 %9771, %v7517_v57   ;;  %v14436_v52 = vld [vmem:[%s10902_s1 + $0x108] sm:$0xff]  }
 0x92c   : > { %v7846_v15 = vmul.f32 %v9289_v46, %v5873_v34  ;;  %v5924_v42 = vadd.f32 %v14376_v6, %v5923_v27  ;;  %vm14430_vm6 = vcmp.eq.f32.partialorder %v5929_v28, 8.507059e+37  ;;  %10054 = vrcp.f32 %v14410_v5 }
 0x92d   : > { %v8293_v20 = vrot.slane %v8292_v62, 4  ;;  %vm17377_vm0 = vcmask 1042434   ;;  %v5932_v7 = vor.u32 1.1754944e-38, %v5931_v1  ;;  %v14441_v2 = vadd.f32 1.0, %v10051_v32 }
 0x92e   : > { %v14439_v13 = vsel %vm17377_vm0, %v8289_v29, %v8715_v63  ;;  %v7974_v53 = vmul.f32 %v7846_v15, %v7328_v16  ;;  %v5928_v9 = vsel %vm14423_vm2, %v14376_v6, %v5924_v42  ;;  %10056 = vpow2.f32 %v9095_v60 }
 0x92f   : > { %v4445_v46 = vmul.f32 %v9306_v25, %v12443_v11  ;;  %v10053_v49 = vpop.eup %10052  ;;  %v5959_v10 = vand.u32 2147483647, %v14400_v55  ;;  %v5961_v24 = vand.u32 2147483648, %v14400_v55  ;;  %v9310_v31 = vunpack.c.h.bf16 %v14436_v52 }
 0x930   : > { %v9305_v28 = vunpack.c.l.bf16 %v14389_v37  ;;  %v8299_v1 = vsel %vm8046_vm12, %v7974_v53, 0.0  ;;  %v5951_v51 = vmul.f32 %v10053_v49, %v14400_v55  ;;  %vm5955_vm10 = vweird.f32 %v14400_v55 }
 0x931   : > { %v5974_v6 = vand.u32 2147483647, %v14410_v5  ;;  %v8294_v40 = vadd.f32 %v8293_v20, %v8292_v62  ;;  %v5933_v41 = vsel %vm14430_vm6, %v5932_v7, %v5928_v9  ;;  %v5976_v57 = vand.u32 2147483648, %v14410_v5 }
 0x932   : > { %10058 = vrcp.f32 %v14441_v2  ;;  %v10055_v22 = vpop.eup %10054  ;;  %v8301_v63 = vadd.f32 %v8300_v54, %v8299_v1  ;;  %v5952_v60 = vsub.f32 1.0, %v5951_v51  ;;  %vm5956_vm9 = vweird.f32 %v10053_v49 }
 0x933   : > { %v9099_v18 = vmul.f32 -1.442695, %v4445_v46  ;;  %vm14461_vm7 = vcmp.eq.f32.partialorder %v5959_v10, 8.507059e+37  ;;  %v5962_v27 = vor.u32 1.1754944e-38, %v5961_v24  ;;  %v5966_v32 = vmul.f32 %v10055_v22, %v14410_v5  ;;  %9774 = vset.pattern.permute.xlu2 %v11784_v39  ;;  %9773 = vset.pattern.permute.xlu1 %v11800_v33  ;;  %vm14480_vm13 = vmor %vm5955_vm10, %vm5956_vm9 }
 0x934   : > { %v4447_v29 = vmul.f32 %v9310_v31, %v12443_v11  ;;  %v10057_v62 = vpop.eup %10056  ;;  %v7850_v54 = vmul.f32 %v9297_v4, %v5933_v41  ;;  %v5953_v16 = vmul.f32 %v10053_v49, %v5952_v60  ;;  %vm5970_vm5 = vweird.f32 %v14410_v5 }
 0x935   : > { %vm14474_vm14 = vcmp.eq.f32.partialorder %v5974_v6, 8.507059e+37  ;;  %v8295_v21 = vrot.slane %v8294_v40, 2  ;;  %v5967_v42 = vsub.f32 1.0, %v5966_v32  ;;  %vm5971_vm8 = vweird.f32 %v10055_v22 }
 0x936   : > { %v14484_v3 = vadd.f32 1.0, %v10057_v62  ;;  %v8302_v20 = vrot.slane %v8301_v63, 4  ;;  %v5954_v4 = vadd.f32 %v10053_v49, %v5953_v16  ;;  %v5977_v7 = vor.u32 1.1754944e-38, %v5976_v57  ;;  %vm14492_vm3 = vmor %vm5970_vm5, %vm5971_vm8  ;;  %v7367_v57 = vpop.permute.xlu2 %7366 }
 0x937   : > { %10060 = vpow2.f32 %v9099_v18  ;;  %v5968_v9 = vmul.f32 %v10055_v22, %v5967_v42  ;;  %v5914_v46 = vand.u32 2147483647, %v14441_v2  ;;  %v9101_v10 = vmul.f32 -1.442695, %v4447_v29 }
 0x938   : > { %v10059_v53 = vpop.eup %10058  ;;  %10062 = vrcp.f32 %v14484_v3  ;;  %v5958_v55 = vsel %vm14480_vm13, %v10053_v49, %v5954_v4  ;;  %vm5910_vm1 = vweird.f32 %v14441_v2  ;;  %v5916_v51 = vand.u32 2147483648, %v14441_v2 }
 0x939   : > { %v5906_v1 = vmul.f32 %v10059_v53, %v14441_v2  ;;  %v8296_v6 = vadd.f32 %v8295_v21, %v8294_v40  ;;  %v7978_v41 = vmul.f32 %v7850_v54, %v7354_v59  ;;  %v5963_v60 = vsel %vm14461_vm7, %v5962_v27, %v5958_v55  ;;  %v17388_v40 = vld [vmem:[#allocation35_spill] sm:$0xff]  ;;  %v7373_v54 = vpop.permute.xlu0 %7372 }
 0x93a   : > { %v5969_v18 = vadd.f32 %v10055_v22, %v5968_v9  ;;  %v8303_v49 = vadd.f32 %v8302_v20, %v8301_v63  ;;  %v7852_v5 = vmul.f32 %v9301_v8, %v5963_v60  ;;  %vm5911_vm15 = vweird.f32 %v10059_v53  ;;  %v7347_v20 = vpop.permute.xlu1 %7346 }
 0x93b   : > { %v5907_v32 = vsub.f32 1.0, %v5906_v1  ;;  %vm14505_vm2 = vcmp.eq.f32.partialorder %v5914_v46, 8.507059e+37  ;;  %v7543_v59 = vperm.slane %v14157_v61, 5  ;;  %10064 = vpow2.f32 %v9101_v10  ;;  %vm14519_vm6 = vmor %vm5910_vm1, %vm5911_vm15 }
 0x93c   : > { %v5973_v29 = vsel %vm14492_vm3, %v10055_v22, %v5969_v18  ;;  %v17389_v35 = vperm.slane %v17388_v40, 4  ;;  %v7980_v63 = vmul.f32 %v7852_v5, %v7367_v57  ;;  %v5917_v21 = vor.u32 1.1754944e-38, %v5916_v51 }
 0x93d   : > { %v10061_v27 = vpop.eup %10060  ;;  %v5978_v8 = vsel %vm14474_vm14, %v5977_v7, %v5973_v29  ;;  %v5908_v16 = vmul.f32 %v10059_v53, %v5907_v32  ;;  %v8297_v22 = vrot.slane %v8296_v6, 1  ;;  %7548 = vperm.xlu2 %9774, %v7543_v59   ;;  %v4444_v34 = vmul.f32 %v9305_v28, %v12443_v11 }
 0x93e   : > { %7541 = vperm.xlu1 %9773, %v17389_v35   ;;  %v10063_v15 = vpop.eup %10062  ;;  %v7853_v42 = vmul.f32 %v9302_v44, %v5978_v8  ;;  %v14523_v9 = vadd.f32 1.0, %v10061_v27  ;;  %v8304_v7 = vrot.slane %v8303_v49, 2  ;;  %vm5940_vm0 = vweird.f32 %v14484_v3 }
 0x93f   : > { %v5909_v46 = vadd.f32 %v10059_v53, %v5908_v16  ;;  %v5936_v48 = vmul.f32 %v10063_v15, %v14484_v3  ;;  %v8326_v44 = vsel %vm8046_vm12, %v7980_v63, 0.0  ;;  %v5946_v10 = vand.u32 2147483648, %v14484_v3 }
 0x940   : > { %v7981_v2 = vmul.f32 %v7853_v42, %v7373_v54  ;;  %10066 = vrcp.f32 %v14523_v9  ;;  %vm5941_vm10 = vweird.f32 %v10063_v15  ;;  %v5944_v1 = vand.u32 2147483647, %v14484_v3 }
 0x941   : > { %v5913_v55 = vsel %vm14519_vm6, %v10059_v53, %v5909_v46  ;;  %v5937_v24 = vsub.f32 1.0, %v5936_v48  ;;  %v10065_v51 = vpop.eup %10064  ;;  %v9098_v18 = vmul.f32 -1.442695, %v4444_v34  ;;  %v7556_v5 = vperm.slane %v14157_v61, 6  ;;  %v14543_v53 = vld [vmem:[%s10902_s1 + $0x118] sm:$0xff]   ;;  %vm14547_vm9 = vmor %vm5940_vm0, %vm5941_vm10  ;;  %v14568_v46 = vld [vmem:[%s10902_s1 + $0x120] sm:$0xff]  }
 0x942   : > { %v8327_v57 = vsel %vm8046_vm12, %v7981_v2, 0.0  ;;  %v5918_v60 = vsel %vm14505_vm2, %v5917_v21, %v5913_v55  ;;  %v8298_v32 = vadd.f32 %v8297_v22, %v8296_v6  ;;  %v8305_v27 = vadd.f32 %v8304_v7, %v8303_v49  ;;  %v7360_v34 = vpop.permute.xlu1 %7359 }
 0x943   : > { %v8328_v29 = vadd.f32 %v8327_v57, %v8326_v44  ;;  %v7849_v40 = vmul.f32 %v9294_v45, %v5918_v60  ;;  %v5938_v35 = vmul.f32 %v10063_v15, %v5937_v24  ;;  %v5947_v62 = vor.u32 1.1754944e-38, %v5946_v10  ;;  %7567 = vperm.xlu0 %9785, %v7556_v5  }
 0x944   : > { %v14551_v54 = vadd.f32 1.0, %v10065_v51  ;;  %10068 = vpow2.f32 %v9098_v18  ;;  %vm5945_vm7 = vcmp.eq.f32.partialorder %v5944_v1, 8.507059e+37  ;;  %v8317_v49 = vsel %vm8046_vm12, %v7978_v41, 0.0 }
 0x945   : > { %v8329_v6 = vrot.slane %v8328_v29, 4  ;;  %v7977_v8 = vmul.f32 %v7849_v40, %v7347_v20  ;;  %v5939_v36 = vadd.f32 %v10063_v15, %v5938_v35  ;;  %7561 = vperm.xlu2 %9774, %v7556_v5   ;;  %v9309_v3 = vunpack.c.l.bf16 %v14436_v52 }
 0x946   : > { %7554 = vperm.xlu1 %9773, %v7543_v59   ;;  %v14553_v45 = vpop.eup %10066  ;;  %10070 = vrcp.f32 %v14551_v54  ;;  %v9317_v16 = vunpack.c.l.bf16 %v14543_v53  ;;  %vm17394_vm5 = vcmask 1043459   ;;  %v8306_v41 = vrot.slane %v8305_v27, 1 }
 0x947   : > { %v8330_v21 = vadd.f32 %v8329_v6, %v8328_v29  ;;  %v8309_v22 = vsel %vm8046_vm12, %v7977_v8, 0.0  ;;  %v5943_v59 = vsel %vm14547_vm9, %v10063_v15, %v5939_v36  ;;  %v5996_v42 = vmul.f32 %v14553_v45, %v14523_v9 }
 0x948   : > { %v8717_v20 = vsel %vm17394_vm5, %v8298_v32, %v14439_v13  ;;  %v8310_v4 = vadd.f32 %v8309_v22, %v12888_v0  ;;  %v5948_v7 = vsel %vm5945_vm7, %v5947_v62, %v5943_v59  ;;  %vm6000_vm14 = vweird.f32 %v14523_v9 }
 0x949   : > { %v7851_v48 = vmul.f32 %v9298_v19, %v5948_v7  ;;  %v5997_v44 = vsub.f32 1.0, %v5996_v42  ;;  %vm6001_vm13 = vweird.f32 %v14553_v45  ;;  %v8331_v2 = vrot.slane %v8330_v21, 2 }
 0x94a   : > { %v10069_v15 = vpop.eup %10068  ;;  %v8311_v10 = vrot.slane %v8310_v4, 4  ;;  %v4446_v13 = vmul.f32 %v9309_v3, %v12443_v11  ;;  %v4450_v0 = vmul.f32 %v9317_v16, %v12443_v11  ;;  %v9321_v24 = vunpack.c.l.bf16 %v14568_v46  ;;  %vm14597_vm8 = vmor %vm6000_vm14, %vm6001_vm13 }
 0x94b   : > { %v7979_v55 = vmul.f32 %v7851_v48, %v7360_v34  ;;  %v5998_v30 = vmul.f32 %v14553_v45, %v5997_v44  ;;  %v14581_v19 = vadd.f32 1.0, %v10069_v15  ;;  %v8307_v51 = vadd.f32 %v8306_v41, %v8305_v27 }
 0x94c   : > { %v14584_v1 = vpop.eup %10070  ;;  %v8312_v57 = vadd.f32 %v8311_v10, %v8310_v4  ;;  %v6004_v60 = vand.u32 2147483647, %v14523_v9  ;;  %v6006_v18 = vand.u32 2147483648, %v14523_v9  ;;  %v9100_v40 = vmul.f32 -1.442695, %v4446_v13 }
 0x94d   : > { %v8318_v5 = vsel %vm8046_vm12, %v7979_v55, 0.0  ;;  %v5999_v32 = vadd.f32 %v14553_v45, %v5998_v30  ;;  %v6026_v29 = vmul.f32 %v14584_v1, %v14551_v54  ;;  %10072 = vrcp.f32 %v14581_v19  ;;  %9776 = vset.pattern.permute.xlu2 %v11800_v33 }
 0x94e   : > { %9775 = vset.pattern.permute.xlu1 %v11784_v39  ;;  %v8313_v35 = vrot.slane %v8312_v57, 2  ;;  %v8319_v63 = vadd.f32 %v8318_v5, %v8317_v49  ;;  %v9104_v62 = vmul.f32 -1.442695, %v4450_v0  ;;  %v8332_v6 = vadd.f32 %v8331_v2, %v8330_v21  ;;  %v7386_v5 = vpop.permute.xlu2 %7385 }
 0x94f   : > { %v6027_v8 = vsub.f32 1.0, %v6026_v29  ;;  %v6034_v36 = vand.u32 2147483647, %v14551_v54  ;;  %v4452_v49 = vmul.f32 %v9321_v24, %v12443_v11  ;;  %vm17397_vm3 = vcmask 1044484  }
 0x950   : > { %v8718_v22 = vsel %vm17397_vm3, %v8307_v51, %v8717_v20  ;;  %v8314_v9 = vadd.f32 %v8313_v35, %v8312_v57  ;;  %v8320_v59 = vrot.slane %v8319_v63, 4  ;;  %vm14608_vm1 = vcmp.eq.f32.partialorder %v6004_v60, 8.507059e+37 }
 0x951   : > { %v6003_v41 = vsel %vm14597_vm8, %v14553_v45, %v5999_v32  ;;  %v6007_v21 = vor.u32 1.1754944e-38, %v6006_v18  ;;  %vm6030_vm15 = vweird.f32 %v14551_v54  ;;  %10074 = vpow2.f32 %v9100_v40 }
 0x952   : > { %v8315_v4 = vrot.slane %v8314_v9, 1  ;;  %v8321_v34 = vadd.f32 %v8320_v59, %v8319_v63  ;;  %v6028_v7 = vmul.f32 %v14584_v1, %v6027_v8  ;;  %10076 = vpow2.f32 %v9104_v62 }
 0x953   : > { %v8333_v20 = vrot.slane %v8332_v6, 1  ;;  %vm14617_vm2 = vcmp.eq.f32.partialorder %v6034_v36, 8.507059e+37  ;;  %v6036_v44 = vand.u32 2147483648, %v14551_v54  ;;  %v9106_v15 = vmul.f32 -1.442695, %v4452_v49  ;;  %v10073_v2 = vpop.eup %10072 }
 0x954   : > { %v8316_v10 = vadd.f32 %v8315_v4, %v8314_v9  ;;  %v8322_v45 = vrot.slane %v8321_v34, 2  ;;  %vm6031_vm6 = vweird.f32 %v14584_v1  ;;  %v9322_v13 = vunpack.c.h.bf16 %v14568_v46  ;;  %v14648_v9 = vld [vmem:[%s10902_s1 + $0x110] sm:$0xff]  }
 0x955   : > { %v6008_v0 = vsel %vm14608_vm1, %v6007_v21, %v6003_v41  ;;  %v5981_v55 = vmul.f32 %v10073_v2, %v14581_v19  ;;  %vm5985_vm0 = vweird.f32 %v14581_v19  ;;  %v5991_v30 = vand.u32 2147483648, %v14581_v19  ;;  %vm14633_vm9 = vmor %vm6030_vm15, %vm6031_vm6  ;;  %v6953_v21 = vld [vmem:[%s10948_s22 + $0x18] sm:$0xff] }
 0x956   : > { %vm17402_vm10 = vcmask 1045509   ;;  %v8323_v57 = vadd.f32 %v8322_v45, %v8321_v34  ;;  %v6029_v60 = vadd.f32 %v14584_v1, %v6028_v7  ;;  %10078 = vpow2.f32 %v9106_v15 }
 0x957   : > { %v8719_v51 = vsel %vm17402_vm10, %v8316_v10, %v8718_v22  ;;  %v10075_v18 = vpop.eup %10074  ;;  %v5982_v29 = vsub.f32 1.0, %v5981_v55  ;;  %vm5986_vm7 = vweird.f32 %v10073_v2  ;;  %v5989_v40 = vand.u32 2147483647, %v14581_v19 }
 0x958   : > { %v4453_v35 = vmul.f32 %v9322_v13, %v12443_v11  ;;  %v10077_v63 = vpop.eup %10076  ;;  %v8324_v27 = vrot.slane %v8323_v57, 1  ;;  %v7855_v62 = vmul.f32 %v9306_v25, %v6008_v0  ;;  %v6037_v8 = vor.u32 1.1754944e-38, %v6036_v44  ;;  %vm14657_vm5 = vmor %vm5985_vm0, %vm5986_vm7 }
 0x959   : > { %v14643_v54 = vadd.f32 1.0, %v10075_v18  ;;  %v8334_v36 = vadd.f32 %v8333_v20, %v8332_v6  ;;  %v5983_v49 = vmul.f32 %v10073_v2, %v5982_v29  ;;  %v14645_v22 = vadd.f32 1.0, %v10077_v63  ;;  %v17407_v20 = vld [vmem:[#allocation38_spill] sm:$0xff] }
 0x95a   : > { %v9314_v59 = vunpack.c.h.bf16 %v14648_v9  ;;  %v8325_v42 = vadd.f32 %v8324_v27, %v8323_v57  ;;  %v6033_v41 = vsel %vm14633_vm9, %v14584_v1, %v6029_v60  ;;  %v5992_v6 = vor.u32 1.1754944e-38, %v5991_v30 }
 0x95b   : > { %10080 = vrcp.f32 %v14643_v54  ;;  %v5984_v4 = vadd.f32 %v10073_v2, %v5983_v49  ;;  %vm5990_vm14 = vcmp.eq.f32.partialorder %v5989_v40, 8.507059e+37  ;;  %v9107_v34 = vmul.f32 -1.442695, %v4453_v35 }
 0x95c   : > { %10082 = vrcp.f32 %v14645_v22  ;;  %v10079_v7 = vpop.eup %10078  ;;  %v17408_v1 = vunpack.c.l.bf16 %v17407_v20  ;;  %v14670_v19 = vmul.f32 %v13134_v23, %v6492_v12  ;;  %v8720_v15 = vsel %vm8697_vm4, %v8325_v42, %v8719_v51 }
 0x95d   : > { %v7983_v10 = vmul.f32 %v7855_v62, %v7386_v5  ;;  %v8721_v45 = vsel %vm17023_vm11, %v8334_v36, %v8720_v15  ;;  %v6038_v0 = vsel %vm14617_vm2, %v6037_v8, %v6033_v41  ;;  %v5988_v55 = vsel %vm14657_vm5, %v10073_v2, %v5984_v4  ;;  %v14689_v2 = vld [vmem:[%s10902_s1 + $0x128] sm:$0xff]   ;;  %v17409_v5 = vld [vmem:[#allocation40_spill] sm:$0xff] }
 0x95e   : > { %v7878_v44 = vmul.f32 %v17408_v1, %v14316_v56  ;;  %v4449_v58 = vmul.f32 %v9314_v59, %v12443_v11  ;;  %10084 = vpow2.f32 %v14323_v43  ;;  %v8761_v12 = vadd.f32 %v8721_v45, %v6953_v21  ;;  %v7380_v56 = vpop.permute.xlu1 %7379 }
 0x95f   : > { %v5993_v30 = vsel %vm5990_vm14, %v5992_v6, %v5988_v55  ;;  %v14682_v51 = vadd.f32 1.0, %v10079_v7  ;;  %10086 = vpow2.f32 %v9107_v34  ;;  %v7569_v48 = vperm.slane %v14157_v61, 7  ;;  %v14721_v34 = vld [vmem:[%s11789_s23 + $0x30] sm:$0xff] }
 0x960   : > { %v7854_v57 = vmul.f32 %v9305_v28, %v5993_v30  ;;  %v9318_v60 = vunpack.c.h.bf16 %v14543_v53  ;;  %v14692_v32 = vmul.f32 %v7878_v44, %v17409_v5  ;;  %8769 = vst.msk [vmem:[%s10948_s22 + $0x18] sm:$0xff] %vm8046_vm12, %v8761_v12  ;;  %v7857_v43 = vmul.f32 %v9310_v31, %v6038_v0  ;;  %v7399_v28 = vpop.permute.xlu2 %7398 }
 0x961   : > { %v10081_v18 = vpop.eup %10080  ;;  %v6019_v29 = vand.u32 2147483647, %v14643_v54  ;;  %10088 = vrcp.f32 %v14682_v51  ;;  %v8336_v61 = vsel %vm8046_vm12, %v7983_v10, 0.0  ;;  %7580 = vperm.xlu2 %9776, %v7569_v48   ;;  %v9103_v63 = vmul.f32 -1.442695, %v4449_v58  ;;  %7574 = vperm.xlu1 %9775, %v7569_v48  }
 0x962   : > { %v14700_v37 = vpop.eup %10082  ;;  %v7982_v40 = vmul.f32 %v7854_v57, %v7380_v56  ;;  %v6011_v35 = vmul.f32 %v10081_v18, %v14643_v54  ;;  %vm6015_vm13 = vweird.f32 %v14643_v54  ;;  %v6021_v31 = vand.u32 2147483648, %v14643_v54 }
 0x963   : > { %v6071_v27 = vmul.f32 %v14700_v37, %v14645_v22  ;;  %v9326_v62 = vunpack.c.h.bf16 %v14689_v2  ;;  %vm6016_vm8 = vweird.f32 %v10081_v18  ;;  %10090 = vpow2.f32 %v9103_v63 }
 0x964   : > { %v6012_v8 = vsub.f32 1.0, %v6011_v35  ;;  %v4451_v36 = vmul.f32 %v9318_v60, %v12443_v11  ;;  %v14712_v49 = vpop.eup %10084  ;;  %v7985_v42 = vmul.f32 %v7857_v43, %v7399_v28  ;;  %vm14714_vm3 = vcmp.eq.f32.partialorder %v6019_v29, 8.507059e+37  ;;  %vm14727_vm15 = vmor %vm6015_vm13, %vm6016_vm8 }
 0x965   : > { %v6072_v25 = vsub.f32 1.0, %v6071_v27  ;;  %vm6075_vm1 = vweird.f32 %v14645_v22  ;;  %v10087_v6 = vpop.eup %10086  ;;  %v8335_v21 = vsel %vm8046_vm12, %v7982_v40, 0.0  ;;  %v7582_v7 = vperm.slane %v14721_v34, 0 }
 0x966   : > { %v6013_v4 = vmul.f32 %v10081_v18, %v6012_v8  ;;  %v9105_v20 = vmul.f32 -1.442695, %v4451_v36  ;;  %v6022_v15 = vor.u32 1.1754944e-38, %v6021_v31  ;;  %v6079_v10 = vand.u32 2147483647, %v14645_v22  ;;  %v7393_v43 = vpop.permute.xlu1 %7392  ;;  %v14765_v31 = vld [vmem:[%s10902_s1 + $0x130] sm:$0xff]  }
 0x967   : > { %v10089_v1 = vpop.eup %10088  ;;  %v6081_v45 = vand.u32 2147483648, %v14645_v22  ;;  %v14733_v0 = vadd.f32 1.0, %v10087_v6  ;;  %v6073_v58 = vmul.f32 %v14700_v37, %v6072_v25  ;;  %v8337_v56 = vadd.f32 %v8336_v61, %v8335_v21 }
 0x968   : > { %v6014_v55 = vadd.f32 %v10081_v18, %v6013_v4  ;;  %v6101_v12 = vmul.f32 %v10089_v1, %v14682_v51  ;;  %10092 = vpow2.f32 %v9105_v20  ;;  %vm6076_vm2 = vweird.f32 %v14700_v37  ;;  %v14790_v20 = vpop.permute.xlu2 %7418 }
 0x969   : > { %vm6105_vm6 = vweird.f32 %v14682_v51  ;;  %10094 = vrcp.f32 %v14733_v0  ;;  %v10091_v54 = vpop.eup %10090  ;;  %vm6106_vm0 = vweird.f32 %v10089_v1  ;;  %v6111_v48 = vand.u32 2147483648, %v14682_v51  ;;  %7593 = vperm.xlu2 %9776, %v7582_v7   ;;  %7587 = vperm.xlu1 %9775, %v7582_v7   ;;  %vm14760_vm10 = vmor %vm6075_vm1, %vm6076_vm2 }
 0x96a   : > { %v6018_v30 = vsel %vm14727_vm15, %v10081_v18, %v6014_v55  ;;  %v6102_v57 = vsub.f32 1.0, %v6101_v12  ;;  %v14745_v5 = vadd.f32 %v13134_v23, %v14670_v19  ;;  %v6109_v61 = vand.u32 2147483647, %v14682_v51  ;;  %vm14774_vm7 = vmor %vm6105_vm6, %vm6106_vm0 }
 0x96b   : > { %v6023_v29 = vsel %vm14714_vm3, %v6022_v15, %v6018_v30  ;;  %v14750_v28 = vadd.f32 1.0, %v10091_v54  ;;  %v8345_v18 = vsel %vm8046_vm12, %v7985_v42, 0.0  ;;  %v6074_v35 = vadd.f32 %v14700_v37, %v6073_v58 }
 0x96c   : > { %v7856_v40 = vmul.f32 %v9309_v3, %v6023_v29  ;;  %v6103_v63 = vmul.f32 %v10089_v1, %v6102_v57  ;;  %v8338_v27 = vrot.slane %v8337_v56, 4  ;;  %vm14767_vm9 = vcmp.eq.f32.partialorder %v6079_v10, 8.507059e+37 }
 0x96d   : > { %10096 = vrcp.f32 %v14750_v28  ;;  %v4455_v3 = vmul.f32 %v9326_v62, %v12443_v11  ;;  %v6082_v42 = vor.u32 1.1754944e-38, %v6081_v45  ;;  %v6112_v25 = vor.u32 1.1754944e-38, %v6111_v48 }
 0x96e   : > { %v10093_v22 = vpop.eup %10092  ;;  %v7984_v36 = vmul.f32 %v7856_v40, %v7393_v43  ;;  %v6104_v41 = vadd.f32 %v10089_v1, %v6103_v63  ;;  %vm14782_vm5 = vcmp.eq.f32.partialorder %v6109_v61, 8.507059e+37  ;;  %v6124_v51 = vand.u32 2147483647, %v14733_v0 }
 0x96f   : > { %v10095_v6 = vpop.eup %10094  ;;  %v14787_v4 = vadd.f32 1.0, %v10093_v22  ;;  %v9330_v7 = vunpack.c.h.bf16 %v14765_v31  ;;  %v6078_v44 = vsel %vm14760_vm10, %v14700_v37, %v6074_v35  ;;  %v6126_v45 = vand.u32 2147483648, %v14733_v0 }
 0x970   : > { %v6108_v15 = vsel %vm14774_vm7, %v10089_v1, %v6104_v41  ;;  %v6116_v10 = vmul.f32 %v10095_v6, %v14733_v0  ;;  %vm6495_vm14 = vweird.f32 %v13076_v26  ;;  %vm6496_vm13 = vweird.f32 %v13134_v23 }
 0x971   : > { %v14801_v55 = vadd.f32 %v8338_v27, %v8337_v56  ;;  %vm6120_vm8 = vweird.f32 %v14733_v0  ;;  %v9109_v58 = vmul.f32 -1.442695, %v4455_v3  ;;  %v9325_v12 = vunpack.c.l.bf16 %v14689_v2  ;;  %9778 = vset.pattern.permute.xlu2 %v11784_v39  ;;  %9777 = vset.pattern.permute.xlu1 %v11800_v33 }
 0x972   : > { %v8344_v37 = vsel %vm8046_vm12, %v7984_v36, 0.0  ;;  %v6113_v1 = vsel %vm14782_vm5, %v6112_v25, %v6108_v15  ;;  %v6117_v54 = vsub.f32 1.0, %v6116_v10  ;;  %vm6121_vm3 = vweird.f32 %v10095_v6  ;;  %v7412_v15 = vpop.permute.xlu1 %7411  ;;  %vm14881_vm5 = vmor %vm6495_vm14, %vm6496_vm13 }
 0x973   : > { %v10097_v30 = vpop.eup %10096  ;;  %v14812_v56 = vsel %vm14767_vm9, %v6082_v42, %v6078_v44  ;;  %v6064_v57 = vand.u32 2147483647, %v14750_v28  ;;  %v6066_v48 = vand.u32 2147483648, %v14750_v28  ;;  %10098 = vrcp.f32 %v14787_v4  ;;  %vm14828_vm15 = vmor %vm6120_vm8, %vm6121_vm3 }
 0x974   : > { %v6118_v43 = vmul.f32 %v10095_v6, %v6117_v54  ;;  %vm14817_vm1 = vcmp.eq.f32.partialorder %v6124_v51, 8.507059e+37  ;;  %v6127_v61 = vor.u32 1.1754944e-38, %v6126_v45  ;;  %v6056_v40 = vmul.f32 %v10097_v30, %v14750_v28  ;;  %v7432_v45 = vpop.permute.xlu2 %7431  ;;  %v7438_v54 = vpop.permute.xlu0 %7437 }
 0x975   : > { %v14822_v35 = vadd.f32 %v8345_v18, %v8344_v37  ;;  %v7862_v19 = vmul.f32 %v9321_v24, %v6113_v1  ;;  %vm6060_vm2 = vweird.f32 %v14750_v28  ;;  %10100 = vpow2.f32 %v9109_v58 }
 0x976   : > { %v6119_v27 = vadd.f32 %v10095_v6, %v6118_v43  ;;  %v6057_v8 = vsub.f32 1.0, %v6056_v40  ;;  %vm6061_vm6 = vweird.f32 %v10097_v30  ;;  %v7608_v52 = vperm.slane %v14721_v34, 2  ;;  %v17432_v43 = vld [vmem:[#allocation36_spill] sm:$0xff] }
 0x977   : > { %vm14834_vm0 = vcmp.eq.f32.partialorder %v6064_v57, 8.507059e+37  ;;  %v6067_v3 = vor.u32 1.1754944e-38, %v6066_v48  ;;  %v4457_v24 = vmul.f32 %v9330_v7, %v12443_v11  ;;  %v4454_v0 = vmul.f32 %v9325_v12, %v12443_v11  ;;  %vm14860_vm9 = vmor %vm6060_vm2, %vm6061_vm6 }
 0x978   : > { %vm14846_vm10 = vcmp.eq.f32.partialorder %v6499_v17, 8.507059e+37  ;;  %v6123_v36 = vsel %vm14828_vm15, %v10095_v6, %v6119_v27  ;;  %v6058_v42 = vmul.f32 %v10097_v30, %v6057_v8  ;;  %v7621_v41 = vperm.slane %v14721_v34, 3 }
 0x979   : > { %v9329_v25 = vunpack.c.l.bf16 %v14765_v31  ;;  %v10099_v21 = vpop.eup %10098  ;;  %v8347_v51 = vrot.slane %v14822_v35, 4  ;;  %v6128_v44 = vsel %vm14817_vm1, %v6127_v61, %v6123_v36  ;;  %v9111_v6 = vmul.f32 -1.442695, %v4457_v24  ;;  %7613 = vperm.xlu2 %9778, %v7608_v52  }
 0x97a   : > { %v9108_v10 = vmul.f32 -1.442695, %v4454_v0  ;;  %v7863_v58 = vmul.f32 %v9322_v13, %v6128_v44  ;;  %v6059_v37 = vadd.f32 %v10097_v30, %v6058_v42  ;;  %v6086_v1 = vmul.f32 %v10099_v21, %v14787_v4  ;;  %7632 = vperm.xlu0 %9785, %v7621_v41   ;;  %v14895_v42 = vld [vmem:[%s10902_s1 + $0x140] sm:$0xff]  }
 0x97b   : > { %vm6090_vm7 = vweird.f32 %v14787_v4  ;;  %v10101_v28 = vpop.eup %10100  ;;  %v6094_v57 = vand.u32 2147483647, %v14787_v4  ;;  %v6096_v48 = vand.u32 2147483648, %v14787_v4  ;;  %10102 = vpow2.f32 %v9111_v6 }
 0x97c   : > { %v17433_v29 = vperm.slane %v17432_v43, 1  ;;  %v4456_v46 = vmul.f32 %v9329_v25, %v12443_v11  ;;  %v6063_v61 = vsel %vm14860_vm9, %v10097_v30, %v6059_v37  ;;  %v6087_v40 = vsub.f32 1.0, %v6086_v1  ;;  %v7425_v37 = vpop.permute.xlu1 %7424 }
 0x97d   : > { %vm6091_vm8 = vweird.f32 %v10099_v21  ;;  %v14887_v63 = vadd.f32 1.0, %v10101_v28  ;;  %v7990_v27 = vmul.f32 %v7862_v19, %v7432_v45  ;;  %v6068_v8 = vsel %vm14834_vm0, %v6067_v3, %v6063_v61 }
 0x97e   : > { %7606 = vperm.xlu1 %9777, %v17433_v29   ;;  %10104 = vpow2.f32 %v9108_v10  ;;  %v9110_v24 = vmul.f32 -1.442695, %v4456_v46  ;;  %v7991_v0 = vmul.f32 %v7863_v58, %v7438_v54  ;;  %v7859_v26 = vmul.f32 %v9314_v59, %v6068_v8  ;;  %vm14907_vm14 = vmor %vm6090_vm7, %vm6091_vm8 }
 0x97f   : > { %v6088_v36 = vmul.f32 %v10099_v21, %v6087_v40  ;;  %10106 = vrcp.f32 %v14887_v63  ;;  %v6498_v30 = vsel %vm14881_vm5, %v13134_v23, %v14745_v5  ;;  %v8340_v19 = vrot.slane %v14801_v55, 2 }
 0x980   : > { %v7860_v18 = vmul.f32 %v9317_v16, %v14812_v56  ;;  %v6097_v59 = vor.u32 1.1754944e-38, %v6096_v48  ;;  %v7987_v3 = vmul.f32 %v7859_v26, %v7412_v15  ;;  %vm14911_vm13 = vcmp.eq.f32.partialorder %v6094_v57, 8.507059e+37 }
 0x981   : > { %v6089_v44 = vadd.f32 %v10099_v21, %v6088_v36  ;;  %10108 = vpow2.f32 %v9110_v24  ;;  %v10103_v23 = vpop.eup %10102  ;;  %v14917_v5 = vsel %vm8046_vm12, %v14692_v32, 0.0  ;;  %v8348_v16 = vadd.f32 %v8347_v51, %v14822_v35  ;;  %7626 = vperm.xlu2 %9778, %v7621_v41   ;;  %v14968_v24 = vld [vmem:[%s10902_s1 + $0x148] sm:$0xff]  }
 0x982   : > { %v8371_v4 = vsel %vm8046_vm12, %v7990_v27, 0.0  ;;  %v9337_v56 = vunpack.c.l.bf16 %v14895_v42  ;;  %v8372_v6 = vsel %vm8046_vm12, %v7991_v0, 0.0  ;;  %v8354_v15 = vsel %vm8046_vm12, %v7987_v3, 0.0 }
 0x983   : > { %v6093_v10 = vsel %vm14907_vm14, %v10099_v21, %v6089_v44  ;;  %v14926_v45 = vadd.f32 1.0, %v10103_v23  ;;  %v14931_v32 = vsel %vm14846_vm10, %v14311_v38, %v6498_v30  ;;  %v14934_v35 = vadd.f32 1.0, %v14712_v49 }
 0x984   : > { %v10105_v58 = vpop.eup %10104  ;;  %v8355_v51 = vadd.f32 %v8354_v15, %v14299_v50  ;;  %v6098_v1 = vsel %vm14911_vm13, %v6097_v59, %v6093_v10  ;;  %v14942_v41 = vadd.f32 %v8340_v19, %v14801_v55  ;;  %v7988_v22 = vmul.f32 %v7860_v18, %v14790_v20 }
 0x985   : > { %v10107_v21 = vpop.eup %10106  ;;  %v7861_v38 = vmul.f32 %v9318_v60, %v6098_v1  ;;  %10110 = vrcp.f32 %v14926_v45  ;;  %v8349_v49 = vrot.slane %v8348_v16, 2  ;;  %v14948_v50 = vadd.f32 %v8372_v6, %v8371_v4 }
 0x986   : > { %7619 = vperm.xlu1 %9777, %v7608_v52   ;;  %v6146_v28 = vmul.f32 %v10107_v21, %v14887_v63  ;;  %vm6150_vm3 = vweird.f32 %v14887_v63  ;;  %v6154_v55 = vand.u32 2147483647, %v14887_v63  ;;  %v14953_v57 = vadd.f32 1.0, %v10105_v58 }
 0x987   : > { %v10109_v54 = vpop.eup %10108  ;;  %v7989_v52 = vmul.f32 %v7861_v38, %v7425_v37  ;;  %v4460_v53 = vmul.f32 %v9337_v56, %v12443_v11  ;;  %v8356_v60 = vrot.slane %v8355_v51, 4  ;;  %vm6151_vm1 = vweird.f32 %v10107_v21 }
 0x988   : > { %v6147_v20 = vsub.f32 1.0, %v6146_v28  ;;  %v14958_v48 = vadd.f32 1.0, %v10109_v54  ;;  %v8362_v29 = vsel %vm8046_vm12, %v7988_v22, 0.0  ;;  %v6156_v13 = vand.u32 2147483648, %v14887_v63  ;;  %vm14973_vm15 = vmor %vm6150_vm3, %vm6151_vm1 }
 0x989   : > { %v8363_v46 = vsel %vm8046_vm12, %v7989_v52, 0.0  ;;  %10112 = vrcp.f32 %v14953_v57  ;;  %v8342_v61 = vrot.slane %v14942_v41, 1  ;;  %v14965_v40 = vadd.f32 %v8349_v49, %v8348_v16  ;;  %9780 = vset.pattern.permute.xlu2 %v11800_v33 }
 0x98a   : > { %v8364_v27 = vadd.f32 %v8363_v46, %v8362_v29  ;;  %v6148_v8 = vmul.f32 %v10107_v21, %v6147_v20  ;;  %v8374_v26 = vrot.slane %v14948_v50, 4  ;;  %v6184_v30 = vand.u32 2147483647, %v14926_v45 }
 0x98b   : > { %v10111_v0 = vpop.eup %10110  ;;  %10114 = vrcp.f32 %v14958_v48  ;;  %v9114_v19 = vmul.f32 -1.442695, %v4460_v53  ;;  %v8357_v18 = vadd.f32 %v8356_v60, %v8355_v51  ;;  %vm14980_vm2 = vcmp.eq.f32.partialorder %v6154_v55, 8.507059e+37  ;;  %v7445_v55 = vpop.permute.xlu1 %7444 }
 0x98c   : > { %v6149_v9 = vadd.f32 %v10107_v21, %v6148_v8  ;;  %v6186_v3 = vand.u32 2147483648, %v14926_v45  ;;  %v6157_v63 = vor.u32 1.1754944e-38, %v6156_v13  ;;  %v6176_v44 = vmul.f32 %v10111_v0, %v14926_v45 }
 0x98d   : > { %v6139_v17 = vand.u32 2147483647, %v14953_v57  ;;  %v9341_v23 = vunpack.c.l.bf16 %v14968_v24  ;;  %v8365_v16 = vrot.slane %v8364_v27, 4  ;;  %vm6180_vm6 = vweird.f32 %v14926_v45 }
 0x98e   : > { %9779 = vset.pattern.permute.xlu1 %v11784_v39  ;;  %v6153_v4 = vsel %vm14973_vm15, %v10107_v21, %v6149_v9  ;;  %v6141_v6 = vand.u32 2147483648, %v14953_v57  ;;  %v6177_v10 = vsub.f32 1.0, %v6176_v44  ;;  %vm6181_vm0 = vweird.f32 %v10111_v0  ;;  %v7451_v21 = vpop.permute.xlu2 %7450 }
 0x98f   : > { %v10113_v15 = vpop.eup %10112  ;;  %vm14993_vm10 = vcmp.eq.f32.partialorder %v6184_v30, 8.507059e+37  ;;  %10116 = vpow2.f32 %v9114_v19  ;;  %v8358_v51 = vrot.slane %v8357_v18, 2  ;;  %v6187_v37 = vor.u32 1.1754944e-38, %v6186_v3  ;;  %vm15008_vm8 = vmor %vm6180_vm6, %vm6181_vm0 }
 0x990   : > { %v6131_v1 = vmul.f32 %v10113_v15, %v14953_v57  ;;  %vm6135_vm9 = vweird.f32 %v14953_v57  ;;  %v6158_v38 = vsel %vm14980_vm2, %v6157_v63, %v6153_v4  ;;  %v6178_v49 = vmul.f32 %v10111_v0, %v6177_v10 }
 0x991   : > { %v10115_v22 = vpop.eup %10114  ;;  %vm15001_vm7 = vcmp.eq.f32.partialorder %v6139_v17, 8.507059e+37  ;;  %vm6165_vm5 = vweird.f32 %v14958_v48  ;;  %v8366_v54 = vadd.f32 %v8365_v16, %v8364_v27  ;;  %vm6136_vm14 = vweird.f32 %v10113_v15  ;;  %v15032_v17 = vld [vmem:[%s10902_s1 + $0x138] sm:$0xff]  }
 0x992   : > { %v6132_v53 = vsub.f32 1.0, %v6131_v1  ;;  %v6142_v60 = vor.u32 1.1754944e-38, %v6141_v6  ;;  %v6179_v20 = vadd.f32 %v10111_v0, %v6178_v49  ;;  %v6161_v29 = vmul.f32 %v10115_v22, %v14958_v48  ;;  %vm15025_vm13 = vmor %vm6135_vm9, %vm6136_vm14 }
 0x993   : > { %v6169_v46 = vand.u32 2147483647, %v14958_v48  ;;  %v4462_v13 = vmul.f32 %v9341_v23, %v12443_v11  ;;  %v7865_v45 = vmul.f32 %v9326_v62, %v6158_v38  ;;  %v6171_v8 = vand.u32 2147483648, %v14958_v48 }
 0x994   : > { %v6133_v27 = vmul.f32 %v10113_v15, %v6132_v53  ;;  %v9342_v36 = vunpack.c.h.bf16 %v14968_v24  ;;  %v6183_v19 = vsel %vm15008_vm8, %v10111_v0, %v6179_v20  ;;  %v6162_v59 = vsub.f32 1.0, %v6161_v29 }
 0x995   : > { %v10117_v30 = vpop.eup %10116  ;;  %vm6166_vm3 = vweird.f32 %v10115_v22  ;;  %v9116_v3 = vmul.f32 -1.442695, %v4462_v13  ;;  %v8367_v63 = vrot.slane %v8366_v54, 2  ;;  %v9334_v16 = vunpack.c.h.bf16 %v15032_v17 }
 0x996   : > { %v6134_v62 = vadd.f32 %v10113_v15, %v6133_v27  ;;  %v15029_v44 = vadd.f32 1.0, %v10117_v30  ;;  %v6188_v0 = vsel %vm14993_vm10, %v6187_v37, %v6183_v19  ;;  %v6163_v4 = vmul.f32 %v10115_v22, %v6162_v59  ;;  %vm15044_vm1 = vmor %vm6165_vm5, %vm6166_vm3  ;;  %v7464_v20 = vpop.permute.xlu2 %7463 }
 0x997   : > { %10118 = vpow2.f32 %v9116_v3  ;;  %v4463_v57 = vmul.f32 %v9342_v36, %v12443_v11  ;;  %v7993_v6 = vmul.f32 %v7865_v45, %v7451_v21  ;;  %v6172_v38 = vor.u32 1.1754944e-38, %v6171_v8 }
 0x998   : > { %v6138_v10 = vsel %vm15025_vm13, %v10113_v15, %v6134_v62  ;;  %10120 = vrcp.f32 %v15029_v44  ;;  %v8359_v58 = vadd.f32 %v8358_v51, %v8357_v18  ;;  %v6164_v49 = vadd.f32 %v10115_v22, %v6163_v4  ;;  %v17454_v62 = vld [vmem:[#allocation39_spill] sm:$0xff] }
 0x999   : > { %v6143_v37 = vsel %vm15001_vm7, %v6142_v60, %v6138_v10  ;;  %vm6170_vm15 = vcmp.eq.f32.partialorder %v6169_v46, 8.507059e+37  ;;  %v8351_v21 = vrot.slane %v14965_v40, 1  ;;  %v7867_v15 = vmul.f32 %v9330_v7, %v6188_v0 }
 0x99a   : > { %v7864_v48 = vmul.f32 %v9325_v12, %v6143_v37  ;;  %v9117_v52 = vmul.f32 -1.442695, %v4463_v57  ;;  %v8375_v53 = vadd.f32 %v8374_v26, %v14948_v50  ;;  %v6168_v18 = vsel %vm15044_vm1, %v10115_v22, %v6164_v49  ;;  %v7458_v12 = vpop.permute.xlu1 %7457  ;;  %v15089_v57 = vld [vmem:[%s10902_s1 + $0x1d8] sm:$0xff]  }
 0x99b   : > { %v7634_v51 = vperm.slane %v14721_v34, 4  ;;  %v4459_v28 = vmul.f32 %v9334_v16, %v12443_v11  ;;  %v8368_v60 = vadd.f32 %v8367_v63, %v8366_v54  ;;  %v8381_v7 = vsel %vm8046_vm12, %v7993_v6, 0.0 }
 0x99c   : > { %v7992_v2 = vmul.f32 %v7864_v48, %v7445_v55  ;;  %v6173_v29 = vsel %vm6170_vm15, %v6172_v38, %v6168_v18  ;;  %v8360_v13 = vrot.slane %v8359_v58, 1  ;;  %10122 = vpow2.f32 %v9117_v52  ;;  %v15108_v48 = vld [vmem:[%s10902_s1 + $0x150] sm:$0xff]   ;;  %v15111_v52 = vld [vmem:[%s10902_s1 + $0x158] sm:$0xff]  }
 0x99d   : > { %v10119_v46 = vpop.eup %10118  ;;  %v7866_v50 = vmul.f32 %v9329_v25, %v6173_v29  ;;  %7645 = vperm.xlu2 %9780, %v7634_v51   ;;  %v9113_v26 = vmul.f32 -1.442695, %v4459_v28  ;;  %7639 = vperm.xlu1 %9779, %v7634_v51   ;;  %v8352_v45 = vadd.f32 %v8351_v21, %v14965_v40  ;;  %v7995_v27 = vmul.f32 %v7867_v15, %v7464_v20 }
 0x99e   : > { %v15068_v22 = vpop.eup %10120  ;;  %v8380_v54 = vsel %vm8046_vm12, %v7992_v2, 0.0  ;;  %v15072_v55 = vadd.f32 1.0, %v10119_v46  ;;  %v9338_v25 = vunpack.c.h.bf16 %v14895_v42  ;;  %v8343_v19 = vadd.f32 %v8342_v61, %v14942_v41  ;;  %v15092_v61 = vld [vmem:[%s11789_s23 + $0x38] sm:$0xff] }
 0x99f   : > { %v8382_v8 = vadd.f32 %v8381_v7, %v8380_v54  ;;  %v7994_v30 = vmul.f32 %v7866_v50, %v7458_v12  ;;  %v6221_v31 = vmul.f32 %v15068_v22, %v15029_v44  ;;  %v8376_v9 = vrot.slane %v8375_v53, 2 }
 0x9a0   : > { %v8369_v40 = vrot.slane %v8368_v60, 1  ;;  %10124 = vrcp.f32 %v15072_v55  ;;  %v8361_v59 = vadd.f32 %v8360_v13, %v8359_v58  ;;  %v17455_v0 = vunpack.c.l.bf16 %v17454_v62 }
 0x9a1   : > { %v8389_v3 = vsel %vm8046_vm12, %v7994_v30, 0.0  ;;  %v6222_v63 = vsub.f32 1.0, %v6221_v31  ;;  %10126 = vpow2.f32 %v9113_v26  ;;  %v8383_v41 = vrot.slane %v8382_v8, 4 }
 0x9a2   : > { %v15085_v4 = vmul.f32 %v17455_v0, %v14931_v32  ;;  %10128 = vrcp.f32 %v14934_v35  ;;  %v7686_v6 = vperm.slane %v15092_v61, 0  ;;  %v10123_v10 = vpop.eup %10122  ;;  %vm17456_vm2 = vcmask 1041409  }
 0x9a3   : > { %v8722_v1 = vsel %vm17456_vm2, %v8352_v45, %v8343_v19  ;;  %v8390_v38 = vsel %vm8046_vm12, %v7995_v27, 0.0  ;;  %v7647_v58 = vperm.slane %v14721_v34, 5  ;;  %v4461_v32 = vmul.f32 %v9338_v25, %v12443_v11 }
 0x9a4   : > { %v15101_v37 = vadd.f32 %v8376_v9, %v8375_v53  ;;  %v8370_v49 = vadd.f32 %v8369_v40, %v8368_v60  ;;  %v8391_v21 = vadd.f32 %v8390_v38, %v8389_v3  ;;  %v15103_v15 = vadd.f32 1.0, %v10123_v10  ;;  %7697 = vperm.xlu0 %9785, %v7686_v6  }
 0x9a5   : > { %v17018_v20 = vunpack.c.l.bf16 %v15089_v57  ;;  %vm17457_vm6 = vcmask 1042434   ;;  %v6223_v51 = vmul.f32 %v15068_v22, %v6222_v63  ;;  %vm6225_vm0 = vweird.f32 %v15029_v44  ;;  %7658 = vperm.xlu2 %9780, %v7647_v58   ;;  %7652 = vperm.xlu1 %9779, %v7647_v58  }
 0x9a6   : > { %v8723_v18 = vsel %vm17457_vm6, %v8361_v59, %v8722_v1  ;;  %v15117_v53 = vpop.eup %10124  ;;  %v8384_v28 = vadd.f32 %v8383_v41, %v8382_v8  ;;  %v6229_v60 = vand.u32 2147483647, %v15029_v44  ;;  %10130 = vrcp.f32 %v15103_v15 }
 0x9a7   : > { %v9115_v7 = vmul.f32 -1.442695, %v4461_v32  ;;  %v10127_v2 = vpop.eup %10126  ;;  %vm6226_vm10 = vweird.f32 %v15068_v22  ;;  %v6251_v12 = vmul.f32 %v15117_v53, %v15072_v55  ;;  %v9346_v29 = vunpack.c.h.bf16 %v15108_v48 }
 0x9a8   : > { %v9350_v46 = vunpack.c.h.bf16 %v15111_v52  ;;  %v15126_v13 = vpop.eup %10128  ;;  %v8378_v50 = vrot.slane %v15101_v37, 1  ;;  %vm17458_vm9 = vcmask 1043459   ;;  %v8392_v45 = vrot.slane %v8391_v21, 4  ;;  %vm15139_vm7 = vmor %vm6225_vm0, %vm6226_vm10 }
 0x9a9   : > { %v15130_v26 = vsel %vm17458_vm9, %v8370_v49, %v8723_v18  ;;  %v6231_v27 = vand.u32 2147483648, %v15029_v44  ;;  %v6224_v54 = vadd.f32 %v15068_v22, %v6223_v51  ;;  %v6252_v8 = vsub.f32 1.0, %v6251_v12 }
 0x9aa   : > { %v6259_v30 = vand.u32 2147483647, %v15072_v55  ;;  %v15135_v31 = vadd.f32 1.0, %v10127_v2  ;;  %v8385_v19 = vrot.slane %v8384_v28, 2  ;;  %v6261_v40 = vand.u32 2147483648, %v15072_v55 }
 0x9ab   : > { %10132 = vpow2.f32 %v9115_v7  ;;  %v7751_v59 = vperm.slane %v15092_v61, 5  ;;  %vm15145_vm5 = vcmp.eq.f32.partialorder %v6229_v60, 8.507059e+37  ;;  %v4465_v63 = vmul.f32 %v9346_v29, %v12443_v11 }
 0x9ac   : > { %10134 = vrcp.f32 %v15135_v31  ;;  %v4467_v44 = vmul.f32 %v9350_v46, %v12443_v11  ;;  %v15156_v62 = vpop.eup %10130  ;;  %v8393_v0 = vadd.f32 %v8392_v45, %v8391_v21  ;;  %v6232_v41 = vor.u32 1.1754944e-38, %v6231_v27 }
 0x9ad   : > { %v6253_v10 = vmul.f32 %v15117_v53, %v6252_v8  ;;  %7762 = vperm.xlu0 %9785, %v7751_v59   ;;  %v9345_v1 = vunpack.c.l.bf16 %v15108_v48  ;;  %v6228_v38 = vsel %vm15139_vm7, %v15068_v22, %v6224_v54  ;;  %vm6255_vm8 = vweird.f32 %v15072_v55  ;;  %9782 = vset.pattern.permute.xlu2 %v11784_v39 }
 0x9ae   : > { %vm15166_vm14 = vcmp.eq.f32.partialorder %v6259_v30, 8.507059e+37  ;;  %v6266_v32 = vmul.f32 %v15156_v62, %v15103_v15  ;;  %9781 = vset.pattern.permute.xlu1 %v11800_v33  ;;  %v15174_v49 = vadd.f32 %v8385_v19, %v8384_v28  ;;  %v6262_v21 = vor.u32 1.1754944e-38, %v6261_v40  ;;  %v15189_v19 = vpop.permute.xlu2 %7483 }
 0x9af   : > { %vm6270_vm13 = vweird.f32 %v15103_v15  ;;  %v6274_v22 = vand.u32 2147483647, %v15103_v15  ;;  %vm6256_vm3 = vweird.f32 %v15117_v53  ;;  %v9119_v51 = vmul.f32 -1.442695, %v4465_v63 }
 0x9b0   : > { %v6267_v18 = vsub.f32 1.0, %v6266_v32  ;;  %v9121_v60 = vmul.f32 -1.442695, %v4467_v44  ;;  %v8394_v2 = vrot.slane %v8393_v0, 2  ;;  %v6233_v12 = vsel %vm15145_vm5, %v6232_v41, %v6228_v38  ;;  %vm15195_vm1 = vmor %vm6255_vm8, %vm6256_vm3 }
 0x9b1   : > { %v10133_v7 = vpop.eup %10132  ;;  %v6254_v45 = vadd.f32 %v15117_v53, %v6253_v10  ;;  %v4464_v28 = vmul.f32 %v9345_v1, %v12443_v11  ;;  %10136 = vpow2.f32 %v9119_v51  ;;  %v9349_v30 = vunpack.c.l.bf16 %v15111_v52 }
 0x9b2   : > { %v10135_v27 = vpop.eup %10134  ;;  %v6268_v54 = vmul.f32 %v15156_v62, %v6267_v18  ;;  %v15186_v8 = vadd.f32 1.0, %v10133_v7  ;;  %v6276_v40 = vand.u32 2147483648, %v15103_v15  ;;  %v7673_v63 = vperm.slane %v14721_v34, 7 }
 0x9b3   : > { %v6206_v3 = vmul.f32 %v10135_v27, %v15135_v31  ;;  %10138 = vpow2.f32 %v9121_v60  ;;  %vm6271_vm15 = vweird.f32 %v15156_v62  ;;  %v6214_v44 = vand.u32 2147483647, %v15135_v31  ;;  %v15221_v60 = vld [vmem:[%s10902_s1 + $0x168] sm:$0xff]  }
 0x9b4   : > { %v6216_v41 = vand.u32 2147483648, %v15135_v31  ;;  %10140 = vrcp.f32 %v15186_v8  ;;  %vm6210_vm2 = vweird.f32 %v15135_v31  ;;  %vm6211_vm6 = vweird.f32 %v10135_v27  ;;  %vm15228_vm10 = vmor %vm6270_vm13, %vm6271_vm15 }
 0x9b5   : > { %v6207_v55 = vsub.f32 1.0, %v6206_v3  ;;  %v9118_v10 = vmul.f32 -1.442695, %v4464_v28  ;;  %v6258_v38 = vsel %vm15195_vm1, %v15117_v53, %v6254_v45  ;;  %v6269_v34 = vadd.f32 %v15156_v62, %v6268_v54  ;;  %7678 = vperm.xlu2 %9782, %v7673_v63   ;;  %vm15235_vm9 = vmor %vm6210_vm2, %vm6211_vm6 }
 0x9b6   : > { %vm15211_vm0 = vcmp.eq.f32.partialorder %v6274_v22, 8.507059e+37  ;;  %v17469_v18 = vperm.slane %v17432_v43, 6  ;;  %v4466_v51 = vmul.f32 %v9349_v30, %v12443_v11  ;;  %v8387_v7 = vrot.slane %v15174_v49, 1 }
 0x9b7   : > { %v8395_v28 = vadd.f32 %v8394_v2, %v8393_v0  ;;  %v6277_v22 = vor.u32 1.1754944e-38, %v6276_v40  ;;  %v6208_v43 = vmul.f32 %v10135_v27, %v6207_v55  ;;  %v10137_v45 = vpop.eup %10136  ;;  %vm15239_vm7 = vcmp.eq.f32.partialorder %v6214_v44, 8.507059e+37 }
 0x9b8   : > { %7671 = vperm.xlu1 %9781, %v17469_v18   ;;  %v6217_v2 = vor.u32 1.1754944e-38, %v6216_v41  ;;  %10142 = vpow2.f32 %v9118_v10  ;;  %v9120_v15 = vmul.f32 -1.442695, %v4466_v51  ;;  %v6263_v40 = vsel %vm15166_vm14, %v6262_v21, %v6258_v38  ;;  %v7477_v38 = vpop.permute.xlu1 %7476 }
 0x9b9   : > { %v10139_v9 = vpop.eup %10138  ;;  %v6209_v3 = vadd.f32 %v10135_v27, %v6208_v43  ;;  %v15245_v55 = vadd.f32 1.0, %v10137_v45  ;;  %v9357_v31 = vunpack.c.l.bf16 %v15221_v60  ;;  %v7870_v44 = vmul.f32 %v9337_v56, %v6233_v12 }
 0x9ba   : > { %v15248_v18 = vpop.eup %10140  ;;  %v6273_v41 = vsel %vm15228_vm10, %v15156_v62, %v6269_v34  ;;  %v15255_v10 = vadd.f32 1.0, %v10139_v9  ;;  %10144 = vpow2.f32 %v9120_v15  ;;  %v8396_v51 = vrot.slane %v8395_v28, 1  ;;  %v7497_v34 = vpop.permute.xlu2 %7496 }
 0x9bb   : > { %v6213_v58 = vsel %vm15235_vm9, %v10135_v27, %v6209_v3  ;;  %v6236_v21 = vmul.f32 %v15248_v18, %v15186_v8  ;;  %10146 = vrcp.f32 %v15245_v55  ;;  %v15265_v56 = vmul.f32 %v17018_v20, %v12443_v11 }
 0x9bc   : > { %v8379_v62 = vadd.f32 %v8378_v50, %v15101_v37  ;;  %v7872_v12 = vmul.f32 %v9341_v23, %v6263_v40  ;;  %v6218_v27 = vsel %vm15239_vm7, %v6217_v2, %v6213_v58  ;;  %v6278_v53 = vsel %vm15211_vm0, %v6277_v22, %v6273_v41 }
 0x9bd   : > { %v7869_v43 = vmul.f32 %v9334_v16, %v6218_v27  ;;  %v6237_v45 = vsub.f32 1.0, %v6236_v21  ;;  %v4470_v54 = vmul.f32 %v9357_v31, %v12443_v11  ;;  %v15283_v23 = vmul.f32 %v15126_v13, %v14934_v35  ;;  %7691 = vperm.xlu2 %9782, %v7686_v6   ;;  %v7503_v6 = vpop.permute.xlu0 %7502 }
 0x9be   : > { %v10143_v37 = vpop.eup %10142  ;;  %v8388_v50 = vadd.f32 %v8387_v7, %v15174_v49  ;;  %vm17476_vm5 = vcmask 1044484   ;;  %10148 = vrcp.f32 %v15255_v10  ;;  %v8397_v17 = vadd.f32 %v8396_v51, %v8395_v28  ;;  %v15318_v51 = vld [vmem:[%s10902_s1 + $0x170] sm:$0xff]  }
 0x9bf   : > { %v8725_v0 = vsel %vm17476_vm5, %v8379_v62, %v15130_v26  ;;  %v15292_v16 = vmul.f32 %v7870_v44, %v15189_v19  ;;  %v7997_v32 = vmul.f32 %v7869_v43, %v7477_v38  ;;  %v6238_v22 = vmul.f32 %v15248_v18, %v6237_v45 }
 0x9c0   : > { %7684 = vperm.xlu1 %9781, %v7673_v63   ;;  %v10145_v2 = vpop.eup %10144  ;;  %v8000_v15 = vmul.f32 %v7872_v12, %v7497_v34  ;;  %v7873_v49 = vmul.f32 %v9342_v36, %v6278_v53  ;;  %vm6240_vm8 = vweird.f32 %v15186_v8  ;;  %v15298_v26 = vadd.f32 1.0, %v10143_v37 }
 0x9c1   : > { %v15300_v7 = vpop.eup %10146  ;;  %v8399_v63 = vsel %vm8046_vm12, %v7997_v32, 0.0  ;;  %vm6241_vm14 = vweird.f32 %v15248_v18  ;;  %v6244_v19 = vand.u32 2147483647, %v15186_v8  ;;  %v9124_v28 = vmul.f32 -1.442695, %v4470_v54 }
 0x9c2   : > { %vm17477_vm13 = vcmask 1045509   ;;  %v8400_v24 = vadd.f32 %v8399_v63, %v14303_v14  ;;  %v6246_v36 = vand.u32 2147483648, %v15186_v8  ;;  %v6296_v40 = vmul.f32 %v15300_v7, %v15245_v55  ;;  %vm15329_vm3 = vmor %vm6240_vm8, %vm6241_vm14 }
 0x9c3   : > { %v8726_v9 = vsel %vm17477_vm13, %v8388_v50, %v8725_v0  ;;  %v6239_v44 = vadd.f32 %v15248_v18, %v6238_v22  ;;  %10150 = vrcp.f32 %v15298_v26  ;;  %v15315_v41 = vadd.f32 1.0, %v10145_v2 }
 0x9c4   : > { %v15311_v3 = vsel %vm8697_vm4, %v8397_v17, %v8726_v9  ;;  %v15320_v58 = vpop.eup %10148  ;;  %v15323_v14 = vsel %vm8046_vm12, %v8000_v15, 0.0  ;;  %v8001_v21 = vmul.f32 %v7873_v49, %v7503_v6  ;;  %v8401_v62 = vrot.slane %v8400_v24, 4  ;;  %v7490_v6 = vpop.permute.xlu1 %7489 }
 0x9c5   : > { %v6297_v38 = vsub.f32 1.0, %v6296_v40  ;;  %vm15333_vm1 = vcmp.eq.f32.partialorder %v6244_v19, 8.507059e+37  ;;  %v6304_v34 = vand.u32 2147483647, %v15245_v55  ;;  %v6326_v53 = vmul.f32 %v15320_v58, %v15255_v10  ;;  %9784 = vset.pattern.permute.xlu2 %v11800_v33 }
 0x9c6   : > { %10152 = vpow2.f32 %v9124_v28  ;;  %v8402_v43 = vadd.f32 %v8401_v62, %v8400_v24  ;;  %v6247_v45 = vor.u32 1.1754944e-38, %v6246_v36  ;;  %v9361_v8 = vunpack.c.l.bf16 %v15318_v51 }
 0x9c7   : > { %v9362_v54 = vunpack.c.h.bf16 %v15318_v51  ;;  %v6243_v37 = vsel %vm15329_vm3, %v15248_v18, %v6239_v44  ;;  %v6298_v50 = vmul.f32 %v15300_v7, %v6297_v38  ;;  %v6306_v0 = vand.u32 2147483648, %v15245_v55 }
 0x9c8   : > { %9783 = vset.pattern.permute.xlu1 %v11784_v39  ;;  %10154 = vrcp.f32 %v15315_v41  ;;  %v8417_v17 = vsel %vm8046_vm12, %v8001_v21, 0.0  ;;  %v8403_v32 = vrot.slane %v8402_v43, 2  ;;  %vm6300_vm15 = vweird.f32 %v15245_v55  ;;  %v6954_v55 = vld [vmem:[%s10948_s22 + $0x20] sm:$0xff] }
 0x9c9   : > { %v6327_v22 = vsub.f32 1.0, %v6326_v53  ;;  %v10151_v2 = vpop.eup %10150  ;;  %vm6301_vm2 = vweird.f32 %v15300_v7  ;;  %vm15353_vm6 = vcmp.eq.f32.partialorder %v6304_v34, 8.507059e+37  ;;  %vm6330_vm0 = vweird.f32 %v15255_v10 }
 0x9ca   : > { %v6289_v18 = vand.u32 2147483647, %v15298_v26  ;;  %v8404_v49 = vadd.f32 %v8403_v32, %v8402_v43  ;;  %v6248_v63 = vsel %vm15333_vm1, %v6247_v45, %v6243_v37  ;;  %v6281_v19 = vmul.f32 %v10151_v2, %v15298_v26  ;;  %vm15370_vm10 = vmor %vm6300_vm15, %vm6301_vm2 }
 0x9cb   : > { %v6291_v28 = vand.u32 2147483648, %v15298_v26  ;;  %v6299_v24 = vadd.f32 %v15300_v7, %v6298_v50  ;;  %v6307_v36 = vor.u32 1.1754944e-38, %v6306_v0  ;;  %v6334_v40 = vand.u32 2147483647, %v15255_v10 }
 0x9cc   : > { %v10153_v9 = vpop.eup %10152  ;;  %v6336_v44 = vand.u32 2147483648, %v15255_v10  ;;  %v8405_v21 = vrot.slane %v8404_v49, 1  ;;  %v6328_v12 = vmul.f32 %v15320_v58, %v6327_v22  ;;  %v6282_v38 = vsub.f32 1.0, %v6281_v19  ;;  %v7510_v62 = vpop.permute.xlu1 %7509 }
 0x9cd   : > { %vm6285_vm9 = vweird.f32 %v15298_v26  ;;  %v7871_v34 = vmul.f32 %v9338_v25, %v6248_v63  ;;  %vm6331_vm7 = vweird.f32 %v15320_v58  ;;  %vm6286_vm5 = vweird.f32 %v10151_v2 }
 0x9ce   : > { %v10155_v27 = vpop.eup %10154  ;;  %vm15379_vm8 = vcmp.eq.f32.partialorder %v6289_v18, 8.507059e+37  ;;  %v8406_v43 = vadd.f32 %v8405_v21, %v8404_v49  ;;  %v6292_v45 = vor.u32 1.1754944e-38, %v6291_v28  ;;  %vm6315_vm14 = vweird.f32 %v15315_v41  ;;  %vm15397_vm13 = vmor %vm6285_vm9, %vm6286_vm5 }
 0x9cf   : > { %v15385_v37 = vadd.f32 1.0, %v10153_v9  ;;  %v6303_v50 = vsel %vm15370_vm10, %v15300_v7, %v6299_v24  ;;  %v6283_v42 = vmul.f32 %v10151_v2, %v6282_v38  ;;  %v6311_v25 = vmul.f32 %v10155_v27, %v15315_v41  ;;  %v7516_v9 = vpop.permute.xlu2 %7515  ;;  %vm15412_vm1 = vmor %vm6330_vm0, %vm6331_vm7 }
 0x9d0   : > { %v6319_v0 = vand.u32 2147483647, %v15315_v41  ;;  %v8728_v32 = vsel %vm17023_vm11, %v8406_v43, %v15311_v3  ;;  %v6329_v22 = vadd.f32 %v15320_v58, %v6328_v12  ;;  %v6321_v49 = vand.u32 2147483648, %v15315_v41 }
 0x9d1   : > { %v4472_v7 = vmul.f32 %v9361_v8, %v12443_v11  ;;  %v8762_v63 = vadd.f32 %v8728_v32, %v6954_v55  ;;  %v6284_v19 = vadd.f32 %v10151_v2, %v6283_v42  ;;  %v6312_v28 = vsub.f32 1.0, %v6311_v25  ;;  %v15448_v55 = vld [vmem:[%s10902_s1 + $0x160] sm:$0xff]  }
 0x9d2   : > { %vm6316_vm3 = vweird.f32 %v10155_v27  ;;  %v8418_v3 = vadd.f32 %v8417_v17, %v15323_v14  ;;  %v6308_v26 = vsel %vm15353_vm6, %v6307_v36, %v6303_v50  ;;  %vm15416_vm15 = vcmp.eq.f32.partialorder %v6334_v40, 8.507059e+37 }
 0x9d3   : > { %10156 = vrcp.f32 %v15385_v37  ;;  %8770 = vst.msk [vmem:[%s10948_s22 + $0x20] sm:$0xff] %vm8046_vm12, %v8762_v63  ;;  %v7999_v14 = vmul.f32 %v7871_v34, %v7490_v6  ;;  %v6337_v17 = vor.u32 1.1754944e-38, %v6336_v44  ;;  %v6288_v15 = vsel %vm15397_vm13, %v10151_v2, %v6284_v19  ;;  %vm15429_vm2 = vmor %vm6315_vm14, %vm6316_vm3 }
 0x9d4   : > { %v6313_v10 = vmul.f32 %v10155_v27, %v6312_v28  ;;  %v6293_v36 = vsel %vm15379_vm8, %v6292_v45, %v6288_v15  ;;  %vm15433_vm6 = vcmp.eq.f32.partialorder %v6319_v0, 8.507059e+37  ;;  %v6322_v38 = vor.u32 1.1754944e-38, %v6321_v49 }
 0x9d5   : > { %v9126_v6 = vmul.f32 -1.442695, %v4472_v7  ;;  %v7875_v44 = vmul.f32 %v9346_v29, %v6308_v26  ;;  %v6333_v2 = vsel %vm15412_vm1, %v15320_v58, %v6329_v22  ;;  %v4473_v41 = vmul.f32 %v9362_v54, %v12443_v11 }
 0x9d6   : > { %v6314_v34 = vadd.f32 %v10155_v27, %v6313_v10  ;;  %v7874_v53 = vmul.f32 %v9345_v1, %v6293_v36  ;;  %v9354_v43 = vunpack.c.h.bf16 %v15448_v55  ;;  %v9358_v29 = vunpack.c.h.bf16 %v15221_v60  ;;  %v7523_v10 = vpop.permute.xlu1 %7522 }
 0x9d7   : > { %10158 = vpow2.f32 %v9126_v6  ;;  %v8408_v45 = vsel %vm8046_vm12, %v7999_v14, 0.0  ;;  %v9127_v50 = vmul.f32 -1.442695, %v4473_v41  ;;  %v7699_v42 = vperm.slane %v15092_v61, 1  ;;  %v7529_v15 = vpop.permute.xlu2 %7528 }
 0x9d8   : > { %v6318_v58 = vsel %vm15429_vm2, %v10155_v27, %v6314_v34  ;;  %v6338_v48 = vsel %vm15416_vm15, %v6337_v17, %v6333_v2  ;;  %v4469_v0 = vmul.f32 %v9354_v43, %v12443_v11  ;;  %v4471_v32 = vmul.f32 %v9358_v29, %v12443_v11  ;;  %v15469_v27 = vld [vmem:[%s10902_s1 + $0x178] sm:$0xff]  }
 0x9d9   : > { %v15456_v25 = vpop.eup %10156  ;;  %v6323_v1 = vsel %vm15433_vm6, %v6322_v38, %v6318_v58  ;;  %v8407_v22 = vsel %vm8046_vm12, %v15292_v16, 0.0  ;;  %v8419_v18 = vrot.slane %v8418_v3, 4  ;;  %v8003_v49 = vmul.f32 %v7875_v44, %v7516_v9  ;;  %7710 = vperm.xlu2 %9784, %v7699_v42   ;;  %7704 = vperm.xlu1 %9783, %v7699_v42  }
 0x9da   : > { %v6371_v7 = vmul.f32 %v15456_v25, %v15385_v37  ;;  %v8002_v63 = vmul.f32 %v7874_v53, %v7510_v62  ;;  %10160 = vpow2.f32 %v9127_v50  ;;  %v9123_v19 = vmul.f32 -1.442695, %v4469_v0 }
 0x9db   : > { %v9125_v28 = vmul.f32 -1.442695, %v4471_v32  ;;  %v8409_v26 = vadd.f32 %v8408_v45, %v8407_v22  ;;  %v7877_v24 = vmul.f32 %v9350_v46, %v6338_v48  ;;  %v7876_v21 = vmul.f32 %v9349_v30, %v6323_v1  ;;  %v15507_v1 = vld [vmem:[%s10902_s1 + $0x180] sm:$0xff]  }
 0x9dc   : > { %v9366_v16 = vunpack.c.h.bf16 %v15469_v27  ;;  %v6649_v9 = vand.u32 2147483647, %v14934_v35  ;;  %v6651_v17 = vand.u32 2147483648, %v14934_v35  ;;  %v6372_v62 = vsub.f32 1.0, %v6371_v7 }
 0x9dd   : > { %v10159_v14 = vpop.eup %10158  ;;  %10162 = vpow2.f32 %v9123_v19  ;;  %v6642_v36 = vsub.f32 1.0, %v15283_v23  ;;  %v9152_v40 = vmul.f32 -1.442695, %v15265_v56  ;;  %v15486_v52 = vadd.f32 %v8419_v18, %v8418_v3 }
 0x9de   : > { %v15484_v12 = vadd.f32 1.0, %v10159_v14  ;;  %10164 = vpow2.f32 %v9125_v28  ;;  %v8426_v46 = vsel %vm8046_vm12, %v8003_v49, 0.0  ;;  %v8425_v30 = vsel %vm8046_vm12, %v8002_v63, 0.0 }
 0x9df   : > { %v4475_v38 = vmul.f32 %v9366_v16, %v12443_v11  ;;  %v8410_v6 = vrot.slane %v8409_v26, 4  ;;  %v8005_v44 = vmul.f32 %v7877_v24, %v7529_v15  ;;  %v8004_v2 = vmul.f32 %v7876_v21, %v7523_v10 }
 0x9e0   : > { %10166 = vrcp.f32 %v15484_v12  ;;  %v10161_v23 = vpop.eup %10160  ;;  %v6373_v56 = vmul.f32 %v15456_v25, %v6372_v62  ;;  %v6379_v3 = vand.u32 2147483647, %v15385_v37  ;;  %v6381_v34 = vand.u32 2147483648, %v15385_v37 }
 0x9e1   : > { %v7712_v41 = vperm.slane %v15092_v61, 2  ;;  %10168 = vpow2.f32 %v9152_v40  ;;  %v8427_v53 = vadd.f32 %v8426_v46, %v8425_v30  ;;  %v15498_v45 = vadd.f32 1.0, %v10161_v23 }
 0x9e2   : > { %v9129_v58 = vmul.f32 -1.442695, %v4475_v38  ;;  %v15501_v42 = vmul.f32 %v15126_v13, %v6642_v36  ;;  %v8421_v48 = vrot.slane %v15486_v52, 2  ;;  %vm6375_vm0 = vweird.f32 %v15385_v37 }
 0x9e3   : > { %v10163_v50 = vpop.eup %10162  ;;  %vm6376_vm10 = vweird.f32 %v15456_v25  ;;  %7723 = vperm.xlu2 %9784, %v7712_v41   ;;  %7717 = vperm.xlu1 %9783, %v7712_v41   ;;  %v15509_v32 = vadd.f32 %v8410_v6, %v8409_v26  ;;  %v8435_v22 = vsel %vm8046_vm12, %v8005_v44, 0.0  ;;  %v8434_v18 = vsel %vm8046_vm12, %v8004_v2, 0.0 }
 0x9e4   : > { %v10165_v0 = vpop.eup %10164  ;;  %10170 = vrcp.f32 %v15498_v45  ;;  %v6374_v49 = vadd.f32 %v15456_v25, %v6373_v56  ;;  %vm15515_vm9 = vcmp.eq.f32.partialorder %v6379_v3, 8.507059e+37  ;;  %v6382_v63 = vor.u32 1.1754944e-38, %v6381_v34  ;;  %vm15525_vm7 = vmor %vm6375_vm0, %vm6376_vm10  ;;  %v15555_v34 = vpop.permute.xlu2 %7548 }
 0x9e5   : > { %v15519_v19 = vadd.f32 1.0, %v10163_v50  ;;  %v8428_v24 = vrot.slane %v8427_v53, 4  ;;  %v15529_v21 = vadd.f32 1.0, %v10165_v0  ;;  %10172 = vpow2.f32 %v9129_v58 }
 0x9e6   : > { %v10167_v28 = vpop.eup %10166  ;;  %v17019_v14 = vunpack.c.h.bf16 %v15507_v1  ;;  %v15532_v15 = vadd.f32 %v8435_v22, %v8434_v18  ;;  %v6409_v62 = vand.u32 2147483647, %v15484_v12  ;;  %v17020_v36 = vunpack.c.l.bf16 %v15469_v27  ;;  %v7568_v18 = vpop.permute.xlu0 %7567 }
 0x9e7   : > { %v6401_v10 = vmul.f32 %v10167_v28, %v15484_v12  ;;  %v15537_v40 = vpop.eup %10168  ;;  %v6411_v37 = vand.u32 2147483648, %v15484_v12  ;;  %v6424_v46 = vand.u32 2147483647, %v15498_v45  ;;  %10174 = vrcp.f32 %v15519_v19 }
 0x9e8   : > { %v9369_v30 = vunpack.c.l.bf16 %v15507_v1  ;;  %v6378_v38 = vsel %vm15525_vm7, %v15456_v25, %v6374_v49  ;;  %vm6405_vm5 = vweird.f32 %v15484_v12  ;;  %vm6406_vm8 = vweird.f32 %v10167_v28 }
 0x9e9   : > { %v6402_v6 = vsub.f32 1.0, %v6401_v10  ;;  %v15547_v2 = vadd.f32 %v8428_v24, %v8427_v53  ;;  %v6426_v23 = vand.u32 2147483648, %v15498_v45  ;;  %10176 = vrcp.f32 %v15529_v21  ;;  %vm15569_vm13 = vmor %vm6405_vm5, %vm6406_vm8 }
 0x9ea   : > { %v10171_v44 = vpop.eup %10170  ;;  %v4477_v56 = vmul.f32 %v17019_v14, %v12443_v11  ;;  %v8437_v3 = vrot.slane %v15532_v15, 4  ;;  %vm15557_vm14 = vcmp.eq.f32.partialorder %v6409_v62, 8.507059e+37  ;;  %v6383_v50 = vsel %vm15515_vm9, %v6382_v63, %v6378_v38 }
 0x9eb   : > { %v6403_v25 = vmul.f32 %v10167_v28, %v6402_v6  ;;  %v6416_v53 = vmul.f32 %v10171_v44, %v15498_v45  ;;  %9787 = vset.pattern.permute.xlu2 %v11784_v39  ;;  %9786 = vset.pattern.permute.xlu1 %v11800_v33  ;;  %v10173_v58 = vpop.eup %10172  ;;  %v6412_v22 = vor.u32 1.1754944e-38, %v6411_v37  ;;  %vm6420_vm3 = vweird.f32 %v15498_v45 }
 0x9ec   : > { %vm15574_vm1 = vcmp.eq.f32.partialorder %v6424_v46, 8.507059e+37  ;;  %vm6421_vm15 = vweird.f32 %v10171_v44  ;;  %v15578_v26 = vadd.f32 1.0, %v10173_v58  ;;  %v6427_v63 = vor.u32 1.1754944e-38, %v6426_v23  ;;  %v7542_v23 = vpop.permute.xlu1 %7541 }
 0x9ed   : > { %v6404_v49 = vadd.f32 %v10167_v28, %v6403_v25  ;;  %v6417_v24 = vsub.f32 1.0, %v6416_v53  ;;  %v10175_v7 = vpop.eup %10174  ;;  %vm6360_vm2 = vweird.f32 %v15519_v19  ;;  %v6364_v12 = vand.u32 2147483647, %v15519_v19  ;;  %vm15589_vm6 = vmor %vm6420_vm3, %vm6421_vm15 }
 0x9ee   : > { %v6366_v10 = vand.u32 2147483648, %v15519_v19  ;;  %v6356_v46 = vmul.f32 %v10175_v7, %v15519_v19  ;;  %v7738_v38 = vperm.slane %v15092_v61, 4  ;;  %vm6361_vm0 = vweird.f32 %v10175_v7 }
 0x9ef   : > { %v6408_v62 = vsel %vm15569_vm13, %v10167_v28, %v6404_v49  ;;  %v6418_v37 = vmul.f32 %v10171_v44, %v6417_v24  ;;  %v10177_v6 = vpop.eup %10176  ;;  %10178 = vrcp.f32 %v15578_v26  ;;  %v9131_v53 = vmul.f32 -1.442695, %v4477_v56  ;;  %vm15620_vm5 = vmor %vm6360_vm2, %vm6361_vm0 }
 0x9f0   : > { %v4474_v28 = vmul.f32 %v17020_v36, %v12443_v11  ;;  %v6413_v58 = vsel %vm15557_vm14, %v6412_v22, %v6408_v62  ;;  %v6357_v49 = vsub.f32 1.0, %v6356_v46  ;;  %v6386_v45 = vmul.f32 %v10177_v6, %v15529_v21  ;;  %v17512_v22 = vld [vmem:[#allocation37_spill] sm:$0xff] }
 0x9f1   : > { %v6419_v0 = vadd.f32 %v10171_v44, %v6418_v37  ;;  %vm15600_vm10 = vcmp.eq.f32.partialorder %v6364_v12, 8.507059e+37  ;;  %vm6390_vm9 = vweird.f32 %v15529_v21  ;;  %v6394_v20 = vand.u32 2147483647, %v15529_v21 }
 0x9f2   : > { %v6396_v56 = vand.u32 2147483648, %v15529_v21  ;;  %v6358_v36 = vmul.f32 %v10175_v7, %v6357_v49  ;;  %v6387_v41 = vsub.f32 1.0, %v6386_v45  ;;  %vm6391_vm7 = vweird.f32 %v10177_v6 }
 0x9f3   : > { %v6423_v14 = vsel %vm15589_vm6, %v10171_v44, %v6419_v0  ;;  %7743 = vperm.xlu2 %9787, %v7738_v38   ;;  %v17513_v12 = vperm.slane %v17512_v22, 3  ;;  %v7882_v62 = vmul.f32 %v9361_v8, %v6413_v58  ;;  %v6367_v46 = vor.u32 1.1754944e-38, %v6366_v10  ;;  %v7562_v0 = vpop.permute.xlu2 %7561  ;;  %vm15633_vm8 = vmor %vm6390_vm9, %vm6391_vm7 }
 0x9f4   : > { %v6428_v37 = vsel %vm15574_vm1, %v6427_v63, %v6423_v14  ;;  %v9128_v25 = vmul.f32 -1.442695, %v4474_v28  ;;  %v6359_v45 = vadd.f32 %v10175_v7, %v6358_v36  ;;  %v6388_v22 = vmul.f32 %v10177_v6, %v6387_v41  ;;  %v15658_v41 = vld [vmem:[%s10902_s1 + $0x190] sm:$0xff]  }
 0x9f5   : > { %7736 = vperm.xlu1 %9786, %v17513_v12   ;;  %v7883_v49 = vmul.f32 %v9362_v54, %v6428_v37  ;;  %10180 = vpow2.f32 %v9131_v53  ;;  %v15626_v8 = vpop.eup %10178  ;;  %v7880_v14 = vmul.f32 %v9357_v31, %v6383_v50  ;;  %v6397_v63 = vor.u32 1.1754944e-38, %v6396_v56  ;;  %v7555_v37 = vpop.permute.xlu1 %7554 }
 0x9f6   : > { %10182 = vpow2.f32 %v9128_v25  ;;  %v4476_v51 = vmul.f32 %v9369_v30, %v12443_v11  ;;  %v6363_v54 = vsel %vm15620_vm5, %v10175_v7, %v6359_v45  ;;  %v6389_v36 = vadd.f32 %v10177_v6, %v6388_v22 }
 0x9f7   : > { %vm15642_vm14 = vcmp.eq.f32.partialorder %v6394_v20, 8.507059e+37  ;;  %v6446_v21 = vmul.f32 %v15626_v8, %v15578_v26  ;;  %vm6645_vm13 = vweird.f32 %v14934_v35  ;;  %vm6646_vm3 = vweird.f32 %v15126_v13 }
 0x9f8   : > { %v8412_v50 = vrot.slane %v15509_v32, 2  ;;  %v8010_v10 = vmul.f32 %v7882_v62, %v7562_v0  ;;  %v6368_v53 = vsel %vm15600_vm10, %v6367_v46, %v6363_v54  ;;  %v9130_v28 = vmul.f32 -1.442695, %v4476_v51  ;;  %vm15721_vm0 = vmor %vm6645_vm13, %vm6646_vm3 }
 0x9f9   : > { %v8011_v7 = vmul.f32 %v7883_v49, %v7568_v18  ;;  %v7879_v20 = vmul.f32 %v9354_v43, %v6368_v53  ;;  %v6393_v58 = vsel %vm15633_vm8, %v10177_v6, %v6389_v36  ;;  %v6447_v56 = vsub.f32 1.0, %v6446_v21  ;;  %v15688_v49 = vld [vmem:[%s10902_s1 + $0x198] sm:$0xff]  }
 0x9fa   : > { %v8430_v12 = vrot.slane %v15547_v2, 2  ;;  %v8438_v62 = vadd.f32 %v8437_v3, %v15532_v15  ;;  %v8008_v24 = vmul.f32 %v7880_v14, %v15555_v34  ;;  %v6398_v44 = vsel %vm15642_vm14, %v6397_v63, %v6393_v58 }
 0x9fb   : > { %v10181_v55 = vpop.eup %10180  ;;  %v8007_v43 = vmul.f32 %v7879_v20, %v7542_v23  ;;  %v7881_v6 = vmul.f32 %v9358_v29, %v6398_v44  ;;  %v6448_v46 = vmul.f32 %v15626_v8, %v6447_v56  ;;  %vm6450_vm1 = vweird.f32 %v15578_v26  ;;  %7756 = vperm.xlu2 %9787, %v7751_v59   ;;  %v7581_v19 = vpop.permute.xlu2 %7580 }
 0x9fc   : > { %v10183_v15 = vpop.eup %10182  ;;  %vm6451_vm15 = vweird.f32 %v15626_v8  ;;  %v6454_v3 = vand.u32 2147483647, %v15578_v26  ;;  %v9377_v34 = vunpack.c.l.bf16 %v15658_v41  ;;  %10184 = vpow2.f32 %v9130_v28 }
 0x9fd   : > { %7749 = vperm.xlu1 %9786, %v7738_v38   ;;  %v8461_v60 = vsel %vm8046_vm12, %v8010_v10, 0.0  ;;  %v8462_v29 = vsel %vm8046_vm12, %v8011_v7, 0.0  ;;  %v8009_v23 = vmul.f32 %v7881_v6, %v7555_v37  ;;  %v6456_v25 = vand.u32 2147483648, %v15578_v26  ;;  %vm15698_vm2 = vmor %vm6450_vm1, %vm6451_vm15 }
 0x9fe   : > { %v8444_v59 = vsel %vm8046_vm12, %v8007_v43, 0.0  ;;  %v6449_v61 = vadd.f32 %v15626_v8, %v6448_v46  ;;  %v15683_v38 = vadd.f32 1.0, %v10181_v55  ;;  %v15685_v0 = vadd.f32 1.0, %v10183_v15 }
 0x9ff   : > { %v6644_v45 = vadd.f32 %v15126_v13, %v15501_v42  ;;  %v8413_v22 = vadd.f32 %v8412_v50, %v15509_v32  ;;  %v8431_v14 = vadd.f32 %v8430_v12, %v15547_v2  ;;  %v8439_v18 = vrot.slane %v8438_v62, 2 }
 0xa00   : > { %v8422_v63 = vadd.f32 %v8421_v48, %v15486_v52  ;;  %v8463_v51 = vadd.f32 %v8462_v29, %v8461_v60  ;;  %v8453_v42 = vsel %vm8046_vm12, %v8009_v23, 0.0  ;;  %v4480_v32 = vmul.f32 %v9377_v34, %v12443_v11 }
 0xa01   : > { %v8445_v2 = vadd.f32 %v8444_v59, %v14917_v5  ;;  %v6457_v54 = vor.u32 1.1754944e-38, %v6456_v25  ;;  %10186 = vrcp.f32 %v15685_v0  ;;  %v9381_v26 = vunpack.c.l.bf16 %v15688_v49 }
 0xa02   : > { %v10185_v36 = vpop.eup %10184  ;;  %v8452_v31 = vsel %vm8046_vm12, %v8008_v24, 0.0  ;;  %v6453_v52 = vsel %vm15698_vm2, %v15626_v8, %v6449_v61  ;;  %vm6455_vm6 = vcmp.eq.f32.partialorder %v6454_v3, 8.507059e+37  ;;  %10188 = vrcp.f32 %v15683_v38  ;;  %v17524_v8 = vld [vmem:[#allocation41_spill] sm:$0xff] }
 0xa03   : > { %v8414_v48 = vrot.slane %v8413_v22, 1  ;;  %v8432_v21 = vrot.slane %v8431_v14, 1  ;;  %v8440_v50 = vadd.f32 %v8439_v18, %v8438_v62  ;;  %v8454_v10 = vadd.f32 %v8453_v42, %v8452_v31  ;;  %9789 = vset.pattern.permute.xlu2 %v11800_v33 }
 0xa04   : > { %v15729_v53 = vmul.f32 %v15085_v4, %v17524_v8  ;;  %v8464_v28 = vrot.slane %v8463_v51, 4  ;;  %v9134_v7 = vmul.f32 -1.442695, %v4480_v32  ;;  %v8446_v20 = vrot.slane %v8445_v2, 4  ;;  %v15787_v8 = vld [vmem:[%s10902_s1 + $0x1a8] sm:$0xff]  }
 0xa05   : > { %9788 = vset.pattern.permute.xlu1 %v11784_v39  ;;  %v6458_v58 = vsel %vm6455_vm6, %v6457_v54, %v6453_v52  ;;  %v15731_v56 = vadd.f32 1.0, %v10185_v36  ;;  %v4482_v12 = vmul.f32 %v9381_v26, %v12443_v11  ;;  %v6648_v39 = vsel %vm15721_vm0, %v15126_v13, %v6644_v45 }
 0xa06   : > { %vm15741_vm10 = vcmp.eq.f32.partialorder %v6649_v9, 8.507059e+37  ;;  %v6652_v4 = vor.u32 1.1754944e-38, %v6651_v17  ;;  %v8423_v62 = vrot.slane %v8422_v63, 1  ;;  %v8415_v37 = vadd.f32 %v8414_v48, %v8413_v22 }
 0xa07   : > { %v10187_v24 = vpop.eup %10186  ;;  %v8433_v44 = vadd.f32 %v8432_v21, %v8431_v14  ;;  %v8441_v55 = vrot.slane %v8440_v50, 1  ;;  %v8455_v43 = vrot.slane %v8454_v10, 4  ;;  %v8465_v46 = vadd.f32 %v8464_v28, %v8463_v51  ;;  %v15771_v51 = vld [vmem:[%s10902_s1 + $0x1a0] sm:$0xff]  }
 0xa08   : > { %v15747_v6 = vpop.eup %10188  ;;  %v7885_v13 = vmul.f32 %v9366_v16, %v6458_v58  ;;  %v6431_v9 = vmul.f32 %v10187_v24, %v15685_v0  ;;  %10190 = vpow2.f32 %v9134_v7  ;;  %v8447_v15 = vadd.f32 %v8446_v20, %v8445_v2  ;;  %v7575_v7 = vpop.permute.xlu1 %7574 }
 0xa09   : > { %v6441_v3 = vand.u32 2147483648, %v15685_v0  ;;  %10192 = vrcp.f32 %v15731_v56  ;;  %v9136_v35 = vmul.f32 -1.442695, %v4482_v12  ;;  %vm6435_vm9 = vweird.f32 %v15685_v0 }
 0xa0a   : > { %v6432_v17 = vsub.f32 1.0, %v6431_v9  ;;  %vm6436_vm7 = vweird.f32 %v10187_v24  ;;  %v6439_v60 = vand.u32 2147483647, %v15685_v0  ;;  %v8424_v29 = vadd.f32 %v8423_v62, %v8422_v63 }
 0xa0b   : > { %v8442_v23 = vadd.f32 %v8441_v55, %v8440_v50  ;;  %v8456_v25 = vadd.f32 %v8455_v43, %v8454_v10  ;;  %v6476_v16 = vmul.f32 %v15747_v6, %v15683_v38  ;;  %v15760_v59 = vsel %vm15741_vm10, %v6652_v4, %v6648_v39  ;;  %vm15766_vm8 = vmor %vm6435_vm9, %vm6436_vm7 }
 0xa0c   : > { %v15763_v61 = vadd.f32 1.0, %v15537_v40  ;;  %v8466_v45 = vrot.slane %v8465_v46, 2  ;;  %v6433_v22 = vmul.f32 %v10187_v24, %v6432_v17  ;;  %vm17527_vm5 = vcmask 1041409  }
 0xa0d   : > { %v8729_v14 = vsel %vm17527_vm5, %v8424_v29, %v8415_v37  ;;  %v8448_v18 = vrot.slane %v8447_v15, 2  ;;  %v6442_v63 = vor.u32 1.1754944e-38, %v6441_v3  ;;  %10194 = vpow2.f32 %v9136_v35 }
 0xa0e   : > { %v10191_v42 = vpop.eup %10190  ;;  %vm17530_vm14 = vcmask 1042434   ;;  %v8013_v40 = vmul.f32 %v7885_v13, %v7581_v19  ;;  %v6434_v2 = vadd.f32 %v10187_v24, %v6433_v22  ;;  %vm6440_vm13 = vcmp.eq.f32.partialorder %v6439_v60, 8.507059e+37 }
 0xa0f   : > { %v8730_v32 = vsel %vm17530_vm14, %v8433_v44, %v8729_v14  ;;  %v15774_v54 = vpop.eup %10192  ;;  %vm17531_vm3 = vcmask 1043459   ;;  %v8457_v31 = vrot.slane %v8456_v25, 2  ;;  %v6477_v52 = vsub.f32 1.0, %v6476_v16 }
 0xa10   : > { %v15777_v36 = vsel %vm17531_vm3, %v8442_v23, %v8730_v32  ;;  %v9382_v5 = vunpack.c.h.bf16 %v15688_v49  ;;  %v15780_v48 = vadd.f32 %v8466_v45, %v8465_v46  ;;  %v6484_v21 = vand.u32 2147483647, %v15683_v38 }
 0xa11   : > { %v6438_v50 = vsel %vm15766_vm8, %v10187_v24, %v6434_v2  ;;  %v9386_v10 = vunpack.c.h.bf16 %v15771_v51  ;;  %v8449_v28 = vadd.f32 %v8448_v18, %v8447_v15  ;;  %vm6480_vm1 = vweird.f32 %v15683_v38  ;;  %v15801_v24 = vld [vmem:[%s10902_s1 + $0x188] sm:$0xff]  }
 0xa12   : > { %v6443_v20 = vsel %vm6440_vm13, %v6442_v63, %v6438_v50  ;;  %v6461_v58 = vmul.f32 %v15774_v54, %v15731_v56  ;;  %v4483_v12 = vmul.f32 %v9382_v5, %v12443_v11  ;;  %v8471_v39 = vsel %vm8046_vm12, %v8013_v40, 0.0 }
 0xa13   : > { %v17532_v33 = vunpack.c.l.bf16 %v15469_v27  ;;  %v15798_v62 = vadd.f32 1.0, %v10191_v42  ;;  %v9374_v37 = vunpack.c.h.bf16 %v15801_v24  ;;  %v10195_v44 = vpop.eup %10194  ;;  %v8458_v55 = vadd.f32 %v8457_v31, %v8456_v25 }
 0xa14   : > { %v6478_v43 = vmul.f32 %v15747_v6, %v6477_v52  ;;  %v9137_v46 = vmul.f32 -1.442695, %v4483_v12  ;;  %v9390_v13 = vunpack.c.h.bf16 %v15787_v8  ;;  %v15806_v15 = vadd.f32 1.0, %v10195_v44  ;;  %v10318_v12 = vld [vmem:[%s11789_s23 + $0x38] sm:$0xff] }
 0xa15   : > { %v7884_v4 = vmul.f32 %v17532_v33, %v6443_v20  ;;  %v4485_v27 = vmul.f32 %v9386_v10, %v12443_v11  ;;  %v9378_v3 = vunpack.c.h.bf16 %v15658_v41  ;;  %v8450_v35 = vrot.slane %v8449_v28, 1 }
 0xa16   : > { %v6462_v17 = vsub.f32 1.0, %v6461_v58  ;;  %10196 = vpow2.f32 %v9137_v46  ;;  %v4479_v60 = vmul.f32 %v9374_v37, %v12443_v11  ;;  %v6486_v29 = vand.u32 2147483648, %v15683_v38 }
 0xa17   : > { %v8012_v9 = vmul.f32 %v7884_v4, %v7575_v7  ;;  %10198 = vrcp.f32 %v15806_v15  ;;  %v4487_v25 = vmul.f32 %v9390_v13, %v12443_v11  ;;  %v8468_v16 = vrot.slane %v15780_v48, 1  ;;  %v15846_v4 = vpop.permute.xlu2 %7593 }
 0xa18   : > { %v8459_v45 = vrot.slane %v8458_v55, 1  ;;  %vm6481_vm15 = vweird.f32 %v15747_v6  ;;  %v6479_v14 = vadd.f32 %v15747_v6, %v6478_v43  ;;  %10200 = vrcp.f32 %v15798_v62 }
 0xa19   : > { %v8470_v23 = vsel %vm8046_vm12, %v8012_v9, 0.0  ;;  %v9139_v18 = vmul.f32 -1.442695, %v4485_v27  ;;  %v4481_v19 = vmul.f32 %v9378_v3, %v12443_v11  ;;  %v8451_v0 = vadd.f32 %v8450_v35, %v8449_v28  ;;  %vm15839_vm0 = vmor %vm6480_vm1, %vm6481_vm15 }
 0xa1a   : > { %v8472_v22 = vadd.f32 %v8471_v39, %v8470_v23  ;;  %v6463_v42 = vmul.f32 %v15774_v54, %v6462_v17  ;;  %v9133_v32 = vmul.f32 -1.442695, %v4479_v60  ;;  %vm6465_vm2 = vweird.f32 %v15731_v56 }
 0xa1b   : > { %v6469_v40 = vand.u32 2147483647, %v15731_v56  ;;  %v6471_v2 = vand.u32 2147483648, %v15731_v56  ;;  %v9141_v31 = vmul.f32 -1.442695, %v4487_v25  ;;  %v8460_v50 = vadd.f32 %v8459_v45, %v8458_v55 }
 0xa1c   : > { %v8473_v63 = vrot.slane %v8472_v22, 4  ;;  %v10197_v52 = vpop.eup %10196  ;;  %vm6466_vm6 = vweird.f32 %v15774_v54  ;;  %10202 = vpow2.f32 %v9133_v32  ;;  %v7764_v39 = vperm.slane %v10318_v12, 6 }
 0xa1d   : > { %v15833_v20 = vpop.eup %10198  ;;  %v15843_v58 = vadd.f32 1.0, %v10197_v52  ;;  %10204 = vpow2.f32 %v9139_v18  ;;  %v9135_v33 = vmul.f32 -1.442695, %v4481_v19  ;;  %v6464_v55 = vadd.f32 %v15774_v54, %v6463_v42  ;;  %vm15864_vm9 = vmor %vm6465_vm2, %vm6466_vm6  ;;  %v6955_v19 = vld [vmem:[%s10948_s22 + $0x28] sm:$0xff] }
 0xa1e   : > { %v8474_v7 = vadd.f32 %v8473_v63, %v8472_v22  ;;  %v6551_v43 = vmul.f32 %v15833_v20, %v15806_v15  ;;  %10206 = vpow2.f32 %v9141_v31  ;;  %v15851_v46 = vpop.eup %10200  ;;  %v8469_v9 = vadd.f32 %v8468_v16, %v15780_v48  ;;  %7769 = vperm.xlu1 %9788, %v7764_v39   ;;  %7775 = vperm.xlu2 %9789, %v7764_v39  }
 0xa1f   : > { %vm15856_vm10 = vcmp.eq.f32.partialorder %v6484_v21, 8.507059e+37  ;;  %v6487_v35 = vor.u32 1.1754944e-38, %v6486_v29  ;;  %10208 = vrcp.f32 %v15843_v58  ;;  %vm17539_vm7 = vcmask 1044484   ;;  %v7588_v29 = vpop.permute.xlu1 %7587 }
 0xa20   : > { %v8475_v44 = vrot.slane %v8474_v7, 2  ;;  %v8732_v38 = vsel %vm17539_vm7, %v8451_v0, %v15777_v36  ;;  %v6483_v48 = vsel %vm15839_vm0, %v15747_v6, %v6479_v14  ;;  %v6552_v60 = vsub.f32 1.0, %v6551_v43 }
 0xa21   : > { %vm17540_vm5 = vcmask 1045509   ;;  %vm15875_vm8 = vcmp.eq.f32.partialorder %v6469_v40, 8.507059e+37  ;;  %v6472_v23 = vor.u32 1.1754944e-38, %v6471_v2  ;;  %10210 = vpow2.f32 %v9135_v33 }
 0xa22   : > { %v8476_v21 = vadd.f32 %v8475_v44, %v8474_v7  ;;  %v8733_v56 = vsel %vm17540_vm5, %v8460_v50, %v8732_v38  ;;  %v10203_v25 = vpop.eup %10202  ;;  %v6468_v36 = vsel %vm15864_vm9, %v15774_v54, %v6464_v55  ;;  %v6553_v45 = vmul.f32 %v15833_v20, %v6552_v60 }
 0xa23   : > { %v6561_v6 = vand.u32 2147483648, %v15806_v15  ;;  %v10205_v22 = vpop.eup %10204  ;;  %10212 = vrcp.f32 %v15763_v61  ;;  %v6488_v14 = vsel %vm15856_vm10, %v6487_v35, %v6483_v48  ;;  %vm6555_vm14 = vweird.f32 %v15806_v15 }
 0xa24   : > { %v8477_v16 = vrot.slane %v8476_v21, 1  ;;  %vm6556_vm13 = vweird.f32 %v15833_v20  ;;  %v10207_v18 = vpop.eup %10206  ;;  %v8734_v63 = vsel %vm8697_vm4, %v8469_v9, %v8733_v56  ;;  %v6521_v54 = vmul.f32 %v15851_v46, %v15798_v62 }
 0xa25   : > { %v15893_v42 = vadd.f32 1.0, %v10203_v25  ;;  %v10209_v32 = vpop.eup %10208  ;;  %v6473_v40 = vsel %vm15875_vm8, %v6472_v23, %v6468_v36  ;;  %v6554_v2 = vadd.f32 %v15833_v20, %v6553_v45  ;;  %v6559_v31 = vand.u32 2147483647, %v15806_v15  ;;  %vm15900_vm3 = vmor %vm6555_vm14, %vm6556_vm13  ;;  %v15910_v15 = vpop.permute.xlu2 %7613 }
 0xa26   : > { %v8478_v0 = vadd.f32 %v8477_v16, %v8476_v21  ;;  %v7777_v52 = vperm.slane %v10318_v12, 7  ;;  %v6562_v28 = vor.u32 1.1754944e-38, %v6561_v6  ;;  %v6566_v39 = vmul.f32 %v10209_v32, %v15843_v58 }
 0xa27   : > { %vm6570_vm1 = vweird.f32 %v15843_v58  ;;  %v10211_v33 = vpop.eup %10210  ;;  %v6576_v55 = vand.u32 2147483648, %v15843_v58  ;;  %v15907_v43 = vadd.f32 1.0, %v10205_v22  ;;  %10214 = vrcp.f32 %v15893_v42 }
 0xa28   : > { %v8735_v50 = vsel %vm17023_vm11, %v8478_v0, %v8734_v63  ;;  %7782 = vperm.xlu1 %9788, %v7777_v52   ;;  %7788 = vperm.xlu2 %9789, %v7777_v52   ;;  %v6567_v12 = vsub.f32 1.0, %v6566_v39  ;;  %vm6571_vm15 = vweird.f32 %v10209_v32  ;;  %v6574_v9 = vand.u32 2147483647, %v15843_v58  ;;  %v15964_v63 = vld [vmem:[%s10902_s1 + $0x1b8] sm:$0xff]  }
 0xa29   : > { %v8763_v44 = vadd.f32 %v8735_v50, %v6955_v19  ;;  %v15913_v27 = vadd.f32 1.0, %v10207_v18  ;;  %v15915_v35 = vpop.eup %10212  ;;  %v7886_v17 = vmul.f32 %v9369_v30, %v6473_v40  ;;  %v6558_v38 = vsel %vm15900_vm3, %v15833_v20, %v6554_v2  ;;  %vm15940_vm6 = vmor %vm6570_vm1, %vm6571_vm15  ;;  %v7633_v40 = vpop.permute.xlu0 %7632 }
 0xa2a   : > { %vm6560_vm2 = vcmp.eq.f32.partialorder %v6559_v31, 8.507059e+37  ;;  %v15924_v48 = vadd.f32 1.0, %v10211_v33  ;;  %v17545_v21 = vunpack.c.h.bf16 %v15507_v1  ;;  %v6522_v56 = vsub.f32 1.0, %v6521_v54 }
 0xa2b   : > { %8771 = vst.msk [vmem:[%s10948_s22 + $0x28] sm:$0xff] %vm8046_vm12, %v8763_v44  ;;  %v6568_v23 = vmul.f32 %v10209_v32, %v6567_v12  ;;  %v15930_v25 = vsel %vm8046_vm12, %v15729_v53, 0.0  ;;  %v17546_v30 = vunpack.c.l.bf16 %v13517_v47  ;;  %v6577_v1 = vor.u32 1.1754944e-38, %v6576_v55  ;;  %v15947_v53 = vld [vmem:[%s10902_s1 + $0x1c0] sm:$0xff]  }
 0xa2c   : > { %v7887_v60 = vmul.f32 %v17545_v21, %v6488_v14  ;;  %10216 = vrcp.f32 %v15907_v43  ;;  %v6563_v36 = vsel %vm6560_vm2, %v6562_v28, %v6558_v38  ;;  %vm6575_vm0 = vcmp.eq.f32.partialorder %v6574_v9, 8.507059e+37 }
 0xa2d   : > { %v15935_v16 = vmul.f32 %v17546_v30, %v15760_v59  ;;  %v6569_v45 = vadd.f32 %v10209_v32, %v6568_v23  ;;  %10218 = vrcp.f32 %v15913_v27  ;;  %v10215_v47 = vpop.eup %10214  ;;  %v15951_v59 = vmul.f32 %v15915_v35, %v15763_v61  ;;  %v7627_v49 = vpop.permute.xlu2 %7626 }
 0xa2e   : > { %vm6525_vm10 = vweird.f32 %v15798_v62  ;;  %v8014_v58 = vmul.f32 %v7886_v17, %v7588_v29  ;;  %10220 = vrcp.f32 %v15924_v48  ;;  %v8015_v6 = vmul.f32 %v7887_v60, %v15846_v4 }
 0xa2f   : > { %v6523_v22 = vmul.f32 %v15851_v46, %v6522_v56  ;;  %v6573_v14 = vsel %vm15940_vm6, %v10209_v32, %v6569_v45  ;;  %v6506_v18 = vmul.f32 %v10215_v47, %v15893_v42  ;;  %v7892_v19 = vmul.f32 %v9381_v26, %v6563_v36 }
 0xa30   : > { %v6578_v0 = vsel %vm6575_vm0, %v6577_v1, %v6573_v14  ;;  %vm6510_vm9 = vweird.f32 %v15893_v42  ;;  %v9402_v54 = vunpack.c.h.bf16 %v15947_v53  ;;  %vm6511_vm7 = vweird.f32 %v10215_v47 }
 0xa31   : > { %v7893_v4 = vmul.f32 %v9382_v5, %v6578_v0  ;;  %v6507_v2 = vsub.f32 1.0, %v6506_v18  ;;  %v6516_v32 = vand.u32 2147483648, %v15893_v42  ;;  %v6529_v52 = vand.u32 2147483647, %v15798_v62  ;;  %vm15989_vm8 = vmor %vm6510_vm9, %vm6511_vm7 }
 0xa32   : > { %v15970_v31 = vpop.eup %10216  ;;  %v6531_v26 = vand.u32 2147483648, %v15798_v62  ;;  %v8479_v50 = vsel %vm8046_vm12, %v8014_v58, 0.0  ;;  %v6514_v7 = vand.u32 2147483647, %v15893_v42  ;;  %v8480_v39 = vsel %vm8046_vm12, %v8015_v6, 0.0 }
 0xa33   : > { %v15976_v28 = vpop.eup %10218  ;;  %vm6526_vm5 = vweird.f32 %v15851_v46  ;;  %v6508_v5 = vmul.f32 %v10215_v47, %v6507_v2  ;;  %v9397_v33 = vunpack.c.l.bf16 %v15964_v63  ;;  %v15984_v55 = vadd.f32 %v15851_v46, %v6523_v22 }
 0xa34   : > { %v15981_v44 = vpop.eup %10220  ;;  %v8020_v12 = vmul.f32 %v7892_v19, %v7627_v49  ;;  %v8021_v9 = vmul.f32 %v7893_v4, %v7633_v40  ;;  %v4493_v38 = vmul.f32 %v9402_v54, %v12443_v11  ;;  %v8481_v21 = vadd.f32 %v8480_v39, %v8479_v50  ;;  %vm16003_vm14 = vmor %vm6525_vm10, %vm6526_vm5 }
 0xa35   : > { %v6596_v60 = vmul.f32 %v15970_v31, %v15907_v43  ;;  %v6509_v56 = vadd.f32 %v10215_v47, %v6508_v5  ;;  %v6517_v29 = vor.u32 1.1754944e-38, %v6516_v32  ;;  %v6792_v23 = vsub.f32 1.0, %v15951_v59  ;;  %v7607_v5 = vpop.permute.xlu1 %7606 }
 0xa36   : > { %vm6515_vm13 = vcmp.eq.f32.partialorder %v6514_v7, 8.507059e+37  ;;  %v6626_v30 = vmul.f32 %v15976_v28, %v15913_v27  ;;  %v6536_v20 = vmul.f32 %v15981_v44, %v15924_v48  ;;  %vm16011_vm3 = vcmp.eq.f32.partialorder %v6529_v52, 8.507059e+37 }
 0xa37   : > { %v6532_v36 = vor.u32 1.1754944e-38, %v6531_v26  ;;  %v6513_v45 = vsel %vm15989_vm8, %v10215_v47, %v6509_v56  ;;  %v4490_v62 = vmul.f32 %v9397_v33, %v12443_v11  ;;  %v8506_v59 = vsel %vm8046_vm12, %v8020_v12, 0.0 }
 0xa38   : > { %v8507_v58 = vsel %vm8046_vm12, %v8021_v9, 0.0  ;;  %v6537_v6 = vsub.f32 1.0, %v6536_v20  ;;  %v9147_v22 = vmul.f32 -1.442695, %v4493_v38  ;;  %v6528_v14 = vsel %vm16003_vm14, %v15851_v46, %v15984_v55 }
 0xa39   : > { %v8482_v18 = vrot.slane %v8481_v21, 4  ;;  %v6597_v19 = vsub.f32 1.0, %v6596_v60  ;;  %v6518_v0 = vsel %vm6515_vm13, %v6517_v29, %v6513_v45  ;;  %v6627_v40 = vsub.f32 1.0, %v6626_v30 }
 0xa3a   : > { %v6538_v47 = vmul.f32 %v15981_v44, %v6537_v6  ;;  %vm6540_vm1 = vweird.f32 %v15924_v48  ;;  %vm6541_vm15 = vweird.f32 %v15981_v44  ;;  %v8508_v4 = vadd.f32 %v8507_v58, %v8506_v59 }
 0xa3b   : > { %v6544_v2 = vand.u32 2147483647, %v15924_v48  ;;  %v6546_v32 = vand.u32 2147483648, %v15924_v48  ;;  %v9144_v52 = vmul.f32 -1.442695, %v4490_v62  ;;  %v7889_v26 = vmul.f32 %v9374_v37, %v6518_v0  ;;  %vm16041_vm6 = vmor %vm6540_vm1, %vm6541_vm15 }
 0xa3c   : > { %v6539_v46 = vadd.f32 %v15981_v44, %v6538_v47  ;;  %10222 = vpow2.f32 %v9147_v22  ;;  %v9385_v50 = vunpack.c.l.bf16 %v15771_v51  ;;  %v6598_v7 = vmul.f32 %v15970_v31, %v6597_v19  ;;  %v7646_v19 = vpop.permute.xlu2 %7645 }
 0xa3d   : > { %vm6600_vm2 = vweird.f32 %v15907_v43  ;;  %v6604_v39 = vand.u32 2147483647, %v15907_v43  ;;  %v6606_v49 = vand.u32 2147483648, %v15907_v43  ;;  %v8483_v24 = vadd.f32 %v8482_v18, %v8481_v21 }
 0xa3e   : > { %vm6601_vm0 = vweird.f32 %v15970_v31  ;;  %v6628_v37 = vmul.f32 %v15976_v28, %v6627_v40  ;;  %vm6630_vm10 = vweird.f32 %v15913_v27  ;;  %vm6631_vm9 = vweird.f32 %v15976_v28 }
 0xa3f   : > { %vm16049_vm7 = vcmp.eq.f32.partialorder %v6544_v2, 8.507059e+37  ;;  %v6547_v9 = vor.u32 1.1754944e-38, %v6546_v32  ;;  %10224 = vpow2.f32 %v9144_v52  ;;  %v8509_v48 = vrot.slane %v8508_v4, 4  ;;  %vm16070_vm8 = vmor %vm6600_vm2, %vm6601_vm0 }
 0xa40   : > { %v8017_v17 = vmul.f32 %v7889_v26, %v7607_v5  ;;  %v6543_v38 = vsel %vm16041_vm6, %v15981_v44, %v6539_v46  ;;  %v4484_v21 = vmul.f32 %v9385_v50, %v12443_v11  ;;  %vm6795_vm5 = vweird.f32 %v15763_v61  ;;  %vm16084_vm13 = vmor %vm6630_vm10, %vm6631_vm9  ;;  %v7620_v26 = vpop.permute.xlu1 %7619 }
 0xa41   : > { %v6599_v60 = vadd.f32 %v15970_v31, %v6598_v7  ;;  %v6634_v56 = vand.u32 2147483647, %v15913_v27  ;;  %v6636_v29 = vand.u32 2147483648, %v15913_v27  ;;  %v6793_v30 = vmul.f32 %v15915_v35, %v6792_v23 }
 0xa42   : > { %v10223_v42 = vpop.eup %10222  ;;  %v6533_v20 = vsel %vm16011_vm3, %v6532_v36, %v6528_v14  ;;  %v6629_v45 = vadd.f32 %v15976_v28, %v6628_v37  ;;  %v9389_v62 = vunpack.c.l.bf16 %v15787_v8  ;;  %vm16076_vm14 = vcmp.eq.f32.partialorder %v6604_v39, 8.507059e+37 }
 0xa43   : > { %v6607_v23 = vor.u32 1.1754944e-38, %v6606_v49  ;;  %v6548_v43 = vsel %vm16049_vm7, %v6547_v9, %v6543_v38  ;;  %v9401_v36 = vunpack.c.l.bf16 %v15947_v53  ;;  %v8484_v58 = vrot.slane %v8483_v24, 2  ;;  %v17567_v9 = vld [vmem:[#allocation42_spill] sm:$0xff] }
 0xa44   : > { %v8510_v6 = vadd.f32 %v8509_v48, %v8508_v4  ;;  %v8489_v22 = vsel %vm8046_vm12, %v8017_v17, 0.0  ;;  %v9138_v14 = vmul.f32 -1.442695, %v4484_v21  ;;  %v6603_v27 = vsel %vm16070_vm8, %v15970_v31, %v6599_v60  ;;  %v7659_v1 = vpop.permute.xlu2 %7658 }
 0xa45   : > { %v10225_v18 = vpop.eup %10224  ;;  %vm16095_vm3 = vcmp.eq.f32.partialorder %v6634_v56, 8.507059e+37  ;;  %v6637_v40 = vor.u32 1.1754944e-38, %v6636_v29  ;;  %v16099_v47 = vadd.f32 1.0, %v10223_v42  ;;  %v6633_v4 = vsel %vm16084_vm13, %v15976_v28, %v6629_v45  ;;  %v16147_v42 = vld [vmem:[%s10902_s1 + $0x1e8] sm:$0xff]  }
 0xa46   : > { %v7891_v2 = vmul.f32 %v9378_v3, %v6548_v43  ;;  %10226 = vpow2.f32 %v9138_v14  ;;  %v4486_v32 = vmul.f32 %v9389_v62, %v12443_v11  ;;  %vm6796_vm1 = vweird.f32 %v15915_v35 }
 0xa47   : > { %v6799_v31 = vand.u32 2147483647, %v15763_v61  ;;  %v8490_v52 = vadd.f32 %v8489_v22, %v15930_v25  ;;  %v4492_v28 = vmul.f32 %v9401_v36, %v12443_v11  ;;  %v7890_v3 = vmul.f32 %v9377_v34, %v6533_v20  ;;  %v16127_v34 = vld [vmem:[%s10902_s1 + $0x1b0] sm:$0xff]   ;;  %vm16136_vm15 = vmor %vm6795_vm5, %vm6796_vm1 }
 0xa48   : > { %v8511_v46 = vrot.slane %v8510_v6, 2  ;;  %v6608_v7 = vsel %vm16076_vm14, %v6607_v23, %v6603_v27  ;;  %v16119_v39 = vadd.f32 1.0, %v10225_v18  ;;  %v6794_v49 = vadd.f32 %v15915_v35, %v6793_v30 }
 0xa49   : > { %v6801_v5 = vand.u32 2147483648, %v15763_v61  ;;  %v6638_v25 = vsel %vm16095_vm3, %v6637_v40, %v6633_v4  ;;  %10228 = vrcp.f32 %v16099_v47  ;;  %v8485_v55 = vadd.f32 %v8484_v58, %v8483_v24  ;;  %v16214_v61 = vld [vmem:[%s10902_s1 + $0x1d0] sm:$0xff]  }
 0xa4a   : > { %v8019_v37 = vmul.f32 %v7891_v2, %v7620_v26  ;;  %v9140_v41 = vmul.f32 -1.442695, %v4486_v32  ;;  %v9394_v12 = vunpack.c.h.bf16 %v16127_v34  ;;  %v8026_v48 = vmul.f32 %v15935_v16, %v17567_v9 }
 0xa4b   : > { %v7895_v24 = vmul.f32 %v9386_v10, %v6608_v7  ;;  %v8491_v38 = vrot.slane %v8490_v52, 4  ;;  %v9146_v21 = vmul.f32 -1.442695, %v4492_v28  ;;  %v8018_v56 = vmul.f32 %v7890_v3, %v15910_v15 }
 0xa4c   : > { %v10227_v60 = vpop.eup %10226  ;;  %v8512_v29 = vadd.f32 %v8511_v46, %v8510_v6  ;;  %v7897_v16 = vmul.f32 %v9390_v13, %v6638_v25  ;;  %10230 = vrcp.f32 %v16119_v39  ;;  %vm16149_vm2 = vcmp.eq.f32.partialorder %v6799_v31, 8.507059e+37  ;;  %v16194_v46 = vld [vmem:[%s10902_s1 + $0x1c8] sm:$0xff]  }
 0xa4d   : > { %v6802_v30 = vor.u32 1.1754944e-38, %v6801_v5  ;;  %v16153_v20 = vadd.f32 1.0, %v10227_v60  ;;  %10232 = vpow2.f32 %v9140_v41  ;;  %v6798_v10 = vsel %vm16136_vm15, %v15915_v35, %v6794_v49 }
 0xa4e   : > { %v8486_v15 = vrot.slane %v8485_v55, 1  ;;  %v8498_v44 = vsel %vm8046_vm12, %v8019_v37, 0.0  ;;  %v4489_v13 = vmul.f32 %v9394_v12, %v12443_v11  ;;  %v8023_v59 = vmul.f32 %v7895_v24, %v7646_v19 }
 0xa4f   : > { %v16162_v45 = vpop.eup %10228  ;;  %v8492_v23 = vadd.f32 %v8491_v38, %v8490_v52  ;;  %10234 = vpow2.f32 %v9146_v21  ;;  %v9422_v43 = vunpack.c.h.bf16 %v16147_v42  ;;  %v8497_v58 = vsel %vm8046_vm12, %v8018_v56, 0.0 }
 0xa50   : > { %v8513_v6 = vrot.slane %v8512_v29, 1  ;;  %v8025_v22 = vmul.f32 %v7897_v16, %v7659_v1  ;;  %10236 = vrcp.f32 %v16153_v20  ;;  %v8499_v35 = vadd.f32 %v8498_v44, %v8497_v58 }
 0xa51   : > { %v16170_v18 = vsel %vm8046_vm12, %v8026_v48, 0.0  ;;  %v16174_v19 = vsel %vm16149_vm2, %v6802_v30, %v6798_v10  ;;  %v6716_v27 = vmul.f32 %v16162_v45, %v16099_v47  ;;  %v9143_v0 = vmul.f32 -1.442695, %v4489_v13 }
 0xa52   : > { %v16167_v14 = vpop.eup %10230  ;;  %v16178_v4 = vadd.f32 %v8486_v15, %v8485_v55  ;;  %v16181_v2 = vsel %vm8046_vm12, %v8023_v59, 0.0  ;;  %v8493_v32 = vrot.slane %v8492_v23, 2  ;;  %v4503_v31 = vmul.f32 %v9422_v43, %v12443_v11 }
 0xa53   : > { %v10233_v40 = vpop.eup %10232  ;;  %v16186_v52 = vadd.f32 %v8513_v6, %v8512_v29  ;;  %v16189_v26 = vsel %vm8046_vm12, %v8025_v22, 0.0  ;;  %v6679_v28 = vand.u32 2147483647, %v16119_v39  ;;  %v6681_v3 = vand.u32 2147483648, %v16119_v39 }
 0xa54   : > { %v8500_v49 = vrot.slane %v8499_v35, 4  ;;  %vm6720_vm6 = vweird.f32 %v16099_v47  ;;  %v6724_v5 = vand.u32 2147483647, %v16099_v47  ;;  %v6726_v25 = vand.u32 2147483648, %v16099_v47 }
 0xa55   : > { %v10235_v7 = vpop.eup %10234  ;;  %v6671_v37 = vmul.f32 %v16167_v14, %v16119_v39  ;;  %v6717_v41 = vsub.f32 1.0, %v6716_v27  ;;  %v16201_v9 = vadd.f32 1.0, %v10233_v40  ;;  %10238 = vpow2.f32 %v9143_v0 }
 0xa56   : > { %v10237_v55 = vpop.eup %10236  ;;  %v8494_v48 = vadd.f32 %v8493_v32, %v8492_v23  ;;  %v9157_v24 = vmul.f32 -1.442695, %v4503_v31  ;;  %v9406_v38 = vunpack.c.h.bf16 %v16194_v46  ;;  %vm6675_vm0 = vweird.f32 %v16119_v39 }
 0xa57   : > { %v6581_v17 = vmul.f32 %v10237_v55, %v16153_v20  ;;  %v16206_v21 = vadd.f32 1.0, %v10235_v7  ;;  %v6591_v60 = vand.u32 2147483648, %v16153_v20  ;;  %10240 = vrcp.f32 %v16201_v9  ;;  %v7640_v7 = vpop.permute.xlu1 %7639 }
 0xa58   : > { %v9398_v56 = vunpack.c.h.bf16 %v15964_v63  ;;  %vm6585_vm10 = vweird.f32 %v16153_v20  ;;  %vm6586_vm9 = vweird.f32 %v10237_v55  ;;  %v6589_v16 = vand.u32 2147483647, %v16153_v20 }
 0xa59   : > { %v6582_v29 = vsub.f32 1.0, %v6581_v17  ;;  %v8501_v30 = vadd.f32 %v8500_v49, %v8499_v35  ;;  %v6672_v10 = vsub.f32 1.0, %v6671_v37  ;;  %v6718_v15 = vmul.f32 %v16162_v45, %v6717_v41  ;;  %vm16228_vm14 = vmor %vm6585_vm10, %vm6586_vm9 }
 0xa5a   : > { %vm6721_vm7 = vweird.f32 %v16162_v45  ;;  %v8495_v44 = vrot.slane %v8494_v48, 1  ;;  %vm16218_vm5 = vcmp.eq.f32.partialorder %v6724_v5, 8.507059e+37  ;;  %10242 = vpow2.f32 %v9157_v24 }
 0xa5b   : > { %v6583_v59 = vmul.f32 %v10237_v55, %v6582_v29  ;;  %v4495_v23 = vmul.f32 %v9406_v38, %v12443_v11  ;;  %v10239_v1 = vpop.eup %10238  ;;  %vm6676_vm8 = vweird.f32 %v16167_v14  ;;  %v6592_v6 = vor.u32 1.1754944e-38, %v6591_v60  ;;  %vm16250_vm1 = vmor %vm6720_vm6, %vm6721_vm7 }
 0xa5c   : > { %v9410_v22 = vunpack.c.h.bf16 %v16214_v61  ;;  %v4491_v35 = vmul.f32 %v9398_v56, %v12443_v11  ;;  %10244 = vrcp.f32 %v16206_v21  ;;  %vm6590_vm13 = vcmp.eq.f32.partialorder %v6589_v16, 8.507059e+37  ;;  %vm16268_vm2 = vmor %vm6675_vm0, %vm6676_vm8 }
 0xa5d   : > { %v6584_v27 = vadd.f32 %v10237_v55, %v6583_v59  ;;  %v16237_v0 = vadd.f32 1.0, %v10239_v1  ;;  %v10241_v40 = vpop.eup %10240  ;;  %v8502_v32 = vrot.slane %v8501_v30, 2  ;;  %v6673_v20 = vmul.f32 %v16167_v14, %v6672_v10 }
 0xa5e   : > { %v6719_v31 = vadd.f32 %v16162_v45, %v6718_v15  ;;  %vm6615_vm3 = vweird.f32 %v16201_v9  ;;  %v6611_v5 = vmul.f32 %v10241_v40, %v16201_v9  ;;  %v6621_v37 = vand.u32 2147483648, %v16201_v9 }
 0xa5f   : > { %v6588_v49 = vsel %vm16228_vm14, %v10237_v55, %v6584_v27  ;;  %v9149_v41 = vmul.f32 -1.442695, %v4495_v23  ;;  %10246 = vrcp.f32 %v16237_v0  ;;  %v4497_v55 = vmul.f32 %v9410_v22, %v12443_v11  ;;  %v7653_v13 = vpop.permute.xlu1 %7652 }
 0xa60   : > { %v6593_v24 = vsel %vm6590_vm13, %v6592_v6, %v6588_v49  ;;  %v9145_v60 = vmul.f32 -1.442695, %v4491_v35  ;;  %v10243_v29 = vpop.eup %10242  ;;  %v6612_v10 = vsub.f32 1.0, %v6611_v5  ;;  %vm6616_vm15 = vweird.f32 %v10241_v40 }
 0xa61   : > { %v7894_v16 = vmul.f32 %v9385_v50, %v6593_v24  ;;  %v6619_v47 = vand.u32 2147483647, %v16201_v9  ;;  %v8496_v15 = vadd.f32 %v8495_v44, %v8494_v48  ;;  %v8503_v59 = vadd.f32 %v8502_v32, %v8501_v30  ;;  %vm16283_vm10 = vmor %vm6615_vm3, %vm6616_vm15 }
 0xa62   : > { %v6674_v23 = vadd.f32 %v16167_v14, %v6673_v20  ;;  %v6727_v1 = vor.u32 1.1754944e-38, %v6726_v25  ;;  %v16262_v58 = vpop.eup %10244  ;;  %v6723_v51 = vsel %vm16250_vm1, %v16162_v45, %v6719_v31  ;;  %v6613_v48 = vmul.f32 %v10241_v40, %v6612_v10  ;;  %v7698_v25 = vpop.permute.xlu0 %7697 }
 0xa63   : > { %v8022_v50 = vmul.f32 %v7894_v16, %v7640_v7  ;;  %10248 = vpow2.f32 %v9149_v41  ;;  %vm16277_vm6 = vcmp.eq.f32.partialorder %v6679_v28, 8.507059e+37  ;;  %v6622_v44 = vor.u32 1.1754944e-38, %v6621_v37 }
 0xa64   : > { %v9151_v35 = vmul.f32 -1.442695, %v4497_v55  ;;  %10250 = vpow2.f32 %v9145_v60  ;;  %v6682_v45 = vor.u32 1.1754944e-38, %v6681_v3  ;;  %v6614_v32 = vadd.f32 %v10241_v40, %v6613_v48 }
 0xa65   : > { %v8515_v27 = vsel %vm8046_vm12, %v8022_v50, 0.0  ;;  %vm6620_vm0 = vcmp.eq.f32.partialorder %v6619_v47, 8.507059e+37  ;;  %v16290_v28 = vpop.eup %10246  ;;  %v6678_v9 = vsel %vm16268_vm2, %v16167_v14, %v6674_v23  ;;  %v6728_v20 = vsel %vm16218_vm5, %v6727_v1, %v6723_v51 }
 0xa66   : > { %v6709_v31 = vand.u32 2147483647, %v16206_v21  ;;  %v6711_v7 = vand.u32 2147483648, %v16206_v21  ;;  %vm17584_vm9 = vcmask 1041409   ;;  %v8504_v3 = vrot.slane %v8503_v59, 1 }
 0xa67   : > { %v8736_v39 = vsel %vm17584_vm9, %v8496_v15, %v16178_v4  ;;  %v16301_v49 = vadd.f32 1.0, %v10243_v29  ;;  %v6618_v5 = vsel %vm16283_vm10, %v10241_v40, %v6614_v32  ;;  %v6701_v37 = vmul.f32 %v16262_v58, %v16206_v21 }
 0xa68   : > { %v8517_v14 = vadd.f32 %v16181_v2, %v8515_v27  ;;  %v6623_v41 = vsel %vm6620_vm0, %v6622_v44, %v6618_v5  ;;  %10252 = vpow2.f32 %v9151_v35  ;;  %v6683_v24 = vsel %vm16277_vm6, %v6682_v45, %v6678_v9 }
 0xa69   : > { %v10249_v17 = vpop.eup %10248  ;;  %v7903_v4 = vmul.f32 %v9402_v54, %v6728_v20  ;;  %v7896_v55 = vmul.f32 %v9389_v62, %v6623_v41  ;;  %v6656_v40 = vmul.f32 %v16290_v28, %v16237_v0  ;;  %vm6660_vm7 = vweird.f32 %v16237_v0  ;;  %v7679_v20 = vpop.permute.xlu2 %7678 }
 0xa6a   : > { %v10251_v60 = vpop.eup %10250  ;;  %v6664_v2 = vand.u32 2147483647, %v16237_v0  ;;  %v6666_v29 = vand.u32 2147483648, %v16237_v0  ;;  %v9421_v16 = vunpack.c.l.bf16 %v16147_v42  ;;  %vm6661_vm5 = vweird.f32 %v16290_v28 }
 0xa6b   : > { %v8024_v10 = vmul.f32 %v7896_v55, %v7653_v13  ;;  %v6657_v47 = vsub.f32 1.0, %v6656_v40  ;;  %v16321_v54 = vadd.f32 1.0, %v10251_v60  ;;  %v8505_v8 = vadd.f32 %v8504_v3, %v8503_v59  ;;  %vm16339_vm14 = vmor %vm6660_vm7, %vm6661_vm5  ;;  %v7672_v13 = vpop.permute.xlu1 %7671 }
 0xa6c   : > { %v6702_v62 = vsub.f32 1.0, %v6701_v37  ;;  %v16323_v15 = vor.u32 1.1754944e-38, %v6711_v7  ;;  %v8518_v23 = vrot.slane %v8517_v14, 4  ;;  %v16326_v6 = vadd.f32 1.0, %v10249_v17 }
 0xa6d   : > { %v8524_v1 = vsel %vm8046_vm12, %v8024_v10, 0.0  ;;  %v6658_v51 = vmul.f32 %v16290_v28, %v6657_v47  ;;  %10254 = vrcp.f32 %v16321_v54  ;;  %v7900_v48 = vmul.f32 %v9397_v33, %v6683_v24  ;;  %v16345_v33 = vld [vmem:[%s10902_s1 + $0x1e0] sm:$0xff]  }
 0xa6e   : > { %v10253_v50 = vpop.eup %10252  ;;  %vm6705_vm8 = vweird.f32 %v16206_v21  ;;  %10256 = vrcp.f32 %v16301_v49  ;;  %v8526_v59 = vadd.f32 %v16189_v26, %v8524_v1  ;;  %v6667_v44 = vor.u32 1.1754944e-38, %v6666_v29 }
 0xa6f   : > { %v8031_v35 = vmul.f32 %v7903_v4, %v7698_v25  ;;  %v6659_v45 = vadd.f32 %v16290_v28, %v6658_v51  ;;  %vm6665_vm13 = vcmp.eq.f32.partialorder %v6664_v2, 8.507059e+37  ;;  %v4502_v27 = vmul.f32 %v9421_v16, %v12443_v11 }
 0xa70   : > { %vm17587_vm3 = vcmask 1042434   ;;  %v6703_v32 = vmul.f32 %v16262_v58, %v6702_v62  ;;  %v8519_v0 = vadd.f32 %v8518_v23, %v8517_v14  ;;  %v8527_v9 = vrot.slane %v8526_v59, 4 }
 0xa71   : > { %v8737_v26 = vsel %vm17587_vm3, %v8505_v8, %v8736_v39  ;;  %vm6706_vm1 = vweird.f32 %v16262_v58  ;;  %10258 = vrcp.f32 %v16326_v6  ;;  %v6663_v7 = vsel %vm16339_vm14, %v16290_v28, %v6659_v45 }
 0xa72   : > { %v16357_v3 = vadd.f32 1.0, %v10253_v50  ;;  %v8028_v5 = vmul.f32 %v7900_v48, %v7679_v20  ;;  %v8528_v37 = vadd.f32 %v8527_v9, %v8526_v59  ;;  %v6668_v41 = vsel %vm6665_vm13, %v6667_v44, %v6663_v7  ;;  %vm16397_vm0 = vmor %vm6705_vm8, %vm6706_vm1 }
 0xa73   : > { %v9417_v39 = vunpack.c.l.bf16 %v16345_v33  ;;  %v10255_v17 = vpop.eup %10254  ;;  %v16361_v14 = vsel %vm8046_vm12, %v8031_v35, 0.0  ;;  %vm17588_vm15 = vcmask 1043459   ;;  %v7899_v4 = vmul.f32 %v9394_v12, %v6668_v41 }
 0xa74   : > { %v16365_v24 = vsel %vm17588_vm15, %v16186_v52, %v8737_v26  ;;  %v9156_v28 = vmul.f32 -1.442695, %v4502_v27  ;;  %v16369_v55 = vpop.eup %10256  ;;  %v6704_v40 = vadd.f32 %v16262_v58, %v6703_v32  ;;  %vm16374_vm2 = vcmp.eq.f32.partialorder %v6709_v31, 8.507059e+37 }
 0xa75   : > { %v8520_v2 = vrot.slane %v8519_v0, 2  ;;  %v6876_v29 = vand.u32 2147483648, %v16301_v49  ;;  %v6686_v52 = vmul.f32 %v10255_v17, %v16321_v54  ;;  %v8529_v10 = vrot.slane %v8528_v37, 2 }
 0xa76   : > { %v8027_v47 = vmul.f32 %v7899_v4, %v7672_v13  ;;  %10260 = vrcp.f32 %v16357_v3  ;;  %v9405_v34 = vunpack.c.l.bf16 %v16194_v46  ;;  %vm6690_vm6 = vweird.f32 %v16321_v54 }
 0xa77   : > { %v6687_v12 = vsub.f32 1.0, %v6686_v52  ;;  %v6696_v8 = vand.u32 2147483648, %v16321_v54  ;;  %v4500_v31 = vmul.f32 %v9417_v39, %v12443_v11  ;;  %v16387_v62 = vpop.eup %10258  ;;  %vm6691_vm10 = vweird.f32 %v10255_v17 }
 0xa78   : > { %v8534_v23 = vsel %vm8046_vm12, %v8027_v47, 0.0  ;;  %v6694_v1 = vand.u32 2147483647, %v16321_v54  ;;  %10262 = vpow2.f32 %v9156_v28  ;;  %v8542_v51 = vsel %vm8046_vm12, %v8028_v5, 0.0  ;;  %vm16410_vm9 = vmor %vm6690_vm6, %vm6691_vm10  ;;  %v7685_v47 = vpop.permute.xlu1 %7684 }
 0xa79   : > { %v8521_v50 = vadd.f32 %v8520_v2, %v8519_v0  ;;  %v8535_v48 = vadd.f32 %v8534_v23, %v16170_v18  ;;  %v6688_v25 = vmul.f32 %v10255_v17, %v6687_v12  ;;  %v8530_v30 = vadd.f32 %v8529_v10, %v8528_v37 }
 0xa7a   : > { %v9154_v44 = vmul.f32 -1.442695, %v4500_v31  ;;  %v4494_v35 = vmul.f32 %v9405_v34, %v12443_v11  ;;  %v9409_v45 = vunpack.c.l.bf16 %v16214_v61  ;;  %v6746_v18 = vmul.f32 %v16387_v62, %v16326_v6 }
 0xa7b   : > { %v8536_v27 = vrot.slane %v8535_v48, 4  ;;  %v6689_v26 = vadd.f32 %v10255_v17, %v6688_v25  ;;  %v6697_v32 = vor.u32 1.1754944e-38, %v6696_v8  ;;  %vm16416_vm7 = vcmp.eq.f32.partialorder %v6694_v1, 8.507059e+37  ;;  %v16433_v8 = vld [vmem:[%s10902_s1 + $0x1d8] sm:$0xff]  }
 0xa7c   : > { %v16414_v0 = vpop.eup %10260  ;;  %10264 = vpow2.f32 %v9154_v44  ;;  %v9148_v20 = vmul.f32 -1.442695, %v4494_v35  ;;  %v4496_v7 = vmul.f32 %v9409_v45, %v12443_v11  ;;  %v6708_v54 = vsel %vm16397_vm0, %v16262_v58, %v6704_v40 }
 0xa7d   : > { %v8522_v5 = vrot.slane %v8521_v50, 1  ;;  %v6866_v37 = vmul.f32 %v16369_v55, %v16301_v49  ;;  %v8537_v13 = vadd.f32 %v8536_v27, %v8535_v48  ;;  %v8531_v4 = vrot.slane %v8530_v30, 1 }
 0xa7e   : > { %v10263_v41 = vpop.eup %10262  ;;  %v6693_v28 = vsel %vm16410_vm9, %v10255_v17, %v6689_v26  ;;  %10266 = vpow2.f32 %v9148_v20  ;;  %v9150_v2 = vmul.f32 -1.442695, %v4496_v7  ;;  %v6747_v52 = vsub.f32 1.0, %v6746_v18  ;;  %v7692_v7 = vpop.permute.xlu2 %7691 }
 0xa7f   : > { %v8538_v10 = vrot.slane %v8537_v13, 2  ;;  %v6698_v12 = vsel %vm16416_vm7, %v6697_v32, %v6693_v28  ;;  %v9414_v58 = vunpack.c.h.bf16 %v16433_v8  ;;  %v6713_v40 = vsel %vm16374_vm2, %v16323_v15, %v6708_v54 }
 0xa80   : > { %v6776_v31 = vmul.f32 %v16414_v0, %v16357_v3  ;;  %v7901_v17 = vmul.f32 %v9398_v56, %v6698_v12  ;;  %10268 = vpow2.f32 %v9150_v2  ;;  %v8523_v23 = vadd.f32 %v8522_v5, %v8521_v50 }
 0xa81   : > { %v6867_v1 = vsub.f32 1.0, %v6866_v37  ;;  %v8539_v48 = vadd.f32 %v8538_v10, %v8537_v13  ;;  %v16443_v25 = vadd.f32 1.0, %v10263_v41  ;;  %v8532_v44 = vadd.f32 %v8531_v4, %v8530_v30 }
 0xa82   : > { %v10265_v59 = vpop.eup %10264  ;;  %v8029_v35 = vmul.f32 %v7901_v17, %v7685_v47  ;;  %v4499_v60 = vmul.f32 %v9414_v58, %v12443_v11  ;;  %v17022_v15 = vunpack.c.h.bf16 %v16345_v33  ;;  %vm6870_vm5 = vweird.f32 %v16301_v49 }
 0xa83   : > { %v6748_v63 = vmul.f32 %v16387_v62, %v6747_v52  ;;  %vm6750_vm8 = vweird.f32 %v16326_v6  ;;  %vm6751_vm14 = vweird.f32 %v16387_v62  ;;  %v8540_v56 = vrot.slane %v8539_v48, 1 }
 0xa84   : > { %v10267_v50 = vpop.eup %10266  ;;  %v6777_v18 = vsub.f32 1.0, %v6776_v31  ;;  %v8543_v30 = vsel %vm8046_vm12, %v8029_v35, 0.0  ;;  %v16454_v27 = vadd.f32 1.0, %v10265_v59  ;;  %v9153_v26 = vmul.f32 -1.442695, %v4499_v60  ;;  %vm16480_vm1 = vmor %vm6750_vm8, %vm6751_vm14 }
 0xa85   : > { %vm17597_vm13 = vcmask 1044484   ;;  %v8541_v32 = vadd.f32 %v8540_v56, %v8539_v48  ;;  %v8544_v9 = vadd.f32 %v8543_v30, %v8542_v51  ;;  %10270 = vrcp.f32 %v16443_v25 }
 0xa86   : > { %v8739_v21 = vsel %vm17597_vm13, %v8523_v23, %v16365_v24  ;;  %v10269_v20 = vpop.eup %10268  ;;  %vm17598_vm3 = vcmask 1045509   ;;  %v16460_v5 = vadd.f32 1.0, %v10267_v50  ;;  %10272 = vpow2.f32 %v9153_v26  ;;  %v16529_v30 = vpop.permute.xlu2 %7710 }
 0xa87   : > { %v8740_v54 = vsel %vm17598_vm3, %v8532_v44, %v8739_v21  ;;  %v4501_v37 = vmul.f32 %v17022_v15, %v12443_v11  ;;  %v6756_v13 = vand.u32 2147483648, %v16326_v6  ;;  %v8545_v24 = vrot.slane %v8544_v9, 4 }
 0xa88   : > { %v8741_v41 = vsel %vm8697_vm4, %v8541_v32, %v8740_v54  ;;  %v16467_v4 = vadd.f32 1.0, %v10269_v20  ;;  %v6749_v51 = vadd.f32 %v16387_v62, %v6748_v63  ;;  %v6754_v28 = vand.u32 2147483647, %v16326_v6 }
 0xa89   : > { %v6778_v2 = vmul.f32 %v16414_v0, %v6777_v18  ;;  %10274 = vrcp.f32 %v16454_v27  ;;  %v7902_v52 = vmul.f32 %v9401_v36, %v6713_v40  ;;  %v6868_v10 = vmul.f32 %v16369_v55, %v6867_v1 }
 0xa8a   : > { %v8546_v12 = vadd.f32 %v8545_v24, %v8544_v9  ;;  %10276 = vrcp.f32 %v16460_v5  ;;  %vm6780_vm15 = vweird.f32 %v16357_v3  ;;  %vm6781_vm2 = vweird.f32 %v16414_v0 }
 0xa8b   : > { %10278 = vrcp.f32 %v16467_v4  ;;  %v9155_v53 = vmul.f32 -1.442695, %v4501_v37  ;;  %v16488_v36 = vpop.eup %10270  ;;  %vm6871_vm6 = vweird.f32 %v16369_v55  ;;  %v6757_v40 = vor.u32 1.1754944e-38, %v6756_v13  ;;  %vm16508_vm0 = vmor %vm6780_vm15, %vm6781_vm2 }
 0xa8c   : > { %v6786_v6 = vand.u32 2147483648, %v16357_v3  ;;  %v8547_v31 = vrot.slane %v8546_v12, 2  ;;  %v10273_v17 = vpop.eup %10272  ;;  %v6753_v23 = vsel %vm16480_vm1, %v16387_v62, %v6749_v51  ;;  %vm16495_vm10 = vcmp.eq.f32.partialorder %v6754_v28, 8.507059e+37  ;;  %vm16520_vm9 = vmor %vm6870_vm5, %vm6871_vm6  ;;  %v6956_v51 = vld [vmem:[%s10948_s22 + $0x30] sm:$0xff] }
 0xa8d   : > { %v6779_v48 = vadd.f32 %v16414_v0, %v6778_v2  ;;  %v6784_v59 = vand.u32 2147483647, %v16357_v3  ;;  %v8030_v44 = vmul.f32 %v7902_v52, %v7692_v7  ;;  %v16502_v35 = vadd.f32 %v16369_v55, %v6868_v10  ;;  %v16554_v2 = vpop.permute.xlu1 %7704  ;;  %v16559_v52 = vld [vmem:[%s10902_s1 + $0x1f0] sm:$0xff]  }
 0xa8e   : > { %v8548_v62 = vadd.f32 %v8547_v31, %v8546_v12  ;;  %v16512_v63 = vadd.f32 1.0, %v10273_v17  ;;  %v6874_v18 = vand.u32 2147483647, %v16301_v49  ;;  %v16527_v3 = vor.u32 1.1754944e-38, %v6876_v29 }
 0xa8f   : > { %v16514_v56 = vpop.eup %10274  ;;  %v6851_v26 = vmul.f32 %v16488_v36, %v16443_v25  ;;  %10280 = vpow2.f32 %v9155_v53  ;;  %v6758_v32 = vsel %vm16495_vm10, %v6757_v40, %v6753_v23  ;;  %v6787_v9 = vor.u32 1.1754944e-38, %v6786_v6 }
 0xa90   : > { %v16533_v21 = vpop.eup %10276  ;;  %v8549_v20 = vrot.slane %v8548_v62, 1  ;;  %10282 = vrcp.f32 %v16512_v63  ;;  %v6783_v29 = vsel %vm16508_vm0, %v16414_v0, %v6779_v48  ;;  %vm6785_vm7 = vcmp.eq.f32.partialorder %v6784_v59, 8.507059e+37 }
 0xa91   : > { %v16538_v7 = vpop.eup %10278  ;;  %v6861_v54 = vand.u32 2147483648, %v16443_v25  ;;  %v6731_v37 = vmul.f32 %v16533_v21, %v16460_v5  ;;  %v16547_v13 = vsel %vm8046_vm12, %v8030_v44, 0.0  ;;  %v6873_v24 = vsel %vm16520_vm9, %v16369_v55, %v16502_v35 }
 0xa92   : > { %v8550_v28 = vadd.f32 %v8549_v20, %v8548_v62  ;;  %v6761_v0 = vmul.f32 %v16538_v7, %v16467_v4  ;;  %v16563_v10 = vmul.f32 %v9406_v38, %v6758_v32  ;;  %v6821_v47 = vmul.f32 %v16514_v56, %v16454_v27 }
 0xa93   : > { %v6852_v12 = vsub.f32 1.0, %v6851_v26  ;;  %v6732_v53 = vsub.f32 1.0, %v6731_v37  ;;  %v16567_v40 = vsel %vm6785_vm7, %v6787_v9, %v6783_v29  ;;  %vm6855_vm5 = vweird.f32 %v16443_v25 }
 0xa94   : > { %v8742_v6 = vsel %vm17023_vm11, %v8550_v28, %v8741_v41  ;;  %v6762_v31 = vsub.f32 1.0, %v6761_v0  ;;  %v6859_v1 = vand.u32 2147483647, %v16443_v25  ;;  %v16572_v48 = vor.u32 1.1754944e-38, %v6861_v54  ;;  %v16593_v54 = vpop.permute.xlu2 %7723 }
 0xa95   : > { %v10281_v17 = vpop.eup %10280  ;;  %v8764_v23 = vadd.f32 %v8742_v6, %v6956_v51  ;;  %v17021_v38 = vunpack.c.h.bf16 %v16559_v52  ;;  %vm6825_vm8 = vweird.f32 %v16454_v27  ;;  %v6831_v44 = vand.u32 2147483648, %v16454_v27 }
 0xa96   : > { %v16575_v59 = vpop.eup %10282  ;;  %v6733_v60 = vmul.f32 %v16533_v21, %v6732_v53  ;;  %vm6735_vm14 = vweird.f32 %v16460_v5  ;;  %v16581_v41 = vadd.f32 1.0, %v10281_v17  ;;  %v6822_v62 = vsub.f32 1.0, %v6821_v47 }
 0xa97   : > { %8772 = vst.msk [vmem:[%s10948_s22 + $0x30] sm:$0xff] %vm8046_vm12, %v8764_v23  ;;  %v6853_v26 = vmul.f32 %v16488_v36, %v6852_v12  ;;  %v6739_v32 = vand.u32 2147483647, %v16460_v5  ;;  %v6806_v9 = vmul.f32 %v16575_v59, %v16512_v63  ;;  %vm6736_vm13 = vweird.f32 %v16533_v21  ;;  %v16620_v23 = vld [vmem:[%s10902_s1 + $0x1f8] sm:$0xff]   ;;  %s9174_s1 = sshll.u32 %s10595_s24, 6  ;;  %s8788_s24 = sshll.u32 %s10948_s22, 4  ;;  %s8789_s24 = int_to_ptr.vmem [resolvable:$true] %s8788_s24 }
 0xa98   : > { %v6741_v20 = vand.u32 2147483648, %v16460_v5  ;;  %v6763_v29 = vmul.f32 %v16538_v7, %v6762_v31  ;;  %10284 = vrcp.f32 %v16581_v41  ;;  %vm6856_vm3 = vweird.f32 %v16488_v36  ;;  %vm16615_vm2 = vmor %vm6735_vm14, %vm6736_vm13  ;;  %s8787_s30 = scalar_lea.hbm %s17649_s17, %s9174_s1 }
 0xa99   : > { %v6769_v37 = vand.u32 2147483647, %v16467_v4  ;;  %v6771_v51 = vand.u32 2147483648, %v16467_v4  ;;  %v4505_v28 = vmul.f32 %v17021_v38, %v12443_v11  ;;  %v6829_v0 = vand.u32 2147483647, %v16454_v27  ;;  %vm16627_vm10 = vmor %vm6855_vm5, %vm6856_vm3  ;;  %s8790_s28 = sshll.u32 %s8787_s30, 4  ;;  %s8791_s28 = int_to_ptr.hbm [resolvable:$true] %s8790_s28 }
 0xa9a   : > { %v6734_v47 = vadd.f32 %v16533_v21, %v6733_v60  ;;  %vm6765_vm1 = vweird.f32 %v16467_v4  ;;  %vm6766_vm15 = vweird.f32 %v16538_v7  ;;  %v6823_v12 = vmul.f32 %v16514_v56, %v6822_v62  ;;  %v16635_v60 = vpop.permute.xlu1 %7717  ;;  %s10479_s8 = sshra.s32 %s8791_s28, 4  ;;  %s10480_s8 = int_to_ptr.hbm [resolvable:$true] %s10479_s8 }
 0xa9b   : > { %v16606_v53 = vor.u32 1.1754944e-38, %v6831_v44  ;;  %v16609_v6 = vadd.f32 %v16488_v36, %v6853_v26  ;;  %v6807_v17 = vsub.f32 1.0, %v6806_v9  ;;  %vm6826_vm6 = vweird.f32 %v16514_v56  ;;  %vm16638_vm7 = vmor %vm6765_vm1, %vm6766_vm15  ;;  %s10481_s0 = scalar_lea.hbm %s10480_s8, 64  ;;  %p10486_p2 = scmp.lt.s32.totalorder %s10480_s8, %s17650_s14 }
 0xa9c   : > { %vm16631_vm0 = vcmp.eq.f32.partialorder %v6739_v32, 8.507059e+37  ;;  %v6742_v5 = vor.u32 1.1754944e-38, %v6741_v20  ;;  %v6764_v62 = vadd.f32 %v16538_v7, %v6763_v29  ;;  %vm16642_vm14 = vcmp.eq.f32.partialorder %v6769_v37, 8.507059e+37  ;;  %vm16684_vm11 = vmor %vm6825_vm8, %vm6826_vm6  ;;  %p10482_p13 = scmp.ne.s32.totalorder %s10480_s8, %s10481_s0  ;;  %p10487_p8 = scmp.lt.s32.totalorder %s10485_s6, %s10481_s0 }
 0xa9d   : > { %v6772_v25 = vor.u32 1.1754944e-38, %v6771_v51  ;;  %vm6810_vm5 = vweird.f32 %v16512_v63  ;;  %v9159_v32 = vmul.f32 -1.442695, %v4505_v28  ;;  %vm16649_vm13 = vcmp.eq.f32.partialorder %v6874_v18, 8.507059e+37 }
 0xa9e   : > { %v10285_v38 = vpop.eup %10284  ;;  %vm16653_vm3 = vcmp.eq.f32.partialorder %v6859_v1, 8.507059e+37  ;;  %v6738_v37 = vsel %vm16615_vm2, %v16533_v21, %v6734_v47  ;;  %v6814_v51 = vand.u32 2147483647, %v16512_v63  ;;  %v17024_v15 = vunpack.c.h.bf16 %v16620_v23  ;;  %p10483_p0 = pnand %p10482_p13, %p10810_p7  ;;  %p10488_p11 = por %p10487_p8, %p10486_p2 }
 0xa9f   : > { %v9425_v28 = vunpack.c.l.bf16 %v16559_v52  ;;  %v6824_v49 = vadd.f32 %v16514_v56, %v6823_v12  ;;  %vm16664_vm1 = vcmp.eq.f32.partialorder %v6829_v0, 8.507059e+37  ;;  %v6858_v1 = vsel %vm16627_vm10, %v16488_v36, %v16609_v6 }
 0xaa0   : > { %v6808_v31 = vmul.f32 %v16575_v59, %v6807_v17  ;;  %v6836_v21 = vmul.f32 %v10285_v38, %v16581_v41  ;;  %v6768_v47 = vsel %vm16638_vm7, %v16538_v7, %v6764_v62  ;;  %vm6811_vm15 = vweird.f32 %v16575_v59  ;;  %v16698_v62 = vpop.permute.xlu2 %7743  ;;  %p10484_p5 = pneg %p10483_p0 }
 0xaa1   : > { %v6816_v0 = vand.u32 2147483648, %v16512_v63  ;;  %vm6840_vm2 = vweird.f32 %v16581_v41  ;;  %v6743_v12 = vsel %vm16631_vm0, %v6742_v5, %v6738_v37  ;;  %vm6841_vm10 = vweird.f32 %v10285_v38  ;;  %vm16707_vm8 = vmor %vm6810_vm5, %vm6811_vm15 }
 0xaa2   : > { %v6837_v6 = vsub.f32 1.0, %v6836_v21  ;;  %10286 = vpow2.f32 %v9159_v32  ;;  %v6844_v7 = vand.u32 2147483647, %v16581_v41  ;;  %v6846_v17 = vand.u32 2147483648, %v16581_v41  ;;  %vm16722_vm0 = vmor %vm6840_vm2, %vm6841_vm10  ;;  %p10489_p1 = pnand %p10488_p11, %p10484_p5 }
 0xaa3   : > { %v4507_v4 = vmul.f32 %v17024_v15, %v12443_v11  ;;  %v4504_v27 = vmul.f32 %v9425_v28, %v12443_v11  ;;  %v6773_v44 = vsel %vm16642_vm14, %v6772_v25, %v6768_v47  ;;  %v6809_v5 = vadd.f32 %v16575_v59, %v6808_v31  ;;  %v7737_v15 = vpop.permute.xlu1 %7736 }
 0xaa4   : > { %v6838_v32 = vmul.f32 %v10285_v38, %v6837_v6  ;;  %v9429_v37 = vunpack.c.l.bf16 %v16620_v23  ;;  %v6828_v21 = vsel %vm16684_vm11, %v16514_v56, %v6824_v49  ;;  %vm16715_vm6 = vcmp.eq.f32.partialorder %v6814_v51, 8.507059e+37 }
 0xaa5   : > { %v9161_v25 = vmul.f32 -1.442695, %v4507_v4  ;;  %v9158_v31 = vmul.f32 -1.442695, %v4504_v27  ;;  %v7904_v47 = vmul.f32 %v9405_v34, %v6743_v12  ;;  %v6817_v6 = vor.u32 1.1754944e-38, %v6816_v0 }
 0xaa6   : > { %v6839_v36 = vadd.f32 %v10285_v38, %v6838_v32  ;;  %v4506_v56 = vmul.f32 %v9429_v37, %v12443_v11  ;;  %v7906_v51 = vmul.f32 %v9409_v45, %v6773_v44  ;;  %vm16733_vm11 = vcmp.eq.f32.partialorder %v6844_v7, 8.507059e+37 }
 0xaa7   : > { %v6847_v49 = vor.u32 1.1754944e-38, %v6846_v17  ;;  %10288 = vpow2.f32 %v9161_v25  ;;  %v6813_v46 = vsel %vm16707_vm8, %v16575_v59, %v6809_v5  ;;  %v7907_v11 = vmul.f32 %v9410_v22, %v16567_v40 }
 0xaa8   : > { %v10287_v4 = vpop.eup %10286  ;;  %v6843_v34 = vsel %vm16722_vm0, %v10285_v38, %v6839_v36  ;;  %10290 = vpow2.f32 %v9158_v31  ;;  %v9160_v0 = vmul.f32 -1.442695, %v4506_v56  ;;  %v17633_v12 = vunpack.c.l.bf16 %v15089_v57 }
 0xaa9   : > { %v16745_v45 = vadd.f32 1.0, %v10287_v4  ;;  %v8553_v17 = vadd.f32 %v16361_v14, %v16547_v13  ;;  %v6878_v38 = vsel %vm16649_vm13, %v16527_v3, %v6873_v24  ;;  %v6863_v61 = vsel %vm16653_vm3, %v16572_v48, %v6858_v1  ;;  %v7763_v48 = vpop.permute.xlu0 %7762 }
 0xaaa   : > { %v7908_v7 = vmul.f32 %v17633_v12, %v16174_v19  ;;  %v6833_v57 = vsel %vm16664_vm1, %v16606_v53, %v6828_v21  ;;  %v6818_v19 = vsel %vm16715_vm6, %v6817_v6, %v6813_v46  ;;  %v6848_v22 = vsel %vm16733_vm11, %v6847_v49, %v6843_v34 }
 0xaab   : > { %10292 = vrcp.f32 %v16745_v45  ;;  %v8033_v14 = vmul.f32 %v16563_v10, %v16529_v30  ;;  %v8032_v55 = vmul.f32 %v7904_v47, %v16554_v2  ;;  %v8034_v35 = vmul.f32 %v7906_v51, %v16635_v60  ;;  %v7757_v30 = vpop.permute.xlu2 %7756  ;;  %v17635_v60 = vld [vmem:[#allocation43_spill] sm:$0xff]  ;;  %v7750_v29 = vpop.permute.xlu1 %7749 }
 0xaac   : > { %10294 = vpow2.f32 %v9160_v0  ;;  %v7913_v3 = vmul.f32 %v9422_v43, %v6878_v38  ;;  %v8035_v13 = vmul.f32 %v7907_v11, %v16593_v54  ;;  %v7912_v24 = vmul.f32 %v9421_v16, %v6863_v61 }
 0xaad   : > { %v10289_v50 = vpop.eup %10288  ;;  %v7910_v59 = vmul.f32 %v9417_v39, %v6833_v57  ;;  %v7909_v2 = vmul.f32 %v9414_v58, %v6818_v19  ;;  %v17634_v10 = vunpack.c.h.bf16 %v16345_v33  ;;  %v8036_v20 = vmul.f32 %v7908_v7, %v17635_v60 }
 0xaae   : > { %v10291_v40 = vpop.eup %10290  ;;  %v8554_v43 = vrot.slane %v8553_v17, 4  ;;  %v16787_v54 = vadd.f32 1.0, %v10289_v50  ;;  %v8561_v42 = vsel %vm8046_vm12, %v8033_v14, 0.0  ;;  %v8560_v16 = vsel %vm8046_vm12, %v8032_v55, 0.0 }
 0xaaf   : > { %v7911_v53 = vmul.f32 %v17634_v10, %v6848_v22  ;;  %v8569_v18 = vsel %vm8046_vm12, %v8034_v35, 0.0  ;;  %v16792_v39 = vadd.f32 1.0, %v10291_v40  ;;  %v8041_v8 = vmul.f32 %v7913_v3, %v7763_v48 }
 0xab0   : > { %v8570_v58 = vsel %vm8046_vm12, %v8035_v13, 0.0  ;;  %v8040_v33 = vmul.f32 %v7912_v24, %v7757_v30  ;;  %10296 = vrcp.f32 %v16787_v54  ;;  %v8038_v44 = vmul.f32 %v7910_v59, %v16698_v62 }
 0xab1   : > { %v10293_v1 = vpop.eup %10292  ;;  %v8037_v5 = vmul.f32 %v7909_v2, %v7737_v15  ;;  %v8039_v26 = vmul.f32 %v7911_v53, %v7750_v29  ;;  %v8562_v21 = vadd.f32 %v8561_v42, %v8560_v16  ;;  %v8571_v9 = vadd.f32 %v8570_v58, %v8569_v18 }
 0xab2   : > { %v10295_v27 = vpop.eup %10294  ;;  %v6896_v32 = vmul.f32 %v10293_v1, %v16745_v45  ;;  %v6906_v63 = vand.u32 2147483648, %v16745_v45  ;;  %10298 = vrcp.f32 %v16792_v39  ;;  %vm6900_vm9 = vweird.f32 %v16745_v45 }
 0xab3   : > { %vm6901_vm7 = vweird.f32 %v10293_v1  ;;  %v6904_v31 = vand.u32 2147483647, %v16745_v45  ;;  %v8578_v47 = vsel %vm8046_vm12, %v8036_v20, 0.0  ;;  %v16803_v6 = vadd.f32 %v8554_v43, %v8553_v17  ;;  %v7776_v50 = vpop.permute.xlu2 %7775  ;;  %v7770_v29 = vpop.permute.xlu1 %7769 }
 0xab4   : > { %v6897_v25 = vsub.f32 1.0, %v6896_v32  ;;  %v8597_v15 = vsel %vm8046_vm12, %v8041_v8, 0.0  ;;  %v16806_v62 = vadd.f32 1.0, %v10295_v27  ;;  %v8596_v36 = vsel %vm8046_vm12, %v8040_v33, 0.0  ;;  %vm16812_vm14 = vmor %vm6900_vm9, %vm6901_vm7 }
 0xab5   : > { %v8579_v56 = vsel %vm8046_vm12, %v8037_v5, 0.0  ;;  %v8588_v51 = vsel %vm8046_vm12, %v8039_v26, 0.0  ;;  %v8587_v4 = vsel %vm8046_vm12, %v8038_v44, 0.0  ;;  %v8563_v46 = vrot.slane %v8562_v21, 4 }
 0xab6   : > { %v6898_v41 = vmul.f32 %v10293_v1, %v6897_v25  ;;  %v10297_v49 = vpop.eup %10296  ;;  %v6907_v0 = vor.u32 1.1754944e-38, %v6906_v63  ;;  %10300 = vrcp.f32 %v16806_v62  ;;  %v8572_v11 = vrot.slane %v8571_v9, 4 }
 0xab7   : > { %vm6905_vm5 = vcmp.eq.f32.partialorder %v6904_v31, 8.507059e+37  ;;  %v6926_v12 = vmul.f32 %v10297_v49, %v16787_v54  ;;  %v8580_v17 = vadd.f32 %v8579_v56, %v8578_v47  ;;  %v8589_v38 = vadd.f32 %v8588_v51, %v8587_v4 }
 0xab8   : > { %v6899_v45 = vadd.f32 %v10293_v1, %v6898_v41  ;;  %v10299_v7 = vpop.eup %10298  ;;  %vm6930_vm13 = vweird.f32 %v16787_v54  ;;  %v6936_v61 = vand.u32 2147483648, %v16787_v54  ;;  %vm6931_vm3 = vweird.f32 %v10297_v49 }
 0xab9   : > { %v6927_v19 = vsub.f32 1.0, %v6926_v12  ;;  %v6881_v22 = vmul.f32 %v10299_v7, %v16792_v39  ;;  %v6934_v55 = vand.u32 2147483647, %v16787_v54  ;;  %vm6885_vm1 = vweird.f32 %v16792_v39  ;;  %vm16830_vm2 = vmor %vm6930_vm13, %vm6931_vm3 }
 0xaba   : > { %v6903_v57 = vsel %vm16812_vm14, %v10293_v1, %v6899_v45  ;;  %v6891_v35 = vand.u32 2147483648, %v16792_v39  ;;  %vm6886_vm15 = vweird.f32 %v10299_v7  ;;  %v6889_v24 = vand.u32 2147483647, %v16792_v39 }
 0xabb   : > { %v6908_v14 = vsel %vm6905_vm5, %v6907_v0, %v6903_v57  ;;  %v6928_v3 = vmul.f32 %v10297_v49, %v6927_v19  ;;  %v6882_v13 = vsub.f32 1.0, %v6881_v22  ;;  %v8598_v48 = vadd.f32 %v8597_v15, %v8596_v36  ;;  %vm16839_vm8 = vmor %vm6885_vm1, %vm6886_vm15  ;;  %v7789_v34 = vpop.permute.xlu2 %7788 }
 0xabc   : > { %v10301_v40 = vpop.eup %10300  ;;  %v8564_v59 = vadd.f32 %v8563_v46, %v8562_v21  ;;  %v8573_v30 = vadd.f32 %v8572_v11, %v8571_v9  ;;  %v8581_v2 = vrot.slane %v8580_v17, 4  ;;  %v17640_v53 = vunpack.c.h.bf16 %v16559_v52 }
 0xabd   : > { %v6929_v20 = vadd.f32 %v10297_v49, %v6928_v3  ;;  %v6937_v43 = vor.u32 1.1754944e-38, %v6936_v61  ;;  %v6883_v42 = vmul.f32 %v10299_v7, %v6882_v13  ;;  %v8590_v16 = vrot.slane %v8589_v38, 4 }
 0xabe   : > { %v7915_v60 = vmul.f32 %v17640_v53, %v6908_v14  ;;  %vm6935_vm10 = vcmp.eq.f32.partialorder %v6934_v55, 8.507059e+37  ;;  %v6892_v54 = vor.u32 1.1754944e-38, %v6891_v35  ;;  %v6911_v1 = vmul.f32 %v10301_v40, %v16806_v62 }
 0xabf   : > { %v6933_v8 = vsel %vm16830_vm2, %v10297_v49, %v6929_v20  ;;  %v6884_v58 = vadd.f32 %v10299_v7, %v6883_v42  ;;  %vm6890_vm6 = vcmp.eq.f32.partialorder %v6889_v24, 8.507059e+37  ;;  %v6921_v33 = vand.u32 2147483648, %v16806_v62 }
 0xac0   : > { %v6912_v27 = vsub.f32 1.0, %v6911_v1  ;;  %vm6915_vm0 = vweird.f32 %v16806_v62  ;;  %vm6916_vm11 = vweird.f32 %v10301_v40  ;;  %v6919_v39 = vand.u32 2147483647, %v16806_v62 }
 0xac1   : > { %v8582_v44 = vadd.f32 %v8581_v2, %v8580_v17  ;;  %v8043_v5 = vmul.f32 %v7915_v60, %v7776_v50  ;;  %v6938_v26 = vsel %vm6935_vm10, %v6937_v43, %v6933_v8  ;;  %v6888_v32 = vsel %vm16839_vm8, %v10299_v7, %v6884_v58  ;;  %vm16853_vm9 = vmor %vm6915_vm0, %vm6916_vm11  ;;  %v7783_v7 = vpop.permute.xlu1 %7782 }
 0xac2   : > { %v8591_v21 = vadd.f32 %v8590_v16, %v8589_v38  ;;  %v6893_v9 = vsel %vm6890_vm6, %v6892_v54, %v6888_v32  ;;  %v6913_v63 = vmul.f32 %v10301_v40, %v6912_v27  ;;  %v8599_v25 = vrot.slane %v8598_v48, 4 }
 0xac3   : > { %v8565_v31 = vrot.slane %v8564_v59, 2  ;;  %v7914_v47 = vmul.f32 %v9425_v28, %v6893_v9  ;;  %v6922_v36 = vor.u32 1.1754944e-38, %v6921_v33  ;;  %v8574_v62 = vrot.slane %v8573_v30, 2  ;;  %v6957_v9 = vld [vmem:[%s10948_s22 + $0x38] sm:$0xff] }
 0xac4   : > { %v17645_v56 = vunpack.c.h.bf16 %v16620_v23  ;;  %v6914_v41 = vadd.f32 %v10301_v40, %v6913_v63  ;;  %vm6920_vm7 = vcmp.eq.f32.partialorder %v6919_v39, 8.507059e+37  ;;  %v8556_v49 = vrot.slane %v16803_v6, 2 }
 0xac5   : > { %v8583_v4 = vrot.slane %v8582_v44, 2  ;;  %v8606_v46 = vsel %vm8046_vm12, %v8043_v5, 0.0  ;;  %v8042_v0 = vmul.f32 %v7914_v47, %v7770_v29  ;;  %v8592_v52 = vrot.slane %v8591_v21, 2 }
 0xac6   : > { %v7917_v51 = vmul.f32 %v17645_v56, %v6938_v26  ;;  %v6918_v28 = vsel %vm16853_vm9, %v10301_v40, %v6914_v41  ;;  %v8600_v11 = vadd.f32 %v8599_v25, %v8598_v48  ;;  %v8566_v45 = vadd.f32 %v8565_v31, %v8564_v59 }
 0xac7   : > { %v8605_v12 = vsel %vm8046_vm12, %v8042_v0, 0.0  ;;  %v6923_v17 = vsel %vm6920_vm7, %v6922_v36, %v6918_v28  ;;  %v8575_v38 = vadd.f32 %v8574_v62, %v8573_v30  ;;  %v8557_v22 = vadd.f32 %v8556_v49, %v16803_v6 }
 0xac8   : > { %v8045_v61 = vmul.f32 %v7917_v51, %v7789_v34  ;;  %v8607_v57 = vadd.f32 %v8606_v46, %v8605_v12  ;;  %v7916_v19 = vmul.f32 %v9429_v37, %v6923_v17  ;;  %v8584_v14 = vadd.f32 %v8583_v4, %v8582_v44 }
 0xac9   : > { %v8593_v55 = vadd.f32 %v8592_v52, %v8591_v21  ;;  %v8601_v3 = vrot.slane %v8600_v11, 2  ;;  %v8567_v13 = vrot.slane %v8566_v45, 1  ;;  %v8576_v24 = vrot.slane %v8575_v38, 1 }
 0xaca   : > { %v8608_v35 = vrot.slane %v8607_v57, 4  ;;  %v8044_v50 = vmul.f32 %v7916_v19, %v7783_v7  ;;  %v8615_v40 = vsel %vm8046_vm12, %v8045_v61, 0.0  ;;  %v8558_v30 = vrot.slane %v8557_v22, 1 }
 0xacb   : > { %v8585_v2 = vrot.slane %v8584_v14, 1  ;;  %v8594_v23 = vrot.slane %v8593_v55, 1  ;;  %v8602_v53 = vadd.f32 %v8601_v3, %v8600_v11  ;;  %v8568_v6 = vadd.f32 %v8567_v13, %v8566_v45 }
 0xacc   : > { %v8609_v48 = vadd.f32 %v8608_v35, %v8607_v57  ;;  %v8614_v59 = vsel %vm8046_vm12, %v8044_v50, 0.0  ;;  %v8577_v20 = vadd.f32 %v8576_v24, %v8575_v38  ;;  %v8559_v29 = vadd.f32 %v8558_v30, %v8557_v22 }
 0xacd   : > { %v8616_v10 = vadd.f32 %v8615_v40, %v8614_v59  ;;  %v8586_v42 = vadd.f32 %v8585_v2, %v8584_v14  ;;  %v8595_v18 = vadd.f32 %v8594_v23, %v8593_v55  ;;  %v8603_v1 = vrot.slane %v8602_v53, 1 }
 0xace   : > { %v8610_v37 = vrot.slane %v8609_v48, 2  ;;  %vm17646_vm14 = vcmask 1041409   ;;  %vm17647_vm5 = vcmask 1042434   ;;  %vm17648_vm13 = vcmask 1043459  }
 0xacf   : > { %v8617_v60 = vrot.slane %v8616_v10, 4  ;;  %v8743_v8 = vsel %vm17646_vm14, %v8568_v6, %v8559_v29  ;;  %vm17651_vm3 = vcmask 1044484   ;;  %v8604_v26 = vadd.f32 %v8603_v1, %v8602_v53 }
 0xad0   : > { %v8611_v43 = vadd.f32 %v8610_v37, %v8609_v48  ;;  %v8744_v33 = vsel %vm17647_vm5, %v8577_v20, %v8743_v8  ;;  %vm17653_vm1 = vcmask 1045509   ;;  %vm17654_vm15 = vcmask 1047559  }
 0xad1   : > { %v8618_v16 = vadd.f32 %v8617_v60, %v8616_v10  ;;  %v8745_v27 = vsel %vm17648_vm13, %v8586_v42, %v8744_v33 }
 0xad2   : > { %v8612_v54 = vrot.slane %v8611_v43, 1  ;;  %v8746_v44 = vsel %vm17651_vm3, %v8595_v18, %v8745_v27 }
 0xad3   : > { %v8619_v58 = vrot.slane %v8618_v16, 2  ;;  %v8747_v21 = vsel %vm17653_vm1, %v8604_v26, %v8746_v44 }
 0xad4   : > { %v8613_v5 = vadd.f32 %v8612_v54, %v8611_v43 }
 0xad5   : > { %v8620_v39 = vadd.f32 %v8619_v58, %v8618_v16 }
 0xad6   : > { %v8748_v25 = vsel %vm8697_vm4, %v8613_v5, %v8747_v21 }
 0xad7   : > { %v8621_v32 = vrot.slane %v8620_v39, 1 }
 0xad9   : > { %v8622_v63 = vadd.f32 %v8621_v32, %v8620_v39 }
 0xadb   : > { %v8749_v31 = vsel %vm17654_vm15, %v8622_v63, %v8748_v25 }
 0xadc   : > { %v8765_v47 = vadd.f32 %v8749_v31, %v6957_v9 }
 0xade   : > { %8773 = vst.msk [vmem:[%s10948_s22 + $0x38] sm:$0xff] %vm8046_vm12, %v8765_v47 }
 0xadf   : > { %10492 = shalt.err (!%p10489_p1)
}
 0xae0   : > { %s10625_s3 = smov 128   ;;  %s10626_s22 = smov 8  }
 0xae1   : > { %9525 = dma.vmem_to_hbm [thread:$0]  (%p10810_p7), %s8789_s24, 1024, %s8791_s28, %s8775_s10, %s10625_s3, %s10625_s3, %s10626_s22  }
 0xae2 PF: > { %s17655_s16 = sld [smem:[#allocation25_spill]]  ;;  %p9542_p9 = scmp.ge.s32.totalorder %s10607_s27, 2 }
 0xae4   : > { %p9535_p4 = pnand %p9542_p9, %p10818_p10 }
 0xae6   : > { %p9536_p12 = pneg %p9535_p4 }
 0xae8   : > { %s8805_s2 = sand.u32 1, %s17655_s16  }
 0xae9   : > { %s8806_s23 = scalar_lea.sflag [#allocation5], %s8805_s2 }
 0xaea   : > { %10562 = dma.done.wait (%p9536_p12), %s8806_s23, 1024  }
 0xaeb   : > { %10564 = vsyncadd (%p9536_p12), %s8806_s23, 4294966272  ;;  %s34_s27 = sadd.s32 1, %s10607_s27   ;;  %s17657_s1 = sld [smem:[#allocation31_spill]] }
 0xaec   : > { %p31_p3 = scmp.ge.s32.totalorder %s34_s27, 6   ;;  %s17658_s7 = sld [smem:[#allocation26_spill]] }
 0xaed   : > { %s17659_s22 = sld [smem:[#allocation30_spill]]  ;;  %s17662_s17 = smov %s10571_s18 }
 0xaee   : > { %s17660_s29 = sld [smem:[#allocation28_spill]]  ;;  %s17663_s18 = smov %s10575_s19 }
 0xaef   : > { %s17661_s30 = sld [smem:[#allocation29_spill]]  ;;  %s17665_s20 = smov %s10583_s21 }
 0xaf0   : > { %s17667_s23 = smov %s10599_s25  ;;  %s17668_s24 = smov %s10603_s26 }
 0xaf1   : > { %s17664_s19 = smov %s17657_s1  ;;  %33 = sbr.rel (!%p31_p3) target bundleno = 25 (0x19), region = 174 }
 0xaf2   : > { %s17666_s21 = smov %s17658_s7 }
 0xaf4   : > { %s17669_s25 = smov %s17660_s29 }
 0xaf5   : > { %s17670_s26 = smov %s17661_s30 }
 0xaf6   :  { %8812 = vsyncpa [#allocation4], 1 }
 0xaf7   :  { %8814 = vsyncpa [#allocation4 + $0x1], 1 }
 0xaf8   :  { %8815 = vsyncpa [#allocation7], 1 }
 0xaf9   :  { %8817 = vsyncpa [#allocation7 + $0x1], 1 }
 0xafa   :  { %8818 = vsyncpa [#allocation10], 1 }
 0xafb   :  { %8820 = vsyncpa [#allocation10 + $0x1], 1 }
 0xafc   :  { %8821 = vsyncpa [#allocation13], 1 }
 0xafd   :  { %8822 = vsyncpa [#allocation5], 1 }
 0xafe   :  { %8824 = vsyncpa [#allocation5 + $0x1], 1 }

</bundles_post_ra>
